<compile_context>
chip_gen: v7x
topology: tpu7x:2x2x1
jax: 0.10.0
libtpu: 0.0.40
codegen_flags: <defaults>
</compile_context>

<pallas_src>
import jax
import jax.numpy as jnp
import numpy as np
from jax import lax
from jax.experimental import pallas as pl
from jax.experimental.pallas import tpu as pltpu

# Scoped-VMEM limit: above the 16/32 MiB defaults, below v7x's 64 MiB physical.
_VMEM_LIMIT = 48 * 1024 * 1024


def _round_up(x, m):
    return ((x + m - 1) // m) * m


def _pick_time_chunk(S, max_chunk=128):
    # TODO(synk): on v7x (64 MiB VMEM/TC) use max_chunk≈64 for large nhid;
    # budget = 2 buffers x (Tc*B*I + Tc*B*H)*4B + resident weights.
    tc = min(S, max_chunk)
    while S % tc != 0:
        tc -= 1
    return tc


# --------------------------------------------------------------------------
# Fused multi-layer LSTM kernel.
# Grid = (batch_tiles [parallel], time_chunks [arbitrary]).
# Per layer: chunk-wide input projection (one big matmul into gate scratch),
# then a serial fori_loop carrying (h, c) with only the recurrent matmul.
# --------------------------------------------------------------------------
def _make_lstm_stack_kernel(L, Hp, Tc, wdt):
    unroll = Tc if Tc <= 16 else 8

    def kernel(*args):
        x_ref, h0_ref, c0_ref = args[0:3]
        w_ih = [args[3 + 3 * l] for l in range(L)]   # (I_lp, 4Hp)
        w_hh = [args[4 + 3 * l] for l in range(L)]   # (Hp, 4Hp)
        b_rf = [args[5 + 3 * l] for l in range(L)]   # (1, 4Hp) f32
        y_ref, hn_ref, cn_ref = args[3 + 3 * L: 6 + 3 * L]
        h_sc, c_sc, gate_sc, hseq_sc = args[6 + 3 * L: 10 + 3 * L]

        ti = pl.program_id(1)
        bt = y_ref.shape[1]

        @pl.when(ti == 0)
        def _():
            # Start of this batch tile's time sweep: load initial state.
            h_sc[...] = h0_ref[...]
            c_sc[...] = c0_ref[...]

        for l in range(L):
            # ---- chunk-wide input projection: (Tc*bt, I) @ (I, 4Hp) -------
            if l == 0:
                x_flat = x_ref[...].reshape(Tc * bt, x_ref.shape[-1])
            else:
                x_flat = hseq_sc[...].reshape(Tc * bt, Hp).astype(wdt)
            gate_sc[...] = (
                jnp.dot(x_flat, w_ih[l][...],
                        preferred_element_type=jnp.float32)
                + b_rf[l][...]
            ).reshape(Tc, bt, 4 * Hp)

            whh = w_hh[l][...]                      # resident (Hp, 4Hp)
            last_layer = (l == L - 1)

            # ---- serial recurrence: only (bt,Hp)@(Hp,4Hp) on the path -----
            def step(ts, carry, _whh=whh, _last=last_layer):
                h, c = carry
                gates = gate_sc[ts] + jnp.dot(
                    h.astype(wdt), _whh, preferred_element_type=jnp.float32)
                i_g = jax.nn.sigmoid(gates[:, 0 * Hp:1 * Hp])
                f_g = jax.nn.sigmoid(gates[:, 1 * Hp:2 * Hp])
                g_g = jnp.tanh(gates[:, 2 * Hp:3 * Hp])
                o_g = jax.nn.sigmoid(gates[:, 3 * Hp:4 * Hp])
                c_new = f_g * c + i_g * g_g
                h_new = o_g * jnp.tanh(c_new)
                if _last:
                    y_ref[ts] = h_new.astype(y_ref.dtype)
                else:
                    hseq_sc[ts] = h_new
                return (h_new, c_new)

            h_fin, c_fin = lax.fori_loop(0, Tc, step, (h_sc[l], c_sc[l]),
                                         unroll=unroll)
            h_sc[l] = h_fin
            c_sc[l] = c_fin

        # Only the final h_n / c_n matter: write once per batch tile.
        @pl.when(ti == pl.num_programs(1) - 1)
        def _():
            hn_ref[...] = h_sc[...]
            cn_ref[...] = c_sc[...]

    return kernel


def lstm_stack(x, h0, c0, layers, *, max_chunk=128, batch_tile=None):
    """x: (S, Bp, Ip) (padded), h0/c0: (L, Bp, Hp) f32 (padded).
    layers[l] = {"w_ih": (I_lp,4Hp), "w_hh": (Hp,4Hp), "b": (1,4Hp) f32}."""
    S, Bp, Ip = x.shape
    L, _, Hp = h0.shape
    Tc = _pick_time_chunk(S, max_chunk)
    nT = S // Tc
    # v7x: pass batch_tile=Bp//2 (multiple of 8) so the parallel batch axis
    # shards the recurrence across both TensorCores.
    bt = Bp if batch_tile is None else batch_tile
    assert Bp % bt == 0 and (bt == Bp or bt % 8 == 0)
    nB = Bp // bt
    wdt = layers[0]["w_ih"].dtype

    kernel = _make_lstm_stack_kernel(L, Hp, Tc, wdt)

    def call(single_buffer):
        def const_spec(shape, index_map):
            # Constant / rarely-changing block index -> single-buffer to halve
            # resident VMEM (weights, bias, h0, c0).
            if single_buffer:
                return pl.BlockSpec(shape, index_map,
                                    pipeline_mode=pl.Buffered(1))
            return pl.BlockSpec(shape, index_map)

        weight_args, weight_specs = [], []
        for lp in layers:
            for name in ("w_ih", "w_hh", "b"):
                weight_args.append(lp[name])
                weight_specs.append(
                    const_spec(lp[name].shape, lambda b, t: (0, 0)))

        state_in_spec = const_spec((L, bt, Hp), lambda b, t: (0, b, 0))

        return pl.pallas_call(
            kernel,
            out_shape=(jax.ShapeDtypeStruct((S, Bp, Hp), jnp.float32),
                       jax.ShapeDtypeStruct((L, Bp, Hp), jnp.float32),
                       jax.ShapeDtypeStruct((L, Bp, Hp), jnp.float32)),
            grid_spec=pltpu.PrefetchScalarGridSpec(
                num_scalar_prefetch=0,
                grid=(nB, nT),
                in_specs=[
                    pl.BlockSpec((Tc, bt, Ip), lambda b, t: (t, b, 0)),
                    state_in_spec,
                    const_spec((L, bt, Hp), lambda b, t: (0, b, 0)),
                    *weight_specs,
                ],
                out_specs=[
                    pl.BlockSpec((Tc, bt, Hp), lambda b, t: (t, b, 0)),
                    pl.BlockSpec((L, bt, Hp), lambda b, t: (0, b, 0)),
                    pl.BlockSpec((L, bt, Hp), lambda b, t: (0, b, 0)),
                ],
                scratch_shapes=[
                    pltpu.VMEM((L, bt, Hp), jnp.float32),        # h state
                    pltpu.VMEM((L, bt, Hp), jnp.float32),        # c state
                    pltpu.VMEM((Tc, bt, 4 * Hp), jnp.float32),   # gate pre-acts
                    pltpu.VMEM((Tc, bt, Hp) if L > 1 else (8, 128),
                               jnp.float32),                     # inter-layer y
                ],
            ),
            # Time axis carries state through scratch -> MUST stay "arbitrary".
            compiler_params=pltpu.CompilerParams(
                dimension_semantics=("parallel", "arbitrary"),
                vmem_limit_bytes=_VMEM_LIMIT),
        )(x, h0, c0, *weight_args)

    try:
        return call(True)
    except Exception:
        # Fallback if single-buffering via pipeline_mode is unavailable.
        return call(False)


# --------------------------------------------------------------------------
# Decoder: V-tiled linear + online log-softmax.
# Kernel A: stream (Hp, tv) weight tiles, write logits + per-row logsumexp.
# Kernel B: normalize (logits - lse).
# --------------------------------------------------------------------------
def _make_decoder_logits_kernel(wdt):
    def kernel(x_ref, w_ref, b_ref, logits_ref, lse_ref, m_sc, l_sc):
        vi = pl.program_id(1)

        @pl.when(vi == 0)
        def _():
            m_sc[...] = jnp.full(m_sc.shape, -jnp.inf, m_sc.dtype)
            l_sc[...] = jnp.zeros(l_sc.shape, l_sc.dtype)

        logits = jnp.dot(x_ref[...].astype(wdt), w_ref[...],
                         preferred_element_type=jnp.float32) + b_ref[...]
        logits_ref[...] = logits

        m_prev = m_sc[...]
        m_new = jnp.maximum(m_prev, jnp.max(logits, axis=-1, keepdims=True))
        l_sc[...] = (l_sc[...] * jnp.exp(m_prev - m_new)
                     + jnp.sum(jnp.exp(logits - m_new), axis=-1, keepdims=True))
        m_sc[...] = m_new

        @pl.when(vi == pl.num_programs(1) - 1)
        def _():
            lse_ref[...] = m_sc[...] + jnp.log(l_sc[...])

    return kernel


def _decoder_normalize_kernel(logits_ref, lse_ref, out_ref):
    out_ref[...] = (logits_ref[...] - lse_ref[...]).astype(out_ref.dtype)


def decoder_logsoftmax(x_flat, w_t, b, ntoken, *, tile_n=256, tile_v=2048):
    """x_flat: (N, Hp) f32, w_t: (Hp, Vp), b: (1, Vp) f32 (padded vocab cols
    carry a large-negative bias). Returns (N, ntoken) f32 log-probs."""
    N, Hp = x_flat.shape
    Vp = w_t.shape[-1]
    wdt = w_t.dtype

    tn = min(tile_n, _round_up(N, 8))
    Np = _round_up(N, tn)
    if Np != N:
        x_flat = jnp.pad(x_flat, ((0, Np - N), (0, 0)))
    tv = min(tile_v, Vp)
    while Vp % tv != 0:
        tv -= 128
    nN, nV = Np // tn, Vp // tv

    logits, lse = pl.pallas_call(
        _make_decoder_logits_kernel(wdt),
        out_shape=(jax.ShapeDtypeStruct((Np, Vp), jnp.float32),
                   jax.ShapeDtypeStruct((Np, 1), jnp.float32)),
        grid_spec=pltpu.PrefetchScalarGridSpec(
            num_scalar_prefetch=0,
            grid=(nN, nV),
            in_specs=[
                pl.BlockSpec((tn, Hp), lambda i, j: (i, 0)),
                pl.BlockSpec((Hp, tv), lambda i, j: (0, j)),
                pl.BlockSpec((1, tv), lambda i, j: (0, j)),
            ],
            out_specs=[
                pl.BlockSpec((tn, tv), lambda i, j: (i, j)),
                pl.BlockSpec((tn, 1), lambda i, j: (i, 0)),
            ],
            scratch_shapes=[pltpu.VMEM((tn, 1), jnp.float32),
                            pltpu.VMEM((tn, 1), jnp.float32)],
        ),
        compiler_params=pltpu.CompilerParams(
            dimension_semantics=("parallel", "arbitrary"),
            vmem_limit_bytes=_VMEM_LIMIT),
    )(x_flat, w_t, b)

    log_probs = pl.pallas_call(
        _decoder_normalize_kernel,
        out_shape=jax.ShapeDtypeStruct((Np, Vp), jnp.float32),
        grid_spec=pltpu.PrefetchScalarGridSpec(
            num_scalar_prefetch=0,
            grid=(nN, nV),
            in_specs=[pl.BlockSpec((tn, tv), lambda i, j: (i, j)),
                      pl.BlockSpec((tn, 1), lambda i, j: (i, 0))],
            out_specs=pl.BlockSpec((tn, tv), lambda i, j: (i, j)),
        ),
        compiler_params=pltpu.CompilerParams(
            dimension_semantics=("parallel", "parallel"),
            vmem_limit_bytes=_VMEM_LIMIT),
    )(logits, lse)

    return log_probs[:N, :ntoken]


# --------------------------------------------------------------------------
# Parameter layout: natural (PyTorch-like) params -> padded kernel params.
# --------------------------------------------------------------------------
def _pad_gate_matrix(w_t, H, Hp, K, Kp):
    """w_t: (K, 4H) gate-stacked [i|f|g|o] -> (Kp, 4Hp), zero padded per gate."""
    out = jnp.zeros((Kp, 4 * Hp), w_t.dtype)
    for g in range(4):
        out = out.at[:K, g * Hp:g * Hp + H].set(w_t[:, g * H:(g + 1) * H])
    return out


def _pad_gate_bias(b, H, Hp):
    out = jnp.zeros((4 * Hp,), b.dtype)
    for g in range(4):
        out = out.at[g * Hp:g * Hp + H].set(b[g * H:(g + 1) * H])
    return out


def prepare_kernel_params(params, weight_dtype=jnp.float32):
    ninp = params["embedding"].shape[1]
    nhid = params["lstm"][0]["whh"].shape[1]
    ntoken = params["dec_w"].shape[0]
    Hp, Ip, Vp = _round_up(nhid, 128), _round_up(ninp, 128), _round_up(ntoken, 128)

    kp = {"embedding": jnp.pad(params["embedding"], ((0, 0), (0, Ip - ninp)))}
    kp["lstm"] = []
    for l, lp in enumerate(params["lstm"]):
        in_dim = lp["wih"].shape[1]
        in_dim_p = Ip if l == 0 else Hp
        kp["lstm"].append({
            "w_ih": _pad_gate_matrix(lp["wih"].T, nhid, Hp, in_dim,
                                     in_dim_p).astype(weight_dtype),
            "w_hh": _pad_gate_matrix(lp["whh"].T, nhid, Hp, nhid,
                                     Hp).astype(weight_dtype),
            "b": _pad_gate_bias(lp["b"], nhid, Hp)[None, :],   # f32
        })
    dec_w_t = jnp.pad(params["dec_w"].T,
                      ((0, Hp - nhid), (0, Vp - ntoken))).astype(weight_dtype)
    dec_b = jnp.full((Vp,), -1e9, jnp.float32).at[:ntoken].set(params["dec_b"])
    kp["dec_w_t"] = dec_w_t
    kp["dec_b"] = dec_b[None, :]
    kp["meta"] = dict(ntoken=ntoken, nhid=nhid, Hp=Hp)
    return kp


# --------------------------------------------------------------------------
# Full RNNModel forward (LSTM, eval mode -> dropout is identity).
# --------------------------------------------------------------------------
def rnn_model_forward(kparams, tokens, hidden):
    """tokens: (S, B) int32; hidden: (h0, c0) each (nlayers, B, nhid)."""
    meta = kparams["meta"]
    H, Hp, V = meta["nhid"], meta["Hp"], meta["ntoken"]
    h0, c0 = hidden
    L, B, _ = h0.shape
    S = tokens.shape[0]
    Bp = _round_up(B, 8)
    wdt = kparams["lstm"][0]["w_ih"].dtype

    # TODO(synk): nn.Embedding gather + nn.Dropout stay as plain-JAX glue.
    emb = kparams["embedding"][tokens].astype(wdt)           # (S, B, Ip)
    x = jnp.pad(emb, ((0, 0), (0, Bp - B), (0, 0)))
    h0p = jnp.pad(h0, ((0, 0), (0, Bp - B), (0, Hp - H))).astype(jnp.float32)
    c0p = jnp.pad(c0, ((0, 0), (0, Bp - B), (0, Hp - H))).astype(jnp.float32)

    y, hn, cn = lstm_stack(x, h0p, c0p, kparams["lstm"])
    hn, cn = hn[:, :B, :H], cn[:, :B, :H]

    x_flat = y[:, :B, :].reshape(S * B, Hp)     # padded H cols are exactly 0
    log_probs = decoder_logsoftmax(x_flat, kparams["dec_w_t"],
                                   kparams["dec_b"], V)
    return log_probs, (hn, cn)


# --------------------------------------------------------------------------
# Pure-JAX reference (natural, unpadded params).
# --------------------------------------------------------------------------
def reference_forward(params, tokens, hidden):
    h_all, c_all = hidden
    x = params["embedding"][tokens]
    H = params["lstm"][0]["whh"].shape[1]
    hns, cns = [], []
    for l, lp in enumerate(params["lstm"]):
        wih_t, whh_t, b = lp["wih"].T, lp["whh"].T, lp["b"]

        def step(carry, x_t, wih_t=wih_t, whh_t=whh_t, b=b):
            h, c = carry
            gates = x_t @ wih_t + h @ whh_t + b
            i = jax.nn.sigmoid(gates[:, 0 * H:1 * H])
            f = jax.nn.sigmoid(gates[:, 1 * H:2 * H])
            g = jnp.tanh(gates[:, 2 * H:3 * H])
            o = jax.nn.sigmoid(gates[:, 3 * H:4 * H])
            c = f * c + i * g
            h = o * jnp.tanh(c)
            return (h, c), h

        (hn, cn), x = lax.scan(step, (h_all[l], c_all[l]), x)
        hns.append(hn)
        cns.append(cn)
    S, B, _ = x.shape
    logits = x.reshape(S * B, H) @ params["dec_w"].T + params["dec_b"]
    return jax.nn.log_softmax(logits, -1), (jnp.stack(hns), jnp.stack(cns))


def init_params(key, ntoken, ninp, nhid, nlayers):
    keys = jax.random.split(key, 3 + 3 * nlayers)
    params = {"embedding": jax.random.uniform(keys[0], (ntoken, ninp),
                                              jnp.float32, -0.1, 0.1),
              "lstm": []}
    k = 1.0 / np.sqrt(nhid)
    idx = 1
    for l in range(nlayers):
        in_dim = ninp if l == 0 else nhid
        wih = jax.random.uniform(keys[idx], (4 * nhid, in_dim), jnp.float32, -k, k)
        whh = jax.random.uniform(keys[idx + 1], (4 * nhid, nhid), jnp.float32, -k, k)
        b = jax.random.uniform(keys[idx + 2], (4 * nhid,), jnp.float32, -k, k)
        idx += 3
        params["lstm"].append({"wih": wih, "whh": whh, "b": b})
    params["dec_w"] = jax.random.uniform(keys[idx], (ntoken, nhid),
                                         jnp.float32, -0.1, 0.1)
    params["dec_b"] = jax.random.uniform(keys[idx + 1], (ntoken,),
                                         jnp.float32, -0.05, 0.05)
    return params


if __name__ == "__main__":
    ntoken, ninp, nhid, nlayers = 128, 32, 32, 2
    seq_len, batch = 8, 2

    key = jax.random.PRNGKey(0)
    pkey, tkey = jax.random.split(key)
    params = init_params(pkey, ntoken, ninp, nhid, nlayers)
    tokens = jax.random.randint(tkey, (seq_len, batch), 0, ntoken, jnp.int32)
    hidden = (jnp.zeros((nlayers, batch, nhid), jnp.float32),
              jnp.zeros((nlayers, batch, nhid), jnp.float32))

    ref_lp, (ref_h, ref_c) = reference_forward(params, tokens, hidden)

    # f32 weights: strict numeric check.
    kparams = prepare_kernel_params(params, jnp.float32)
    log_probs, (h_n, c_n) = rnn_model_forward(kparams, tokens, hidden)
    jax.block_until_ready((log_probs, h_n, c_n))
    np.testing.assert_allclose(np.asarray(log_probs), np.asarray(ref_lp),
                               rtol=1e-4, atol=1e-4)
    np.testing.assert_allclose(np.asarray(h_n), np.asarray(ref_h),
                               rtol=1e-4, atol=1e-4)
    np.testing.assert_allclose(np.asarray(c_n), np.asarray(ref_c),
                               rtol=1e-4, atol=1e-4)

    # bf16 weights (halves resident weight VMEM / DMA; f32 accumulation kept):
    # exercised with loosened tolerances.
    kparams_bf16 = prepare_kernel_params(params, jnp.bfloat16)
    lp16, (h16, c16) = rnn_model_forward(kparams_bf16, tokens, hidden)
    jax.block_until_ready((lp16, h16, c16))
    np.testing.assert_allclose(np.asarray(lp16), np.asarray(ref_lp),
                               rtol=1e-1, atol=1e-1)

    assert log_probs.shape == (seq_len * batch, ntoken)
    assert h_n.shape == (nlayers, batch, nhid)
    assert c_n.shape == (nlayers, batch, nhid)
    print("KERNEL_OK")
</pallas_src>

<mosaic_0001>
module attributes {stable_mosaic.version = 11 : i64} {
  func.func @kernel(%arg0: i32, %arg1: i32, %arg2: memref<8x8x128xf32, #tpu.memory_space<vmem>>, %arg3: memref<2x8x128xf32, #tpu.memory_space<vmem>>, %arg4: memref<2x8x128xf32, #tpu.memory_space<vmem>>, %arg5: memref<128x512xf32, #tpu.memory_space<vmem>>, %arg6: memref<128x512xf32, #tpu.memory_space<vmem>>, %arg7: memref<1x512xf32, #tpu.memory_space<vmem>>, %arg8: memref<128x512xf32, #tpu.memory_space<vmem>>, %arg9: memref<128x512xf32, #tpu.memory_space<vmem>>, %arg10: memref<1x512xf32, #tpu.memory_space<vmem>>, %arg11: memref<8x8x128xf32, #tpu.memory_space<vmem>>, %arg12: memref<2x8x128xf32, #tpu.memory_space<vmem>>, %arg13: memref<2x8x128xf32, #tpu.memory_space<vmem>>, %arg14: memref<2x8x128xf32, #tpu.memory_space<vmem>>, %arg15: memref<2x8x128xf32, #tpu.memory_space<vmem>>, %arg16: memref<8x8x512xf32, #tpu.memory_space<vmem>>, %arg17: memref<8x8x128xf32, #tpu.memory_space<vmem>>) attributes {dimension_semantics = [#tpu.dimension_semantics<parallel>, #tpu.dimension_semantics<arbitrary>], iteration_bounds = array<i64: 1, 1>, scalar_prefetch = 0 : i64, scratch_operands = 4 : i64, tpu.core_type = #tpu.core_type<tc>, window_params = [{transform_indices = @transform_0, window_bounds = array<i64: 8, 8, 128>}, {pipeline_mode = #tpu.pipeline_mode<synchronous>, transform_indices = @transform_1, window_bounds = array<i64: 2, 8, 128>}, {pipeline_mode = #tpu.pipeline_mode<synchronous>, transform_indices = @transform_2, window_bounds = array<i64: 2, 8, 128>}, {pipeline_mode = #tpu.pipeline_mode<synchronous>, transform_indices = @transform_3, window_bounds = array<i64: 128, 512>}, {pipeline_mode = #tpu.pipeline_mode<synchronous>, transform_indices = @transform_4, window_bounds = array<i64: 128, 512>}, {pipeline_mode = #tpu.pipeline_mode<synchronous>, transform_indices = @transform_5, window_bounds = array<i64: 1, 512>}, {pipeline_mode = #tpu.pipeline_mode<synchronous>, transform_indices = @transform_6, window_bounds = array<i64: 128, 512>}, {pipeline_mode = #tpu.pipeline_mode<synchronous>, transform_indices = @transform_7, window_bounds = array<i64: 128, 512>}, {pipeline_mode = #tpu.pipeline_mode<synchronous>, transform_indices = @transform_8, window_bounds = array<i64: 1, 512>}, {transform_indices = @transform_9, window_bounds = array<i64: 8, 8, 128>}, {transform_indices = @transform_10, window_bounds = array<i64: 2, 8, 128>}, {transform_indices = @transform_11, window_bounds = array<i64: 2, 8, 128>}]} {
    %c0_i32 = arith.constant 0 : i32
    %0 = arith.cmpi eq, %arg1, %c0_i32 : i32
    %1 = arith.extui %0 : i1 to i32
    %c0_i32_0 = arith.constant 0 : i32
    %2 = arith.cmpi ne, %1, %c0_i32_0 : i32
    scf.if %2 {
      %c0_188 = arith.constant 0 : index
      %c0_189 = arith.constant 0 : index
      %c0_190 = arith.constant 0 : index
      %590 = vector.load %arg3[%c0_188, %c0_189, %c0_190] : memref<2x8x128xf32, #tpu.memory_space<vmem>>, vector<2x8x128xf32>
      %c0_191 = arith.constant 0 : index
      %c0_192 = arith.constant 0 : index
      %c0_193 = arith.constant 0 : index
      %591 = vector.load %arg14[%c0_191, %c0_192, %c0_193] : memref<2x8x128xf32, #tpu.memory_space<vmem>>, vector<2x8x128xf32>
      tpu.vector_store %arg14[%c0_191, %c0_192, %c0_193], %590 {strides = array<i32>} : memref<2x8x128xf32, #tpu.memory_space<vmem>>, vector<2x8x128xf32>,
      %c0_194 = arith.constant 0 : index
      %c0_195 = arith.constant 0 : index
      %c0_196 = arith.constant 0 : index
      %592 = vector.load %arg4[%c0_194, %c0_195, %c0_196] : memref<2x8x128xf32, #tpu.memory_space<vmem>>, vector<2x8x128xf32>
      %c0_197 = arith.constant 0 : index
      %c0_198 = arith.constant 0 : index
      %c0_199 = arith.constant 0 : index
      %593 = vector.load %arg15[%c0_197, %c0_198, %c0_199] : memref<2x8x128xf32, #tpu.memory_space<vmem>>, vector<2x8x128xf32>
      tpu.vector_store %arg15[%c0_197, %c0_198, %c0_199], %592 {strides = array<i32>} : memref<2x8x128xf32, #tpu.memory_space<vmem>>, vector<2x8x128xf32>,
    } else {
    }
    %c0 = arith.constant 0 : index
    %c0_1 = arith.constant 0 : index
    %c0_2 = arith.constant 0 : index
    %3 = vector.load %arg2[%c0, %c0_1, %c0_2] : memref<8x8x128xf32, #tpu.memory_space<vmem>>, vector<8x8x128xf32>
    %4 = vector.shape_cast %3 : vector<8x8x128xf32> to vector<64x128xf32>
    %c0_3 = arith.constant 0 : index
    %c0_4 = arith.constant 0 : index
    %5 = vector.load %arg5[%c0_3, %c0_4] : memref<128x512xf32, #tpu.memory_space<vmem>>, vector<128x512xf32>
    %cst = arith.constant dense<0.000000e+00> : vector<64x512xf32>
    %6 = tpu.matmul %4, %5, %cst {dimension_numbers = #tpu.dot_dimension_numbers<[1], [0], [0], [1], [0, 0, 1, 1], [], []>} : vector<64x128xf32>, vector<128x512xf32>, vector<64x512xf32> -> vector<64x512xf32>
    %c0_5 = arith.constant 0 : index
    %c0_6 = arith.constant 0 : index
    %7 = vector.load %arg7[%c0_5, %c0_6] : memref<1x512xf32, #tpu.memory_space<vmem>>, vector<1x512xf32>
    %8 = vector.broadcast %7 : vector<1x512xf32> to vector<64x512xf32>
    %9 = arith.addf %6, %8 : vector<64x512xf32>
    %10 = vector.shape_cast %9 : vector<64x512xf32> to vector<8x8x512xf32>
    %c0_7 = arith.constant 0 : index
    %c0_8 = arith.constant 0 : index
    %c0_9 = arith.constant 0 : index
    %11 = vector.load %arg16[%c0_7, %c0_8, %c0_9] : memref<8x8x512xf32, #tpu.memory_space<vmem>>, vector<8x8x512xf32>
    tpu.vector_store %arg16[%c0_7, %c0_8, %c0_9], %10 {strides = array<i32>} : memref<8x8x512xf32, #tpu.memory_space<vmem>>, vector<8x8x512xf32>,
    %c0_10 = arith.constant 0 : index
    %c0_11 = arith.constant 0 : index
    %12 = vector.load %arg6[%c0_10, %c0_11] : memref<128x512xf32, #tpu.memory_space<vmem>>, vector<128x512xf32>
    %c0_12 = arith.constant 0 : index
    %c0_13 = arith.constant 0 : index
    %c0_14 = arith.constant 0 : index
    %13 = vector.load %arg14[%c0_12, %c0_13, %c0_14] : memref<2x8x128xf32, #tpu.memory_space<vmem>>, vector<1x8x128xf32>
    %14 = vector.shape_cast %13 : vector<1x8x128xf32> to vector<8x128xf32>
    %c0_15 = arith.constant 0 : index
    %c0_16 = arith.constant 0 : index
    %c0_17 = arith.constant 0 : index
    %15 = vector.load %arg15[%c0_15, %c0_16, %c0_17] : memref<2x8x128xf32, #tpu.memory_space<vmem>>, vector<1x8x128xf32>
    %16 = vector.shape_cast %15 : vector<1x8x128xf32> to vector<8x128xf32>
    %c0_i32_18 = arith.constant 0 : i32
    %17 = arith.index_cast %c0_i32_18 : i32 to index
    %c0_19 = arith.constant 0 : index
    %c0_20 = arith.constant 0 : index
    %18 = vector.load %arg16[%17, %c0_19, %c0_20] : memref<8x8x512xf32, #tpu.memory_space<vmem>>, vector<1x8x512xf32>
    %19 = vector.shape_cast %18 : vector<1x8x512xf32> to vector<8x512xf32>
    %cst_21 = arith.constant dense<0.000000e+00> : vector<8x512xf32>
    %20 = tpu.matmul %14, %12, %cst_21 {dimension_numbers = #tpu.dot_dimension_numbers<[1], [0], [0], [1], [0, 0, 1, 1], [], []>} : vector<8x128xf32>, vector<128x512xf32>, vector<8x512xf32> -> vector<8x512xf32>
    %21 = arith.addf %19, %20 : vector<8x512xf32>
    %22 = vector.extract_strided_slice %21 {offsets = [0, 0], sizes = [8, 128], strides = [1, 1]} : vector<8x512xf32> to vector<8x128xf32>
    %23 = arith.negf %22 : vector<8x128xf32>
    %24 = math.exp %23 : vector<8x128xf32>
    %cst_22 = arith.constant 1.000000e+00 : f32
    %25 = vector.broadcast %cst_22 : f32 to vector<8x128xf32>
    %26 = arith.addf %25, %24 : vector<8x128xf32>
    %27 = arith.divf %25, %26 : vector<8x128xf32>
    %28 = vector.extract_strided_slice %21 {offsets = [0, 128], sizes = [8, 128], strides = [1, 1]} : vector<8x512xf32> to vector<8x128xf32>
    %29 = arith.negf %28 : vector<8x128xf32>
    %30 = math.exp %29 : vector<8x128xf32>
    %cst_23 = arith.constant 1.000000e+00 : f32
    %31 = vector.broadcast %cst_23 : f32 to vector<8x128xf32>
    %32 = arith.addf %31, %30 : vector<8x128xf32>
    %33 = arith.divf %31, %32 : vector<8x128xf32>
    %34 = vector.extract_strided_slice %21 {offsets = [0, 256], sizes = [8, 128], strides = [1, 1]} : vector<8x512xf32> to vector<8x128xf32>
    %35 = math.tanh %34 : vector<8x128xf32>
    %36 = vector.extract_strided_slice %21 {offsets = [0, 384], sizes = [8, 128], strides = [1, 1]} : vector<8x512xf32> to vector<8x128xf32>
    %37 = arith.negf %36 : vector<8x128xf32>
    %38 = math.exp %37 : vector<8x128xf32>
    %cst_24 = arith.constant 1.000000e+00 : f32
    %39 = vector.broadcast %cst_24 : f32 to vector<8x128xf32>
    %40 = arith.addf %39, %38 : vector<8x128xf32>
    %41 = arith.divf %39, %40 : vector<8x128xf32>
    %42 = arith.mulf %33, %16 : vector<8x128xf32>
    %43 = arith.mulf %27, %35 : vector<8x128xf32>
    %44 = arith.addf %42, %43 : vector<8x128xf32>
    %45 = math.tanh %44 : vector<8x128xf32>
    %46 = arith.mulf %41, %45 : vector<8x128xf32>
    %47 = arith.index_cast %c0_i32_18 : i32 to index
    %c0_25 = arith.constant 0 : index
    %c0_26 = arith.constant 0 : index
    %48 = vector.load %arg17[%47, %c0_25, %c0_26] : memref<8x8x128xf32, #tpu.memory_space<vmem>>, vector<1x8x128xf32>
    %49 = vector.shape_cast %48 : vector<1x8x128xf32> to vector<8x128xf32>
    %50 = vector.shape_cast %46 : vector<8x128xf32> to vector<1x8x128xf32>
    tpu.vector_store %arg17[%47, %c0_25, %c0_26], %50 {strides = array<i32>} : memref<8x8x128xf32, #tpu.memory_space<vmem>>, vector<1x8x128xf32>,
    %c1_i32 = arith.constant 1 : i32
    %51 = arith.index_cast %c1_i32 : i32 to index
    %c0_27 = arith.constant 0 : index
    %c0_28 = arith.constant 0 : index
    %52 = vector.load %arg16[%51, %c0_27, %c0_28] : memref<8x8x512xf32, #tpu.memory_space<vmem>>, vector<1x8x512xf32>
    %53 = vector.shape_cast %52 : vector<1x8x512xf32> to vector<8x512xf32>
    %cst_29 = arith.constant dense<0.000000e+00> : vector<8x512xf32>
    %54 = tpu.matmul %46, %12, %cst_29 {dimension_numbers = #tpu.dot_dimension_numbers<[1], [0], [0], [1], [0, 0, 1, 1], [], []>} : vector<8x128xf32>, vector<128x512xf32>, vector<8x512xf32> -> vector<8x512xf32>
    %55 = arith.addf %53, %54 : vector<8x512xf32>
    %56 = vector.extract_strided_slice %55 {offsets = [0, 0], sizes = [8, 128], strides = [1, 1]} : vector<8x512xf32> to vector<8x128xf32>
    %57 = arith.negf %56 : vector<8x128xf32>
    %58 = math.exp %57 : vector<8x128xf32>
    %cst_30 = arith.constant 1.000000e+00 : f32
    %59 = vector.broadcast %cst_30 : f32 to vector<8x128xf32>
    %60 = arith.addf %59, %58 : vector<8x128xf32>
    %61 = arith.divf %59, %60 : vector<8x128xf32>
    %62 = vector.extract_strided_slice %55 {offsets = [0, 128], sizes = [8, 128], strides = [1, 1]} : vector<8x512xf32> to vector<8x128xf32>
    %63 = arith.negf %62 : vector<8x128xf32>
    %64 = math.exp %63 : vector<8x128xf32>
    %cst_31 = arith.constant 1.000000e+00 : f32
    %65 = vector.broadcast %cst_31 : f32 to vector<8x128xf32>
    %66 = arith.addf %65, %64 : vector<8x128xf32>
    %67 = arith.divf %65, %66 : vector<8x128xf32>
    %68 = vector.extract_strided_slice %55 {offsets = [0, 256], sizes = [8, 128], strides = [1, 1]} : vector<8x512xf32> to vector<8x128xf32>
    %69 = math.tanh %68 : vector<8x128xf32>
    %70 = vector.extract_strided_slice %55 {offsets = [0, 384], sizes = [8, 128], strides = [1, 1]} : vector<8x512xf32> to vector<8x128xf32>
    %71 = arith.negf %70 : vector<8x128xf32>
    %72 = math.exp %71 : vector<8x128xf32>
    %cst_32 = arith.constant 1.000000e+00 : f32
    %73 = vector.broadcast %cst_32 : f32 to vector<8x128xf32>
    %74 = arith.addf %73, %72 : vector<8x128xf32>
    %75 = arith.divf %73, %74 : vector<8x128xf32>
    %76 = arith.mulf %67, %44 : vector<8x128xf32>
    %77 = arith.mulf %61, %69 : vector<8x128xf32>
    %78 = arith.addf %76, %77 : vector<8x128xf32>
    %79 = math.tanh %78 : vector<8x128xf32>
    %80 = arith.mulf %75, %79 : vector<8x128xf32>
    %81 = arith.index_cast %c1_i32 : i32 to index
    %c0_33 = arith.constant 0 : index
    %c0_34 = arith.constant 0 : index
    %82 = vector.load %arg17[%81, %c0_33, %c0_34] : memref<8x8x128xf32, #tpu.memory_space<vmem>>, vector<1x8x128xf32>
    %83 = vector.shape_cast %82 : vector<1x8x128xf32> to vector<8x128xf32>
    %84 = vector.shape_cast %80 : vector<8x128xf32> to vector<1x8x128xf32>
    tpu.vector_store %arg17[%81, %c0_33, %c0_34], %84 {strides = array<i32>} : memref<8x8x128xf32, #tpu.memory_space<vmem>>, vector<1x8x128xf32>,
    %c2_i32 = arith.constant 2 : i32
    %85 = arith.index_cast %c2_i32 : i32 to index
    %c0_35 = arith.constant 0 : index
    %c0_36 = arith.constant 0 : index
    %86 = vector.load %arg16[%85, %c0_35, %c0_36] : memref<8x8x512xf32, #tpu.memory_space<vmem>>, vector<1x8x512xf32>
    %87 = vector.shape_cast %86 : vector<1x8x512xf32> to vector<8x512xf32>
    %cst_37 = arith.constant dense<0.000000e+00> : vector<8x512xf32>
    %88 = tpu.matmul %80, %12, %cst_37 {dimension_numbers = #tpu.dot_dimension_numbers<[1], [0], [0], [1], [0, 0, 1, 1], [], []>} : vector<8x128xf32>, vector<128x512xf32>, vector<8x512xf32> -> vector<8x512xf32>
    %89 = arith.addf %87, %88 : vector<8x512xf32>
    %90 = vector.extract_strided_slice %89 {offsets = [0, 0], sizes = [8, 128], strides = [1, 1]} : vector<8x512xf32> to vector<8x128xf32>
    %91 = arith.negf %90 : vector<8x128xf32>
    %92 = math.exp %91 : vector<8x128xf32>
    %cst_38 = arith.constant 1.000000e+00 : f32
    %93 = vector.broadcast %cst_38 : f32 to vector<8x128xf32>
    %94 = arith.addf %93, %92 : vector<8x128xf32>
    %95 = arith.divf %93, %94 : vector<8x128xf32>
    %96 = vector.extract_strided_slice %89 {offsets = [0, 128], sizes = [8, 128], strides = [1, 1]} : vector<8x512xf32> to vector<8x128xf32>
    %97 = arith.negf %96 : vector<8x128xf32>
    %98 = math.exp %97 : vector<8x128xf32>
    %cst_39 = arith.constant 1.000000e+00 : f32
    %99 = vector.broadcast %cst_39 : f32 to vector<8x128xf32>
    %100 = arith.addf %99, %98 : vector<8x128xf32>
    %101 = arith.divf %99, %100 : vector<8x128xf32>
    %102 = vector.extract_strided_slice %89 {offsets = [0, 256], sizes = [8, 128], strides = [1, 1]} : vector<8x512xf32> to vector<8x128xf32>
    %103 = math.tanh %102 : vector<8x128xf32>
    %104 = vector.extract_strided_slice %89 {offsets = [0, 384], sizes = [8, 128], strides = [1, 1]} : vector<8x512xf32> to vector<8x128xf32>
    %105 = arith.negf %104 : vector<8x128xf32>
    %106 = math.exp %105 : vector<8x128xf32>
    %cst_40 = arith.constant 1.000000e+00 : f32
    %107 = vector.broadcast %cst_40 : f32 to vector<8x128xf32>
    %108 = arith.addf %107, %106 : vector<8x128xf32>
    %109 = arith.divf %107, %108 : vector<8x128xf32>
    %110 = arith.mulf %101, %78 : vector<8x128xf32>
    %111 = arith.mulf %95, %103 : vector<8x128xf32>
    %112 = arith.addf %110, %111 : vector<8x128xf32>
    %113 = math.tanh %112 : vector<8x128xf32>
    %114 = arith.mulf %109, %113 : vector<8x128xf32>
    %115 = arith.index_cast %c2_i32 : i32 to index
    %c0_41 = arith.constant 0 : index
    %c0_42 = arith.constant 0 : index
    %116 = vector.load %arg17[%115, %c0_41, %c0_42] : memref<8x8x128xf32, #tpu.memory_space<vmem>>, vector<1x8x128xf32>
    %117 = vector.shape_cast %116 : vector<1x8x128xf32> to vector<8x128xf32>
    %118 = vector.shape_cast %114 : vector<8x128xf32> to vector<1x8x128xf32>
    tpu.vector_store %arg17[%115, %c0_41, %c0_42], %118 {strides = array<i32>} : memref<8x8x128xf32, #tpu.memory_space<vmem>>, vector<1x8x128xf32>,
    %c3_i32 = arith.constant 3 : i32
    %119 = arith.index_cast %c3_i32 : i32 to index
    %c0_43 = arith.constant 0 : index
    %c0_44 = arith.constant 0 : index
    %120 = vector.load %arg16[%119, %c0_43, %c0_44] : memref<8x8x512xf32, #tpu.memory_space<vmem>>, vector<1x8x512xf32>
    %121 = vector.shape_cast %120 : vector<1x8x512xf32> to vector<8x512xf32>
    %cst_45 = arith.constant dense<0.000000e+00> : vector<8x512xf32>
    %122 = tpu.matmul %114, %12, %cst_45 {dimension_numbers = #tpu.dot_dimension_numbers<[1], [0], [0], [1], [0, 0, 1, 1], [], []>} : vector<8x128xf32>, vector<128x512xf32>, vector<8x512xf32> -> vector<8x512xf32>
    %123 = arith.addf %121, %122 : vector<8x512xf32>
    %124 = vector.extract_strided_slice %123 {offsets = [0, 0], sizes = [8, 128], strides = [1, 1]} : vector<8x512xf32> to vector<8x128xf32>
    %125 = arith.negf %124 : vector<8x128xf32>
    %126 = math.exp %125 : vector<8x128xf32>
    %cst_46 = arith.constant 1.000000e+00 : f32
    %127 = vector.broadcast %cst_46 : f32 to vector<8x128xf32>
    %128 = arith.addf %127, %126 : vector<8x128xf32>
    %129 = arith.divf %127, %128 : vector<8x128xf32>
    %130 = vector.extract_strided_slice %123 {offsets = [0, 128], sizes = [8, 128], strides = [1, 1]} : vector<8x512xf32> to vector<8x128xf32>
    %131 = arith.negf %130 : vector<8x128xf32>
    %132 = math.exp %131 : vector<8x128xf32>
    %cst_47 = arith.constant 1.000000e+00 : f32
    %133 = vector.broadcast %cst_47 : f32 to vector<8x128xf32>
    %134 = arith.addf %133, %132 : vector<8x128xf32>
    %135 = arith.divf %133, %134 : vector<8x128xf32>
    %136 = vector.extract_strided_slice %123 {offsets = [0, 256], sizes = [8, 128], strides = [1, 1]} : vector<8x512xf32> to vector<8x128xf32>
    %137 = math.tanh %136 : vector<8x128xf32>
    %138 = vector.extract_strided_slice %123 {offsets = [0, 384], sizes = [8, 128], strides = [1, 1]} : vector<8x512xf32> to vector<8x128xf32>
    %139 = arith.negf %138 : vector<8x128xf32>
    %140 = math.exp %139 : vector<8x128xf32>
    %cst_48 = arith.constant 1.000000e+00 : f32
    %141 = vector.broadcast %cst_48 : f32 to vector<8x128xf32>
    %142 = arith.addf %141, %140 : vector<8x128xf32>
    %143 = arith.divf %141, %142 : vector<8x128xf32>
    %144 = arith.mulf %135, %112 : vector<8x128xf32>
    %145 = arith.mulf %129, %137 : vector<8x128xf32>
    %146 = arith.addf %144, %145 : vector<8x128xf32>
    %147 = math.tanh %146 : vector<8x128xf32>
    %148 = arith.mulf %143, %147 : vector<8x128xf32>
    %149 = arith.index_cast %c3_i32 : i32 to index
    %c0_49 = arith.constant 0 : index
    %c0_50 = arith.constant 0 : index
    %150 = vector.load %arg17[%149, %c0_49, %c0_50] : memref<8x8x128xf32, #tpu.memory_space<vmem>>, vector<1x8x128xf32>
    %151 = vector.shape_cast %150 : vector<1x8x128xf32> to vector<8x128xf32>
    %152 = vector.shape_cast %148 : vector<8x128xf32> to vector<1x8x128xf32>
    tpu.vector_store %arg17[%149, %c0_49, %c0_50], %152 {strides = array<i32>} : memref<8x8x128xf32, #tpu.memory_space<vmem>>, vector<1x8x128xf32>,
    %c4_i32 = arith.constant 4 : i32
    %153 = arith.index_cast %c4_i32 : i32 to index
    %c0_51 = arith.constant 0 : index
    %c0_52 = arith.constant 0 : index
    %154 = vector.load %arg16[%153, %c0_51, %c0_52] : memref<8x8x512xf32, #tpu.memory_space<vmem>>, vector<1x8x512xf32>
    %155 = vector.shape_cast %154 : vector<1x8x512xf32> to vector<8x512xf32>
    %cst_53 = arith.constant dense<0.000000e+00> : vector<8x512xf32>
    %156 = tpu.matmul %148, %12, %cst_53 {dimension_numbers = #tpu.dot_dimension_numbers<[1], [0], [0], [1], [0, 0, 1, 1], [], []>} : vector<8x128xf32>, vector<128x512xf32>, vector<8x512xf32> -> vector<8x512xf32>
    %157 = arith.addf %155, %156 : vector<8x512xf32>
    %158 = vector.extract_strided_slice %157 {offsets = [0, 0], sizes = [8, 128], strides = [1, 1]} : vector<8x512xf32> to vector<8x128xf32>
    %159 = arith.negf %158 : vector<8x128xf32>
    %160 = math.exp %159 : vector<8x128xf32>
    %cst_54 = arith.constant 1.000000e+00 : f32
    %161 = vector.broadcast %cst_54 : f32 to vector<8x128xf32>
    %162 = arith.addf %161, %160 : vector<8x128xf32>
    %163 = arith.divf %161, %162 : vector<8x128xf32>
    %164 = vector.extract_strided_slice %157 {offsets = [0, 128], sizes = [8, 128], strides = [1, 1]} : vector<8x512xf32> to vector<8x128xf32>
    %165 = arith.negf %164 : vector<8x128xf32>
    %166 = math.exp %165 : vector<8x128xf32>
    %cst_55 = arith.constant 1.000000e+00 : f32
    %167 = vector.broadcast %cst_55 : f32 to vector<8x128xf32>
    %168 = arith.addf %167, %166 : vector<8x128xf32>
    %169 = arith.divf %167, %168 : vector<8x128xf32>
    %170 = vector.extract_strided_slice %157 {offsets = [0, 256], sizes = [8, 128], strides = [1, 1]} : vector<8x512xf32> to vector<8x128xf32>
    %171 = math.tanh %170 : vector<8x128xf32>
    %172 = vector.extract_strided_slice %157 {offsets = [0, 384], sizes = [8, 128], strides = [1, 1]} : vector<8x512xf32> to vector<8x128xf32>
    %173 = arith.negf %172 : vector<8x128xf32>
    %174 = math.exp %173 : vector<8x128xf32>
    %cst_56 = arith.constant 1.000000e+00 : f32
    %175 = vector.broadcast %cst_56 : f32 to vector<8x128xf32>
    %176 = arith.addf %175, %174 : vector<8x128xf32>
    %177 = arith.divf %175, %176 : vector<8x128xf32>
    %178 = arith.mulf %169, %146 : vector<8x128xf32>
    %179 = arith.mulf %163, %171 : vector<8x128xf32>
    %180 = arith.addf %178, %179 : vector<8x128xf32>
    %181 = math.tanh %180 : vector<8x128xf32>
    %182 = arith.mulf %177, %181 : vector<8x128xf32>
    %183 = arith.index_cast %c4_i32 : i32 to index
    %c0_57 = arith.constant 0 : index
    %c0_58 = arith.constant 0 : index
    %184 = vector.load %arg17[%183, %c0_57, %c0_58] : memref<8x8x128xf32, #tpu.memory_space<vmem>>, vector<1x8x128xf32>
    %185 = vector.shape_cast %184 : vector<1x8x128xf32> to vector<8x128xf32>
    %186 = vector.shape_cast %182 : vector<8x128xf32> to vector<1x8x128xf32>
    tpu.vector_store %arg17[%183, %c0_57, %c0_58], %186 {strides = array<i32>} : memref<8x8x128xf32, #tpu.memory_space<vmem>>, vector<1x8x128xf32>,
    %c5_i32 = arith.constant 5 : i32
    %187 = arith.index_cast %c5_i32 : i32 to index
    %c0_59 = arith.constant 0 : index
    %c0_60 = arith.constant 0 : index
    %188 = vector.load %arg16[%187, %c0_59, %c0_60] : memref<8x8x512xf32, #tpu.memory_space<vmem>>, vector<1x8x512xf32>
    %189 = vector.shape_cast %188 : vector<1x8x512xf32> to vector<8x512xf32>
    %cst_61 = arith.constant dense<0.000000e+00> : vector<8x512xf32>
    %190 = tpu.matmul %182, %12, %cst_61 {dimension_numbers = #tpu.dot_dimension_numbers<[1], [0], [0], [1], [0, 0, 1, 1], [], []>} : vector<8x128xf32>, vector<128x512xf32>, vector<8x512xf32> -> vector<8x512xf32>
    %191 = arith.addf %189, %190 : vector<8x512xf32>
    %192 = vector.extract_strided_slice %191 {offsets = [0, 0], sizes = [8, 128], strides = [1, 1]} : vector<8x512xf32> to vector<8x128xf32>
    %193 = arith.negf %192 : vector<8x128xf32>
    %194 = math.exp %193 : vector<8x128xf32>
    %cst_62 = arith.constant 1.000000e+00 : f32
    %195 = vector.broadcast %cst_62 : f32 to vector<8x128xf32>
    %196 = arith.addf %195, %194 : vector<8x128xf32>
    %197 = arith.divf %195, %196 : vector<8x128xf32>
    %198 = vector.extract_strided_slice %191 {offsets = [0, 128], sizes = [8, 128], strides = [1, 1]} : vector<8x512xf32> to vector<8x128xf32>
    %199 = arith.negf %198 : vector<8x128xf32>
    %200 = math.exp %199 : vector<8x128xf32>
    %cst_63 = arith.constant 1.000000e+00 : f32
    %201 = vector.broadcast %cst_63 : f32 to vector<8x128xf32>
    %202 = arith.addf %201, %200 : vector<8x128xf32>
    %203 = arith.divf %201, %202 : vector<8x128xf32>
    %204 = vector.extract_strided_slice %191 {offsets = [0, 256], sizes = [8, 128], strides = [1, 1]} : vector<8x512xf32> to vector<8x128xf32>
    %205 = math.tanh %204 : vector<8x128xf32>
    %206 = vector.extract_strided_slice %191 {offsets = [0, 384], sizes = [8, 128], strides = [1, 1]} : vector<8x512xf32> to vector<8x128xf32>
    %207 = arith.negf %206 : vector<8x128xf32>
    %208 = math.exp %207 : vector<8x128xf32>
    %cst_64 = arith.constant 1.000000e+00 : f32
    %209 = vector.broadcast %cst_64 : f32 to vector<8x128xf32>
    %210 = arith.addf %209, %208 : vector<8x128xf32>
    %211 = arith.divf %209, %210 : vector<8x128xf32>
    %212 = arith.mulf %203, %180 : vector<8x128xf32>
    %213 = arith.mulf %197, %205 : vector<8x128xf32>
    %214 = arith.addf %212, %213 : vector<8x128xf32>
    %215 = math.tanh %214 : vector<8x128xf32>
    %216 = arith.mulf %211, %215 : vector<8x128xf32>
    %217 = arith.index_cast %c5_i32 : i32 to index
    %c0_65 = arith.constant 0 : index
    %c0_66 = arith.constant 0 : index
    %218 = vector.load %arg17[%217, %c0_65, %c0_66] : memref<8x8x128xf32, #tpu.memory_space<vmem>>, vector<1x8x128xf32>
    %219 = vector.shape_cast %218 : vector<1x8x128xf32> to vector<8x128xf32>
    %220 = vector.shape_cast %216 : vector<8x128xf32> to vector<1x8x128xf32>
    tpu.vector_store %arg17[%217, %c0_65, %c0_66], %220 {strides = array<i32>} : memref<8x8x128xf32, #tpu.memory_space<vmem>>, vector<1x8x128xf32>,
    %c6_i32 = arith.constant 6 : i32
    %221 = arith.index_cast %c6_i32 : i32 to index
    %c0_67 = arith.constant 0 : index
    %c0_68 = arith.constant 0 : index
    %222 = vector.load %arg16[%221, %c0_67, %c0_68] : memref<8x8x512xf32, #tpu.memory_space<vmem>>, vector<1x8x512xf32>
    %223 = vector.shape_cast %222 : vector<1x8x512xf32> to vector<8x512xf32>
    %cst_69 = arith.constant dense<0.000000e+00> : vector<8x512xf32>
    %224 = tpu.matmul %216, %12, %cst_69 {dimension_numbers = #tpu.dot_dimension_numbers<[1], [0], [0], [1], [0, 0, 1, 1], [], []>} : vector<8x128xf32>, vector<128x512xf32>, vector<8x512xf32> -> vector<8x512xf32>
    %225 = arith.addf %223, %224 : vector<8x512xf32>
    %226 = vector.extract_strided_slice %225 {offsets = [0, 0], sizes = [8, 128], strides = [1, 1]} : vector<8x512xf32> to vector<8x128xf32>
    %227 = arith.negf %226 : vector<8x128xf32>
    %228 = math.exp %227 : vector<8x128xf32>
    %cst_70 = arith.constant 1.000000e+00 : f32
    %229 = vector.broadcast %cst_70 : f32 to vector<8x128xf32>
    %230 = arith.addf %229, %228 : vector<8x128xf32>
    %231 = arith.divf %229, %230 : vector<8x128xf32>
    %232 = vector.extract_strided_slice %225 {offsets = [0, 128], sizes = [8, 128], strides = [1, 1]} : vector<8x512xf32> to vector<8x128xf32>
    %233 = arith.negf %232 : vector<8x128xf32>
    %234 = math.exp %233 : vector<8x128xf32>
    %cst_71 = arith.constant 1.000000e+00 : f32
    %235 = vector.broadcast %cst_71 : f32 to vector<8x128xf32>
    %236 = arith.addf %235, %234 : vector<8x128xf32>
    %237 = arith.divf %235, %236 : vector<8x128xf32>
    %238 = vector.extract_strided_slice %225 {offsets = [0, 256], sizes = [8, 128], strides = [1, 1]} : vector<8x512xf32> to vector<8x128xf32>
    %239 = math.tanh %238 : vector<8x128xf32>
    %240 = vector.extract_strided_slice %225 {offsets = [0, 384], sizes = [8, 128], strides = [1, 1]} : vector<8x512xf32> to vector<8x128xf32>
    %241 = arith.negf %240 : vector<8x128xf32>
    %242 = math.exp %241 : vector<8x128xf32>
    %cst_72 = arith.constant 1.000000e+00 : f32
    %243 = vector.broadcast %cst_72 : f32 to vector<8x128xf32>
    %244 = arith.addf %243, %242 : vector<8x128xf32>
    %245 = arith.divf %243, %244 : vector<8x128xf32>
    %246 = arith.mulf %237, %214 : vector<8x128xf32>
    %247 = arith.mulf %231, %239 : vector<8x128xf32>
    %248 = arith.addf %246, %247 : vector<8x128xf32>
    %249 = math.tanh %248 : vector<8x128xf32>
    %250 = arith.mulf %245, %249 : vector<8x128xf32>
    %251 = arith.index_cast %c6_i32 : i32 to index
    %c0_73 = arith.constant 0 : index
    %c0_74 = arith.constant 0 : index
    %252 = vector.load %arg17[%251, %c0_73, %c0_74] : memref<8x8x128xf32, #tpu.memory_space<vmem>>, vector<1x8x128xf32>
    %253 = vector.shape_cast %252 : vector<1x8x128xf32> to vector<8x128xf32>
    %254 = vector.shape_cast %250 : vector<8x128xf32> to vector<1x8x128xf32>
    tpu.vector_store %arg17[%251, %c0_73, %c0_74], %254 {strides = array<i32>} : memref<8x8x128xf32, #tpu.memory_space<vmem>>, vector<1x8x128xf32>,
    %c7_i32 = arith.constant 7 : i32
    %255 = arith.index_cast %c7_i32 : i32 to index
    %c0_75 = arith.constant 0 : index
    %c0_76 = arith.constant 0 : index
    %256 = vector.load %arg16[%255, %c0_75, %c0_76] : memref<8x8x512xf32, #tpu.memory_space<vmem>>, vector<1x8x512xf32>
    %257 = vector.shape_cast %256 : vector<1x8x512xf32> to vector<8x512xf32>
    %cst_77 = arith.constant dense<0.000000e+00> : vector<8x512xf32>
    %258 = tpu.matmul %250, %12, %cst_77 {dimension_numbers = #tpu.dot_dimension_numbers<[1], [0], [0], [1], [0, 0, 1, 1], [], []>} : vector<8x128xf32>, vector<128x512xf32>, vector<8x512xf32> -> vector<8x512xf32>
    %259 = arith.addf %257, %258 : vector<8x512xf32>
    %260 = vector.extract_strided_slice %259 {offsets = [0, 0], sizes = [8, 128], strides = [1, 1]} : vector<8x512xf32> to vector<8x128xf32>
    %261 = arith.negf %260 : vector<8x128xf32>
    %262 = math.exp %261 : vector<8x128xf32>
    %cst_78 = arith.constant 1.000000e+00 : f32
    %263 = vector.broadcast %cst_78 : f32 to vector<8x128xf32>
    %264 = arith.addf %263, %262 : vector<8x128xf32>
    %265 = arith.divf %263, %264 : vector<8x128xf32>
    %266 = vector.extract_strided_slice %259 {offsets = [0, 128], sizes = [8, 128], strides = [1, 1]} : vector<8x512xf32> to vector<8x128xf32>
    %267 = arith.negf %266 : vector<8x128xf32>
    %268 = math.exp %267 : vector<8x128xf32>
    %cst_79 = arith.constant 1.000000e+00 : f32
    %269 = vector.broadcast %cst_79 : f32 to vector<8x128xf32>
    %270 = arith.addf %269, %268 : vector<8x128xf32>
    %271 = arith.divf %269, %270 : vector<8x128xf32>
    %272 = vector.extract_strided_slice %259 {offsets = [0, 256], sizes = [8, 128], strides = [1, 1]} : vector<8x512xf32> to vector<8x128xf32>
    %273 = math.tanh %272 : vector<8x128xf32>
    %274 = vector.extract_strided_slice %259 {offsets = [0, 384], sizes = [8, 128], strides = [1, 1]} : vector<8x512xf32> to vector<8x128xf32>
    %275 = arith.negf %274 : vector<8x128xf32>
    %276 = math.exp %275 : vector<8x128xf32>
    %cst_80 = arith.constant 1.000000e+00 : f32
    %277 = vector.broadcast %cst_80 : f32 to vector<8x128xf32>
    %278 = arith.addf %277, %276 : vector<8x128xf32>
    %279 = arith.divf %277, %278 : vector<8x128xf32>
    %280 = arith.mulf %271, %248 : vector<8x128xf32>
    %281 = arith.mulf %265, %273 : vector<8x128xf32>
    %282 = arith.addf %280, %281 : vector<8x128xf32>
    %283 = math.tanh %282 : vector<8x128xf32>
    %284 = arith.mulf %279, %283 : vector<8x128xf32>
    %285 = arith.index_cast %c7_i32 : i32 to index
    %c0_81 = arith.constant 0 : index
    %c0_82 = arith.constant 0 : index
    %286 = vector.load %arg17[%285, %c0_81, %c0_82] : memref<8x8x128xf32, #tpu.memory_space<vmem>>, vector<1x8x128xf32>
    %287 = vector.shape_cast %286 : vector<1x8x128xf32> to vector<8x128xf32>
    %288 = vector.shape_cast %284 : vector<8x128xf32> to vector<1x8x128xf32>
    tpu.vector_store %arg17[%285, %c0_81, %c0_82], %288 {strides = array<i32>} : memref<8x8x128xf32, #tpu.memory_space<vmem>>, vector<1x8x128xf32>,
    %c8_i32 = arith.constant 8 : i32
    %c0_83 = arith.constant 0 : index
    %c0_84 = arith.constant 0 : index
    %c0_85 = arith.constant 0 : index
    %289 = vector.load %arg14[%c0_83, %c0_84, %c0_85] : memref<2x8x128xf32, #tpu.memory_space<vmem>>, vector<1x8x128xf32>
    %290 = vector.shape_cast %289 : vector<1x8x128xf32> to vector<8x128xf32>
    %291 = vector.shape_cast %284 : vector<8x128xf32> to vector<1x8x128xf32>
    tpu.vector_store %arg14[%c0_83, %c0_84, %c0_85], %291 {strides = array<i32>} : memref<2x8x128xf32, #tpu.memory_space<vmem>>, vector<1x8x128xf32>,
    %c0_86 = arith.constant 0 : index
    %c0_87 = arith.constant 0 : index
    %c0_88 = arith.constant 0 : index
    %292 = vector.load %arg15[%c0_86, %c0_87, %c0_88] : memref<2x8x128xf32, #tpu.memory_space<vmem>>, vector<1x8x128xf32>
    %293 = vector.shape_cast %292 : vector<1x8x128xf32> to vector<8x128xf32>
    %294 = vector.shape_cast %282 : vector<8x128xf32> to vector<1x8x128xf32>
    tpu.vector_store %arg15[%c0_86, %c0_87, %c0_88], %294 {strides = array<i32>} : memref<2x8x128xf32, #tpu.memory_space<vmem>>, vector<1x8x128xf32>,
    %c0_89 = arith.constant 0 : index
    %c0_90 = arith.constant 0 : index
    %c0_91 = arith.constant 0 : index
    %295 = vector.load %arg17[%c0_89, %c0_90, %c0_91] : memref<8x8x128xf32, #tpu.memory_space<vmem>>, vector<8x8x128xf32>
    %296 = vector.shape_cast %295 : vector<8x8x128xf32> to vector<64x128xf32>
    %c0_92 = arith.constant 0 : index
    %c0_93 = arith.constant 0 : index
    %297 = vector.load %arg8[%c0_92, %c0_93] : memref<128x512xf32, #tpu.memory_space<vmem>>, vector<128x512xf32>
    %cst_94 = arith.constant dense<0.000000e+00> : vector<64x512xf32>
    %298 = tpu.matmul %296, %297, %cst_94 {dimension_numbers = #tpu.dot_dimension_numbers<[1], [0], [0], [1], [0, 0, 1, 1], [], []>} : vector<64x128xf32>, vector<128x512xf32>, vector<64x512xf32> -> vector<64x512xf32>
    %c0_95 = arith.constant 0 : index
    %c0_96 = arith.constant 0 : index
    %299 = vector.load %arg10[%c0_95, %c0_96] : memref<1x512xf32, #tpu.memory_space<vmem>>, vector<1x512xf32>
    %300 = vector.broadcast %299 : vector<1x512xf32> to vector<64x512xf32>
    %301 = arith.addf %298, %300 : vector<64x512xf32>
    %302 = vector.shape_cast %301 : vector<64x512xf32> to vector<8x8x512xf32>
    %c0_97 = arith.constant 0 : index
    %c0_98 = arith.constant 0 : index
    %c0_99 = arith.constant 0 : index
    %303 = vector.load %arg16[%c0_97, %c0_98, %c0_99] : memref<8x8x512xf32, #tpu.memory_space<vmem>>, vector<8x8x512xf32>
    tpu.vector_store %arg16[%c0_97, %c0_98, %c0_99], %302 {strides = array<i32>} : memref<8x8x512xf32, #tpu.memory_space<vmem>>, vector<8x8x512xf32>,
    %c0_100 = arith.constant 0 : index
    %c0_101 = arith.constant 0 : index
    %304 = vector.load %arg9[%c0_100, %c0_101] : memref<128x512xf32, #tpu.memory_space<vmem>>, vector<128x512xf32>
    %c1 = arith.constant 1 : index
    %c0_102 = arith.constant 0 : index
    %c0_103 = arith.constant 0 : index
    %305 = vector.load %arg14[%c1, %c0_102, %c0_103] : memref<2x8x128xf32, #tpu.memory_space<vmem>>, vector<1x8x128xf32>
    %306 = vector.shape_cast %305 : vector<1x8x128xf32> to vector<8x128xf32>
    %c1_104 = arith.constant 1 : index
    %c0_105 = arith.constant 0 : index
    %c0_106 = arith.constant 0 : index
    %307 = vector.load %arg15[%c1_104, %c0_105, %c0_106] : memref<2x8x128xf32, #tpu.memory_space<vmem>>, vector<1x8x128xf32>
    %308 = vector.shape_cast %307 : vector<1x8x128xf32> to vector<8x128xf32>
    %c0_i32_107 = arith.constant 0 : i32
    %309 = arith.index_cast %c0_i32_107 : i32 to index
    %c0_108 = arith.constant 0 : index
    %c0_109 = arith.constant 0 : index
    %310 = vector.load %arg16[%309, %c0_108, %c0_109] : memref<8x8x512xf32, #tpu.memory_space<vmem>>, vector<1x8x512xf32>
    %311 = vector.shape_cast %310 : vector<1x8x512xf32> to vector<8x512xf32>
    %cst_110 = arith.constant dense<0.000000e+00> : vector<8x512xf32>
    %312 = tpu.matmul %306, %304, %cst_110 {dimension_numbers = #tpu.dot_dimension_numbers<[1], [0], [0], [1], [0, 0, 1, 1], [], []>} : vector<8x128xf32>, vector<128x512xf32>, vector<8x512xf32> -> vector<8x512xf32>
    %313 = arith.addf %311, %312 : vector<8x512xf32>
    %314 = vector.extract_strided_slice %313 {offsets = [0, 0], sizes = [8, 128], strides = [1, 1]} : vector<8x512xf32> to vector<8x128xf32>
    %315 = arith.negf %314 : vector<8x128xf32>
    %316 = math.exp %315 : vector<8x128xf32>
    %cst_111 = arith.constant 1.000000e+00 : f32
    %317 = vector.broadcast %cst_111 : f32 to vector<8x128xf32>
    %318 = arith.addf %317, %316 : vector<8x128xf32>
    %319 = arith.divf %317, %318 : vector<8x128xf32>
    %320 = vector.extract_strided_slice %313 {offsets = [0, 128], sizes = [8, 128], strides = [1, 1]} : vector<8x512xf32> to vector<8x128xf32>
    %321 = arith.negf %320 : vector<8x128xf32>
    %322 = math.exp %321 : vector<8x128xf32>
    %cst_112 = arith.constant 1.000000e+00 : f32
    %323 = vector.broadcast %cst_112 : f32 to vector<8x128xf32>
    %324 = arith.addf %323, %322 : vector<8x128xf32>
    %325 = arith.divf %323, %324 : vector<8x128xf32>
    %326 = vector.extract_strided_slice %313 {offsets = [0, 256], sizes = [8, 128], strides = [1, 1]} : vector<8x512xf32> to vector<8x128xf32>
    %327 = math.tanh %326 : vector<8x128xf32>
    %328 = vector.extract_strided_slice %313 {offsets = [0, 384], sizes = [8, 128], strides = [1, 1]} : vector<8x512xf32> to vector<8x128xf32>
    %329 = arith.negf %328 : vector<8x128xf32>
    %330 = math.exp %329 : vector<8x128xf32>
    %cst_113 = arith.constant 1.000000e+00 : f32
    %331 = vector.broadcast %cst_113 : f32 to vector<8x128xf32>
    %332 = arith.addf %331, %330 : vector<8x128xf32>
    %333 = arith.divf %331, %332 : vector<8x128xf32>
    %334 = arith.mulf %325, %308 : vector<8x128xf32>
    %335 = arith.mulf %319, %327 : vector<8x128xf32>
    %336 = arith.addf %334, %335 : vector<8x128xf32>
    %337 = math.tanh %336 : vector<8x128xf32>
    %338 = arith.mulf %333, %337 : vector<8x128xf32>
    %339 = arith.index_cast %c0_i32_107 : i32 to index
    %c0_114 = arith.constant 0 : index
    %c0_115 = arith.constant 0 : index
    %340 = vector.load %arg11[%339, %c0_114, %c0_115] : memref<8x8x128xf32, #tpu.memory_space<vmem>>, vector<1x8x128xf32>
    %341 = vector.shape_cast %340 : vector<1x8x128xf32> to vector<8x128xf32>
    %342 = vector.shape_cast %338 : vector<8x128xf32> to vector<1x8x128xf32>
    tpu.vector_store %arg11[%339, %c0_114, %c0_115], %342 {strides = array<i32>} : memref<8x8x128xf32, #tpu.memory_space<vmem>>, vector<1x8x128xf32>,
    %c1_i32_116 = arith.constant 1 : i32
    %343 = arith.index_cast %c1_i32_116 : i32 to index
    %c0_117 = arith.constant 0 : index
    %c0_118 = arith.constant 0 : index
    %344 = vector.load %arg16[%343, %c0_117, %c0_118] : memref<8x8x512xf32, #tpu.memory_space<vmem>>, vector<1x8x512xf32>
    %345 = vector.shape_cast %344 : vector<1x8x512xf32> to vector<8x512xf32>
    %cst_119 = arith.constant dense<0.000000e+00> : vector<8x512xf32>
    %346 = tpu.matmul %338, %304, %cst_119 {dimension_numbers = #tpu.dot_dimension_numbers<[1], [0], [0], [1], [0, 0, 1, 1], [], []>} : vector<8x128xf32>, vector<128x512xf32>, vector<8x512xf32> -> vector<8x512xf32>
    %347 = arith.addf %345, %346 : vector<8x512xf32>
    %348 = vector.extract_strided_slice %347 {offsets = [0, 0], sizes = [8, 128], strides = [1, 1]} : vector<8x512xf32> to vector<8x128xf32>
    %349 = arith.negf %348 : vector<8x128xf32>
    %350 = math.exp %349 : vector<8x128xf32>
    %cst_120 = arith.constant 1.000000e+00 : f32
    %351 = vector.broadcast %cst_120 : f32 to vector<8x128xf32>
    %352 = arith.addf %351, %350 : vector<8x128xf32>
    %353 = arith.divf %351, %352 : vector<8x128xf32>
    %354 = vector.extract_strided_slice %347 {offsets = [0, 128], sizes = [8, 128], strides = [1, 1]} : vector<8x512xf32> to vector<8x128xf32>
    %355 = arith.negf %354 : vector<8x128xf32>
    %356 = math.exp %355 : vector<8x128xf32>
    %cst_121 = arith.constant 1.000000e+00 : f32
    %357 = vector.broadcast %cst_121 : f32 to vector<8x128xf32>
    %358 = arith.addf %357, %356 : vector<8x128xf32>
    %359 = arith.divf %357, %358 : vector<8x128xf32>
    %360 = vector.extract_strided_slice %347 {offsets = [0, 256], sizes = [8, 128], strides = [1, 1]} : vector<8x512xf32> to vector<8x128xf32>
    %361 = math.tanh %360 : vector<8x128xf32>
    %362 = vector.extract_strided_slice %347 {offsets = [0, 384], sizes = [8, 128], strides = [1, 1]} : vector<8x512xf32> to vector<8x128xf32>
    %363 = arith.negf %362 : vector<8x128xf32>
    %364 = math.exp %363 : vector<8x128xf32>
    %cst_122 = arith.constant 1.000000e+00 : f32
    %365 = vector.broadcast %cst_122 : f32 to vector<8x128xf32>
    %366 = arith.addf %365, %364 : vector<8x128xf32>
    %367 = arith.divf %365, %366 : vector<8x128xf32>
    %368 = arith.mulf %359, %336 : vector<8x128xf32>
    %369 = arith.mulf %353, %361 : vector<8x128xf32>
    %370 = arith.addf %368, %369 : vector<8x128xf32>
    %371 = math.tanh %370 : vector<8x128xf32>
    %372 = arith.mulf %367, %371 : vector<8x128xf32>
    %373 = arith.index_cast %c1_i32_116 : i32 to index
    %c0_123 = arith.constant 0 : index
    %c0_124 = arith.constant 0 : index
    %374 = vector.load %arg11[%373, %c0_123, %c0_124] : memref<8x8x128xf32, #tpu.memory_space<vmem>>, vector<1x8x128xf32>
    %375 = vector.shape_cast %374 : vector<1x8x128xf32> to vector<8x128xf32>
    %376 = vector.shape_cast %372 : vector<8x128xf32> to vector<1x8x128xf32>
    tpu.vector_store %arg11[%373, %c0_123, %c0_124], %376 {strides = array<i32>} : memref<8x8x128xf32, #tpu.memory_space<vmem>>, vector<1x8x128xf32>,
    %c2_i32_125 = arith.constant 2 : i32
    %377 = arith.index_cast %c2_i32_125 : i32 to index
    %c0_126 = arith.constant 0 : index
    %c0_127 = arith.constant 0 : index
    %378 = vector.load %arg16[%377, %c0_126, %c0_127] : memref<8x8x512xf32, #tpu.memory_space<vmem>>, vector<1x8x512xf32>
    %379 = vector.shape_cast %378 : vector<1x8x512xf32> to vector<8x512xf32>
    %cst_128 = arith.constant dense<0.000000e+00> : vector<8x512xf32>
    %380 = tpu.matmul %372, %304, %cst_128 {dimension_numbers = #tpu.dot_dimension_numbers<[1], [0], [0], [1], [0, 0, 1, 1], [], []>} : vector<8x128xf32>, vector<128x512xf32>, vector<8x512xf32> -> vector<8x512xf32>
    %381 = arith.addf %379, %380 : vector<8x512xf32>
    %382 = vector.extract_strided_slice %381 {offsets = [0, 0], sizes = [8, 128], strides = [1, 1]} : vector<8x512xf32> to vector<8x128xf32>
    %383 = arith.negf %382 : vector<8x128xf32>
    %384 = math.exp %383 : vector<8x128xf32>
    %cst_129 = arith.constant 1.000000e+00 : f32
    %385 = vector.broadcast %cst_129 : f32 to vector<8x128xf32>
    %386 = arith.addf %385, %384 : vector<8x128xf32>
    %387 = arith.divf %385, %386 : vector<8x128xf32>
    %388 = vector.extract_strided_slice %381 {offsets = [0, 128], sizes = [8, 128], strides = [1, 1]} : vector<8x512xf32> to vector<8x128xf32>
    %389 = arith.negf %388 : vector<8x128xf32>
    %390 = math.exp %389 : vector<8x128xf32>
    %cst_130 = arith.constant 1.000000e+00 : f32
    %391 = vector.broadcast %cst_130 : f32 to vector<8x128xf32>
    %392 = arith.addf %391, %390 : vector<8x128xf32>
    %393 = arith.divf %391, %392 : vector<8x128xf32>
    %394 = vector.extract_strided_slice %381 {offsets = [0, 256], sizes = [8, 128], strides = [1, 1]} : vector<8x512xf32> to vector<8x128xf32>
    %395 = math.tanh %394 : vector<8x128xf32>
    %396 = vector.extract_strided_slice %381 {offsets = [0, 384], sizes = [8, 128], strides = [1, 1]} : vector<8x512xf32> to vector<8x128xf32>
    %397 = arith.negf %396 : vector<8x128xf32>
    %398 = math.exp %397 : vector<8x128xf32>
    %cst_131 = arith.constant 1.000000e+00 : f32
    %399 = vector.broadcast %cst_131 : f32 to vector<8x128xf32>
    %400 = arith.addf %399, %398 : vector<8x128xf32>
    %401 = arith.divf %399, %400 : vector<8x128xf32>
    %402 = arith.mulf %393, %370 : vector<8x128xf32>
    %403 = arith.mulf %387, %395 : vector<8x128xf32>
    %404 = arith.addf %402, %403 : vector<8x128xf32>
    %405 = math.tanh %404 : vector<8x128xf32>
    %406 = arith.mulf %401, %405 : vector<8x128xf32>
    %407 = arith.index_cast %c2_i32_125 : i32 to index
    %c0_132 = arith.constant 0 : index
    %c0_133 = arith.constant 0 : index
    %408 = vector.load %arg11[%407, %c0_132, %c0_133] : memref<8x8x128xf32, #tpu.memory_space<vmem>>, vector<1x8x128xf32>
    %409 = vector.shape_cast %408 : vector<1x8x128xf32> to vector<8x128xf32>
    %410 = vector.shape_cast %406 : vector<8x128xf32> to vector<1x8x128xf32>
    tpu.vector_store %arg11[%407, %c0_132, %c0_133], %410 {strides = array<i32>} : memref<8x8x128xf32, #tpu.memory_space<vmem>>, vector<1x8x128xf32>,
    %c3_i32_134 = arith.constant 3 : i32
    %411 = arith.index_cast %c3_i32_134 : i32 to index
    %c0_135 = arith.constant 0 : index
    %c0_136 = arith.constant 0 : index
    %412 = vector.load %arg16[%411, %c0_135, %c0_136] : memref<8x8x512xf32, #tpu.memory_space<vmem>>, vector<1x8x512xf32>
    %413 = vector.shape_cast %412 : vector<1x8x512xf32> to vector<8x512xf32>
    %cst_137 = arith.constant dense<0.000000e+00> : vector<8x512xf32>
    %414 = tpu.matmul %406, %304, %cst_137 {dimension_numbers = #tpu.dot_dimension_numbers<[1], [0], [0], [1], [0, 0, 1, 1], [], []>} : vector<8x128xf32>, vector<128x512xf32>, vector<8x512xf32> -> vector<8x512xf32>
    %415 = arith.addf %413, %414 : vector<8x512xf32>
    %416 = vector.extract_strided_slice %415 {offsets = [0, 0], sizes = [8, 128], strides = [1, 1]} : vector<8x512xf32> to vector<8x128xf32>
    %417 = arith.negf %416 : vector<8x128xf32>
    %418 = math.exp %417 : vector<8x128xf32>
    %cst_138 = arith.constant 1.000000e+00 : f32
    %419 = vector.broadcast %cst_138 : f32 to vector<8x128xf32>
    %420 = arith.addf %419, %418 : vector<8x128xf32>
    %421 = arith.divf %419, %420 : vector<8x128xf32>
    %422 = vector.extract_strided_slice %415 {offsets = [0, 128], sizes = [8, 128], strides = [1, 1]} : vector<8x512xf32> to vector<8x128xf32>
    %423 = arith.negf %422 : vector<8x128xf32>
    %424 = math.exp %423 : vector<8x128xf32>
    %cst_139 = arith.constant 1.000000e+00 : f32
    %425 = vector.broadcast %cst_139 : f32 to vector<8x128xf32>
    %426 = arith.addf %425, %424 : vector<8x128xf32>
    %427 = arith.divf %425, %426 : vector<8x128xf32>
    %428 = vector.extract_strided_slice %415 {offsets = [0, 256], sizes = [8, 128], strides = [1, 1]} : vector<8x512xf32> to vector<8x128xf32>
    %429 = math.tanh %428 : vector<8x128xf32>
    %430 = vector.extract_strided_slice %415 {offsets = [0, 384], sizes = [8, 128], strides = [1, 1]} : vector<8x512xf32> to vector<8x128xf32>
    %431 = arith.negf %430 : vector<8x128xf32>
    %432 = math.exp %431 : vector<8x128xf32>
    %cst_140 = arith.constant 1.000000e+00 : f32
    %433 = vector.broadcast %cst_140 : f32 to vector<8x128xf32>
    %434 = arith.addf %433, %432 : vector<8x128xf32>
    %435 = arith.divf %433, %434 : vector<8x128xf32>
    %436 = arith.mulf %427, %404 : vector<8x128xf32>
    %437 = arith.mulf %421, %429 : vector<8x128xf32>
    %438 = arith.addf %436, %437 : vector<8x128xf32>
    %439 = math.tanh %438 : vector<8x128xf32>
    %440 = arith.mulf %435, %439 : vector<8x128xf32>
    %441 = arith.index_cast %c3_i32_134 : i32 to index
    %c0_141 = arith.constant 0 : index
    %c0_142 = arith.constant 0 : index
    %442 = vector.load %arg11[%441, %c0_141, %c0_142] : memref<8x8x128xf32, #tpu.memory_space<vmem>>, vector<1x8x128xf32>
    %443 = vector.shape_cast %442 : vector<1x8x128xf32> to vector<8x128xf32>
    %444 = vector.shape_cast %440 : vector<8x128xf32> to vector<1x8x128xf32>
    tpu.vector_store %arg11[%441, %c0_141, %c0_142], %444 {strides = array<i32>} : memref<8x8x128xf32, #tpu.memory_space<vmem>>, vector<1x8x128xf32>,
    %c4_i32_143 = arith.constant 4 : i32
    %445 = arith.index_cast %c4_i32_143 : i32 to index
    %c0_144 = arith.constant 0 : index
    %c0_145 = arith.constant 0 : index
    %446 = vector.load %arg16[%445, %c0_144, %c0_145] : memref<8x8x512xf32, #tpu.memory_space<vmem>>, vector<1x8x512xf32>
    %447 = vector.shape_cast %446 : vector<1x8x512xf32> to vector<8x512xf32>
    %cst_146 = arith.constant dense<0.000000e+00> : vector<8x512xf32>
    %448 = tpu.matmul %440, %304, %cst_146 {dimension_numbers = #tpu.dot_dimension_numbers<[1], [0], [0], [1], [0, 0, 1, 1], [], []>} : vector<8x128xf32>, vector<128x512xf32>, vector<8x512xf32> -> vector<8x512xf32>
    %449 = arith.addf %447, %448 : vector<8x512xf32>
    %450 = vector.extract_strided_slice %449 {offsets = [0, 0], sizes = [8, 128], strides = [1, 1]} : vector<8x512xf32> to vector<8x128xf32>
    %451 = arith.negf %450 : vector<8x128xf32>
    %452 = math.exp %451 : vector<8x128xf32>
    %cst_147 = arith.constant 1.000000e+00 : f32
    %453 = vector.broadcast %cst_147 : f32 to vector<8x128xf32>
    %454 = arith.addf %453, %452 : vector<8x128xf32>
    %455 = arith.divf %453, %454 : vector<8x128xf32>
    %456 = vector.extract_strided_slice %449 {offsets = [0, 128], sizes = [8, 128], strides = [1, 1]} : vector<8x512xf32> to vector<8x128xf32>
    %457 = arith.negf %456 : vector<8x128xf32>
    %458 = math.exp %457 : vector<8x128xf32>
    %cst_148 = arith.constant 1.000000e+00 : f32
    %459 = vector.broadcast %cst_148 : f32 to vector<8x128xf32>
    %460 = arith.addf %459, %458 : vector<8x128xf32>
    %461 = arith.divf %459, %460 : vector<8x128xf32>
    %462 = vector.extract_strided_slice %449 {offsets = [0, 256], sizes = [8, 128], strides = [1, 1]} : vector<8x512xf32> to vector<8x128xf32>
    %463 = math.tanh %462 : vector<8x128xf32>
    %464 = vector.extract_strided_slice %449 {offsets = [0, 384], sizes = [8, 128], strides = [1, 1]} : vector<8x512xf32> to vector<8x128xf32>
    %465 = arith.negf %464 : vector<8x128xf32>
    %466 = math.exp %465 : vector<8x128xf32>
    %cst_149 = arith.constant 1.000000e+00 : f32
    %467 = vector.broadcast %cst_149 : f32 to vector<8x128xf32>
    %468 = arith.addf %467, %466 : vector<8x128xf32>
    %469 = arith.divf %467, %468 : vector<8x128xf32>
    %470 = arith.mulf %461, %438 : vector<8x128xf32>
    %471 = arith.mulf %455, %463 : vector<8x128xf32>
    %472 = arith.addf %470, %471 : vector<8x128xf32>
    %473 = math.tanh %472 : vector<8x128xf32>
    %474 = arith.mulf %469, %473 : vector<8x128xf32>
    %475 = arith.index_cast %c4_i32_143 : i32 to index
    %c0_150 = arith.constant 0 : index
    %c0_151 = arith.constant 0 : index
    %476 = vector.load %arg11[%475, %c0_150, %c0_151] : memref<8x8x128xf32, #tpu.memory_space<vmem>>, vector<1x8x128xf32>
    %477 = vector.shape_cast %476 : vector<1x8x128xf32> to vector<8x128xf32>
    %478 = vector.shape_cast %474 : vector<8x128xf32> to vector<1x8x128xf32>
    tpu.vector_store %arg11[%475, %c0_150, %c0_151], %478 {strides = array<i32>} : memref<8x8x128xf32, #tpu.memory_space<vmem>>, vector<1x8x128xf32>,
    %c5_i32_152 = arith.constant 5 : i32
    %479 = arith.index_cast %c5_i32_152 : i32 to index
    %c0_153 = arith.constant 0 : index
    %c0_154 = arith.constant 0 : index
    %480 = vector.load %arg16[%479, %c0_153, %c0_154] : memref<8x8x512xf32, #tpu.memory_space<vmem>>, vector<1x8x512xf32>
    %481 = vector.shape_cast %480 : vector<1x8x512xf32> to vector<8x512xf32>
    %cst_155 = arith.constant dense<0.000000e+00> : vector<8x512xf32>
    %482 = tpu.matmul %474, %304, %cst_155 {dimension_numbers = #tpu.dot_dimension_numbers<[1], [0], [0], [1], [0, 0, 1, 1], [], []>} : vector<8x128xf32>, vector<128x512xf32>, vector<8x512xf32> -> vector<8x512xf32>
    %483 = arith.addf %481, %482 : vector<8x512xf32>
    %484 = vector.extract_strided_slice %483 {offsets = [0, 0], sizes = [8, 128], strides = [1, 1]} : vector<8x512xf32> to vector<8x128xf32>
    %485 = arith.negf %484 : vector<8x128xf32>
    %486 = math.exp %485 : vector<8x128xf32>
    %cst_156 = arith.constant 1.000000e+00 : f32
    %487 = vector.broadcast %cst_156 : f32 to vector<8x128xf32>
    %488 = arith.addf %487, %486 : vector<8x128xf32>
    %489 = arith.divf %487, %488 : vector<8x128xf32>
    %490 = vector.extract_strided_slice %483 {offsets = [0, 128], sizes = [8, 128], strides = [1, 1]} : vector<8x512xf32> to vector<8x128xf32>
    %491 = arith.negf %490 : vector<8x128xf32>
    %492 = math.exp %491 : vector<8x128xf32>
    %cst_157 = arith.constant 1.000000e+00 : f32
    %493 = vector.broadcast %cst_157 : f32 to vector<8x128xf32>
    %494 = arith.addf %493, %492 : vector<8x128xf32>
    %495 = arith.divf %493, %494 : vector<8x128xf32>
    %496 = vector.extract_strided_slice %483 {offsets = [0, 256], sizes = [8, 128], strides = [1, 1]} : vector<8x512xf32> to vector<8x128xf32>
    %497 = math.tanh %496 : vector<8x128xf32>
    %498 = vector.extract_strided_slice %483 {offsets = [0, 384], sizes = [8, 128], strides = [1, 1]} : vector<8x512xf32> to vector<8x128xf32>
    %499 = arith.negf %498 : vector<8x128xf32>
    %500 = math.exp %499 : vector<8x128xf32>
    %cst_158 = arith.constant 1.000000e+00 : f32
    %501 = vector.broadcast %cst_158 : f32 to vector<8x128xf32>
    %502 = arith.addf %501, %500 : vector<8x128xf32>
    %503 = arith.divf %501, %502 : vector<8x128xf32>
    %504 = arith.mulf %495, %472 : vector<8x128xf32>
    %505 = arith.mulf %489, %497 : vector<8x128xf32>
    %506 = arith.addf %504, %505 : vector<8x128xf32>
    %507 = math.tanh %506 : vector<8x128xf32>
    %508 = arith.mulf %503, %507 : vector<8x128xf32>
    %509 = arith.index_cast %c5_i32_152 : i32 to index
    %c0_159 = arith.constant 0 : index
    %c0_160 = arith.constant 0 : index
    %510 = vector.load %arg11[%509, %c0_159, %c0_160] : memref<8x8x128xf32, #tpu.memory_space<vmem>>, vector<1x8x128xf32>
    %511 = vector.shape_cast %510 : vector<1x8x128xf32> to vector<8x128xf32>
    %512 = vector.shape_cast %508 : vector<8x128xf32> to vector<1x8x128xf32>
    tpu.vector_store %arg11[%509, %c0_159, %c0_160], %512 {strides = array<i32>} : memref<8x8x128xf32, #tpu.memory_space<vmem>>, vector<1x8x128xf32>,
    %c6_i32_161 = arith.constant 6 : i32
    %513 = arith.index_cast %c6_i32_161 : i32 to index
    %c0_162 = arith.constant 0 : index
    %c0_163 = arith.constant 0 : index
    %514 = vector.load %arg16[%513, %c0_162, %c0_163] : memref<8x8x512xf32, #tpu.memory_space<vmem>>, vector<1x8x512xf32>
    %515 = vector.shape_cast %514 : vector<1x8x512xf32> to vector<8x512xf32>
    %cst_164 = arith.constant dense<0.000000e+00> : vector<8x512xf32>
    %516 = tpu.matmul %508, %304, %cst_164 {dimension_numbers = #tpu.dot_dimension_numbers<[1], [0], [0], [1], [0, 0, 1, 1], [], []>} : vector<8x128xf32>, vector<128x512xf32>, vector<8x512xf32> -> vector<8x512xf32>
    %517 = arith.addf %515, %516 : vector<8x512xf32>
    %518 = vector.extract_strided_slice %517 {offsets = [0, 0], sizes = [8, 128], strides = [1, 1]} : vector<8x512xf32> to vector<8x128xf32>
    %519 = arith.negf %518 : vector<8x128xf32>
    %520 = math.exp %519 : vector<8x128xf32>
    %cst_165 = arith.constant 1.000000e+00 : f32
    %521 = vector.broadcast %cst_165 : f32 to vector<8x128xf32>
    %522 = arith.addf %521, %520 : vector<8x128xf32>
    %523 = arith.divf %521, %522 : vector<8x128xf32>
    %524 = vector.extract_strided_slice %517 {offsets = [0, 128], sizes = [8, 128], strides = [1, 1]} : vector<8x512xf32> to vector<8x128xf32>
    %525 = arith.negf %524 : vector<8x128xf32>
    %526 = math.exp %525 : vector<8x128xf32>
    %cst_166 = arith.constant 1.000000e+00 : f32
    %527 = vector.broadcast %cst_166 : f32 to vector<8x128xf32>
    %528 = arith.addf %527, %526 : vector<8x128xf32>
    %529 = arith.divf %527, %528 : vector<8x128xf32>
    %530 = vector.extract_strided_slice %517 {offsets = [0, 256], sizes = [8, 128], strides = [1, 1]} : vector<8x512xf32> to vector<8x128xf32>
    %531 = math.tanh %530 : vector<8x128xf32>
    %532 = vector.extract_strided_slice %517 {offsets = [0, 384], sizes = [8, 128], strides = [1, 1]} : vector<8x512xf32> to vector<8x128xf32>
    %533 = arith.negf %532 : vector<8x128xf32>
    %534 = math.exp %533 : vector<8x128xf32>
    %cst_167 = arith.constant 1.000000e+00 : f32
    %535 = vector.broadcast %cst_167 : f32 to vector<8x128xf32>
    %536 = arith.addf %535, %534 : vector<8x128xf32>
    %537 = arith.divf %535, %536 : vector<8x128xf32>
    %538 = arith.mulf %529, %506 : vector<8x128xf32>
    %539 = arith.mulf %523, %531 : vector<8x128xf32>
    %540 = arith.addf %538, %539 : vector<8x128xf32>
    %541 = math.tanh %540 : vector<8x128xf32>
    %542 = arith.mulf %537, %541 : vector<8x128xf32>
    %543 = arith.index_cast %c6_i32_161 : i32 to index
    %c0_168 = arith.constant 0 : index
    %c0_169 = arith.constant 0 : index
    %544 = vector.load %arg11[%543, %c0_168, %c0_169] : memref<8x8x128xf32, #tpu.memory_space<vmem>>, vector<1x8x128xf32>
    %545 = vector.shape_cast %544 : vector<1x8x128xf32> to vector<8x128xf32>
    %546 = vector.shape_cast %542 : vector<8x128xf32> to vector<1x8x128xf32>
    tpu.vector_store %arg11[%543, %c0_168, %c0_169], %546 {strides = array<i32>} : memref<8x8x128xf32, #tpu.memory_space<vmem>>, vector<1x8x128xf32>,
    %c7_i32_170 = arith.constant 7 : i32
    %547 = arith.index_cast %c7_i32_170 : i32 to index
    %c0_171 = arith.constant 0 : index
    %c0_172 = arith.constant 0 : index
    %548 = vector.load %arg16[%547, %c0_171, %c0_172] : memref<8x8x512xf32, #tpu.memory_space<vmem>>, vector<1x8x512xf32>
    %549 = vector.shape_cast %548 : vector<1x8x512xf32> to vector<8x512xf32>
    %cst_173 = arith.constant dense<0.000000e+00> : vector<8x512xf32>
    %550 = tpu.matmul %542, %304, %cst_173 {dimension_numbers = #tpu.dot_dimension_numbers<[1], [0], [0], [1], [0, 0, 1, 1], [], []>} : vector<8x128xf32>, vector<128x512xf32>, vector<8x512xf32> -> vector<8x512xf32>
    %551 = arith.addf %549, %550 : vector<8x512xf32>
    %552 = vector.extract_strided_slice %551 {offsets = [0, 0], sizes = [8, 128], strides = [1, 1]} : vector<8x512xf32> to vector<8x128xf32>
    %553 = arith.negf %552 : vector<8x128xf32>
    %554 = math.exp %553 : vector<8x128xf32>
    %cst_174 = arith.constant 1.000000e+00 : f32
    %555 = vector.broadcast %cst_174 : f32 to vector<8x128xf32>
    %556 = arith.addf %555, %554 : vector<8x128xf32>
    %557 = arith.divf %555, %556 : vector<8x128xf32>
    %558 = vector.extract_strided_slice %551 {offsets = [0, 128], sizes = [8, 128], strides = [1, 1]} : vector<8x512xf32> to vector<8x128xf32>
    %559 = arith.negf %558 : vector<8x128xf32>
    %560 = math.exp %559 : vector<8x128xf32>
    %cst_175 = arith.constant 1.000000e+00 : f32
    %561 = vector.broadcast %cst_175 : f32 to vector<8x128xf32>
    %562 = arith.addf %561, %560 : vector<8x128xf32>
    %563 = arith.divf %561, %562 : vector<8x128xf32>
    %564 = vector.extract_strided_slice %551 {offsets = [0, 256], sizes = [8, 128], strides = [1, 1]} : vector<8x512xf32> to vector<8x128xf32>
    %565 = math.tanh %564 : vector<8x128xf32>
    %566 = vector.extract_strided_slice %551 {offsets = [0, 384], sizes = [8, 128], strides = [1, 1]} : vector<8x512xf32> to vector<8x128xf32>
    %567 = arith.negf %566 : vector<8x128xf32>
    %568 = math.exp %567 : vector<8x128xf32>
    %cst_176 = arith.constant 1.000000e+00 : f32
    %569 = vector.broadcast %cst_176 : f32 to vector<8x128xf32>
    %570 = arith.addf %569, %568 : vector<8x128xf32>
    %571 = arith.divf %569, %570 : vector<8x128xf32>
    %572 = arith.mulf %563, %540 : vector<8x128xf32>
    %573 = arith.mulf %557, %565 : vector<8x128xf32>
    %574 = arith.addf %572, %573 : vector<8x128xf32>
    %575 = math.tanh %574 : vector<8x128xf32>
    %576 = arith.mulf %571, %575 : vector<8x128xf32>
    %577 = arith.index_cast %c7_i32_170 : i32 to index
    %c0_177 = arith.constant 0 : index
    %c0_178 = arith.constant 0 : index
    %578 = vector.load %arg11[%577, %c0_177, %c0_178] : memref<8x8x128xf32, #tpu.memory_space<vmem>>, vector<1x8x128xf32>
    %579 = vector.shape_cast %578 : vector<1x8x128xf32> to vector<8x128xf32>
    %580 = vector.shape_cast %576 : vector<8x128xf32> to vector<1x8x128xf32>
    tpu.vector_store %arg11[%577, %c0_177, %c0_178], %580 {strides = array<i32>} : memref<8x8x128xf32, #tpu.memory_space<vmem>>, vector<1x8x128xf32>,
    %c8_i32_179 = arith.constant 8 : i32
    %c1_180 = arith.constant 1 : index
    %c0_181 = arith.constant 0 : index
    %c0_182 = arith.constant 0 : index
    %581 = vector.load %arg14[%c1_180, %c0_181, %c0_182] : memref<2x8x128xf32, #tpu.memory_space<vmem>>, vector<1x8x128xf32>
    %582 = vector.shape_cast %581 : vector<1x8x128xf32> to vector<8x128xf32>
    %583 = vector.shape_cast %576 : vector<8x128xf32> to vector<1x8x128xf32>
    tpu.vector_store %arg14[%c1_180, %c0_181, %c0_182], %583 {strides = array<i32>} : memref<2x8x128xf32, #tpu.memory_space<vmem>>, vector<1x8x128xf32>,
    %c1_183 = arith.constant 1 : index
    %c0_184 = arith.constant 0 : index
    %c0_185 = arith.constant 0 : index
    %584 = vector.load %arg15[%c1_183, %c0_184, %c0_185] : memref<2x8x128xf32, #tpu.memory_space<vmem>>, vector<1x8x128xf32>
    %585 = vector.shape_cast %584 : vector<1x8x128xf32> to vector<8x128xf32>
    %586 = vector.shape_cast %574 : vector<8x128xf32> to vector<1x8x128xf32>
    tpu.vector_store %arg15[%c1_183, %c0_184, %c0_185], %586 {strides = array<i32>} : memref<2x8x128xf32, #tpu.memory_space<vmem>>, vector<1x8x128xf32>,
    %c0_i32_186 = arith.constant 0 : i32
    %587 = arith.cmpi eq, %arg1, %c0_i32_186 : i32
    %588 = arith.extui %587 : i1 to i32
    %c0_i32_187 = arith.constant 0 : i32
    %589 = arith.cmpi ne, %588, %c0_i32_187 : i32
    scf.if %589 {
      %c0_188 = arith.constant 0 : index
      %c0_189 = arith.constant 0 : index
      %c0_190 = arith.constant 0 : index
      %590 = vector.load %arg14[%c0_188, %c0_189, %c0_190] : memref<2x8x128xf32, #tpu.memory_space<vmem>>, vector<2x8x128xf32>
      %c0_191 = arith.constant 0 : index
      %c0_192 = arith.constant 0 : index
      %c0_193 = arith.constant 0 : index
      %591 = vector.load %arg12[%c0_191, %c0_192, %c0_193] : memref<2x8x128xf32, #tpu.memory_space<vmem>>, vector<2x8x128xf32>
      tpu.vector_store %arg12[%c0_191, %c0_192, %c0_193], %590 {strides = array<i32>} : memref<2x8x128xf32, #tpu.memory_space<vmem>>, vector<2x8x128xf32>,
      %c0_194 = arith.constant 0 : index
      %c0_195 = arith.constant 0 : index
      %c0_196 = arith.constant 0 : index
      %592 = vector.load %arg15[%c0_194, %c0_195, %c0_196] : memref<2x8x128xf32, #tpu.memory_space<vmem>>, vector<2x8x128xf32>
      %c0_197 = arith.constant 0 : index
      %c0_198 = arith.constant 0 : index
      %c0_199 = arith.constant 0 : index
      %593 = vector.load %arg13[%c0_197, %c0_198, %c0_199] : memref<2x8x128xf32, #tpu.memory_space<vmem>>, vector<2x8x128xf32>
      tpu.vector_store %arg13[%c0_197, %c0_198, %c0_199], %592 {strides = array<i32>} : memref<2x8x128xf32, #tpu.memory_space<vmem>>, vector<2x8x128xf32>,
    } else {
    }
    return
  }
  func.func @transform_0(%arg0: i32, %arg1: i32) -> (i32, i32, i32) {
    %c0_i32 = arith.constant 0 : i32
    %c0_i32_0 = arith.constant 0 : i32
    return %arg1, %arg0, %c0_i32 : i32, i32, i32
  }
  func.func @transform_1(%arg0: i32, %arg1: i32) -> (i32, i32, i32) {
    %c0_i32 = arith.constant 0 : i32
    %c0_i32_0 = arith.constant 0 : i32
    %c0_i32_1 = arith.constant 0 : i32
    return %c0_i32, %arg0, %c0_i32_0 : i32, i32, i32
  }
  func.func @transform_2(%arg0: i32, %arg1: i32) -> (i32, i32, i32) {
    %c0_i32 = arith.constant 0 : i32
    %c0_i32_0 = arith.constant 0 : i32
    %c0_i32_1 = arith.constant 0 : i32
    return %c0_i32, %arg0, %c0_i32_0 : i32, i32, i32
  }
  func.func @transform_3(%arg0: i32, %arg1: i32) -> (i32, i32) {
    %c0_i32 = arith.constant 0 : i32
    %c0_i32_0 = arith.constant 0 : i32
    %c0_i32_1 = arith.constant 0 : i32
    return %c0_i32, %c0_i32_0 : i32, i32
  }
  func.func @transform_4(%arg0: i32, %arg1: i32) -> (i32, i32) {
    %c0_i32 = arith.constant 0 : i32
    %c0_i32_0 = arith.constant 0 : i32
    %c0_i32_1 = arith.constant 0 : i32
    return %c0_i32, %c0_i32_0 : i32, i32
  }
  func.func @transform_5(%arg0: i32, %arg1: i32) -> (i32, i32) {
    %c0_i32 = arith.constant 0 : i32
    %c0_i32_0 = arith.constant 0 : i32
    %c0_i32_1 = arith.constant 0 : i32
    return %c0_i32, %c0_i32_0 : i32, i32
  }
  func.func @transform_6(%arg0: i32, %arg1: i32) -> (i32, i32) {
    %c0_i32 = arith.constant 0 : i32
    %c0_i32_0 = arith.constant 0 : i32
    %c0_i32_1 = arith.constant 0 : i32
    return %c0_i32, %c0_i32_0 : i32, i32
  }
  func.func @transform_7(%arg0: i32, %arg1: i32) -> (i32, i32) {
    %c0_i32 = arith.constant 0 : i32
    %c0_i32_0 = arith.constant 0 : i32
    %c0_i32_1 = arith.constant 0 : i32
    return %c0_i32, %c0_i32_0 : i32, i32
  }
  func.func @transform_8(%arg0: i32, %arg1: i32) -> (i32, i32) {
    %c0_i32 = arith.constant 0 : i32
    %c0_i32_0 = arith.constant 0 : i32
    %c0_i32_1 = arith.constant 0 : i32
    return %c0_i32, %c0_i32_0 : i32, i32
  }
  func.func @transform_9(%arg0: i32, %arg1: i32) -> (i32, i32, i32) {
    %c0_i32 = arith.constant 0 : i32
    %c0_i32_0 = arith.constant 0 : i32
    return %arg1, %arg0, %c0_i32 : i32, i32, i32
  }
  func.func @transform_10(%arg0: i32, %arg1: i32) -> (i32, i32, i32) {
    %c0_i32 = arith.constant 0 : i32
    %c0_i32_0 = arith.constant 0 : i32
    %c0_i32_1 = arith.constant 0 : i32
    return %c0_i32, %arg0, %c0_i32_0 : i32, i32, i32
  }
  func.func @transform_11(%arg0: i32, %arg1: i32) -> (i32, i32, i32) {
    %c0_i32 = arith.constant 0 : i32
    %c0_i32_0 = arith.constant 0 : i32
    %c0_i32_1 = arith.constant 0 : i32
    return %c0_i32, %arg0, %c0_i32_0 : i32, i32, i32
  }
}

module attributes {stable_mosaic.version = 11 : i64} {
  func.func @kernel(%arg0: i32, %arg1: i32, %arg2: memref<8x8x128xf32, #tpu.memory_space<vmem>>, %arg3: memref<2x8x128xf32, #tpu.memory_space<vmem>>, %arg4: memref<2x8x128xf32, #tpu.memory_space<vmem>>, %arg5: memref<128x512xf32, #tpu.memory_space<vmem>>, %arg6: memref<128x512xf32, #tpu.memory_space<vmem>>, %arg7: memref<1x512xf32, #tpu.memory_space<vmem>>, %arg8: memref<128x512xf32, #tpu.memory_space<vmem>>, %arg9: memref<128x512xf32, #tpu.memory_space<vmem>>, %arg10: memref<1x512xf32, #tpu.memory_space<vmem>>, %arg11: memref<8x8x128xf32, #tpu.memory_space<vmem>>, %arg12: memref<2x8x128xf32, #tpu.memory_space<vmem>>, %arg13: memref<2x8x128xf32, #tpu.memory_space<vmem>>, %arg14: memref<2x8x128xf32, #tpu.memory_space<vmem>>, %arg15: memref<2x8x128xf32, #tpu.memory_space<vmem>>, %arg16: memref<8x8x512xf32, #tpu.memory_space<vmem>>, %arg17: memref<8x8x128xf32, #tpu.memory_space<vmem>>) attributes {dimension_semantics = [#tpu.dimension_semantics<parallel>, #tpu.dimension_semantics<arbitrary>], iteration_bounds = array<i64: 1, 1>, scalar_prefetch = 0 : i64, scratch_operands = 4 : i64, tpu.core_type = #tpu.core_type<tc>, window_params = [{transform_indices = @transform_0, window_bounds = array<i64: 8, 8, 128>}, {transform_indices = @transform_1, window_bounds = array<i64: 2, 8, 128>}, {transform_indices = @transform_2, window_bounds = array<i64: 2, 8, 128>}, {pipeline_mode = #tpu.pipeline_mode<synchronous>, transform_indices = @transform_3, window_bounds = array<i64: 128, 512>}, {pipeline_mode = #tpu.pipeline_mode<synchronous>, transform_indices = @transform_4, window_bounds = array<i64: 128, 512>}, {pipeline_mode = #tpu.pipeline_mode<synchronous>, transform_indices = @transform_5, window_bounds = array<i64: 1, 512>}, {pipeline_mode = #tpu.pipeline_mode<synchronous>, transform_indices = @transform_6, window_bounds = array<i64: 128, 512>}, {pipeline_mode = #tpu.pipeline_mode<synchronous>, transform_indices = @transform_7, window_bounds = array<i64: 128, 512>}, {pipeline_mode = #tpu.pipeline_mode<synchronous>, transform_indices = @transform_8, window_bounds = array<i64: 1, 512>}, {transform_indices = @transform_9, window_bounds = array<i64: 8, 8, 128>}, {transform_indices = @transform_10, window_bounds = array<i64: 2, 8, 128>}, {transform_indices = @transform_11, window_bounds = array<i64: 2, 8, 128>}]} {
    %c0_i32 = arith.constant 0 : i32
    %0 = arith.cmpi eq, %arg1, %c0_i32 : i32
    %1 = arith.extui %0 : i1 to i32
    %c0_i32_0 = arith.constant 0 : i32
    %2 = arith.cmpi ne, %1, %c0_i32_0 : i32
    scf.if %2 {
      %c0_188 = arith.constant 0 : index
      %c0_189 = arith.constant 0 : index
      %c0_190 = arith.constant 0 : index
      %590 = vector.load %arg3[%c0_188, %c0_189, %c0_190] : memref<2x8x128xf32, #tpu.memory_space<vmem>>, vector<2x8x128xf32>
      %c0_191 = arith.constant 0 : index
      %c0_192 = arith.constant 0 : index
      %c0_193 = arith.constant 0 : index
      %591 = vector.load %arg14[%c0_191, %c0_192, %c0_193] : memref<2x8x128xf32, #tpu.memory_space<vmem>>, vector<2x8x128xf32>
      tpu.vector_store %arg14[%c0_191, %c0_192, %c0_193], %590 {strides = array<i32>} : memref<2x8x128xf32, #tpu.memory_space<vmem>>, vector<2x8x128xf32>,
      %c0_194 = arith.constant 0 : index
      %c0_195 = arith.constant 0 : index
      %c0_196 = arith.constant 0 : index
      %592 = vector.load %arg4[%c0_194, %c0_195, %c0_196] : memref<2x8x128xf32, #tpu.memory_space<vmem>>, vector<2x8x128xf32>
      %c0_197 = arith.constant 0 : index
      %c0_198 = arith.constant 0 : index
      %c0_199 = arith.constant 0 : index
      %593 = vector.load %arg15[%c0_197, %c0_198, %c0_199] : memref<2x8x128xf32, #tpu.memory_space<vmem>>, vector<2x8x128xf32>
      tpu.vector_store %arg15[%c0_197, %c0_198, %c0_199], %592 {strides = array<i32>} : memref<2x8x128xf32, #tpu.memory_space<vmem>>, vector<2x8x128xf32>,
    } else {
    }
    %c0 = arith.constant 0 : index
    %c0_1 = arith.constant 0 : index
    %c0_2 = arith.constant 0 : index
    %3 = vector.load %arg2[%c0, %c0_1, %c0_2] : memref<8x8x128xf32, #tpu.memory_space<vmem>>, vector<8x8x128xf32>
    %4 = vector.shape_cast %3 : vector<8x8x128xf32> to vector<64x128xf32>
    %c0_3 = arith.constant 0 : index
    %c0_4 = arith.constant 0 : index
    %5 = vector.load %arg5[%c0_3, %c0_4] : memref<128x512xf32, #tpu.memory_space<vmem>>, vector<128x512xf32>
    %cst = arith.constant dense<0.000000e+00> : vector<64x512xf32>
    %6 = tpu.matmul %4, %5, %cst {dimension_numbers = #tpu.dot_dimension_numbers<[1], [0], [0], [1], [0, 0, 1, 1], [], []>} : vector<64x128xf32>, vector<128x512xf32>, vector<64x512xf32> -> vector<64x512xf32>
    %c0_5 = arith.constant 0 : index
    %c0_6 = arith.constant 0 : index
    %7 = vector.load %arg7[%c0_5, %c0_6] : memref<1x512xf32, #tpu.memory_space<vmem>>, vector<1x512xf32>
    %8 = vector.broadcast %7 : vector<1x512xf32> to vector<64x512xf32>
    %9 = arith.addf %6, %8 : vector<64x512xf32>
    %10 = vector.shape_cast %9 : vector<64x512xf32> to vector<8x8x512xf32>
    %c0_7 = arith.constant 0 : index
    %c0_8 = arith.constant 0 : index
    %c0_9 = arith.constant 0 : index
    %11 = vector.load %arg16[%c0_7, %c0_8, %c0_9] : memref<8x8x512xf32, #tpu.memory_space<vmem>>, vector<8x8x512xf32>
    tpu.vector_store %arg16[%c0_7, %c0_8, %c0_9], %10 {strides = array<i32>} : memref<8x8x512xf32, #tpu.memory_space<vmem>>, vector<8x8x512xf32>,
    %c0_10 = arith.constant 0 : index
    %c0_11 = arith.constant 0 : index
    %12 = vector.load %arg6[%c0_10, %c0_11] : memref<128x512xf32, #tpu.memory_space<vmem>>, vector<128x512xf32>
    %c0_12 = arith.constant 0 : index
    %c0_13 = arith.constant 0 : index
    %c0_14 = arith.constant 0 : index
    %13 = vector.load %arg14[%c0_12, %c0_13, %c0_14] : memref<2x8x128xf32, #tpu.memory_space<vmem>>, vector<1x8x128xf32>
    %14 = vector.shape_cast %13 : vector<1x8x128xf32> to vector<8x128xf32>
    %c0_15 = arith.constant 0 : index
    %c0_16 = arith.constant 0 : index
    %c0_17 = arith.constant 0 : index
    %15 = vector.load %arg15[%c0_15, %c0_16, %c0_17] : memref<2x8x128xf32, #tpu.memory_space<vmem>>, vector<1x8x128xf32>
    %16 = vector.shape_cast %15 : vector<1x8x128xf32> to vector<8x128xf32>
    %c0_i32_18 = arith.constant 0 : i32
    %17 = arith.index_cast %c0_i32_18 : i32 to index
    %c0_19 = arith.constant 0 : index
    %c0_20 = arith.constant 0 : index
    %18 = vector.load %arg16[%17, %c0_19, %c0_20] : memref<8x8x512xf32, #tpu.memory_space<vmem>>, vector<1x8x512xf32>
    %19 = vector.shape_cast %18 : vector<1x8x512xf32> to vector<8x512xf32>
    %cst_21 = arith.constant dense<0.000000e+00> : vector<8x512xf32>
    %20 = tpu.matmul %14, %12, %cst_21 {dimension_numbers = #tpu.dot_dimension_numbers<[1], [0], [0], [1], [0, 0, 1, 1], [], []>} : vector<8x128xf32>, vector<128x512xf32>, vector<8x512xf32> -> vector<8x512xf32>
    %21 = arith.addf %19, %20 : vector<8x512xf32>
    %22 = vector.extract_strided_slice %21 {offsets = [0, 0], sizes = [8, 128], strides = [1, 1]} : vector<8x512xf32> to vector<8x128xf32>
    %23 = arith.negf %22 : vector<8x128xf32>
    %24 = math.exp %23 : vector<8x128xf32>
    %cst_22 = arith.constant 1.000000e+00 : f32
    %25 = vector.broadcast %cst_22 : f32 to vector<8x128xf32>
    %26 = arith.addf %25, %24 : vector<8x128xf32>
    %27 = arith.divf %25, %26 : vector<8x128xf32>
    %28 = vector.extract_strided_slice %21 {offsets = [0, 128], sizes = [8, 128], strides = [1, 1]} : vector<8x512xf32> to vector<8x128xf32>
    %29 = arith.negf %28 : vector<8x128xf32>
    %30 = math.exp %29 : vector<8x128xf32>
    %cst_23 = arith.constant 1.000000e+00 : f32
    %31 = vector.broadcast %cst_23 : f32 to vector<8x128xf32>
    %32 = arith.addf %31, %30 : vector<8x128xf32>
    %33 = arith.divf %31, %32 : vector<8x128xf32>
    %34 = vector.extract_strided_slice %21 {offsets = [0, 256], sizes = [8, 128], strides = [1, 1]} : vector<8x512xf32> to vector<8x128xf32>
    %35 = math.tanh %34 : vector<8x128xf32>
    %36 = vector.extract_strided_slice %21 {offsets = [0, 384], sizes = [8, 128], strides = [1, 1]} : vector<8x512xf32> to vector<8x128xf32>
    %37 = arith.negf %36 : vector<8x128xf32>
    %38 = math.exp %37 : vector<8x128xf32>
    %cst_24 = arith.constant 1.000000e+00 : f32
    %39 = vector.broadcast %cst_24 : f32 to vector<8x128xf32>
    %40 = arith.addf %39, %38 : vector<8x128xf32>
    %41 = arith.divf %39, %40 : vector<8x128xf32>
    %42 = arith.mulf %33, %16 : vector<8x128xf32>
    %43 = arith.mulf %27, %35 : vector<8x128xf32>
    %44 = arith.addf %42, %43 : vector<8x128xf32>
    %45 = math.tanh %44 : vector<8x128xf32>
    %46 = arith.mulf %41, %45 : vector<8x128xf32>
    %47 = arith.index_cast %c0_i32_18 : i32 to index
    %c0_25 = arith.constant 0 : index
    %c0_26 = arith.constant 0 : index
    %48 = vector.load %arg17[%47, %c0_25, %c0_26] : memref<8x8x128xf32, #tpu.memory_space<vmem>>, vector<1x8x128xf32>
    %49 = vector.shape_cast %48 : vector<1x8x128xf32> to vector<8x128xf32>
    %50 = vector.shape_cast %46 : vector<8x128xf32> to vector<1x8x128xf32>
    tpu.vector_store %arg17[%47, %c0_25, %c0_26], %50 {strides = array<i32>} : memref<8x8x128xf32, #tpu.memory_space<vmem>>, vector<1x8x128xf32>,
    %c1_i32 = arith.constant 1 : i32
    %51 = arith.index_cast %c1_i32 : i32 to index
    %c0_27 = arith.constant 0 : index
    %c0_28 = arith.constant 0 : index
    %52 = vector.load %arg16[%51, %c0_27, %c0_28] : memref<8x8x512xf32, #tpu.memory_space<vmem>>, vector<1x8x512xf32>
    %53 = vector.shape_cast %52 : vector<1x8x512xf32> to vector<8x512xf32>
    %cst_29 = arith.constant dense<0.000000e+00> : vector<8x512xf32>
    %54 = tpu.matmul %46, %12, %cst_29 {dimension_numbers = #tpu.dot_dimension_numbers<[1], [0], [0], [1], [0, 0, 1, 1], [], []>} : vector<8x128xf32>, vector<128x512xf32>, vector<8x512xf32> -> vector<8x512xf32>
    %55 = arith.addf %53, %54 : vector<8x512xf32>
    %56 = vector.extract_strided_slice %55 {offsets = [0, 0], sizes = [8, 128], strides = [1, 1]} : vector<8x512xf32> to vector<8x128xf32>
    %57 = arith.negf %56 : vector<8x128xf32>
    %58 = math.exp %57 : vector<8x128xf32>
    %cst_30 = arith.constant 1.000000e+00 : f32
    %59 = vector.broadcast %cst_30 : f32 to vector<8x128xf32>
    %60 = arith.addf %59, %58 : vector<8x128xf32>
    %61 = arith.divf %59, %60 : vector<8x128xf32>
    %62 = vector.extract_strided_slice %55 {offsets = [0, 128], sizes = [8, 128], strides = [1, 1]} : vector<8x512xf32> to vector<8x128xf32>
    %63 = arith.negf %62 : vector<8x128xf32>
    %64 = math.exp %63 : vector<8x128xf32>
    %cst_31 = arith.constant 1.000000e+00 : f32
    %65 = vector.broadcast %cst_31 : f32 to vector<8x128xf32>
    %66 = arith.addf %65, %64 : vector<8x128xf32>
    %67 = arith.divf %65, %66 : vector<8x128xf32>
    %68 = vector.extract_strided_slice %55 {offsets = [0, 256], sizes = [8, 128], strides = [1, 1]} : vector<8x512xf32> to vector<8x128xf32>
    %69 = math.tanh %68 : vector<8x128xf32>
    %70 = vector.extract_strided_slice %55 {offsets = [0, 384], sizes = [8, 128], strides = [1, 1]} : vector<8x512xf32> to vector<8x128xf32>
    %71 = arith.negf %70 : vector<8x128xf32>
    %72 = math.exp %71 : vector<8x128xf32>
    %cst_32 = arith.constant 1.000000e+00 : f32
    %73 = vector.broadcast %cst_32 : f32 to vector<8x128xf32>
    %74 = arith.addf %73, %72 : vector<8x128xf32>
    %75 = arith.divf %73, %74 : vector<8x128xf32>
    %76 = arith.mulf %67, %44 : vector<8x128xf32>
    %77 = arith.mulf %61, %69 : vector<8x128xf32>
    %78 = arith.addf %76, %77 : vector<8x128xf32>
    %79 = math.tanh %78 : vector<8x128xf32>
    %80 = arith.mulf %75, %79 : vector<8x128xf32>
    %81 = arith.index_cast %c1_i32 : i32 to index
    %c0_33 = arith.constant 0 : index
    %c0_34 = arith.constant 0 : index
    %82 = vector.load %arg17[%81, %c0_33, %c0_34] : memref<8x8x128xf32, #tpu.memory_space<vmem>>, vector<1x8x128xf32>
    %83 = vector.shape_cast %82 : vector<1x8x128xf32> to vector<8x128xf32>
    %84 = vector.shape_cast %80 : vector<8x128xf32> to vector<1x8x128xf32>
    tpu.vector_store %arg17[%81, %c0_33, %c0_34], %84 {strides = array<i32>} : memref<8x8x128xf32, #tpu.memory_space<vmem>>, vector<1x8x128xf32>,
    %c2_i32 = arith.constant 2 : i32
    %85 = arith.index_cast %c2_i32 : i32 to index
    %c0_35 = arith.constant 0 : index
    %c0_36 = arith.constant 0 : index
    %86 = vector.load %arg16[%85, %c0_35, %c0_36] : memref<8x8x512xf32, #tpu.memory_space<vmem>>, vector<1x8x512xf32>
    %87 = vector.shape_cast %86 : vector<1x8x512xf32> to vector<8x512xf32>
    %cst_37 = arith.constant dense<0.000000e+00> : vector<8x512xf32>
    %88 = tpu.matmul %80, %12, %cst_37 {dimension_numbers = #tpu.dot_dimension_numbers<[1], [0], [0], [1], [0, 0, 1, 1], [], []>} : vector<8x128xf32>, vector<128x512xf32>, vector<8x512xf32> -> vector<8x512xf32>
    %89 = arith.addf %87, %88 : vector<8x512xf32>
    %90 = vector.extract_strided_slice %89 {offsets = [0, 0], sizes = [8, 128], strides = [1, 1]} : vector<8x512xf32> to vector<8x128xf32>
    %91 = arith.negf %90 : vector<8x128xf32>
    %92 = math.exp %91 : vector<8x128xf32>
    %cst_38 = arith.constant 1.000000e+00 : f32
    %93 = vector.broadcast %cst_38 : f32 to vector<8x128xf32>
    %94 = arith.addf %93, %92 : vector<8x128xf32>
    %95 = arith.divf %93, %94 : vector<8x128xf32>
    %96 = vector.extract_strided_slice %89 {offsets = [0, 128], sizes = [8, 128], strides = [1, 1]} : vector<8x512xf32> to vector<8x128xf32>
    %97 = arith.negf %96 : vector<8x128xf32>
    %98 = math.exp %97 : vector<8x128xf32>
    %cst_39 = arith.constant 1.000000e+00 : f32
    %99 = vector.broadcast %cst_39 : f32 to vector<8x128xf32>
    %100 = arith.addf %99, %98 : vector<8x128xf32>
    %101 = arith.divf %99, %100 : vector<8x128xf32>
    %102 = vector.extract_strided_slice %89 {offsets = [0, 256], sizes = [8, 128], strides = [1, 1]} : vector<8x512xf32> to vector<8x128xf32>
    %103 = math.tanh %102 : vector<8x128xf32>
    %104 = vector.extract_strided_slice %89 {offsets = [0, 384], sizes = [8, 128], strides = [1, 1]} : vector<8x512xf32> to vector<8x128xf32>
    %105 = arith.negf %104 : vector<8x128xf32>
    %106 = math.exp %105 : vector<8x128xf32>
    %cst_40 = arith.constant 1.000000e+00 : f32
    %107 = vector.broadcast %cst_40 : f32 to vector<8x128xf32>
    %108 = arith.addf %107, %106 : vector<8x128xf32>
    %109 = arith.divf %107, %108 : vector<8x128xf32>
    %110 = arith.mulf %101, %78 : vector<8x128xf32>
    %111 = arith.mulf %95, %103 : vector<8x128xf32>
    %112 = arith.addf %110, %111 : vector<8x128xf32>
    %113 = math.tanh %112 : vector<8x128xf32>
    %114 = arith.mulf %109, %113 : vector<8x128xf32>
    %115 = arith.index_cast %c2_i32 : i32 to index
    %c0_41 = arith.constant 0 : index
    %c0_42 = arith.constant 0 : index
    %116 = vector.load %arg17[%115, %c0_41, %c0_42] : memref<8x8x128xf32, #tpu.memory_space<vmem>>, vector<1x8x128xf32>
    %117 = vector.shape_cast %116 : vector<1x8x128xf32> to vector<8x128xf32>
    %118 = vector.shape_cast %114 : vector<8x128xf32> to vector<1x8x128xf32>
    tpu.vector_store %arg17[%115, %c0_41, %c0_42], %118 {strides = array<i32>} : memref<8x8x128xf32, #tpu.memory_space<vmem>>, vector<1x8x128xf32>,
    %c3_i32 = arith.constant 3 : i32
    %119 = arith.index_cast %c3_i32 : i32 to index
    %c0_43 = arith.constant 0 : index
    %c0_44 = arith.constant 0 : index
    %120 = vector.load %arg16[%119, %c0_43, %c0_44] : memref<8x8x512xf32, #tpu.memory_space<vmem>>, vector<1x8x512xf32>
    %121 = vector.shape_cast %120 : vector<1x8x512xf32> to vector<8x512xf32>
    %cst_45 = arith.constant dense<0.000000e+00> : vector<8x512xf32>
    %122 = tpu.matmul %114, %12, %cst_45 {dimension_numbers = #tpu.dot_dimension_numbers<[1], [0], [0], [1], [0, 0, 1, 1], [], []>} : vector<8x128xf32>, vector<128x512xf32>, vector<8x512xf32> -> vector<8x512xf32>
    %123 = arith.addf %121, %122 : vector<8x512xf32>
    %124 = vector.extract_strided_slice %123 {offsets = [0, 0], sizes = [8, 128], strides = [1, 1]} : vector<8x512xf32> to vector<8x128xf32>
    %125 = arith.negf %124 : vector<8x128xf32>
    %126 = math.exp %125 : vector<8x128xf32>
    %cst_46 = arith.constant 1.000000e+00 : f32
    %127 = vector.broadcast %cst_46 : f32 to vector<8x128xf32>
    %128 = arith.addf %127, %126 : vector<8x128xf32>
    %129 = arith.divf %127, %128 : vector<8x128xf32>
    %130 = vector.extract_strided_slice %123 {offsets = [0, 128], sizes = [8, 128], strides = [1, 1]} : vector<8x512xf32> to vector<8x128xf32>
    %131 = arith.negf %130 : vector<8x128xf32>
    %132 = math.exp %131 : vector<8x128xf32>
    %cst_47 = arith.constant 1.000000e+00 : f32
    %133 = vector.broadcast %cst_47 : f32 to vector<8x128xf32>
    %134 = arith.addf %133, %132 : vector<8x128xf32>
    %135 = arith.divf %133, %134 : vector<8x128xf32>
    %136 = vector.extract_strided_slice %123 {offsets = [0, 256], sizes = [8, 128], strides = [1, 1]} : vector<8x512xf32> to vector<8x128xf32>
    %137 = math.tanh %136 : vector<8x128xf32>
    %138 = vector.extract_strided_slice %123 {offsets = [0, 384], sizes = [8, 128], strides = [1, 1]} : vector<8x512xf32> to vector<8x128xf32>
    %139 = arith.negf %138 : vector<8x128xf32>
    %140 = math.exp %139 : vector<8x128xf32>
    %cst_48 = arith.constant 1.000000e+00 : f32
    %141 = vector.broadcast %cst_48 : f32 to vector<8x128xf32>
    %142 = arith.addf %141, %140 : vector<8x128xf32>
    %143 = arith.divf %141, %142 : vector<8x128xf32>
    %144 = arith.mulf %135, %112 : vector<8x128xf32>
    %145 = arith.mulf %129, %137 : vector<8x128xf32>
    %146 = arith.addf %144, %145 : vector<8x128xf32>
    %147 = math.tanh %146 : vector<8x128xf32>
    %148 = arith.mulf %143, %147 : vector<8x128xf32>
    %149 = arith.index_cast %c3_i32 : i32 to index
    %c0_49 = arith.constant 0 : index
    %c0_50 = arith.constant 0 : index
    %150 = vector.load %arg17[%149, %c0_49, %c0_50] : memref<8x8x128xf32, #tpu.memory_space<vmem>>, vector<1x8x128xf32>
    %151 = vector.shape_cast %150 : vector<1x8x128xf32> to vector<8x128xf32>
    %152 = vector.shape_cast %148 : vector<8x128xf32> to vector<1x8x128xf32>
    tpu.vector_store %arg17[%149, %c0_49, %c0_50], %152 {strides = array<i32>} : memref<8x8x128xf32, #tpu.memory_space<vmem>>, vector<1x8x128xf32>,
    %c4_i32 = arith.constant 4 : i32
    %153 = arith.index_cast %c4_i32 : i32 to index
    %c0_51 = arith.constant 0 : index
    %c0_52 = arith.constant 0 : index
    %154 = vector.load %arg16[%153, %c0_51, %c0_52] : memref<8x8x512xf32, #tpu.memory_space<vmem>>, vector<1x8x512xf32>
    %155 = vector.shape_cast %154 : vector<1x8x512xf32> to vector<8x512xf32>
    %cst_53 = arith.constant dense<0.000000e+00> : vector<8x512xf32>
    %156 = tpu.matmul %148, %12, %cst_53 {dimension_numbers = #tpu.dot_dimension_numbers<[1], [0], [0], [1], [0, 0, 1, 1], [], []>} : vector<8x128xf32>, vector<128x512xf32>, vector<8x512xf32> -> vector<8x512xf32>
    %157 = arith.addf %155, %156 : vector<8x512xf32>
    %158 = vector.extract_strided_slice %157 {offsets = [0, 0], sizes = [8, 128], strides = [1, 1]} : vector<8x512xf32> to vector<8x128xf32>
    %159 = arith.negf %158 : vector<8x128xf32>
    %160 = math.exp %159 : vector<8x128xf32>
    %cst_54 = arith.constant 1.000000e+00 : f32
    %161 = vector.broadcast %cst_54 : f32 to vector<8x128xf32>
    %162 = arith.addf %161, %160 : vector<8x128xf32>
    %163 = arith.divf %161, %162 : vector<8x128xf32>
    %164 = vector.extract_strided_slice %157 {offsets = [0, 128], sizes = [8, 128], strides = [1, 1]} : vector<8x512xf32> to vector<8x128xf32>
    %165 = arith.negf %164 : vector<8x128xf32>
    %166 = math.exp %165 : vector<8x128xf32>
    %cst_55 = arith.constant 1.000000e+00 : f32
    %167 = vector.broadcast %cst_55 : f32 to vector<8x128xf32>
    %168 = arith.addf %167, %166 : vector<8x128xf32>
    %169 = arith.divf %167, %168 : vector<8x128xf32>
    %170 = vector.extract_strided_slice %157 {offsets = [0, 256], sizes = [8, 128], strides = [1, 1]} : vector<8x512xf32> to vector<8x128xf32>
    %171 = math.tanh %170 : vector<8x128xf32>
    %172 = vector.extract_strided_slice %157 {offsets = [0, 384], sizes = [8, 128], strides = [1, 1]} : vector<8x512xf32> to vector<8x128xf32>
    %173 = arith.negf %172 : vector<8x128xf32>
    %174 = math.exp %173 : vector<8x128xf32>
    %cst_56 = arith.constant 1.000000e+00 : f32
    %175 = vector.broadcast %cst_56 : f32 to vector<8x128xf32>
    %176 = arith.addf %175, %174 : vector<8x128xf32>
    %177 = arith.divf %175, %176 : vector<8x128xf32>
    %178 = arith.mulf %169, %146 : vector<8x128xf32>
    %179 = arith.mulf %163, %171 : vector<8x128xf32>
    %180 = arith.addf %178, %179 : vector<8x128xf32>
    %181 = math.tanh %180 : vector<8x128xf32>
    %182 = arith.mulf %177, %181 : vector<8x128xf32>
    %183 = arith.index_cast %c4_i32 : i32 to index
    %c0_57 = arith.constant 0 : index
    %c0_58 = arith.constant 0 : index
    %184 = vector.load %arg17[%183, %c0_57, %c0_58] : memref<8x8x128xf32, #tpu.memory_space<vmem>>, vector<1x8x128xf32>
    %185 = vector.shape_cast %184 : vector<1x8x128xf32> to vector<8x128xf32>
    %186 = vector.shape_cast %182 : vector<8x128xf32> to vector<1x8x128xf32>
    tpu.vector_store %arg17[%183, %c0_57, %c0_58], %186 {strides = array<i32>} : memref<8x8x128xf32, #tpu.memory_space<vmem>>, vector<1x8x128xf32>,
    %c5_i32 = arith.constant 5 : i32
    %187 = arith.index_cast %c5_i32 : i32 to index
    %c0_59 = arith.constant 0 : index
    %c0_60 = arith.constant 0 : index
    %188 = vector.load %arg16[%187, %c0_59, %c0_60] : memref<8x8x512xf32, #tpu.memory_space<vmem>>, vector<1x8x512xf32>
    %189 = vector.shape_cast %188 : vector<1x8x512xf32> to vector<8x512xf32>
    %cst_61 = arith.constant dense<0.000000e+00> : vector<8x512xf32>
    %190 = tpu.matmul %182, %12, %cst_61 {dimension_numbers = #tpu.dot_dimension_numbers<[1], [0], [0], [1], [0, 0, 1, 1], [], []>} : vector<8x128xf32>, vector<128x512xf32>, vector<8x512xf32> -> vector<8x512xf32>
    %191 = arith.addf %189, %190 : vector<8x512xf32>
    %192 = vector.extract_strided_slice %191 {offsets = [0, 0], sizes = [8, 128], strides = [1, 1]} : vector<8x512xf32> to vector<8x128xf32>
    %193 = arith.negf %192 : vector<8x128xf32>
    %194 = math.exp %193 : vector<8x128xf32>
    %cst_62 = arith.constant 1.000000e+00 : f32
    %195 = vector.broadcast %cst_62 : f32 to vector<8x128xf32>
    %196 = arith.addf %195, %194 : vector<8x128xf32>
    %197 = arith.divf %195, %196 : vector<8x128xf32>
    %198 = vector.extract_strided_slice %191 {offsets = [0, 128], sizes = [8, 128], strides = [1, 1]} : vector<8x512xf32> to vector<8x128xf32>
    %199 = arith.negf %198 : vector<8x128xf32>
    %200 = math.exp %199 : vector<8x128xf32>
    %cst_63 = arith.constant 1.000000e+00 : f32
    %201 = vector.broadcast %cst_63 : f32 to vector<8x128xf32>
    %202 = arith.addf %201, %200 : vector<8x128xf32>
    %203 = arith.divf %201, %202 : vector<8x128xf32>
    %204 = vector.extract_strided_slice %191 {offsets = [0, 256], sizes = [8, 128], strides = [1, 1]} : vector<8x512xf32> to vector<8x128xf32>
    %205 = math.tanh %204 : vector<8x128xf32>
    %206 = vector.extract_strided_slice %191 {offsets = [0, 384], sizes = [8, 128], strides = [1, 1]} : vector<8x512xf32> to vector<8x128xf32>
    %207 = arith.negf %206 : vector<8x128xf32>
    %208 = math.exp %207 : vector<8x128xf32>
    %cst_64 = arith.constant 1.000000e+00 : f32
    %209 = vector.broadcast %cst_64 : f32 to vector<8x128xf32>
    %210 = arith.addf %209, %208 : vector<8x128xf32>
    %211 = arith.divf %209, %210 : vector<8x128xf32>
    %212 = arith.mulf %203, %180 : vector<8x128xf32>
    %213 = arith.mulf %197, %205 : vector<8x128xf32>
    %214 = arith.addf %212, %213 : vector<8x128xf32>
    %215 = math.tanh %214 : vector<8x128xf32>
    %216 = arith.mulf %211, %215 : vector<8x128xf32>
    %217 = arith.index_cast %c5_i32 : i32 to index
    %c0_65 = arith.constant 0 : index
    %c0_66 = arith.constant 0 : index
    %218 = vector.load %arg17[%217, %c0_65, %c0_66] : memref<8x8x128xf32, #tpu.memory_space<vmem>>, vector<1x8x128xf32>
    %219 = vector.shape_cast %218 : vector<1x8x128xf32> to vector<8x128xf32>
    %220 = vector.shape_cast %216 : vector<8x128xf32> to vector<1x8x128xf32>
    tpu.vector_store %arg17[%217, %c0_65, %c0_66], %220 {strides = array<i32>} : memref<8x8x128xf32, #tpu.memory_space<vmem>>, vector<1x8x128xf32>,
    %c6_i32 = arith.constant 6 : i32
    %221 = arith.index_cast %c6_i32 : i32 to index
    %c0_67 = arith.constant 0 : index
    %c0_68 = arith.constant 0 : index
    %222 = vector.load %arg16[%221, %c0_67, %c0_68] : memref<8x8x512xf32, #tpu.memory_space<vmem>>, vector<1x8x512xf32>
    %223 = vector.shape_cast %222 : vector<1x8x512xf32> to vector<8x512xf32>
    %cst_69 = arith.constant dense<0.000000e+00> : vector<8x512xf32>
    %224 = tpu.matmul %216, %12, %cst_69 {dimension_numbers = #tpu.dot_dimension_numbers<[1], [0], [0], [1], [0, 0, 1, 1], [], []>} : vector<8x128xf32>, vector<128x512xf32>, vector<8x512xf32> -> vector<8x512xf32>
    %225 = arith.addf %223, %224 : vector<8x512xf32>
    %226 = vector.extract_strided_slice %225 {offsets = [0, 0], sizes = [8, 128], strides = [1, 1]} : vector<8x512xf32> to vector<8x128xf32>
    %227 = arith.negf %226 : vector<8x128xf32>
    %228 = math.exp %227 : vector<8x128xf32>
    %cst_70 = arith.constant 1.000000e+00 : f32
    %229 = vector.broadcast %cst_70 : f32 to vector<8x128xf32>
    %230 = arith.addf %229, %228 : vector<8x128xf32>
    %231 = arith.divf %229, %230 : vector<8x128xf32>
    %232 = vector.extract_strided_slice %225 {offsets = [0, 128], sizes = [8, 128], strides = [1, 1]} : vector<8x512xf32> to vector<8x128xf32>
    %233 = arith.negf %232 : vector<8x128xf32>
    %234 = math.exp %233 : vector<8x128xf32>
    %cst_71 = arith.constant 1.000000e+00 : f32
    %235 = vector.broadcast %cst_71 : f32 to vector<8x128xf32>
    %236 = arith.addf %235, %234 : vector<8x128xf32>
    %237 = arith.divf %235, %236 : vector<8x128xf32>
    %238 = vector.extract_strided_slice %225 {offsets = [0, 256], sizes = [8, 128], strides = [1, 1]} : vector<8x512xf32> to vector<8x128xf32>
    %239 = math.tanh %238 : vector<8x128xf32>
    %240 = vector.extract_strided_slice %225 {offsets = [0, 384], sizes = [8, 128], strides = [1, 1]} : vector<8x512xf32> to vector<8x128xf32>
    %241 = arith.negf %240 : vector<8x128xf32>
    %242 = math.exp %241 : vector<8x128xf32>
    %cst_72 = arith.constant 1.000000e+00 : f32
    %243 = vector.broadcast %cst_72 : f32 to vector<8x128xf32>
    %244 = arith.addf %243, %242 : vector<8x128xf32>
    %245 = arith.divf %243, %244 : vector<8x128xf32>
    %246 = arith.mulf %237, %214 : vector<8x128xf32>
    %247 = arith.mulf %231, %239 : vector<8x128xf32>
    %248 = arith.addf %246, %247 : vector<8x128xf32>
    %249 = math.tanh %248 : vector<8x128xf32>
    %250 = arith.mulf %245, %249 : vector<8x128xf32>
    %251 = arith.index_cast %c6_i32 : i32 to index
    %c0_73 = arith.constant 0 : index
    %c0_74 = arith.constant 0 : index
    %252 = vector.load %arg17[%251, %c0_73, %c0_74] : memref<8x8x128xf32, #tpu.memory_space<vmem>>, vector<1x8x128xf32>
    %253 = vector.shape_cast %252 : vector<1x8x128xf32> to vector<8x128xf32>
    %254 = vector.shape_cast %250 : vector<8x128xf32> to vector<1x8x128xf32>
    tpu.vector_store %arg17[%251, %c0_73, %c0_74], %254 {strides = array<i32>} : memref<8x8x128xf32, #tpu.memory_space<vmem>>, vector<1x8x128xf32>,
    %c7_i32 = arith.constant 7 : i32
    %255 = arith.index_cast %c7_i32 : i32 to index
    %c0_75 = arith.constant 0 : index
    %c0_76 = arith.constant 0 : index
    %256 = vector.load %arg16[%255, %c0_75, %c0_76] : memref<8x8x512xf32, #tpu.memory_space<vmem>>, vector<1x8x512xf32>
    %257 = vector.shape_cast %256 : vector<1x8x512xf32> to vector<8x512xf32>
    %cst_77 = arith.constant dense<0.000000e+00> : vector<8x512xf32>
    %258 = tpu.matmul %250, %12, %cst_77 {dimension_numbers = #tpu.dot_dimension_numbers<[1], [0], [0], [1], [0, 0, 1, 1], [], []>} : vector<8x128xf32>, vector<128x512xf32>, vector<8x512xf32> -> vector<8x512xf32>
    %259 = arith.addf %257, %258 : vector<8x512xf32>
    %260 = vector.extract_strided_slice %259 {offsets = [0, 0], sizes = [8, 128], strides = [1, 1]} : vector<8x512xf32> to vector<8x128xf32>
    %261 = arith.negf %260 : vector<8x128xf32>
    %262 = math.exp %261 : vector<8x128xf32>
    %cst_78 = arith.constant 1.000000e+00 : f32
    %263 = vector.broadcast %cst_78 : f32 to vector<8x128xf32>
    %264 = arith.addf %263, %262 : vector<8x128xf32>
    %265 = arith.divf %263, %264 : vector<8x128xf32>
    %266 = vector.extract_strided_slice %259 {offsets = [0, 128], sizes = [8, 128], strides = [1, 1]} : vector<8x512xf32> to vector<8x128xf32>
    %267 = arith.negf %266 : vector<8x128xf32>
    %268 = math.exp %267 : vector<8x128xf32>
    %cst_79 = arith.constant 1.000000e+00 : f32
    %269 = vector.broadcast %cst_79 : f32 to vector<8x128xf32>
    %270 = arith.addf %269, %268 : vector<8x128xf32>
    %271 = arith.divf %269, %270 : vector<8x128xf32>
    %272 = vector.extract_strided_slice %259 {offsets = [0, 256], sizes = [8, 128], strides = [1, 1]} : vector<8x512xf32> to vector<8x128xf32>
    %273 = math.tanh %272 : vector<8x128xf32>
    %274 = vector.extract_strided_slice %259 {offsets = [0, 384], sizes = [8, 128], strides = [1, 1]} : vector<8x512xf32> to vector<8x128xf32>
    %275 = arith.negf %274 : vector<8x128xf32>
    %276 = math.exp %275 : vector<8x128xf32>
    %cst_80 = arith.constant 1.000000e+00 : f32
    %277 = vector.broadcast %cst_80 : f32 to vector<8x128xf32>
    %278 = arith.addf %277, %276 : vector<8x128xf32>
    %279 = arith.divf %277, %278 : vector<8x128xf32>
    %280 = arith.mulf %271, %248 : vector<8x128xf32>
    %281 = arith.mulf %265, %273 : vector<8x128xf32>
    %282 = arith.addf %280, %281 : vector<8x128xf32>
    %283 = math.tanh %282 : vector<8x128xf32>
    %284 = arith.mulf %279, %283 : vector<8x128xf32>
    %285 = arith.index_cast %c7_i32 : i32 to index
    %c0_81 = arith.constant 0 : index
    %c0_82 = arith.constant 0 : index
    %286 = vector.load %arg17[%285, %c0_81, %c0_82] : memref<8x8x128xf32, #tpu.memory_space<vmem>>, vector<1x8x128xf32>
    %287 = vector.shape_cast %286 : vector<1x8x128xf32> to vector<8x128xf32>
    %288 = vector.shape_cast %284 : vector<8x128xf32> to vector<1x8x128xf32>
    tpu.vector_store %arg17[%285, %c0_81, %c0_82], %288 {strides = array<i32>} : memref<8x8x128xf32, #tpu.memory_space<vmem>>, vector<1x8x128xf32>,
    %c8_i32 = arith.constant 8 : i32
    %c0_83 = arith.constant 0 : index
    %c0_84 = arith.constant 0 : index
    %c0_85 = arith.constant 0 : index
    %289 = vector.load %arg14[%c0_83, %c0_84, %c0_85] : memref<2x8x128xf32, #tpu.memory_space<vmem>>, vector<1x8x128xf32>
    %290 = vector.shape_cast %289 : vector<1x8x128xf32> to vector<8x128xf32>
    %291 = vector.shape_cast %284 : vector<8x128xf32> to vector<1x8x128xf32>
    tpu.vector_store %arg14[%c0_83, %c0_84, %c0_85], %291 {strides = array<i32>} : memref<2x8x128xf32, #tpu.memory_space<vmem>>, vector<1x8x128xf32>,
    %c0_86 = arith.constant 0 : index
    %c0_87 = arith.constant 0 : index
    %c0_88 = arith.constant 0 : index
    %292 = vector.load %arg15[%c0_86, %c0_87, %c0_88] : memref<2x8x128xf32, #tpu.memory_space<vmem>>, vector<1x8x128xf32>
    %293 = vector.shape_cast %292 : vector<1x8x128xf32> to vector<8x128xf32>
    %294 = vector.shape_cast %282 : vector<8x128xf32> to vector<1x8x128xf32>
    tpu.vector_store %arg15[%c0_86, %c0_87, %c0_88], %294 {strides = array<i32>} : memref<2x8x128xf32, #tpu.memory_space<vmem>>, vector<1x8x128xf32>,
    %c0_89 = arith.constant 0 : index
    %c0_90 = arith.constant 0 : index
    %c0_91 = arith.constant 0 : index
    %295 = vector.load %arg17[%c0_89, %c0_90, %c0_91] : memref<8x8x128xf32, #tpu.memory_space<vmem>>, vector<8x8x128xf32>
    %296 = vector.shape_cast %295 : vector<8x8x128xf32> to vector<64x128xf32>
    %c0_92 = arith.constant 0 : index
    %c0_93 = arith.constant 0 : index
    %297 = vector.load %arg8[%c0_92, %c0_93] : memref<128x512xf32, #tpu.memory_space<vmem>>, vector<128x512xf32>
    %cst_94 = arith.constant dense<0.000000e+00> : vector<64x512xf32>
    %298 = tpu.matmul %296, %297, %cst_94 {dimension_numbers = #tpu.dot_dimension_numbers<[1], [0], [0], [1], [0, 0, 1, 1], [], []>} : vector<64x128xf32>, vector<128x512xf32>, vector<64x512xf32> -> vector<64x512xf32>
    %c0_95 = arith.constant 0 : index
    %c0_96 = arith.constant 0 : index
    %299 = vector.load %arg10[%c0_95, %c0_96] : memref<1x512xf32, #tpu.memory_space<vmem>>, vector<1x512xf32>
    %300 = vector.broadcast %299 : vector<1x512xf32> to vector<64x512xf32>
    %301 = arith.addf %298, %300 : vector<64x512xf32>
    %302 = vector.shape_cast %301 : vector<64x512xf32> to vector<8x8x512xf32>
    %c0_97 = arith.constant 0 : index
    %c0_98 = arith.constant 0 : index
    %c0_99 = arith.constant 0 : index
    %303 = vector.load %arg16[%c0_97, %c0_98, %c0_99] : memref<8x8x512xf32, #tpu.memory_space<vmem>>, vector<8x8x512xf32>
    tpu.vector_store %arg16[%c0_97, %c0_98, %c0_99], %302 {strides = array<i32>} : memref<8x8x512xf32, #tpu.memory_space<vmem>>, vector<8x8x512xf32>,
    %c0_100 = arith.constant 0 : index
    %c0_101 = arith.constant 0 : index
    %304 = vector.load %arg9[%c0_100, %c0_101] : memref<128x512xf32, #tpu.memory_space<vmem>>, vector<128x512xf32>
    %c1 = arith.constant 1 : index
    %c0_102 = arith.constant 0 : index
    %c0_103 = arith.constant 0 : index
    %305 = vector.load %arg14[%c1, %c0_102, %c0_103] : memref<2x8x128xf32, #tpu.memory_space<vmem>>, vector<1x8x128xf32>
    %306 = vector.shape_cast %305 : vector<1x8x128xf32> to vector<8x128xf32>
    %c1_104 = arith.constant 1 : index
    %c0_105 = arith.constant 0 : index
    %c0_106 = arith.constant 0 : index
    %307 = vector.load %arg15[%c1_104, %c0_105, %c0_106] : memref<2x8x128xf32, #tpu.memory_space<vmem>>, vector<1x8x128xf32>
    %308 = vector.shape_cast %307 : vector<1x8x128xf32> to vector<8x128xf32>
    %c0_i32_107 = arith.constant 0 : i32
    %309 = arith.index_cast %c0_i32_107 : i32 to index
    %c0_108 = arith.constant 0 : index
    %c0_109 = arith.constant 0 : index
    %310 = vector.load %arg16[%309, %c0_108, %c0_109] : memref<8x8x512xf32, #tpu.memory_space<vmem>>, vector<1x8x512xf32>
    %311 = vector.shape_cast %310 : vector<1x8x512xf32> to vector<8x512xf32>
    %cst_110 = arith.constant dense<0.000000e+00> : vector<8x512xf32>
    %312 = tpu.matmul %306, %304, %cst_110 {dimension_numbers = #tpu.dot_dimension_numbers<[1], [0], [0], [1], [0, 0, 1, 1], [], []>} : vector<8x128xf32>, vector<128x512xf32>, vector<8x512xf32> -> vector<8x512xf32>
    %313 = arith.addf %311, %312 : vector<8x512xf32>
    %314 = vector.extract_strided_slice %313 {offsets = [0, 0], sizes = [8, 128], strides = [1, 1]} : vector<8x512xf32> to vector<8x128xf32>
    %315 = arith.negf %314 : vector<8x128xf32>
    %316 = math.exp %315 : vector<8x128xf32>
    %cst_111 = arith.constant 1.000000e+00 : f32
    %317 = vector.broadcast %cst_111 : f32 to vector<8x128xf32>
    %318 = arith.addf %317, %316 : vector<8x128xf32>
    %319 = arith.divf %317, %318 : vector<8x128xf32>
    %320 = vector.extract_strided_slice %313 {offsets = [0, 128], sizes = [8, 128], strides = [1, 1]} : vector<8x512xf32> to vector<8x128xf32>
    %321 = arith.negf %320 : vector<8x128xf32>
    %322 = math.exp %321 : vector<8x128xf32>
    %cst_112 = arith.constant 1.000000e+00 : f32
    %323 = vector.broadcast %cst_112 : f32 to vector<8x128xf32>
    %324 = arith.addf %323, %322 : vector<8x128xf32>
    %325 = arith.divf %323, %324 : vector<8x128xf32>
    %326 = vector.extract_strided_slice %313 {offsets = [0, 256], sizes = [8, 128], strides = [1, 1]} : vector<8x512xf32> to vector<8x128xf32>
    %327 = math.tanh %326 : vector<8x128xf32>
    %328 = vector.extract_strided_slice %313 {offsets = [0, 384], sizes = [8, 128], strides = [1, 1]} : vector<8x512xf32> to vector<8x128xf32>
    %329 = arith.negf %328 : vector<8x128xf32>
    %330 = math.exp %329 : vector<8x128xf32>
    %cst_113 = arith.constant 1.000000e+00 : f32
    %331 = vector.broadcast %cst_113 : f32 to vector<8x128xf32>
    %332 = arith.addf %331, %330 : vector<8x128xf32>
    %333 = arith.divf %331, %332 : vector<8x128xf32>
    %334 = arith.mulf %325, %308 : vector<8x128xf32>
    %335 = arith.mulf %319, %327 : vector<8x128xf32>
    %336 = arith.addf %334, %335 : vector<8x128xf32>
    %337 = math.tanh %336 : vector<8x128xf32>
    %338 = arith.mulf %333, %337 : vector<8x128xf32>
    %339 = arith.index_cast %c0_i32_107 : i32 to index
    %c0_114 = arith.constant 0 : index
    %c0_115 = arith.constant 0 : index
    %340 = vector.load %arg11[%339, %c0_114, %c0_115] : memref<8x8x128xf32, #tpu.memory_space<vmem>>, vector<1x8x128xf32>
    %341 = vector.shape_cast %340 : vector<1x8x128xf32> to vector<8x128xf32>
    %342 = vector.shape_cast %338 : vector<8x128xf32> to vector<1x8x128xf32>
    tpu.vector_store %arg11[%339, %c0_114, %c0_115], %342 {strides = array<i32>} : memref<8x8x128xf32, #tpu.memory_space<vmem>>, vector<1x8x128xf32>,
    %c1_i32_116 = arith.constant 1 : i32
    %343 = arith.index_cast %c1_i32_116 : i32 to index
    %c0_117 = arith.constant 0 : index
    %c0_118 = arith.constant 0 : index
    %344 = vector.load %arg16[%343, %c0_117, %c0_118] : memref<8x8x512xf32, #tpu.memory_space<vmem>>, vector<1x8x512xf32>
    %345 = vector.shape_cast %344 : vector<1x8x512xf32> to vector<8x512xf32>
    %cst_119 = arith.constant dense<0.000000e+00> : vector<8x512xf32>
    %346 = tpu.matmul %338, %304, %cst_119 {dimension_numbers = #tpu.dot_dimension_numbers<[1], [0], [0], [1], [0, 0, 1, 1], [], []>} : vector<8x128xf32>, vector<128x512xf32>, vector<8x512xf32> -> vector<8x512xf32>
    %347 = arith.addf %345, %346 : vector<8x512xf32>
    %348 = vector.extract_strided_slice %347 {offsets = [0, 0], sizes = [8, 128], strides = [1, 1]} : vector<8x512xf32> to vector<8x128xf32>
    %349 = arith.negf %348 : vector<8x128xf32>
    %350 = math.exp %349 : vector<8x128xf32>
    %cst_120 = arith.constant 1.000000e+00 : f32
    %351 = vector.broadcast %cst_120 : f32 to vector<8x128xf32>
    %352 = arith.addf %351, %350 : vector<8x128xf32>
    %353 = arith.divf %351, %352 : vector<8x128xf32>
    %354 = vector.extract_strided_slice %347 {offsets = [0, 128], sizes = [8, 128], strides = [1, 1]} : vector<8x512xf32> to vector<8x128xf32>
    %355 = arith.negf %354 : vector<8x128xf32>
    %356 = math.exp %355 : vector<8x128xf32>
    %cst_121 = arith.constant 1.000000e+00 : f32
    %357 = vector.broadcast %cst_121 : f32 to vector<8x128xf32>
    %358 = arith.addf %357, %356 : vector<8x128xf32>
    %359 = arith.divf %357, %358 : vector<8x128xf32>
    %360 = vector.extract_strided_slice %347 {offsets = [0, 256], sizes = [8, 128], strides = [1, 1]} : vector<8x512xf32> to vector<8x128xf32>
    %361 = math.tanh %360 : vector<8x128xf32>
    %362 = vector.extract_strided_slice %347 {offsets = [0, 384], sizes = [8, 128], strides = [1, 1]} : vector<8x512xf32> to vector<8x128xf32>
    %363 = arith.negf %362 : vector<8x128xf32>
    %364 = math.exp %363 : vector<8x128xf32>
    %cst_122 = arith.constant 1.000000e+00 : f32
    %365 = vector.broadcast %cst_122 : f32 to vector<8x128xf32>
    %366 = arith.addf %365, %364 : vector<8x128xf32>
    %367 = arith.divf %365, %366 : vector<8x128xf32>
    %368 = arith.mulf %359, %336 : vector<8x128xf32>
    %369 = arith.mulf %353, %361 : vector<8x128xf32>
    %370 = arith.addf %368, %369 : vector<8x128xf32>
    %371 = math.tanh %370 : vector<8x128xf32>
    %372 = arith.mulf %367, %371 : vector<8x128xf32>
    %373 = arith.index_cast %c1_i32_116 : i32 to index
    %c0_123 = arith.constant 0 : index
    %c0_124 = arith.constant 0 : index
    %374 = vector.load %arg11[%373, %c0_123, %c0_124] : memref<8x8x128xf32, #tpu.memory_space<vmem>>, vector<1x8x128xf32>
    %375 = vector.shape_cast %374 : vector<1x8x128xf32> to vector<8x128xf32>
    %376 = vector.shape_cast %372 : vector<8x128xf32> to vector<1x8x128xf32>
    tpu.vector_store %arg11[%373, %c0_123, %c0_124], %376 {strides = array<i32>} : memref<8x8x128xf32, #tpu.memory_space<vmem>>, vector<1x8x128xf32>,
    %c2_i32_125 = arith.constant 2 : i32
    %377 = arith.index_cast %c2_i32_125 : i32 to index
    %c0_126 = arith.constant 0 : index
    %c0_127 = arith.constant 0 : index
    %378 = vector.load %arg16[%377, %c0_126, %c0_127] : memref<8x8x512xf32, #tpu.memory_space<vmem>>, vector<1x8x512xf32>
    %379 = vector.shape_cast %378 : vector<1x8x512xf32> to vector<8x512xf32>
    %cst_128 = arith.constant dense<0.000000e+00> : vector<8x512xf32>
    %380 = tpu.matmul %372, %304, %cst_128 {dimension_numbers = #tpu.dot_dimension_numbers<[1], [0], [0], [1], [0, 0, 1, 1], [], []>} : vector<8x128xf32>, vector<128x512xf32>, vector<8x512xf32> -> vector<8x512xf32>
    %381 = arith.addf %379, %380 : vector<8x512xf32>
    %382 = vector.extract_strided_slice %381 {offsets = [0, 0], sizes = [8, 128], strides = [1, 1]} : vector<8x512xf32> to vector<8x128xf32>
    %383 = arith.negf %382 : vector<8x128xf32>
    %384 = math.exp %383 : vector<8x128xf32>
    %cst_129 = arith.constant 1.000000e+00 : f32
    %385 = vector.broadcast %cst_129 : f32 to vector<8x128xf32>
    %386 = arith.addf %385, %384 : vector<8x128xf32>
    %387 = arith.divf %385, %386 : vector<8x128xf32>
    %388 = vector.extract_strided_slice %381 {offsets = [0, 128], sizes = [8, 128], strides = [1, 1]} : vector<8x512xf32> to vector<8x128xf32>
    %389 = arith.negf %388 : vector<8x128xf32>
    %390 = math.exp %389 : vector<8x128xf32>
    %cst_130 = arith.constant 1.000000e+00 : f32
    %391 = vector.broadcast %cst_130 : f32 to vector<8x128xf32>
    %392 = arith.addf %391, %390 : vector<8x128xf32>
    %393 = arith.divf %391, %392 : vector<8x128xf32>
    %394 = vector.extract_strided_slice %381 {offsets = [0, 256], sizes = [8, 128], strides = [1, 1]} : vector<8x512xf32> to vector<8x128xf32>
    %395 = math.tanh %394 : vector<8x128xf32>
    %396 = vector.extract_strided_slice %381 {offsets = [0, 384], sizes = [8, 128], strides = [1, 1]} : vector<8x512xf32> to vector<8x128xf32>
    %397 = arith.negf %396 : vector<8x128xf32>
    %398 = math.exp %397 : vector<8x128xf32>
    %cst_131 = arith.constant 1.000000e+00 : f32
    %399 = vector.broadcast %cst_131 : f32 to vector<8x128xf32>
    %400 = arith.addf %399, %398 : vector<8x128xf32>
    %401 = arith.divf %399, %400 : vector<8x128xf32>
    %402 = arith.mulf %393, %370 : vector<8x128xf32>
    %403 = arith.mulf %387, %395 : vector<8x128xf32>
    %404 = arith.addf %402, %403 : vector<8x128xf32>
    %405 = math.tanh %404 : vector<8x128xf32>
    %406 = arith.mulf %401, %405 : vector<8x128xf32>
    %407 = arith.index_cast %c2_i32_125 : i32 to index
    %c0_132 = arith.constant 0 : index
    %c0_133 = arith.constant 0 : index
    %408 = vector.load %arg11[%407, %c0_132, %c0_133] : memref<8x8x128xf32, #tpu.memory_space<vmem>>, vector<1x8x128xf32>
    %409 = vector.shape_cast %408 : vector<1x8x128xf32> to vector<8x128xf32>
    %410 = vector.shape_cast %406 : vector<8x128xf32> to vector<1x8x128xf32>
    tpu.vector_store %arg11[%407, %c0_132, %c0_133], %410 {strides = array<i32>} : memref<8x8x128xf32, #tpu.memory_space<vmem>>, vector<1x8x128xf32>,
    %c3_i32_134 = arith.constant 3 : i32
    %411 = arith.index_cast %c3_i32_134 : i32 to index
    %c0_135 = arith.constant 0 : index
    %c0_136 = arith.constant 0 : index
    %412 = vector.load %arg16[%411, %c0_135, %c0_136] : memref<8x8x512xf32, #tpu.memory_space<vmem>>, vector<1x8x512xf32>
    %413 = vector.shape_cast %412 : vector<1x8x512xf32> to vector<8x512xf32>
    %cst_137 = arith.constant dense<0.000000e+00> : vector<8x512xf32>
    %414 = tpu.matmul %406, %304, %cst_137 {dimension_numbers = #tpu.dot_dimension_numbers<[1], [0], [0], [1], [0, 0, 1, 1], [], []>} : vector<8x128xf32>, vector<128x512xf32>, vector<8x512xf32> -> vector<8x512xf32>
    %415 = arith.addf %413, %414 : vector<8x512xf32>
    %416 = vector.extract_strided_slice %415 {offsets = [0, 0], sizes = [8, 128], strides = [1, 1]} : vector<8x512xf32> to vector<8x128xf32>
    %417 = arith.negf %416 : vector<8x128xf32>
    %418 = math.exp %417 : vector<8x128xf32>
    %cst_138 = arith.constant 1.000000e+00 : f32
    %419 = vector.broadcast %cst_138 : f32 to vector<8x128xf32>
    %420 = arith.addf %419, %418 : vector<8x128xf32>
    %421 = arith.divf %419, %420 : vector<8x128xf32>
    %422 = vector.extract_strided_slice %415 {offsets = [0, 128], sizes = [8, 128], strides = [1, 1]} : vector<8x512xf32> to vector<8x128xf32>
    %423 = arith.negf %422 : vector<8x128xf32>
    %424 = math.exp %423 : vector<8x128xf32>
    %cst_139 = arith.constant 1.000000e+00 : f32
    %425 = vector.broadcast %cst_139 : f32 to vector<8x128xf32>
    %426 = arith.addf %425, %424 : vector<8x128xf32>
    %427 = arith.divf %425, %426 : vector<8x128xf32>
    %428 = vector.extract_strided_slice %415 {offsets = [0, 256], sizes = [8, 128], strides = [1, 1]} : vector<8x512xf32> to vector<8x128xf32>
    %429 = math.tanh %428 : vector<8x128xf32>
    %430 = vector.extract_strided_slice %415 {offsets = [0, 384], sizes = [8, 128], strides = [1, 1]} : vector<8x512xf32> to vector<8x128xf32>
    %431 = arith.negf %430 : vector<8x128xf32>
    %432 = math.exp %431 : vector<8x128xf32>
    %cst_140 = arith.constant 1.000000e+00 : f32
    %433 = vector.broadcast %cst_140 : f32 to vector<8x128xf32>
    %434 = arith.addf %433, %432 : vector<8x128xf32>
    %435 = arith.divf %433, %434 : vector<8x128xf32>
    %436 = arith.mulf %427, %404 : vector<8x128xf32>
    %437 = arith.mulf %421, %429 : vector<8x128xf32>
    %438 = arith.addf %436, %437 : vector<8x128xf32>
    %439 = math.tanh %438 : vector<8x128xf32>
    %440 = arith.mulf %435, %439 : vector<8x128xf32>
    %441 = arith.index_cast %c3_i32_134 : i32 to index
    %c0_141 = arith.constant 0 : index
    %c0_142 = arith.constant 0 : index
    %442 = vector.load %arg11[%441, %c0_141, %c0_142] : memref<8x8x128xf32, #tpu.memory_space<vmem>>, vector<1x8x128xf32>
    %443 = vector.shape_cast %442 : vector<1x8x128xf32> to vector<8x128xf32>
    %444 = vector.shape_cast %440 : vector<8x128xf32> to vector<1x8x128xf32>
    tpu.vector_store %arg11[%441, %c0_141, %c0_142], %444 {strides = array<i32>} : memref<8x8x128xf32, #tpu.memory_space<vmem>>, vector<1x8x128xf32>,
    %c4_i32_143 = arith.constant 4 : i32
    %445 = arith.index_cast %c4_i32_143 : i32 to index
    %c0_144 = arith.constant 0 : index
    %c0_145 = arith.constant 0 : index
    %446 = vector.load %arg16[%445, %c0_144, %c0_145] : memref<8x8x512xf32, #tpu.memory_space<vmem>>, vector<1x8x512xf32>
    %447 = vector.shape_cast %446 : vector<1x8x512xf32> to vector<8x512xf32>
    %cst_146 = arith.constant dense<0.000000e+00> : vector<8x512xf32>
    %448 = tpu.matmul %440, %304, %cst_146 {dimension_numbers = #tpu.dot_dimension_numbers<[1], [0], [0], [1], [0, 0, 1, 1], [], []>} : vector<8x128xf32>, vector<128x512xf32>, vector<8x512xf32> -> vector<8x512xf32>
    %449 = arith.addf %447, %448 : vector<8x512xf32>
    %450 = vector.extract_strided_slice %449 {offsets = [0, 0], sizes = [8, 128], strides = [1, 1]} : vector<8x512xf32> to vector<8x128xf32>
    %451 = arith.negf %450 : vector<8x128xf32>
    %452 = math.exp %451 : vector<8x128xf32>
    %cst_147 = arith.constant 1.000000e+00 : f32
    %453 = vector.broadcast %cst_147 : f32 to vector<8x128xf32>
    %454 = arith.addf %453, %452 : vector<8x128xf32>
    %455 = arith.divf %453, %454 : vector<8x128xf32>
    %456 = vector.extract_strided_slice %449 {offsets = [0, 128], sizes = [8, 128], strides = [1, 1]} : vector<8x512xf32> to vector<8x128xf32>
    %457 = arith.negf %456 : vector<8x128xf32>
    %458 = math.exp %457 : vector<8x128xf32>
    %cst_148 = arith.constant 1.000000e+00 : f32
    %459 = vector.broadcast %cst_148 : f32 to vector<8x128xf32>
    %460 = arith.addf %459, %458 : vector<8x128xf32>
    %461 = arith.divf %459, %460 : vector<8x128xf32>
    %462 = vector.extract_strided_slice %449 {offsets = [0, 256], sizes = [8, 128], strides = [1, 1]} : vector<8x512xf32> to vector<8x128xf32>
    %463 = math.tanh %462 : vector<8x128xf32>
    %464 = vector.extract_strided_slice %449 {offsets = [0, 384], sizes = [8, 128], strides = [1, 1]} : vector<8x512xf32> to vector<8x128xf32>
    %465 = arith.negf %464 : vector<8x128xf32>
    %466 = math.exp %465 : vector<8x128xf32>
    %cst_149 = arith.constant 1.000000e+00 : f32
    %467 = vector.broadcast %cst_149 : f32 to vector<8x128xf32>
    %468 = arith.addf %467, %466 : vector<8x128xf32>
    %469 = arith.divf %467, %468 : vector<8x128xf32>
    %470 = arith.mulf %461, %438 : vector<8x128xf32>
    %471 = arith.mulf %455, %463 : vector<8x128xf32>
    %472 = arith.addf %470, %471 : vector<8x128xf32>
    %473 = math.tanh %472 : vector<8x128xf32>
    %474 = arith.mulf %469, %473 : vector<8x128xf32>
    %475 = arith.index_cast %c4_i32_143 : i32 to index
    %c0_150 = arith.constant 0 : index
    %c0_151 = arith.constant 0 : index
    %476 = vector.load %arg11[%475, %c0_150, %c0_151] : memref<8x8x128xf32, #tpu.memory_space<vmem>>, vector<1x8x128xf32>
    %477 = vector.shape_cast %476 : vector<1x8x128xf32> to vector<8x128xf32>
    %478 = vector.shape_cast %474 : vector<8x128xf32> to vector<1x8x128xf32>
    tpu.vector_store %arg11[%475, %c0_150, %c0_151], %478 {strides = array<i32>} : memref<8x8x128xf32, #tpu.memory_space<vmem>>, vector<1x8x128xf32>,
    %c5_i32_152 = arith.constant 5 : i32
    %479 = arith.index_cast %c5_i32_152 : i32 to index
    %c0_153 = arith.constant 0 : index
    %c0_154 = arith.constant 0 : index
    %480 = vector.load %arg16[%479, %c0_153, %c0_154] : memref<8x8x512xf32, #tpu.memory_space<vmem>>, vector<1x8x512xf32>
    %481 = vector.shape_cast %480 : vector<1x8x512xf32> to vector<8x512xf32>
    %cst_155 = arith.constant dense<0.000000e+00> : vector<8x512xf32>
    %482 = tpu.matmul %474, %304, %cst_155 {dimension_numbers = #tpu.dot_dimension_numbers<[1], [0], [0], [1], [0, 0, 1, 1], [], []>} : vector<8x128xf32>, vector<128x512xf32>, vector<8x512xf32> -> vector<8x512xf32>
    %483 = arith.addf %481, %482 : vector<8x512xf32>
    %484 = vector.extract_strided_slice %483 {offsets = [0, 0], sizes = [8, 128], strides = [1, 1]} : vector<8x512xf32> to vector<8x128xf32>
    %485 = arith.negf %484 : vector<8x128xf32>
    %486 = math.exp %485 : vector<8x128xf32>
    %cst_156 = arith.constant 1.000000e+00 : f32
    %487 = vector.broadcast %cst_156 : f32 to vector<8x128xf32>
    %488 = arith.addf %487, %486 : vector<8x128xf32>
    %489 = arith.divf %487, %488 : vector<8x128xf32>
    %490 = vector.extract_strided_slice %483 {offsets = [0, 128], sizes = [8, 128], strides = [1, 1]} : vector<8x512xf32> to vector<8x128xf32>
    %491 = arith.negf %490 : vector<8x128xf32>
    %492 = math.exp %491 : vector<8x128xf32>
    %cst_157 = arith.constant 1.000000e+00 : f32
    %493 = vector.broadcast %cst_157 : f32 to vector<8x128xf32>
    %494 = arith.addf %493, %492 : vector<8x128xf32>
    %495 = arith.divf %493, %494 : vector<8x128xf32>
    %496 = vector.extract_strided_slice %483 {offsets = [0, 256], sizes = [8, 128], strides = [1, 1]} : vector<8x512xf32> to vector<8x128xf32>
    %497 = math.tanh %496 : vector<8x128xf32>
    %498 = vector.extract_strided_slice %483 {offsets = [0, 384], sizes = [8, 128], strides = [1, 1]} : vector<8x512xf32> to vector<8x128xf32>
    %499 = arith.negf %498 : vector<8x128xf32>
    %500 = math.exp %499 : vector<8x128xf32>
    %cst_158 = arith.constant 1.000000e+00 : f32
    %501 = vector.broadcast %cst_158 : f32 to vector<8x128xf32>
    %502 = arith.addf %501, %500 : vector<8x128xf32>
    %503 = arith.divf %501, %502 : vector<8x128xf32>
    %504 = arith.mulf %495, %472 : vector<8x128xf32>
    %505 = arith.mulf %489, %497 : vector<8x128xf32>
    %506 = arith.addf %504, %505 : vector<8x128xf32>
    %507 = math.tanh %506 : vector<8x128xf32>
    %508 = arith.mulf %503, %507 : vector<8x128xf32>
    %509 = arith.index_cast %c5_i32_152 : i32 to index
    %c0_159 = arith.constant 0 : index
    %c0_160 = arith.constant 0 : index
    %510 = vector.load %arg11[%509, %c0_159, %c0_160] : memref<8x8x128xf32, #tpu.memory_space<vmem>>, vector<1x8x128xf32>
    %511 = vector.shape_cast %510 : vector<1x8x128xf32> to vector<8x128xf32>
    %512 = vector.shape_cast %508 : vector<8x128xf32> to vector<1x8x128xf32>
    tpu.vector_store %arg11[%509, %c0_159, %c0_160], %512 {strides = array<i32>} : memref<8x8x128xf32, #tpu.memory_space<vmem>>, vector<1x8x128xf32>,
    %c6_i32_161 = arith.constant 6 : i32
    %513 = arith.index_cast %c6_i32_161 : i32 to index
    %c0_162 = arith.constant 0 : index
    %c0_163 = arith.constant 0 : index
    %514 = vector.load %arg16[%513, %c0_162, %c0_163] : memref<8x8x512xf32, #tpu.memory_space<vmem>>, vector<1x8x512xf32>
    %515 = vector.shape_cast %514 : vector<1x8x512xf32> to vector<8x512xf32>
    %cst_164 = arith.constant dense<0.000000e+00> : vector<8x512xf32>
    %516 = tpu.matmul %508, %304, %cst_164 {dimension_numbers = #tpu.dot_dimension_numbers<[1], [0], [0], [1], [0, 0, 1, 1], [], []>} : vector<8x128xf32>, vector<128x512xf32>, vector<8x512xf32> -> vector<8x512xf32>
    %517 = arith.addf %515, %516 : vector<8x512xf32>
    %518 = vector.extract_strided_slice %517 {offsets = [0, 0], sizes = [8, 128], strides = [1, 1]} : vector<8x512xf32> to vector<8x128xf32>
    %519 = arith.negf %518 : vector<8x128xf32>
    %520 = math.exp %519 : vector<8x128xf32>
    %cst_165 = arith.constant 1.000000e+00 : f32
    %521 = vector.broadcast %cst_165 : f32 to vector<8x128xf32>
    %522 = arith.addf %521, %520 : vector<8x128xf32>
    %523 = arith.divf %521, %522 : vector<8x128xf32>
    %524 = vector.extract_strided_slice %517 {offsets = [0, 128], sizes = [8, 128], strides = [1, 1]} : vector<8x512xf32> to vector<8x128xf32>
    %525 = arith.negf %524 : vector<8x128xf32>
    %526 = math.exp %525 : vector<8x128xf32>
    %cst_166 = arith.constant 1.000000e+00 : f32
    %527 = vector.broadcast %cst_166 : f32 to vector<8x128xf32>
    %528 = arith.addf %527, %526 : vector<8x128xf32>
    %529 = arith.divf %527, %528 : vector<8x128xf32>
    %530 = vector.extract_strided_slice %517 {offsets = [0, 256], sizes = [8, 128], strides = [1, 1]} : vector<8x512xf32> to vector<8x128xf32>
    %531 = math.tanh %530 : vector<8x128xf32>
    %532 = vector.extract_strided_slice %517 {offsets = [0, 384], sizes = [8, 128], strides = [1, 1]} : vector<8x512xf32> to vector<8x128xf32>
    %533 = arith.negf %532 : vector<8x128xf32>
    %534 = math.exp %533 : vector<8x128xf32>
    %cst_167 = arith.constant 1.000000e+00 : f32
    %535 = vector.broadcast %cst_167 : f32 to vector<8x128xf32>
    %536 = arith.addf %535, %534 : vector<8x128xf32>
    %537 = arith.divf %535, %536 : vector<8x128xf32>
    %538 = arith.mulf %529, %506 : vector<8x128xf32>
    %539 = arith.mulf %523, %531 : vector<8x128xf32>
    %540 = arith.addf %538, %539 : vector<8x128xf32>
    %541 = math.tanh %540 : vector<8x128xf32>
    %542 = arith.mulf %537, %541 : vector<8x128xf32>
    %543 = arith.index_cast %c6_i32_161 : i32 to index
    %c0_168 = arith.constant 0 : index
    %c0_169 = arith.constant 0 : index
    %544 = vector.load %arg11[%543, %c0_168, %c0_169] : memref<8x8x128xf32, #tpu.memory_space<vmem>>, vector<1x8x128xf32>
    %545 = vector.shape_cast %544 : vector<1x8x128xf32> to vector<8x128xf32>
    %546 = vector.shape_cast %542 : vector<8x128xf32> to vector<1x8x128xf32>
    tpu.vector_store %arg11[%543, %c0_168, %c0_169], %546 {strides = array<i32>} : memref<8x8x128xf32, #tpu.memory_space<vmem>>, vector<1x8x128xf32>,
    %c7_i32_170 = arith.constant 7 : i32
    %547 = arith.index_cast %c7_i32_170 : i32 to index
    %c0_171 = arith.constant 0 : index
    %c0_172 = arith.constant 0 : index
    %548 = vector.load %arg16[%547, %c0_171, %c0_172] : memref<8x8x512xf32, #tpu.memory_space<vmem>>, vector<1x8x512xf32>
    %549 = vector.shape_cast %548 : vector<1x8x512xf32> to vector<8x512xf32>
    %cst_173 = arith.constant dense<0.000000e+00> : vector<8x512xf32>
    %550 = tpu.matmul %542, %304, %cst_173 {dimension_numbers = #tpu.dot_dimension_numbers<[1], [0], [0], [1], [0, 0, 1, 1], [], []>} : vector<8x128xf32>, vector<128x512xf32>, vector<8x512xf32> -> vector<8x512xf32>
    %551 = arith.addf %549, %550 : vector<8x512xf32>
    %552 = vector.extract_strided_slice %551 {offsets = [0, 0], sizes = [8, 128], strides = [1, 1]} : vector<8x512xf32> to vector<8x128xf32>
    %553 = arith.negf %552 : vector<8x128xf32>
    %554 = math.exp %553 : vector<8x128xf32>
    %cst_174 = arith.constant 1.000000e+00 : f32
    %555 = vector.broadcast %cst_174 : f32 to vector<8x128xf32>
    %556 = arith.addf %555, %554 : vector<8x128xf32>
    %557 = arith.divf %555, %556 : vector<8x128xf32>
    %558 = vector.extract_strided_slice %551 {offsets = [0, 128], sizes = [8, 128], strides = [1, 1]} : vector<8x512xf32> to vector<8x128xf32>
    %559 = arith.negf %558 : vector<8x128xf32>
    %560 = math.exp %559 : vector<8x128xf32>
    %cst_175 = arith.constant 1.000000e+00 : f32
    %561 = vector.broadcast %cst_175 : f32 to vector<8x128xf32>
    %562 = arith.addf %561, %560 : vector<8x128xf32>
    %563 = arith.divf %561, %562 : vector<8x128xf32>
    %564 = vector.extract_strided_slice %551 {offsets = [0, 256], sizes = [8, 128], strides = [1, 1]} : vector<8x512xf32> to vector<8x128xf32>
    %565 = math.tanh %564 : vector<8x128xf32>
    %566 = vector.extract_strided_slice %551 {offsets = [0, 384], sizes = [8, 128], strides = [1, 1]} : vector<8x512xf32> to vector<8x128xf32>
    %567 = arith.negf %566 : vector<8x128xf32>
    %568 = math.exp %567 : vector<8x128xf32>
    %cst_176 = arith.constant 1.000000e+00 : f32
    %569 = vector.broadcast %cst_176 : f32 to vector<8x128xf32>
    %570 = arith.addf %569, %568 : vector<8x128xf32>
    %571 = arith.divf %569, %570 : vector<8x128xf32>
    %572 = arith.mulf %563, %540 : vector<8x128xf32>
    %573 = arith.mulf %557, %565 : vector<8x128xf32>
    %574 = arith.addf %572, %573 : vector<8x128xf32>
    %575 = math.tanh %574 : vector<8x128xf32>
    %576 = arith.mulf %571, %575 : vector<8x128xf32>
    %577 = arith.index_cast %c7_i32_170 : i32 to index
    %c0_177 = arith.constant 0 : index
    %c0_178 = arith.constant 0 : index
    %578 = vector.load %arg11[%577, %c0_177, %c0_178] : memref<8x8x128xf32, #tpu.memory_space<vmem>>, vector<1x8x128xf32>
    %579 = vector.shape_cast %578 : vector<1x8x128xf32> to vector<8x128xf32>
    %580 = vector.shape_cast %576 : vector<8x128xf32> to vector<1x8x128xf32>
    tpu.vector_store %arg11[%577, %c0_177, %c0_178], %580 {strides = array<i32>} : memref<8x8x128xf32, #tpu.memory_space<vmem>>, vector<1x8x128xf32>,
    %c8_i32_179 = arith.constant 8 : i32
    %c1_180 = arith.constant 1 : index
    %c0_181 = arith.constant 0 : index
    %c0_182 = arith.constant 0 : index
    %581 = vector.load %arg14[%c1_180, %c0_181, %c0_182] : memref<2x8x128xf32, #tpu.memory_space<vmem>>, vector<1x8x128xf32>
    %582 = vector.shape_cast %581 : vector<1x8x128xf32> to vector<8x128xf32>
    %583 = vector.shape_cast %576 : vector<8x128xf32> to vector<1x8x128xf32>
    tpu.vector_store %arg14[%c1_180, %c0_181, %c0_182], %583 {strides = array<i32>} : memref<2x8x128xf32, #tpu.memory_space<vmem>>, vector<1x8x128xf32>,
    %c1_183 = arith.constant 1 : index
    %c0_184 = arith.constant 0 : index
    %c0_185 = arith.constant 0 : index
    %584 = vector.load %arg15[%c1_183, %c0_184, %c0_185] : memref<2x8x128xf32, #tpu.memory_space<vmem>>, vector<1x8x128xf32>
    %585 = vector.shape_cast %584 : vector<1x8x128xf32> to vector<8x128xf32>
    %586 = vector.shape_cast %574 : vector<8x128xf32> to vector<1x8x128xf32>
    tpu.vector_store %arg15[%c1_183, %c0_184, %c0_185], %586 {strides = array<i32>} : memref<2x8x128xf32, #tpu.memory_space<vmem>>, vector<1x8x128xf32>,
    %c0_i32_186 = arith.constant 0 : i32
    %587 = arith.cmpi eq, %arg1, %c0_i32_186 : i32
    %588 = arith.extui %587 : i1 to i32
    %c0_i32_187 = arith.constant 0 : i32
    %589 = arith.cmpi ne, %588, %c0_i32_187 : i32
    scf.if %589 {
      %c0_188 = arith.constant 0 : index
      %c0_189 = arith.constant 0 : index
      %c0_190 = arith.constant 0 : index
      %590 = vector.load %arg14[%c0_188, %c0_189, %c0_190] : memref<2x8x128xf32, #tpu.memory_space<vmem>>, vector<2x8x128xf32>
      %c0_191 = arith.constant 0 : index
      %c0_192 = arith.constant 0 : index
      %c0_193 = arith.constant 0 : index
      %591 = vector.load %arg12[%c0_191, %c0_192, %c0_193] : memref<2x8x128xf32, #tpu.memory_space<vmem>>, vector<2x8x128xf32>
      tpu.vector_store %arg12[%c0_191, %c0_192, %c0_193], %590 {strides = array<i32>} : memref<2x8x128xf32, #tpu.memory_space<vmem>>, vector<2x8x128xf32>,
      %c0_194 = arith.constant 0 : index
      %c0_195 = arith.constant 0 : index
      %c0_196 = arith.constant 0 : index
      %592 = vector.load %arg15[%c0_194, %c0_195, %c0_196] : memref<2x8x128xf32, #tpu.memory_space<vmem>>, vector<2x8x128xf32>
      %c0_197 = arith.constant 0 : index
      %c0_198 = arith.constant 0 : index
      %c0_199 = arith.constant 0 : index
      %593 = vector.load %arg13[%c0_197, %c0_198, %c0_199] : memref<2x8x128xf32, #tpu.memory_space<vmem>>, vector<2x8x128xf32>
      tpu.vector_store %arg13[%c0_197, %c0_198, %c0_199], %592 {strides = array<i32>} : memref<2x8x128xf32, #tpu.memory_space<vmem>>, vector<2x8x128xf32>,
    } else {
    }
    return
  }
  func.func @transform_0(%arg0: i32, %arg1: i32) -> (i32, i32, i32) {
    %c0_i32 = arith.constant 0 : i32
    %c0_i32_0 = arith.constant 0 : i32
    return %arg1, %arg0, %c0_i32 : i32, i32, i32
  }
  func.func @transform_1(%arg0: i32, %arg1: i32) -> (i32, i32, i32) {
    %c0_i32 = arith.constant 0 : i32
    %c0_i32_0 = arith.constant 0 : i32
    %c0_i32_1 = arith.constant 0 : i32
    return %c0_i32, %arg0, %c0_i32_0 : i32, i32, i32
  }
  func.func @transform_2(%arg0: i32, %arg1: i32) -> (i32, i32, i32) {
    %c0_i32 = arith.constant 0 : i32
    %c0_i32_0 = arith.constant 0 : i32
    %c0_i32_1 = arith.constant 0 : i32
    return %c0_i32, %arg0, %c0_i32_0 : i32, i32, i32
  }
  func.func @transform_3(%arg0: i32, %arg1: i32) -> (i32, i32) {
    %c0_i32 = arith.constant 0 : i32
    %c0_i32_0 = arith.constant 0 : i32
    %c0_i32_1 = arith.constant 0 : i32
    return %c0_i32, %c0_i32_0 : i32, i32
  }
  func.func @transform_4(%arg0: i32, %arg1: i32) -> (i32, i32) {
    %c0_i32 = arith.constant 0 : i32
    %c0_i32_0 = arith.constant 0 : i32
    %c0_i32_1 = arith.constant 0 : i32
    return %c0_i32, %c0_i32_0 : i32, i32
  }
  func.func @transform_5(%arg0: i32, %arg1: i32) -> (i32, i32) {
    %c0_i32 = arith.constant 0 : i32
    %c0_i32_0 = arith.constant 0 : i32
    %c0_i32_1 = arith.constant 0 : i32
    return %c0_i32, %c0_i32_0 : i32, i32
  }
  func.func @transform_6(%arg0: i32, %arg1: i32) -> (i32, i32) {
    %c0_i32 = arith.constant 0 : i32
    %c0_i32_0 = arith.constant 0 : i32
    %c0_i32_1 = arith.constant 0 : i32
    return %c0_i32, %c0_i32_0 : i32, i32
  }
  func.func @transform_7(%arg0: i32, %arg1: i32) -> (i32, i32) {
    %c0_i32 = arith.constant 0 : i32
    %c0_i32_0 = arith.constant 0 : i32
    %c0_i32_1 = arith.constant 0 : i32
    return %c0_i32, %c0_i32_0 : i32, i32
  }
  func.func @transform_8(%arg0: i32, %arg1: i32) -> (i32, i32) {
    %c0_i32 = arith.constant 0 : i32
    %c0_i32_0 = arith.constant 0 : i32
    %c0_i32_1 = arith.constant 0 : i32
    return %c0_i32, %c0_i32_0 : i32, i32
  }
  func.func @transform_9(%arg0: i32, %arg1: i32) -> (i32, i32, i32) {
    %c0_i32 = arith.constant 0 : i32
    %c0_i32_0 = arith.constant 0 : i32
    return %arg1, %arg0, %c0_i32 : i32, i32, i32
  }
  func.func @transform_10(%arg0: i32, %arg1: i32) -> (i32, i32, i32) {
    %c0_i32 = arith.constant 0 : i32
    %c0_i32_0 = arith.constant 0 : i32
    %c0_i32_1 = arith.constant 0 : i32
    return %c0_i32, %arg0, %c0_i32_0 : i32, i32, i32
  }
  func.func @transform_11(%arg0: i32, %arg1: i32) -> (i32, i32, i32) {
    %c0_i32 = arith.constant 0 : i32
    %c0_i32_0 = arith.constant 0 : i32
    %c0_i32_1 = arith.constant 0 : i32
    return %c0_i32, %arg0, %c0_i32_0 : i32, i32, i32
  }
}

</mosaic_0001>

<bundles_post_ra>
// kernel: tpu_custom_call.1
= control target key start
LH: loop header
LB: loop body
LE: loop exit
PB: predicated region body
PF: predicated region fallthrough
CT: control target
= control target key end

     0   :  { %17 = vsyncpa [#allocation7], 0  ;;  %s6866_s0 = inlined_call_operand.hbm [shape: f32[8,8,128], index: 0, kind: input, shape index: {}]   ;;  %s6867_s1 = inlined_call_operand.hbm [shape: f32[2,8,128], index: 1, kind: input, shape index: {}]   ;;  %s6868_s2 = inlined_call_operand.hbm [shape: f32[2,8,128], index: 2, kind: input, shape index: {}]   ;;  %s6869_s3 = inlined_call_operand.hbm [shape: f32[128,512], index: 3, kind: input, shape index: {}]   ;;  %s6870_s4 = inlined_call_operand.hbm [shape: f32[128,512], index: 4, kind: input, shape index: {}]   ;;  %s6871_s5 = inlined_call_operand.vmem [shape: f32[1,512], index: 5, kind: input, shape index: {}]   ;;  %s6872_s6 = inlined_call_operand.hbm [shape: f32[128,512], index: 6, kind: input, shape index: {}]   ;;  %s6873_s7 = inlined_call_operand.hbm [shape: f32[128,512], index: 7, kind: input, shape index: {}]   ;;  %s6874_s8 = inlined_call_operand.vmem [shape: f32[1,512], index: 8, kind: input, shape index: {}]   ;;  %s6875_s9 = inlined_call_operand.hbm [shape: f32[8,8,128], index: 9, kind: output, shape index: {0}]   ;;  %s6876_s10 = inlined_call_operand.hbm [shape: f32[2,8,128], index: 10, kind: output, shape index: {1}]   ;;  %s6877_s11 = inlined_call_operand.hbm [shape: f32[2,8,128], index: 11, kind: output, shape index: {2}]  }
   0x1   :  { %18 = vsyncpa [#allocation10], 0 }
   0x2   :  { %19 = vsyncpa [#allocation13], 0 }
   0x3   :  { %20 = vsyncpa [#allocation16], 0 }
   0x4   :  { %21 = vsyncpa [#allocation8], 0 }
   0x5   :  { %22 = vsyncpa [#allocation20], 0  ;;  %s5700_s17 = smov [#allocation9]   ;;  %s5701_s19 = smov [#allocation12]  }
   0x6   :  { %s40_s18 = sshll.u32 %s5700_s17, 4  ;;  %s64_s20 = sshll.u32 %s5701_s19, 4  ;;  %s41_s18 = int_to_ptr.vmem [resolvable:$true] %s40_s18  ;;  %s5775_s20 = int_to_ptr.vmem [resolvable:$true] %s64_s20 }
   0x7   :  { %s5468_s23 = scalar_lea.hbm %s6867_s1, 256 }
   0x8   :  { %p5469_p0 = scmp.ne.s32.totalorder %s6867_s1, %s5468_s23  ;;  %p5472_p1 = scmp.lt.u32.totalorder %s5468_s23, %s6867_s1 }
   0xa   :  { %p5474_p2 = pnand %p5472_p1, %p5469_p0 }
   0xc   :  { %5477 = shalt.err (!%p5474_p2)
}
   0xd   :  { %s5478_s28 = scalar_lea.vmem %s41_s18, 256  ;;  %p5483_p4 = scmp.lt.s32.totalorder %s41_s18, %s41_s18 }
   0xe   :  { %p5479_p3 = scmp.ne.s32.totalorder %s41_s18, %s5478_s28  ;;  %p5484_p5 = scmp.lt.s32.totalorder %s5478_s28, %s5478_s28 }
  0x10   :  { %p5485_p6 = por %p5484_p5, %p5483_p4 }
  0x12   :  { %p5486_p7 = pnand %p5485_p6, %p5479_p3 }
  0x14   :  { %5489 = shalt.err (!%p5486_p7)
}
  0x15   :  { %s5702_s29 = smov 128   ;;  %s5703_s30 = smov 8  }
  0x16   :  { %46 = dma.hbm_to_vmem [thread:$0]  %s6867_s1, 256, %s41_s18, [#allocation10], %s5702_s29, %s5702_s29, %s5703_s30  }
  0x17   :  { %s5490_s16 = scalar_lea.hbm %s6869_s3, 8192 }
  0x18   :  { %p5491_p8 = scmp.ne.s32.totalorder %s6869_s3, %s5490_s16  ;;  %p5494_p9 = scmp.lt.u32.totalorder %s5490_s16, %s6869_s3 }
  0x1a   :  { %p5496_p10 = pnand %p5494_p9, %p5491_p8 }
  0x1c   :  { %5499 = shalt.err (!%p5496_p10)
}
  0x1d   :  { %s5500_s23 = scalar_lea.vmem %s5775_s20, 8192  ;;  %p5505_p12 = scmp.lt.s32.totalorder %s5775_s20, %s5775_s20 }
  0x1e   :  { %p5501_p11 = scmp.ne.s32.totalorder %s5775_s20, %s5500_s23  ;;  %p5506_p13 = scmp.lt.s32.totalorder %s5500_s23, %s5500_s23 }
  0x20   :  { %p5507_p0 = por %p5506_p13, %p5505_p12 }
  0x22   :  { %p5508_p1 = pnand %p5507_p0, %p5501_p11 }
  0x24   :  { %5511 = shalt.err (!%p5508_p1)
}
  0x25   :  { %s5704_s1 = smov 512   ;;  %s5705_s18 = smov 32  }
  0x26   :  { %70 = dma.hbm_to_vmem [thread:$0]  %s6869_s3, 8192, %s5775_s20, [#allocation13], %s5704_s1, %s5704_s1, %s5705_s18  }
  0x27   :  { %s5706_s26 = smov [#allocation15]   ;;  %s5707_s28 = smov [#allocation6]  }
  0x28   :  { %s90_s27 = sshll.u32 %s5706_s26, 4  ;;  %s28_s12 = sshll.u32 %s5707_s28, 4  ;;  %s91_s27 = int_to_ptr.vmem [resolvable:$true] %s90_s27  ;;  %s5812_s12 = int_to_ptr.vmem [resolvable:$true] %s28_s12 }
  0x29   :  { %s5512_s15 = scalar_lea.hbm %s6872_s6, 8192 }
  0x2a   :  { %p5513_p2 = scmp.ne.s32.totalorder %s6872_s6, %s5512_s15  ;;  %p5516_p3 = scmp.lt.u32.totalorder %s5512_s15, %s6872_s6 }
  0x2c   :  { %p5518_p4 = pnand %p5516_p3, %p5513_p2 }
  0x2e   :  { %5521 = shalt.err (!%p5518_p4)
}
  0x2f   :  { %s5522_s3 = scalar_lea.vmem %s91_s27, 8192  ;;  %p5527_p6 = scmp.lt.s32.totalorder %s91_s27, %s91_s27 }
  0x30   :  { %p5523_p5 = scmp.ne.s32.totalorder %s91_s27, %s5522_s3  ;;  %p5528_p7 = scmp.lt.s32.totalorder %s5522_s3, %s5522_s3 }
  0x32   :  { %p5529_p8 = por %p5528_p7, %p5527_p6 }
  0x34   :  { %p5530_p9 = pnand %p5529_p8, %p5523_p5 }
  0x36   :  { %5533 = shalt.err (!%p5530_p9)
}
  0x37   :  { %96 = dma.hbm_to_vmem [thread:$0]  %s6872_s6, 8192, %s91_s27, [#allocation16], %s5704_s1, %s5704_s1, %s5705_s18  }
  0x38   :  { %s5534_s25 = scalar_lea.hbm %s6866_s0, 1024 }
  0x39   :  { %p5535_p10 = scmp.ne.s32.totalorder %s6866_s0, %s5534_s25  ;;  %p5538_p11 = scmp.lt.u32.totalorder %s5534_s25, %s6866_s0 }
  0x3b   :  { %p5540_p12 = pnand %p5538_p11, %p5535_p10 }
  0x3d   :  { %5543 = shalt.err (!%p5540_p12)
}
  0x3e   :  { %s5544_s15 = scalar_lea.vmem %s5812_s12, 1024  ;;  %p5549_p0 = scmp.lt.s32.totalorder %s5812_s12, %s5812_s12 }
  0x3f   :  { %p5545_p13 = scmp.ne.s32.totalorder %s5812_s12, %s5544_s15  ;;  %p5550_p1 = scmp.lt.s32.totalorder %s5544_s15, %s5544_s15 }
  0x41   :  { %p5551_p2 = por %p5550_p1, %p5549_p0 }
  0x43   :  { %p5552_p3 = pnand %p5551_p2, %p5545_p13 }
  0x45   :  { %5555 = shalt.err (!%p5552_p3)
}
  0x46   :  { %34 = dma.hbm_to_vmem [thread:$0]  %s6866_s0, 1024, %s5812_s12, [#allocation7], %s5702_s29, %s5702_s29, %s5703_s30  }
  0x47   :  { %s5708_s16 = smov [#allocation11]   ;;  %s5709_s19 = smov [#allocation14]  }
  0x48   :  { %s52_s17 = sshll.u32 %s5708_s16, 4  ;;  %s76_s21 = sshll.u32 %s5709_s19, 4  ;;  %s53_s17 = int_to_ptr.vmem [resolvable:$true] %s52_s17  ;;  %s5849_s21 = int_to_ptr.vmem [resolvable:$true] %s76_s21 }
  0x49   :  { %s5556_s22 = scalar_lea.hbm %s6868_s2, 256 }
  0x4a   :  { %p5557_p4 = scmp.ne.s32.totalorder %s6868_s2, %s5556_s22  ;;  %p5560_p5 = scmp.lt.u32.totalorder %s5556_s22, %s6868_s2 }
  0x4c   :  { %p5562_p6 = pnand %p5560_p5, %p5557_p4 }
  0x4e   :  { %5565 = shalt.err (!%p5562_p6)
}
  0x4f   :  { %s5566_s0 = scalar_lea.vmem %s53_s17, 256  ;;  %p5571_p8 = scmp.lt.s32.totalorder %s53_s17, %s53_s17 }
  0x50   :  { %p5567_p7 = scmp.ne.s32.totalorder %s53_s17, %s5566_s0  ;;  %p5572_p9 = scmp.lt.s32.totalorder %s5566_s0, %s5566_s0 }
  0x52   :  { %p5573_p10 = por %p5572_p9, %p5571_p8 }
  0x54   :  { %p5574_p11 = pnand %p5573_p10, %p5567_p7 }
  0x56   :  { %5577 = shalt.err (!%p5574_p11)
}
  0x57   :  { %58 = dma.hbm_to_vmem [thread:$0]  %s6868_s2, 256, %s53_s17, [#allocation10], %s5702_s29, %s5702_s29, %s5703_s30  }
  0x58   :  { %s5578_s15 = scalar_lea.hbm %s6870_s4, 8192 }
  0x59   :  { %p5579_p12 = scmp.ne.s32.totalorder %s6870_s4, %s5578_s15  ;;  %p5582_p13 = scmp.lt.u32.totalorder %s5578_s15, %s6870_s4 }
  0x5b   :  { %p5584_p0 = pnand %p5582_p13, %p5579_p12 }
  0x5d   :  { %5587 = shalt.err (!%p5584_p0)
}
  0x5e   :  { %s5588_s3 = scalar_lea.vmem %s5849_s21, 8192  ;;  %p5593_p2 = scmp.lt.s32.totalorder %s5849_s21, %s5849_s21 }
  0x5f   :  { %p5589_p1 = scmp.ne.s32.totalorder %s5849_s21, %s5588_s3  ;;  %p5594_p3 = scmp.lt.s32.totalorder %s5588_s3, %s5588_s3 }
  0x61   :  { %p5595_p4 = por %p5594_p3, %p5593_p2 }
  0x63   :  { %p5596_p5 = pnand %p5595_p4, %p5589_p1 }
  0x65   :  { %5599 = shalt.err (!%p5596_p5)
}
  0x66   :  { %82 = dma.hbm_to_vmem [thread:$0]  %s6870_s4, 8192, %s5849_s21, [#allocation13], %s5704_s1, %s5704_s1, %s5705_s18  }
  0x67   :  { %s5710_s20 = smov [#allocation17]   ;;  %s5600_s25 = scalar_lea.hbm %s6873_s7, 8192 }
  0x68   :  { %s102_s22 = sshll.u32 %s5710_s20, 4  ;;  %p5601_p6 = scmp.ne.s32.totalorder %s6873_s7, %s5600_s25  ;;  %s103_s22 = int_to_ptr.vmem [resolvable:$true] %s102_s22 }
  0x69   :  { %p5604_p7 = scmp.lt.u32.totalorder %s5600_s25, %s6873_s7 }
  0x6b   :  { %p5606_p8 = pnand %p5604_p7, %p5601_p6 }
  0x6d   :  { %5609 = shalt.err (!%p5606_p8)
}
  0x6e   :  { %s5610_s13 = scalar_lea.vmem %s103_s22, 8192  ;;  %p5615_p10 = scmp.lt.s32.totalorder %s103_s22, %s103_s22 }
  0x6f   :  { %p5611_p9 = scmp.ne.s32.totalorder %s103_s22, %s5610_s13  ;;  %p5616_p11 = scmp.lt.s32.totalorder %s5610_s13, %s5610_s13 }
  0x71   :  { %p5617_p12 = por %p5616_p11, %p5615_p10 }
  0x73   :  { %p5618_p13 = pnand %p5617_p12, %p5611_p9 }
  0x75   :  { %5621 = shalt.err (!%p5618_p13)
}
  0x76   :  { %108 = dma.hbm_to_vmem [thread:$0]  %s6873_s7, 8192, %s103_s22, [#allocation16], %s5704_s1, %s5704_s1, %s5705_s18  }
  0x77   :  { %5688 = dma.done.wait [#allocation7], 1024  }
  0x78   :  { %5689 = vsyncadd [#allocation7], 4294966272 }
  0x79   :  { %5690 = dma.done.wait [#allocation10], 512  }
  0x7a   :  { %5691 = vsyncadd [#allocation10], 4294966784 }
  0x7b   :  { %5692 = dma.done.wait [#allocation13], 16384  }
  0x7c   :  { %5693 = vsyncadd [#allocation13], 4294950912 }
  0x7d   :  { %5694 = dma.done.wait [#allocation16], 16384  }
  0x7e   :  { %5695 = vsyncadd [#allocation16], 4294950912  ;;  %v5711_v0 = vmov 0.0   ;;  %v153_v1 = vld [vmem:[#allocation12 + $0x8] sm:$0xff]  ;;  %v155_v3 = vld [vmem:[#allocation12 + $0x18] sm:$0xff]  ;;  %s5713_s15 = smov [#allocation18]  }
  0x7f   :  { %302 = vmatprep.mubr.f32.mxu0 %v5711_v0  ;;  %415 = vmatprep.mubr.f32.mxu1 %v5711_v0  ;;  %v157_v2 = vld [vmem:[#allocation12 + $0x28] sm:$0xff]  ;;  %v159_v5 = vld [vmem:[#allocation12 + $0x38] sm:$0xff]  ;;  %v152_v6 = vld [vmem:[#allocation12] sm:$0xff]  ;;  %s3823_s6 = sshll.u32 %s5713_s15, 4  ;;  %s5714_s27 = smov [#allocation21]   ;;  %s6807_s6 = int_to_ptr.vmem [resolvable:$true] %s3823_s6 }
  0x80   :  { %v3917_v4 = vpack.c.bf16 %v157_v2, %v153_v1  ;;  %v156_v7 = vld [vmem:[#allocation12 + $0x20] sm:$0xff]  ;;  %v3949_v8 = vpack.c.bf16 %v159_v5, %v155_v3  ;;  %v154_v10 = vld [vmem:[#allocation12 + $0x10] sm:$0xff]  ;;  %v161_v12 = vld [vmem:[#allocation12 + $0x48] sm:$0xff]  ;;  %s3847_s16 = sshll.u32 %s5714_s27, 4  ;;  %s6809_s16 = int_to_ptr.vmem [resolvable:$true] %s3847_s16 }
  0x81   :  { %v3919_v9 = vpack.c.bf16 %v156_v7, %v152_v6  ;;  %v158_v11 = vld [vmem:[#allocation12 + $0x30] sm:$0xff]  ;;  %v165_v14 = vld [vmem:[#allocation12 + $0x68] sm:$0xff]  ;;  %v163_v15 = vld [vmem:[#allocation12 + $0x58] sm:$0xff] }
  0x82   :  { %3918 = vmatprep.subr.bf16.mxu0 %v3917_v4  ;;  %v3951_v13 = vpack.c.bf16 %v158_v11, %v154_v10  ;;  %v167_v16 = vld [vmem:[#allocation12 + $0x78] sm:$0xff]  ;;  %3950 = vmatprep.subr.bf16.mxu1 %v3949_v8  ;;  %v3921_v17 = vpack.c.bf16 %v165_v14, %v161_v12  ;;  %v160_v19 = vld [vmem:[#allocation12 + $0x40] sm:$0xff]  ;;  %v162_v21 = vld [vmem:[#allocation12 + $0x50] sm:$0xff] }
  0x83   :  { %3920 = vmatpush1.bf16.msra.mxu0 %v3919_v9  ;;  %v3953_v18 = vpack.c.bf16 %v167_v16, %v163_v15  ;;  %v164_v20 = vld [vmem:[#allocation12 + $0x60] sm:$0xff]  ;;  %v166_v23 = vld [vmem:[#allocation12 + $0x70] sm:$0xff]  ;;  %v169_v24 = vld [vmem:[#allocation12 + $0x88] sm:$0xff] }
  0x84   :  { %3952 = vmatpush1.bf16.msra.mxu1 %v3951_v13  ;;  %v3923_v22 = vpack.c.bf16 %v164_v20, %v160_v19  ;;  %v173_v25 = vld [vmem:[#allocation12 + $0xa8] sm:$0xff]  ;;  %3922 = vmatprep.subr.bf16.mxu0 %v3921_v17  ;;  %v3955_v26 = vpack.c.bf16 %v166_v23, %v162_v21  ;;  %v171_v28 = vld [vmem:[#allocation12 + $0x98] sm:$0xff]  ;;  %v168_v30 = vld [vmem:[#allocation12 + $0x80] sm:$0xff] }
  0x85   :  { %3954 = vmatprep.subr.bf16.mxu1 %v3953_v18  ;;  %v3925_v27 = vpack.c.bf16 %v173_v25, %v169_v24  ;;  %v175_v29 = vld [vmem:[#allocation12 + $0xb8] sm:$0xff]  ;;  %v172_v32 = vld [vmem:[#allocation12 + $0xa0] sm:$0xff]  ;;  %v170_v33 = vld [vmem:[#allocation12 + $0x90] sm:$0xff] }
  0x86   :  { %v3957_v31 = vpack.c.bf16 %v175_v29, %v171_v28  ;;  %v174_v34 = vld [vmem:[#allocation12 + $0xb0] sm:$0xff]  ;;  %v3927_v35 = vpack.c.bf16 %v172_v32, %v168_v30  ;;  %v177_v36 = vld [vmem:[#allocation12 + $0xc8] sm:$0xff]  ;;  %v179_v38 = vld [vmem:[#allocation12 + $0xd8] sm:$0xff] }
  0x87   :  { %3924 = vmatpush1.bf16.msra.mxu0 %v3923_v22  ;;  %v181_v37 = vld [vmem:[#allocation12 + $0xe8] sm:$0xff]  ;;  %v3959_v39 = vpack.c.bf16 %v174_v34, %v170_v33  ;;  %v183_v41 = vld [vmem:[#allocation12 + $0xf8] sm:$0xff]  ;;  %v176_v42 = vld [vmem:[#allocation12 + $0xc0] sm:$0xff] }
  0x88   :  { %3956 = vmatpush1.bf16.msra.mxu1 %v3955_v26  ;;  %3926 = vmatprep.subr.bf16.mxu0 %v3925_v27  ;;  %v3929_v40 = vpack.c.bf16 %v181_v37, %v177_v36  ;;  %v180_v43 = vld [vmem:[#allocation12 + $0xe0] sm:$0xff]  ;;  %v3961_v44 = vpack.c.bf16 %v183_v41, %v179_v38  ;;  %v178_v45 = vld [vmem:[#allocation12 + $0xd0] sm:$0xff]  ;;  %v185_v47 = vld [vmem:[#allocation12 + $0x108] sm:$0xff] }
  0x89   :  { %3958 = vmatprep.subr.bf16.mxu1 %v3957_v31  ;;  %v182_v46 = vld [vmem:[#allocation12 + $0xf0] sm:$0xff]  ;;  %v189_v48 = vld [vmem:[#allocation12 + $0x128] sm:$0xff]  ;;  %v187_v49 = vld [vmem:[#allocation12 + $0x118] sm:$0xff]  ;;  %v3931_v51 = vpack.c.bf16 %v180_v43, %v176_v42 }
  0x8a   :  { %v191_v50 = vld [vmem:[#allocation12 + $0x138] sm:$0xff]  ;;  %v3963_v52 = vpack.c.bf16 %v182_v46, %v178_v45  ;;  %v3933_v53 = vpack.c.bf16 %v189_v48, %v185_v47  ;;  %v184_v54 = vld [vmem:[#allocation12 + $0x100] sm:$0xff]  ;;  %v186_v56 = vld [vmem:[#allocation12 + $0x110] sm:$0xff] }
  0x8b   :  { %3928 = vmatpush1.bf16.msra.mxu0 %v3927_v35  ;;  %v188_v55 = vld [vmem:[#allocation12 + $0x120] sm:$0xff]  ;;  %v3965_v57 = vpack.c.bf16 %v191_v50, %v187_v49  ;;  %v190_v58 = vld [vmem:[#allocation12 + $0x130] sm:$0xff]  ;;  %v193_v59 = vld [vmem:[#allocation12 + $0x148] sm:$0xff] }
  0x8c   :  { %3960 = vmatpush1.bf16.msra.mxu1 %v3959_v39  ;;  %3930 = vmatprep.subr.bf16.mxu0 %v3929_v40  ;;  %v197_v60 = vld [vmem:[#allocation12 + $0x168] sm:$0xff]  ;;  %v195_v61 = vld [vmem:[#allocation12 + $0x158] sm:$0xff]  ;;  %v3935_v63 = vpack.c.bf16 %v188_v55, %v184_v54  ;;  %v3967_v1 = vpack.c.bf16 %v190_v58, %v186_v56  ;;  %v192_v3 = vld [vmem:[#allocation12 + $0x140] sm:$0xff] }
  0x8d   :  { %3962 = vmatprep.subr.bf16.mxu1 %v3961_v44  ;;  %v199_v62 = vld [vmem:[#allocation12 + $0x178] sm:$0xff]  ;;  %v3937_v2 = vpack.c.bf16 %v197_v60, %v193_v59  ;;  %v196_v4 = vld [vmem:[#allocation12 + $0x160] sm:$0xff]  ;;  %v194_v5 = vld [vmem:[#allocation12 + $0x150] sm:$0xff] }
  0x8e   :  { %v3969_v6 = vpack.c.bf16 %v199_v62, %v195_v61  ;;  %v198_v7 = vld [vmem:[#allocation12 + $0x170] sm:$0xff]  ;;  %v201_v8 = vld [vmem:[#allocation12 + $0x188] sm:$0xff]  ;;  %v203_v10 = vld [vmem:[#allocation12 + $0x198] sm:$0xff]  ;;  %v3939_v12 = vpack.c.bf16 %v196_v4, %v192_v3 }
  0x8f   :  { %3932 = vmatpush1.bf16.msra.mxu0 %v3931_v51  ;;  %v205_v9 = vld [vmem:[#allocation12 + $0x1a8] sm:$0xff]  ;;  %v207_v11 = vld [vmem:[#allocation12 + $0x1b8] sm:$0xff]  ;;  %v3971_v13 = vpack.c.bf16 %v198_v7, %v194_v5  ;;  %v200_v15 = vld [vmem:[#allocation12 + $0x180] sm:$0xff] }
  0x90   :  { %3964 = vmatpush1.bf16.msra.mxu1 %v3963_v52  ;;  %3934 = vmatprep.subr.bf16.mxu0 %v3933_v53  ;;  %v3941_v14 = vpack.c.bf16 %v205_v9, %v201_v8  ;;  %v204_v16 = vld [vmem:[#allocation12 + $0x1a0] sm:$0xff]  ;;  %v202_v17 = vld [vmem:[#allocation12 + $0x190] sm:$0xff]  ;;  %v3973_v18 = vpack.c.bf16 %v207_v11, %v203_v10  ;;  %v209_v20 = vld [vmem:[#allocation12 + $0x1c8] sm:$0xff] }
  0x91   :  { %3966 = vmatprep.subr.bf16.mxu1 %v3965_v57  ;;  %v206_v19 = vld [vmem:[#allocation12 + $0x1b0] sm:$0xff]  ;;  %v213_v21 = vld [vmem:[#allocation12 + $0x1e8] sm:$0xff]  ;;  %v211_v22 = vld [vmem:[#allocation12 + $0x1d8] sm:$0xff]  ;;  %v3943_v24 = vpack.c.bf16 %v204_v16, %v200_v15 }
  0x92   :  { %v215_v23 = vld [vmem:[#allocation12 + $0x1f8] sm:$0xff]  ;;  %v3975_v25 = vpack.c.bf16 %v206_v19, %v202_v17  ;;  %v3945_v26 = vpack.c.bf16 %v213_v21, %v209_v20  ;;  %v208_v27 = vld [vmem:[#allocation12 + $0x1c0] sm:$0xff]  ;;  %v210_v29 = vld [vmem:[#allocation12 + $0x1d0] sm:$0xff] }
  0x93   :  { %3936 = vmatpush1.bf16.msra.mxu0 %v3935_v63  ;;  %v212_v28 = vld [vmem:[#allocation12 + $0x1e0] sm:$0xff]  ;;  %v3977_v30 = vpack.c.bf16 %v215_v23, %v211_v22  ;;  %v214_v31 = vld [vmem:[#allocation12 + $0x1f0] sm:$0xff]  ;;  %v497_v32 = vld [vmem:[#allocation14 + $0x8] sm:$0xff] }
  0x94   :  { %3968 = vmatpush1.bf16.msra.mxu1 %v3967_v1  ;;  %3938 = vmatprep.subr.bf16.mxu0 %v3937_v2  ;;  %v501_v33 = vld [vmem:[#allocation14 + $0x28] sm:$0xff]  ;;  %v499_v34 = vld [vmem:[#allocation14 + $0x18] sm:$0xff]  ;;  %v3947_v36 = vpack.c.bf16 %v212_v28, %v208_v27  ;;  %v3979_v37 = vpack.c.bf16 %v214_v31, %v210_v29  ;;  %v496_v39 = vld [vmem:[#allocation14] sm:$0xff] }
  0x95   :  { %3970 = vmatprep.subr.bf16.mxu1 %v3969_v6  ;;  %v503_v35 = vld [vmem:[#allocation14 + $0x38] sm:$0xff]  ;;  %v5903_v38 = vpack.c.bf16 %v501_v33, %v497_v32  ;;  %v500_v40 = vld [vmem:[#allocation14 + $0x20] sm:$0xff]  ;;  %v498_v42 = vld [vmem:[#allocation14 + $0x10] sm:$0xff] }
  0x96   :  { %v5905_v41 = vpack.c.bf16 %v503_v35, %v499_v34  ;;  %v502_v43 = vld [vmem:[#allocation14 + $0x30] sm:$0xff]  ;;  %v505_v44 = vld [vmem:[#allocation14 + $0x48] sm:$0xff]  ;;  %v144_v46 = vld [vmem:[#allocation6] sm:$0xff]  ;;  %v5907_v47 = vpack.c.bf16 %v500_v40, %v496_v39 }
  0x97   :  { %3940 = vmatpush1.bf16.msra.mxu0 %v3939_v12  ;;  %v509_v45 = vld [vmem:[#allocation14 + $0x68] sm:$0xff]  ;;  %v507_v48 = vld [vmem:[#allocation14 + $0x58] sm:$0xff]  ;;  %v5910_v50 = vpack.c.bf16 %v502_v43, %v498_v42  ;;  %v504_v51 = vld [vmem:[#allocation14 + $0x40] sm:$0xff] }
  0x98   :  { %3972 = vmatpush1.bf16.msra.mxu1 %v3971_v13  ;;  %3942 = vmatprep.subr.bf16.mxu0 %v3941_v14  ;;  %v511_v49 = vld [vmem:[#allocation14 + $0x78] sm:$0xff]  ;;  %v508_v52 = vld [vmem:[#allocation14 + $0x60] sm:$0xff]  ;;  %v5913_v53 = vpack.c.bf16 %v509_v45, %v505_v44  ;;  %v506_v54 = vld [vmem:[#allocation14 + $0x50] sm:$0xff] }
  0x99   :  { %3974 = vmatprep.subr.bf16.mxu1 %v3973_v18  ;;  %v510_v55 = vld [vmem:[#allocation14 + $0x70] sm:$0xff]  ;;  %v5915_v56 = vpack.c.bf16 %v511_v49, %v507_v48  ;;  %v513_v57 = vld [vmem:[#allocation14 + $0x88] sm:$0xff]  ;;  %v5918_v60 = vpack.c.bf16 %v508_v52, %v504_v51  ;;  %v515_v61 = vld [vmem:[#allocation14 + $0x98] sm:$0xff] }
  0x9a   :  { %v517_v58 = vld [vmem:[#allocation14 + $0xa8] sm:$0xff]  ;;  %v519_v62 = vld [vmem:[#allocation14 + $0xb8] sm:$0xff]  ;;  %v5922_v63 = vpack.c.bf16 %v510_v55, %v506_v54  ;;  %v512_v1 = vld [vmem:[#allocation14 + $0x80] sm:$0xff] }
  0x9b   :  { %3944 = vmatpush1.bf16.msra.mxu0 %v3943_v24  ;;  %v145_v59 = vld [vmem:[#allocation6 + $0x8] sm:$0xff]  ;;  %v516_v2 = vld [vmem:[#allocation14 + $0xa0] sm:$0xff]  ;;  %v5926_v3 = vpack.c.bf16 %v517_v58, %v513_v57  ;;  %v514_v4 = vld [vmem:[#allocation14 + $0x90] sm:$0xff]  ;;  %v5929_v6 = vpack.c.bf16 %v519_v62, %v515_v61 }
  0x9c   :  { %3976 = vmatpush1.bf16.msra.mxu1 %v3975_v25  ;;  %3946 = vmatprep.subr.bf16.mxu0 %v3945_v26  ;;  %v518_v5 = vld [vmem:[#allocation14 + $0xb0] sm:$0xff]  ;;  %v521_v7 = vld [vmem:[#allocation14 + $0xc8] sm:$0xff]  ;;  %v5932_v10 = vpack.c.bf16 %v516_v2, %v512_v1  ;;  %v523_v11 = vld [vmem:[#allocation14 + $0xd8] sm:$0xff] }
  0x9d   :  { %3978 = vmatprep.subr.bf16.mxu1 %v3977_v30  ;;  %v525_v8 = vld [vmem:[#allocation14 + $0xe8] sm:$0xff]  ;;  %v146_v9 = vld [vmem:[#allocation6 + $0x10] sm:$0xff]  ;;  %v527_v12 = vld [vmem:[#allocation14 + $0xf8] sm:$0xff]  ;;  %v5936_v13 = vpack.c.bf16 %v518_v5, %v514_v4 }
  0x9e   :  { %v520_v14 = vld [vmem:[#allocation14 + $0xc0] sm:$0xff]  ;;  %v5940_v16 = vpack.c.bf16 %v525_v8, %v521_v7  ;;  %v522_v17 = vld [vmem:[#allocation14 + $0xd0] sm:$0xff]  ;;  %v5943_v19 = vpack.c.bf16 %v527_v12, %v523_v11  ;;  %v529_v20 = vld [vmem:[#allocation14 + $0x108] sm:$0xff] }
  0x9f   :  { %3948 = vmatpush1.bf16.msra.mxu0 %v3947_v36  ;;  %v524_v15 = vld [vmem:[#allocation14 + $0xe0] sm:$0xff]  ;;  %v526_v18 = vld [vmem:[#allocation14 + $0xf0] sm:$0xff]  ;;  %v533_v21 = vld [vmem:[#allocation14 + $0x128] sm:$0xff] }
  0xa0   :  { %3980 = vmatpush1.bf16.msra.mxu1 %v3979_v37  ;;  %3982 = vmatprep.subr.bf16.mxu0 %v5903_v38  ;;  %v147_v22 = vld [vmem:[#allocation6 + $0x18] sm:$0xff]  ;;  %v5946_v23 = vpack.c.bf16 %v524_v15, %v520_v14  ;;  %v5950_v26 = vpack.c.bf16 %v526_v18, %v522_v17  ;;  %v528_v27 = vld [vmem:[#allocation14 + $0x100] sm:$0xff]  ;;  %v5954_v29 = vpack.c.bf16 %v533_v21, %v529_v20  ;;  %v530_v30 = vld [vmem:[#allocation14 + $0x110] sm:$0xff] }
  0xa1   :  { %4014 = vmatprep.subr.bf16.mxu1 %v5905_v41  ;;  %v531_v24 = vld [vmem:[#allocation14 + $0x118] sm:$0xff]  ;;  %v532_v28 = vld [vmem:[#allocation14 + $0x120] sm:$0xff]  ;;  %v534_v31 = vld [vmem:[#allocation14 + $0x130] sm:$0xff] }
  0xa2   :  { %303 = vmatmul.mubr.f32.vlgmr.msra.gmra.mrb[0].mxu0 %v144_v46  ;;  %v535_v25 = vld [vmem:[#allocation14 + $0x138] sm:$0xff]  ;;  %v537_v33 = vld [vmem:[#allocation14 + $0x148] sm:$0xff]  ;;  %v148_v35 = vld [vmem:[#allocation6 + $0x20] sm:$0xff]  ;;  %v5960_v36 = vpack.c.bf16 %v532_v28, %v528_v27  ;;  %v5964_v40 = vpack.c.bf16 %v534_v31, %v530_v30  ;;  %v218_v30 = vlaneseq }
  0xa3   :  { %416 = vmatmul.mubr.f32.vlgmr.msra.gmra.mrb[0].mxu1 %v144_v46  ;;  %3984 = vmatpush1.bf16.msra.mxu0 %v5907_v47  ;;  %v5957_v32 = vpack.c.bf16 %v535_v25, %v531_v24  ;;  %v541_v34 = vld [vmem:[#allocation14 + $0x168] sm:$0xff]  ;;  %v539_v37 = vld [vmem:[#allocation14 + $0x158] sm:$0xff]  ;;  %v536_v42 = vld [vmem:[#allocation14 + $0x140] sm:$0xff] }
  0xa4   :  { %4016 = vmatpush1.bf16.msra.mxu1 %v5910_v50  ;;  %308 = vmatprep.mubr.f32.mxu0 %v5711_v0  ;;  %v543_v39 = vld [vmem:[#allocation14 + $0x178] sm:$0xff]  ;;  %v540_v43 = vld [vmem:[#allocation14 + $0x160] sm:$0xff]  ;;  %v5968_v44 = vpack.c.bf16 %v541_v34, %v537_v33  ;;  %v538_v45 = vld [vmem:[#allocation14 + $0x150] sm:$0xff]  ;;  %v6051_v31 = vshrl.u32 %v218_v30, 7 }
  0xa5   :  { %421 = vmatprep.mubr.f32.mxu1 %v5711_v0  ;;  %3986 = vmatprep.subr.bf16.mxu0 %v5913_v53  ;;  %v542_v46 = vld [vmem:[#allocation14 + $0x170] sm:$0xff]  ;;  %v5971_v48 = vpack.c.bf16 %v543_v39, %v539_v37  ;;  %v545_v49 = vld [vmem:[#allocation14 + $0x188] sm:$0xff]  ;;  %v5974_v54 = vpack.c.bf16 %v540_v43, %v536_v42  ;;  %v547_v55 = vld [vmem:[#allocation14 + $0x198] sm:$0xff] }
  0xa6   :  { %309 = vmatmul.mubr.f32.gmra.mrb[2].mxu0 %v145_v59  ;;  %4018 = vmatprep.subr.bf16.mxu1 %v5915_v56  ;;  %v549_v51 = vld [vmem:[#allocation14 + $0x1a8] sm:$0xff]  ;;  %v551_v57 = vld [vmem:[#allocation14 + $0x1b8] sm:$0xff]  ;;  %v5978_v58 = vpack.c.bf16 %v542_v46, %v538_v45  ;;  %v548_v61 = vld [vmem:[#allocation14 + $0x1a0] sm:$0xff]  ;;  %v220_v33 = vsub.s32 0, %v6051_v31  ;;  %v232_v43 = vsub.s32 3, %v6051_v31 }
  0xa7   :  { %422 = vmatmul.mubr.f32.gmra.mrb[2].mxu1 %v145_v59  ;;  %3988 = vmatpush1.bf16.msra.mxu0 %v5918_v60  ;;  %v149_v52 = vld [vmem:[#allocation6 + $0x28] sm:$0xff]  ;;  %v544_v59 = vld [vmem:[#allocation14 + $0x180] sm:$0xff]  ;;  %v5982_v62 = vpack.c.bf16 %v549_v51, %v545_v49  ;;  %v546_v1 = vld [vmem:[#allocation14 + $0x190] sm:$0xff]  ;;  %v5985_v4 = vpack.c.bf16 %v551_v57, %v547_v55 }
  0xa8   :  { %4020 = vmatpush1.bf16.msra.mxu1 %v5922_v63  ;;  %314 = vmatprep.mubr.f32.mxu0 %v5711_v0  ;;  %v550_v2 = vld [vmem:[#allocation14 + $0x1b0] sm:$0xff]  ;;  %v553_v5 = vld [vmem:[#allocation14 + $0x1c8] sm:$0xff]  ;;  %v555_v11 = vld [vmem:[#allocation14 + $0x1d8] sm:$0xff] }
  0xa9   :  { %427 = vmatprep.mubr.f32.mxu1 %v5711_v0  ;;  %3990 = vmatprep.subr.bf16.mxu0 %v5926_v3  ;;  %v557_v7 = vld [vmem:[#allocation14 + $0x1e8] sm:$0xff]  ;;  %v150_v8 = vld [vmem:[#allocation6 + $0x30] sm:$0xff]  ;;  %v559_v12 = vld [vmem:[#allocation14 + $0x1f8] sm:$0xff]  ;;  %v5992_v14 = vpack.c.bf16 %v550_v2, %v546_v1 }
  0xaa   :  { %315 = vmatmul.mubr.f32.gmra.mrb[4].mxu0 %v146_v9  ;;  %4022 = vmatprep.subr.bf16.mxu1 %v5929_v6  ;;  %v552_v15 = vld [vmem:[#allocation14 + $0x1c0] sm:$0xff]  ;;  %v5996_v18 = vpack.c.bf16 %v557_v7, %v553_v5  ;;  %v554_v20 = vld [vmem:[#allocation14 + $0x1d0] sm:$0xff]  ;;  %v151_v24 = vld [vmem:[#allocation6 + $0x38] sm:$0xff] }
  0xab   :  { %428 = vmatmul.mubr.f32.gmra.mrb[4].mxu1 %v146_v9  ;;  %3992 = vmatpush1.bf16.msra.mxu0 %v5932_v10  ;;  %v5988_v9 = vpack.c.bf16 %v548_v61, %v544_v59  ;;  %v556_v17 = vld [vmem:[#allocation14 + $0x1e0] sm:$0xff]  ;;  %v558_v21 = vld [vmem:[#allocation14 + $0x1f0] sm:$0xff]  ;;  %v228_v61 = vsub.s32 2, %v6051_v31 }
  0xac   :  { %4024 = vmatpush1.bf16.msra.mxu1 %v5936_v13  ;;  %320 = vmatprep.mubr.f32.mxu0 %v5711_v0  ;;  %v6002_v25 = vpack.c.bf16 %v556_v17, %v552_v15  ;;  %v6006_v27 = vpack.c.bf16 %v558_v21, %v554_v20  ;;  %v136_v28 = vld [vmem:[#allocation9] sm:$0xff]  ;;  %v140_v21 = vld [vmem:[#allocation11] sm:$0xff] }
  0xad   :  { %433 = vmatprep.mubr.f32.mxu1 %v5711_v0  ;;  %3994 = vmatprep.subr.bf16.mxu0 %v5940_v16  ;;  %v216_v34 = vld [vmem:[%s6871_s5] sm:$0xf] }
  0xae   :  { %321 = vmatmul.mubr.f32.gmra.mrb[6].mxu0 %v147_v22  ;;  %4026 = vmatprep.subr.bf16.mxu1 %v5943_v19  ;;  %v6060_v37 = vrot.slane %v216_v34, %v220_v33  ;;  %v6071_v59 = vrot.slane %v216_v34, %v232_v43  ;;  %v6077_v2 = vrot.slane %v216_v34, %v228_v61 }
  0xaf   :  { %434 = vmatmul.mubr.f32.gmra.mrb[6].mxu1 %v147_v22  ;;  %3996 = vmatpush1.bf16.msra.mxu0 %v5946_v23  ;;  %v5999_v22 = vpack.c.bf16 %v559_v12, %v555_v11 }
  0xb0   :  { %4028 = vmatpush1.bf16.msra.mxu1 %v5950_v26  ;;  %326 = vmatprep.mubr.f32.mxu0 %v5711_v0 }
  0xb1   :  { %439 = vmatprep.mubr.f32.mxu1 %v5711_v0  ;;  %3998 = vmatprep.subr.bf16.mxu0 %v5954_v29 }
  0xb2   :  { %327 = vmatmul.mubr.f32.gmra.mrb[8].mxu0 %v148_v35  ;;  %4030 = vmatprep.subr.bf16.mxu1 %v5957_v32 }
  0xb3   :  { %440 = vmatmul.mubr.f32.gmra.mrb[8].mxu1 %v148_v35  ;;  %4000 = vmatpush1.bf16.msra.mxu0 %v5960_v36  ;;  %v224_v35 = vsub.s32 1, %v6051_v31 }
  0xb4   :  { %4032 = vmatpush1.bf16.msra.mxu1 %v5964_v40  ;;  %332 = vmatprep.mubr.f32.mxu0 %v5711_v0 }
  0xb5   :  { %445 = vmatprep.mubr.f32.mxu1 %v5711_v0  ;;  %4002 = vmatprep.subr.bf16.mxu0 %v5968_v44  ;;  %v6064_v39 = vrot.slane %v216_v34, %v224_v35 }
  0xb6   :  { %333 = vmatmul.mubr.f32.gmra.mrb[10].mxu0 %v149_v52  ;;  %4034 = vmatprep.subr.bf16.mxu1 %v5971_v48 }
  0xb7   :  { %446 = vmatmul.mubr.f32.gmra.mrb[10].mxu1 %v149_v52  ;;  %4004 = vmatpush1.bf16.msra.mxu0 %v5974_v54 }
  0xb8   :  { %4036 = vmatpush1.bf16.msra.mxu1 %v5978_v58  ;;  %338 = vmatprep.mubr.f32.mxu0 %v5711_v0 }
  0xb9   :  { %451 = vmatprep.mubr.f32.mxu1 %v5711_v0  ;;  %4006 = vmatprep.subr.bf16.mxu0 %v5982_v62 }
  0xba   :  { %339 = vmatmul.mubr.f32.gmra.mrb[12].mxu0 %v150_v8  ;;  %4038 = vmatprep.subr.bf16.mxu1 %v5985_v4 }
  0xbb   :  { %452 = vmatmul.mubr.f32.gmra.mrb[12].mxu1 %v150_v8  ;;  %4008 = vmatpush1.bf16.msra.mxu0 %v5988_v9 }
  0xbc   :  { %4040 = vmatpush1.bf16.msra.mxu1 %v5992_v14  ;;  %344 = vmatprep.mubr.f32.mxu0 %v5711_v0 }
  0xbd   :  { %457 = vmatprep.mubr.f32.mxu1 %v5711_v0  ;;  %4010 = vmatprep.subr.bf16.mxu0 %v5996_v18 }
  0xbe   :  { %345 = vmatmul.mubr.f32.gmra.mrb[14].mxu0 %v151_v24  ;;  %4042 = vmatprep.subr.bf16.mxu1 %v5999_v22 }
  0xbf   :  { %458 = vmatmul.mubr.f32.gmra.mrb[14].mxu1 %v151_v24  ;;  %4012 = vmatpush1.bf16.msra.mxu0 %v6002_v25 }
  0xc0   :  { %4044 = vmatpush1.bf16.msra.mxu1 %v6006_v27  ;;  %630 = vmatprep.mubr.f32.mxu0 %v5711_v0 }
  0xc1   :  { %701 = vmatprep.mubr.f32.mxu1 %v5711_v0  ;;  %4046 = vmatprep.subr.bf16.mxu0 %v5903_v38 }
  0xc2   :  { %631 = vmatmul.mubr.f32.vlgmr.msra.gmra.mrb[0].mxu0 %v136_v28  ;;  %4078 = vmatprep.subr.bf16.mxu1 %v5905_v41 }
  0xc3   :  { %702 = vmatmul.mubr.f32.vlgmr.msra.gmra.mrb[0].mxu1 %v136_v28  ;;  %4048 = vmatpush1.bf16.msra.mxu0 %v5907_v47 }
  0xc4   :  { %4080 = vmatpush1.bf16.msra.mxu1 %v5910_v50  ;;  %4050 = vmatprep.subr.bf16.mxu0 %v5913_v53 }
  0xc5   :  { %4082 = vmatprep.subr.bf16.mxu1 %v5915_v56  ;;  %806 = vmatprep.mubr.f32.mxu0 %v5711_v0 }
  0xc6   :  { %877 = vmatprep.mubr.f32.mxu1 %v5711_v0 }
  0xc7   :  { %4052 = vmatpush1.bf16.msra.mxu0 %v5918_v60 }
  0xc8   :  { %4084 = vmatpush1.bf16.msra.mxu1 %v5922_v63  ;;  %4054 = vmatprep.subr.bf16.mxu0 %v5926_v3 }
  0xc9   :  { %4086 = vmatprep.subr.bf16.mxu1 %v5929_v6 }
  0xcb   :  { %4056 = vmatpush1.bf16.msra.mxu0 %v5932_v10 }
  0xcc   :  { %4088 = vmatpush1.bf16.msra.mxu1 %v5936_v13  ;;  %4058 = vmatprep.subr.bf16.mxu0 %v5940_v16 }
  0xcd   :  { %4090 = vmatprep.subr.bf16.mxu1 %v5943_v19 }
  0xcf   :  { %4060 = vmatpush1.bf16.msra.mxu0 %v5946_v23 }
  0xd0   :  { %4092 = vmatpush1.bf16.msra.mxu1 %v5950_v26  ;;  %4062 = vmatprep.subr.bf16.mxu0 %v5954_v29 }
  0xd1   :  { %4094 = vmatprep.subr.bf16.mxu1 %v5957_v32 }
  0xd3   :  { %4064 = vmatpush1.bf16.msra.mxu0 %v5960_v36 }
  0xd4   :  { %4096 = vmatpush1.bf16.msra.mxu1 %v5964_v40  ;;  %4066 = vmatprep.subr.bf16.mxu0 %v5968_v44 }
  0xd5   :  { %4098 = vmatprep.subr.bf16.mxu1 %v5971_v48 }
  0xd7   :  { %4068 = vmatpush1.bf16.msra.mxu0 %v5974_v54 }
  0xd8   :  { %4100 = vmatpush1.bf16.msra.mxu1 %v5978_v58  ;;  %4070 = vmatprep.subr.bf16.mxu0 %v5982_v62 }
  0xd9   :  { %4102 = vmatprep.subr.bf16.mxu1 %v5985_v4 }
  0xdb   :  { %4072 = vmatpush1.bf16.msra.mxu0 %v5988_v9 }
  0xdc   :  { %4104 = vmatpush1.bf16.msra.mxu1 %v5992_v14  ;;  %4074 = vmatprep.subr.bf16.mxu0 %v5996_v18 }
  0xdd   :  { %4106 = vmatprep.subr.bf16.mxu1 %v5999_v22 }
  0xdf   :  { %4076 = vmatpush1.bf16.msra.mxu0 %v6002_v25 }
  0xe0   :  { %4108 = vmatpush1.bf16.msra.mxu1 %v6006_v27  ;;  %4110 = vmatprep.subr.bf16.mxu0 %v5903_v38 }
  0xe1   :  { %4142 = vmatprep.subr.bf16.mxu1 %v5905_v41 }
 0x195   :  { %v632_v42 = vpop.f32.mrb[0].mxu0 }
 0x196   :  { %v5069_v45 = vadd.f32 %v632_v42, %v6060_v37  ;;  %v703_v46 = vpop.f32.mrb[0].mxu1  ;;  %v634_v49 = vpop.f32.mrb[1].mxu0 }
 0x197   :  { %v5070_v51 = vadd.f32 %v634_v49, %v6064_v39  ;;  %v705_v52 = vpop.f32.mrb[1].mxu1  ;;  %v5085_v7 = vadd.f32 %v703_v46, %v6077_v2 }
 0x198   :  { %v3869_v55 = vmul.f32 -1.442695, %v5069_v45  ;;  %v5086_v1 = vadd.f32 %v705_v52, %v6071_v59 }
 0x199   :  { %v3870_v57 = vmul.f32 -1.442695, %v5070_v51 }
 0x19a   :  { %5212 = vpow2.f32 %v3869_v55  ;;  %v3871_v5 = vmul.f32 -1.442695, %v5086_v1 }
 0x19b   :  { %5214 = vpow2.f32 %v3870_v57 }
 0x19c   :  { %5216 = vpow2.f32 %v3871_v5 }
 0x19d   :  { %5218 = vtanh.f32 %v5085_v7 }
 0x1a4   :  { %v5213_v8 = vpop.eup %5212 }
 0x1a5   :  { %v5215_v11 = vpop.eup %5214  ;;  %v715_v12 = vadd.f32 1.0, %v5213_v8 }
 0x1a6   :  { %v721_v15 = vadd.f32 1.0, %v5215_v11  ;;  %v5217_v17 = vpop.eup %5216 }
 0x1a7   :  { %5220 = vrcp.f32 %v715_v12  ;;  %v5219_v20 = vpop.eup %5218  ;;  %v728_v42 = vadd.f32 1.0, %v5217_v17 }
 0x1a8   :  { %5222 = vrcp.f32 %v721_v15 }
 0x1a9   :  { %5224 = vrcp.f32 %v728_v42 }
 0x1b1   :  { %v5221_v24 = vpop.eup %5220 }
 0x1b2   :  { %v5223_v28 = vpop.eup %5222  ;;  %v732_v30 = vmul.f32 %v5221_v24, %v5219_v20 }
 0x1b3   :  { %v731_v34 = vmul.f32 %v5223_v28, %v140_v21  ;;  %v5225_v46 = vpop.eup %5224 }
 0x1b5   :  { %v6080_v45 = vadd.f32 %v732_v30, %v731_v34 }
 0x1b7   :  { %5226 = vtanh.f32 %v6080_v45 }
 0x1c1   :  { %v5227_v49 = vpop.eup %5226 }
 0x1c2   :  { %v6083_v51 = vmul.f32 %v5227_v49, %v5225_v46 }
 0x1c4   :  { %807 = vmatmul.mubr.f32.vlgmr.msra.gmra.mrb[2].mxu0 %v6083_v51  ;;  %878 = vmatmul.mubr.f32.vlgmr.msra.gmra.mrb[2].mxu1 %v6083_v51 }
 0x1c5   :  { %4112 = vmatpush1.bf16.msra.mxu0 %v5907_v47  ;;  %4144 = vmatpush1.bf16.msra.mxu1 %v5910_v50 }
 0x1c6   :  { %4114 = vmatprep.subr.bf16.mxu0 %v5913_v53  ;;  %4146 = vmatprep.subr.bf16.mxu1 %v5915_v56 }
 0x1c7   :  { %983 = vmatprep.mubr.f32.mxu0 %v5711_v0  ;;  %1054 = vmatprep.mubr.f32.mxu1 %v5711_v0 }
 0x1c9   :  { %4116 = vmatpush1.bf16.msra.mxu0 %v5918_v60  ;;  %4148 = vmatpush1.bf16.msra.mxu1 %v5922_v63 }
 0x1ca   :  { %4118 = vmatprep.subr.bf16.mxu0 %v5926_v3  ;;  %4150 = vmatprep.subr.bf16.mxu1 %v5929_v6 }
 0x1cd   :  { %4120 = vmatpush1.bf16.msra.mxu0 %v5932_v10  ;;  %4152 = vmatpush1.bf16.msra.mxu1 %v5936_v13 }
 0x1ce   :  { %4122 = vmatprep.subr.bf16.mxu0 %v5940_v16  ;;  %4154 = vmatprep.subr.bf16.mxu1 %v5943_v19 }
 0x1d1   :  { %4124 = vmatpush1.bf16.msra.mxu0 %v5946_v23  ;;  %4156 = vmatpush1.bf16.msra.mxu1 %v5950_v26 }
 0x1d2   :  { %4126 = vmatprep.subr.bf16.mxu0 %v5954_v29  ;;  %4158 = vmatprep.subr.bf16.mxu1 %v5957_v32 }
 0x1d5   :  { %4128 = vmatpush1.bf16.msra.mxu0 %v5960_v36  ;;  %4160 = vmatpush1.bf16.msra.mxu1 %v5964_v40 }
 0x1d6   :  { %4130 = vmatprep.subr.bf16.mxu0 %v5968_v44  ;;  %4162 = vmatprep.subr.bf16.mxu1 %v5971_v48 }
 0x1d9   :  { %4132 = vmatpush1.bf16.msra.mxu0 %v5974_v54  ;;  %4164 = vmatpush1.bf16.msra.mxu1 %v5978_v58 }
 0x1da   :  { %4134 = vmatprep.subr.bf16.mxu0 %v5982_v62  ;;  %4166 = vmatprep.subr.bf16.mxu1 %v5985_v4 }
 0x1dd   :  { %4136 = vmatpush1.bf16.msra.mxu0 %v5988_v9  ;;  %4168 = vmatpush1.bf16.msra.mxu1 %v5992_v14 }
 0x1de   :  { %4138 = vmatprep.subr.bf16.mxu0 %v5996_v18  ;;  %4170 = vmatprep.subr.bf16.mxu1 %v5999_v22 }
 0x1e1   :  { %4140 = vmatpush1.bf16.msra.mxu0 %v6002_v25  ;;  %4172 = vmatpush1.bf16.msra.mxu1 %v6006_v27 }
 0x1e2   :  { %4174 = vmatprep.subr.bf16.mxu0 %v5903_v38  ;;  %4206 = vmatprep.subr.bf16.mxu1 %v5905_v41 }
 0x297   :  { %v808_v52 = vpop.f32.mrb[2].mxu0  ;;  %v879_v55 = vpop.f32.mrb[2].mxu1 }
 0x298   :  { %v5071_v57 = vadd.f32 %v808_v52, %v6060_v37  ;;  %v810_v1 = vpop.f32.mrb[3].mxu0  ;;  %v881_v5 = vpop.f32.mrb[3].mxu1  ;;  %v5087_v17 = vadd.f32 %v879_v55, %v6077_v2 }
 0x299   :  { %v5072_v7 = vadd.f32 %v810_v1, %v6064_v39  ;;  %v5088_v12 = vadd.f32 %v881_v5, %v6071_v59 }
 0x29a   :  { %v3872_v8 = vmul.f32 -1.442695, %v5071_v57 }
 0x29b   :  { %v3873_v11 = vmul.f32 -1.442695, %v5072_v7  ;;  %v3874_v15 = vmul.f32 -1.442695, %v5088_v12 }
 0x29c   :  { %5228 = vpow2.f32 %v3872_v8 }
 0x29d   :  { %5230 = vpow2.f32 %v3873_v11 }
 0x29e   :  { %5232 = vpow2.f32 %v3874_v15 }
 0x29f   :  { %5234 = vtanh.f32 %v5087_v17 }
 0x2a6   :  { %v5229_v20 = vpop.eup %5228 }
 0x2a7   :  { %v5231_v21 = vpop.eup %5230  ;;  %v891_v24 = vadd.f32 1.0, %v5229_v20 }
 0x2a8   :  { %v897_v28 = vadd.f32 1.0, %v5231_v21  ;;  %v5233_v30 = vpop.eup %5232 }
 0x2a9   :  { %5236 = vrcp.f32 %v891_v24  ;;  %v5235_v42 = vpop.eup %5234  ;;  %v904_v52 = vadd.f32 1.0, %v5233_v30 }
 0x2aa   :  { %5238 = vrcp.f32 %v897_v28 }
 0x2ab   :  { %5240 = vrcp.f32 %v904_v52 }
 0x2b3   :  { %v5237_v34 = vpop.eup %5236 }
 0x2b4   :  { %v5239_v46 = vpop.eup %5238  ;;  %v908_v49 = vmul.f32 %v5237_v34, %v5235_v42 }
 0x2b5   :  { %v907_v57 = vmul.f32 %v5239_v46, %v6080_v45  ;;  %v5241_v55 = vpop.eup %5240 }
 0x2b7   :  { %v6126_v1 = vadd.f32 %v908_v49, %v907_v57 }
 0x2b9   :  { %5242 = vtanh.f32 %v6126_v1 }
 0x2c3   :  { %v5243_v5 = vpop.eup %5242 }
 0x2c4   :  { %v6129_v7 = vmul.f32 %v5243_v5, %v5241_v55 }
 0x2c6   :  { %984 = vmatmul.mubr.f32.vlgmr.msra.gmra.mrb[4].mxu0 %v6129_v7  ;;  %1055 = vmatmul.mubr.f32.vlgmr.msra.gmra.mrb[4].mxu1 %v6129_v7 }
 0x2c7   :  { %4176 = vmatpush1.bf16.msra.mxu0 %v5907_v47  ;;  %4208 = vmatpush1.bf16.msra.mxu1 %v5910_v50 }
 0x2c8   :  { %4178 = vmatprep.subr.bf16.mxu0 %v5913_v53  ;;  %4210 = vmatprep.subr.bf16.mxu1 %v5915_v56 }
 0x2c9   :  { %1160 = vmatprep.mubr.f32.mxu0 %v5711_v0  ;;  %1231 = vmatprep.mubr.f32.mxu1 %v5711_v0 }
 0x2cb   :  { %4180 = vmatpush1.bf16.msra.mxu0 %v5918_v60  ;;  %4212 = vmatpush1.bf16.msra.mxu1 %v5922_v63 }
 0x2cc   :  { %4182 = vmatprep.subr.bf16.mxu0 %v5926_v3  ;;  %4214 = vmatprep.subr.bf16.mxu1 %v5929_v6 }
 0x2cf   :  { %4184 = vmatpush1.bf16.msra.mxu0 %v5932_v10  ;;  %4216 = vmatpush1.bf16.msra.mxu1 %v5936_v13 }
 0x2d0   :  { %4186 = vmatprep.subr.bf16.mxu0 %v5940_v16  ;;  %4218 = vmatprep.subr.bf16.mxu1 %v5943_v19 }
 0x2d3   :  { %4188 = vmatpush1.bf16.msra.mxu0 %v5946_v23  ;;  %4220 = vmatpush1.bf16.msra.mxu1 %v5950_v26 }
 0x2d4   :  { %4190 = vmatprep.subr.bf16.mxu0 %v5954_v29  ;;  %4222 = vmatprep.subr.bf16.mxu1 %v5957_v32 }
 0x2d7   :  { %4192 = vmatpush1.bf16.msra.mxu0 %v5960_v36  ;;  %4224 = vmatpush1.bf16.msra.mxu1 %v5964_v40 }
 0x2d8   :  { %4194 = vmatprep.subr.bf16.mxu0 %v5968_v44  ;;  %4226 = vmatprep.subr.bf16.mxu1 %v5971_v48 }
 0x2db   :  { %4196 = vmatpush1.bf16.msra.mxu0 %v5974_v54  ;;  %4228 = vmatpush1.bf16.msra.mxu1 %v5978_v58 }
 0x2dc   :  { %4198 = vmatprep.subr.bf16.mxu0 %v5982_v62  ;;  %4230 = vmatprep.subr.bf16.mxu1 %v5985_v4 }
 0x2df   :  { %4200 = vmatpush1.bf16.msra.mxu0 %v5988_v9  ;;  %4232 = vmatpush1.bf16.msra.mxu1 %v5992_v14 }
 0x2e0   :  { %4202 = vmatprep.subr.bf16.mxu0 %v5996_v18  ;;  %4234 = vmatprep.subr.bf16.mxu1 %v5999_v22 }
 0x2e3   :  { %4204 = vmatpush1.bf16.msra.mxu0 %v6002_v25  ;;  %4236 = vmatpush1.bf16.msra.mxu1 %v6006_v27 }
 0x2e4   :  { %4238 = vmatprep.subr.bf16.mxu0 %v5903_v38  ;;  %4270 = vmatprep.subr.bf16.mxu1 %v5905_v41 }
 0x399   :  { %v985_v45 = vpop.f32.mrb[4].mxu0  ;;  %v1056_v8 = vpop.f32.mrb[4].mxu1 }
 0x39a   :  { %v5073_v11 = vadd.f32 %v985_v45, %v6060_v37  ;;  %v987_v12 = vpop.f32.mrb[5].mxu0  ;;  %v1058_v15 = vpop.f32.mrb[5].mxu1  ;;  %v5089_v30 = vadd.f32 %v1056_v8, %v6077_v2 }
 0x39b   :  { %v5074_v17 = vadd.f32 %v987_v12, %v6064_v39  ;;  %v5090_v24 = vadd.f32 %v1058_v15, %v6071_v59 }
 0x39c   :  { %v3875_v20 = vmul.f32 -1.442695, %v5073_v11 }
 0x39d   :  { %v3876_v21 = vmul.f32 -1.442695, %v5074_v17  ;;  %v3877_v28 = vmul.f32 -1.442695, %v5090_v24 }
 0x39e   :  { %5244 = vpow2.f32 %v3875_v20 }
 0x39f   :  { %5246 = vpow2.f32 %v3876_v21 }
 0x3a0   :  { %5248 = vpow2.f32 %v3877_v28 }
 0x3a1   :  { %5250 = vtanh.f32 %v5089_v30 }
 0x3a8   :  { %v5245_v42 = vpop.eup %5244 }
 0x3a9   :  { %v5247_v34 = vpop.eup %5246  ;;  %v1068_v46 = vadd.f32 1.0, %v5245_v42 }
 0x3aa   :  { %v1074_v49 = vadd.f32 1.0, %v5247_v34  ;;  %v5249_v52 = vpop.eup %5248 }
 0x3ab   :  { %5252 = vrcp.f32 %v1068_v46  ;;  %v5251_v57 = vpop.eup %5250  ;;  %v1081_v11 = vadd.f32 1.0, %v5249_v52 }
 0x3ac   :  { %5254 = vrcp.f32 %v1074_v49 }
 0x3ad   :  { %5256 = vrcp.f32 %v1081_v11 }
 0x3b5   :  { %v5253_v55 = vpop.eup %5252 }
 0x3b6   :  { %v5255_v5 = vpop.eup %5254  ;;  %v1085_v45 = vmul.f32 %v5253_v55, %v5251_v57 }
 0x3b7   :  { %v1084_v12 = vmul.f32 %v5255_v5, %v6126_v1  ;;  %v5257_v8 = vpop.eup %5256 }
 0x3b9   :  { %v6172_v15 = vadd.f32 %v1085_v45, %v1084_v12 }
 0x3bb   :  { %5258 = vtanh.f32 %v6172_v15 }
 0x3c5   :  { %v5259_v17 = vpop.eup %5258 }
 0x3c6   :  { %v6175_v20 = vmul.f32 %v5259_v17, %v5257_v8 }
 0x3c8   :  { %1161 = vmatmul.mubr.f32.vlgmr.msra.gmra.mrb[6].mxu0 %v6175_v20  ;;  %1232 = vmatmul.mubr.f32.vlgmr.msra.gmra.mrb[6].mxu1 %v6175_v20 }
 0x3c9   :  { %4240 = vmatpush1.bf16.msra.mxu0 %v5907_v47  ;;  %4272 = vmatpush1.bf16.msra.mxu1 %v5910_v50 }
 0x3ca   :  { %4242 = vmatprep.subr.bf16.mxu0 %v5913_v53  ;;  %4274 = vmatprep.subr.bf16.mxu1 %v5915_v56 }
 0x3cb   :  { %1337 = vmatprep.mubr.f32.mxu0 %v5711_v0  ;;  %1408 = vmatprep.mubr.f32.mxu1 %v5711_v0 }
 0x3cd   :  { %4244 = vmatpush1.bf16.msra.mxu0 %v5918_v60  ;;  %4276 = vmatpush1.bf16.msra.mxu1 %v5922_v63 }
 0x3ce   :  { %4246 = vmatprep.subr.bf16.mxu0 %v5926_v3  ;;  %4278 = vmatprep.subr.bf16.mxu1 %v5929_v6 }
 0x3d1   :  { %4248 = vmatpush1.bf16.msra.mxu0 %v5932_v10  ;;  %4280 = vmatpush1.bf16.msra.mxu1 %v5936_v13 }
 0x3d2   :  { %4250 = vmatprep.subr.bf16.mxu0 %v5940_v16  ;;  %4282 = vmatprep.subr.bf16.mxu1 %v5943_v19 }
 0x3d5   :  { %4252 = vmatpush1.bf16.msra.mxu0 %v5946_v23  ;;  %4284 = vmatpush1.bf16.msra.mxu1 %v5950_v26 }
 0x3d6   :  { %4254 = vmatprep.subr.bf16.mxu0 %v5954_v29  ;;  %4286 = vmatprep.subr.bf16.mxu1 %v5957_v32 }
 0x3d9   :  { %4256 = vmatpush1.bf16.msra.mxu0 %v5960_v36  ;;  %4288 = vmatpush1.bf16.msra.mxu1 %v5964_v40 }
 0x3da   :  { %4258 = vmatprep.subr.bf16.mxu0 %v5968_v44  ;;  %4290 = vmatprep.subr.bf16.mxu1 %v5971_v48 }
 0x3dd   :  { %4260 = vmatpush1.bf16.msra.mxu0 %v5974_v54  ;;  %4292 = vmatpush1.bf16.msra.mxu1 %v5978_v58 }
 0x3de   :  { %4262 = vmatprep.subr.bf16.mxu0 %v5982_v62  ;;  %4294 = vmatprep.subr.bf16.mxu1 %v5985_v4 }
 0x3e1   :  { %4264 = vmatpush1.bf16.msra.mxu0 %v5988_v9  ;;  %4296 = vmatpush1.bf16.msra.mxu1 %v5992_v14 }
 0x3e2   :  { %4266 = vmatprep.subr.bf16.mxu0 %v5996_v18  ;;  %4298 = vmatprep.subr.bf16.mxu1 %v5999_v22 }
 0x3e5   :  { %4268 = vmatpush1.bf16.msra.mxu0 %v6002_v25  ;;  %4300 = vmatpush1.bf16.msra.mxu1 %v6006_v27 }
 0x3e6   :  { %4302 = vmatprep.subr.bf16.mxu0 %v5903_v38  ;;  %4334 = vmatprep.subr.bf16.mxu1 %v5905_v41 }
 0x49b   :  { %v1162_v1 = vpop.f32.mrb[6].mxu0  ;;  %v1233_v21 = vpop.f32.mrb[6].mxu1 }
 0x49c   :  { %v5075_v24 = vadd.f32 %v1162_v1, %v6060_v37  ;;  %v1164_v28 = vpop.f32.mrb[7].mxu0  ;;  %v1235_v30 = vpop.f32.mrb[7].mxu1  ;;  %v5091_v57 = vadd.f32 %v1233_v21, %v6077_v2 }
 0x49d   :  { %v5076_v42 = vadd.f32 %v1164_v28, %v6064_v39  ;;  %v5092_v49 = vadd.f32 %v1235_v30, %v6071_v59 }
 0x49e   :  { %v3878_v34 = vmul.f32 -1.442695, %v5075_v24 }
 0x49f   :  { %v3879_v46 = vmul.f32 -1.442695, %v5076_v42  ;;  %v3880_v52 = vmul.f32 -1.442695, %v5092_v49 }
 0x4a0   :  { %5260 = vpow2.f32 %v3878_v34 }
 0x4a1   :  { %5262 = vpow2.f32 %v3879_v46 }
 0x4a2   :  { %5264 = vpow2.f32 %v3880_v52 }
 0x4a3   :  { %5266 = vtanh.f32 %v5091_v57 }
 0x4aa   :  { %v5261_v55 = vpop.eup %5260 }
 0x4ab   :  { %v5263_v5 = vpop.eup %5262  ;;  %v1245_v45 = vadd.f32 1.0, %v5261_v55 }
 0x4ac   :  { %v1251_v11 = vadd.f32 1.0, %v5263_v5  ;;  %v5265_v12 = vpop.eup %5264 }
 0x4ad   :  { %5268 = vrcp.f32 %v1245_v45  ;;  %v5267_v8 = vpop.eup %5266  ;;  %v1258_v28 = vadd.f32 1.0, %v5265_v12 }
 0x4ae   :  { %5270 = vrcp.f32 %v1251_v11 }
 0x4af   :  { %5272 = vrcp.f32 %v1258_v28 }
 0x4b7   :  { %v5269_v17 = vpop.eup %5268 }
 0x4b8   :  { %v5271_v1 = vpop.eup %5270  ;;  %v1262_v24 = vmul.f32 %v5269_v17, %v5267_v8 }
 0x4b9   :  { %v1261_v42 = vmul.f32 %v5271_v1, %v6172_v15  ;;  %v5273_v21 = vpop.eup %5272 }
 0x4bb   :  { %v6218_v30 = vadd.f32 %v1262_v24, %v1261_v42 }
 0x4bd   :  { %5274 = vtanh.f32 %v6218_v30 }
 0x4c7   :  { %v5275_v34 = vpop.eup %5274 }
 0x4c8   :  { %v6221_v46 = vmul.f32 %v5275_v34, %v5273_v21 }
 0x4ca   :  { %1338 = vmatmul.mubr.f32.vlgmr.msra.gmra.mrb[8].mxu0 %v6221_v46  ;;  %1409 = vmatmul.mubr.f32.vlgmr.msra.gmra.mrb[8].mxu1 %v6221_v46 }
 0x4cb   :  { %4304 = vmatpush1.bf16.msra.mxu0 %v5907_v47  ;;  %4336 = vmatpush1.bf16.msra.mxu1 %v5910_v50 }
 0x4cc   :  { %4306 = vmatprep.subr.bf16.mxu0 %v5913_v53  ;;  %4338 = vmatprep.subr.bf16.mxu1 %v5915_v56 }
 0x4cd   :  { %1514 = vmatprep.mubr.f32.mxu0 %v5711_v0  ;;  %1585 = vmatprep.mubr.f32.mxu1 %v5711_v0 }
 0x4cf   :  { %4308 = vmatpush1.bf16.msra.mxu0 %v5918_v60  ;;  %4340 = vmatpush1.bf16.msra.mxu1 %v5922_v63 }
 0x4d0   :  { %4310 = vmatprep.subr.bf16.mxu0 %v5926_v3  ;;  %4342 = vmatprep.subr.bf16.mxu1 %v5929_v6 }
 0x4d3   :  { %4312 = vmatpush1.bf16.msra.mxu0 %v5932_v10  ;;  %4344 = vmatpush1.bf16.msra.mxu1 %v5936_v13 }
 0x4d4   :  { %4314 = vmatprep.subr.bf16.mxu0 %v5940_v16  ;;  %4346 = vmatprep.subr.bf16.mxu1 %v5943_v19 }
 0x4d7   :  { %4316 = vmatpush1.bf16.msra.mxu0 %v5946_v23  ;;  %4348 = vmatpush1.bf16.msra.mxu1 %v5950_v26 }
 0x4d8   :  { %4318 = vmatprep.subr.bf16.mxu0 %v5954_v29  ;;  %4350 = vmatprep.subr.bf16.mxu1 %v5957_v32 }
 0x4db   :  { %4320 = vmatpush1.bf16.msra.mxu0 %v5960_v36  ;;  %4352 = vmatpush1.bf16.msra.mxu1 %v5964_v40 }
 0x4dc   :  { %4322 = vmatprep.subr.bf16.mxu0 %v5968_v44  ;;  %4354 = vmatprep.subr.bf16.mxu1 %v5971_v48 }
 0x4df   :  { %4324 = vmatpush1.bf16.msra.mxu0 %v5974_v54  ;;  %4356 = vmatpush1.bf16.msra.mxu1 %v5978_v58 }
 0x4e0   :  { %4326 = vmatprep.subr.bf16.mxu0 %v5982_v62  ;;  %4358 = vmatprep.subr.bf16.mxu1 %v5985_v4 }
 0x4e3   :  { %4328 = vmatpush1.bf16.msra.mxu0 %v5988_v9  ;;  %4360 = vmatpush1.bf16.msra.mxu1 %v5992_v14 }
 0x4e4   :  { %4330 = vmatprep.subr.bf16.mxu0 %v5996_v18  ;;  %4362 = vmatprep.subr.bf16.mxu1 %v5999_v22 }
 0x4e7   :  { %4332 = vmatpush1.bf16.msra.mxu0 %v6002_v25  ;;  %4364 = vmatpush1.bf16.msra.mxu1 %v6006_v27 }
 0x4e8   :  { %4366 = vmatprep.subr.bf16.mxu0 %v5903_v38  ;;  %4398 = vmatprep.subr.bf16.mxu1 %v5905_v41 }
 0x59d   :  { %v1339_v15 = vpop.f32.mrb[8].mxu0  ;;  %v1410_v49 = vpop.f32.mrb[8].mxu1 }
 0x59e   :  { %v5077_v52 = vadd.f32 %v1339_v15, %v6060_v37  ;;  %v1341_v57 = vpop.f32.mrb[9].mxu0  ;;  %v1412_v55 = vpop.f32.mrb[9].mxu1  ;;  %v5093_v17 = vadd.f32 %v1410_v49, %v6077_v2 }
 0x59f   :  { %v5078_v5 = vadd.f32 %v1341_v57, %v6064_v39  ;;  %v5094_v12 = vadd.f32 %v1412_v55, %v6071_v59 }
 0x5a0   :  { %v3881_v45 = vmul.f32 -1.442695, %v5077_v52 }
 0x5a1   :  { %v3882_v11 = vmul.f32 -1.442695, %v5078_v5  ;;  %v3883_v8 = vmul.f32 -1.442695, %v5094_v12 }
 0x5a2   :  { %5276 = vpow2.f32 %v3881_v45 }
 0x5a3   :  { %5278 = vpow2.f32 %v3882_v11 }
 0x5a4   :  { %5280 = vpow2.f32 %v3883_v8 }
 0x5a5   :  { %5282 = vtanh.f32 %v5093_v17 }
 0x5ac   :  { %v5277_v1 = vpop.eup %5276 }
 0x5ad   :  { %v5279_v24 = vpop.eup %5278  ;;  %v1422_v28 = vadd.f32 1.0, %v5277_v1 }
 0x5ae   :  { %v1428_v42 = vadd.f32 1.0, %v5279_v24  ;;  %v5281_v21 = vpop.eup %5280 }
 0x5af   :  { %5284 = vrcp.f32 %v1422_v28  ;;  %v5283_v34 = vpop.eup %5282  ;;  %v1435_v5 = vadd.f32 1.0, %v5281_v21 }
 0x5b0   :  { %5286 = vrcp.f32 %v1428_v42 }
 0x5b1   :  { %5288 = vrcp.f32 %v1435_v5 }
 0x5b9   :  { %v5285_v15 = vpop.eup %5284 }
 0x5ba   :  { %v5287_v52 = vpop.eup %5286  ;;  %v1439_v57 = vmul.f32 %v5285_v15, %v5283_v34 }
 0x5bb   :  { %v1438_v45 = vmul.f32 %v5287_v52, %v6218_v30  ;;  %v5289_v49 = vpop.eup %5288 }
 0x5bd   :  { %v6264_v55 = vadd.f32 %v1439_v57, %v1438_v45 }
 0x5bf   :  { %5290 = vtanh.f32 %v6264_v55 }
 0x5c9   :  { %v5291_v11 = vpop.eup %5290 }
 0x5ca   :  { %v6267_v12 = vmul.f32 %v5291_v11, %v5289_v49 }
 0x5cc   :  { %1515 = vmatmul.mubr.f32.vlgmr.msra.gmra.mrb[10].mxu0 %v6267_v12  ;;  %1586 = vmatmul.mubr.f32.vlgmr.msra.gmra.mrb[10].mxu1 %v6267_v12 }
 0x5cd   :  { %4368 = vmatpush1.bf16.msra.mxu0 %v5907_v47  ;;  %4400 = vmatpush1.bf16.msra.mxu1 %v5910_v50 }
 0x5ce   :  { %4370 = vmatprep.subr.bf16.mxu0 %v5913_v53  ;;  %4402 = vmatprep.subr.bf16.mxu1 %v5915_v56 }
 0x5cf   :  { %1691 = vmatprep.mubr.f32.mxu0 %v5711_v0  ;;  %1762 = vmatprep.mubr.f32.mxu1 %v5711_v0 }
 0x5d1   :  { %4372 = vmatpush1.bf16.msra.mxu0 %v5918_v60  ;;  %4404 = vmatpush1.bf16.msra.mxu1 %v5922_v63 }
 0x5d2   :  { %4374 = vmatprep.subr.bf16.mxu0 %v5926_v3  ;;  %4406 = vmatprep.subr.bf16.mxu1 %v5929_v6 }
 0x5d5   :  { %4376 = vmatpush1.bf16.msra.mxu0 %v5932_v10  ;;  %4408 = vmatpush1.bf16.msra.mxu1 %v5936_v13 }
 0x5d6   :  { %4378 = vmatprep.subr.bf16.mxu0 %v5940_v16  ;;  %4410 = vmatprep.subr.bf16.mxu1 %v5943_v19 }
 0x5d9   :  { %4380 = vmatpush1.bf16.msra.mxu0 %v5946_v23  ;;  %4412 = vmatpush1.bf16.msra.mxu1 %v5950_v26 }
 0x5da   :  { %4382 = vmatprep.subr.bf16.mxu0 %v5954_v29  ;;  %4414 = vmatprep.subr.bf16.mxu1 %v5957_v32 }
 0x5dd   :  { %4384 = vmatpush1.bf16.msra.mxu0 %v5960_v36  ;;  %4416 = vmatpush1.bf16.msra.mxu1 %v5964_v40 }
 0x5de   :  { %4386 = vmatprep.subr.bf16.mxu0 %v5968_v44  ;;  %4418 = vmatprep.subr.bf16.mxu1 %v5971_v48 }
 0x5e1   :  { %4388 = vmatpush1.bf16.msra.mxu0 %v5974_v54  ;;  %4420 = vmatpush1.bf16.msra.mxu1 %v5978_v58 }
 0x5e2   :  { %4390 = vmatprep.subr.bf16.mxu0 %v5982_v62  ;;  %4422 = vmatprep.subr.bf16.mxu1 %v5985_v4 }
 0x5e5   :  { %4392 = vmatpush1.bf16.msra.mxu0 %v5988_v9  ;;  %4424 = vmatpush1.bf16.msra.mxu1 %v5992_v14 }
 0x5e6   :  { %4394 = vmatprep.subr.bf16.mxu0 %v5996_v18  ;;  %4426 = vmatprep.subr.bf16.mxu1 %v5999_v22 }
 0x5e9   :  { %4396 = vmatpush1.bf16.msra.mxu0 %v6002_v25  ;;  %4428 = vmatpush1.bf16.msra.mxu1 %v6006_v27 }
 0x5ea   :  { %4430 = vmatprep.subr.bf16.mxu0 %v5903_v38  ;;  %4462 = vmatprep.subr.bf16.mxu1 %v5905_v41 }
 0x69f   :  { %v1516_v30 = vpop.f32.mrb[10].mxu0  ;;  %v1587_v8 = vpop.f32.mrb[10].mxu1 }
 0x6a0   :  { %v5079_v17 = vadd.f32 %v1516_v30, %v6060_v37  ;;  %v1518_v1 = vpop.f32.mrb[11].mxu0  ;;  %v1589_v24 = vpop.f32.mrb[11].mxu1  ;;  %v5095_v52 = vadd.f32 %v1587_v8, %v6077_v2 }
 0x6a1   :  { %v5080_v28 = vadd.f32 %v1518_v1, %v6064_v39  ;;  %v5096_v34 = vadd.f32 %v1589_v24, %v6071_v59 }
 0x6a2   :  { %v3884_v42 = vmul.f32 -1.442695, %v5079_v17 }
 0x6a3   :  { %v3885_v21 = vmul.f32 -1.442695, %v5080_v28  ;;  %v3886_v15 = vmul.f32 -1.442695, %v5096_v34  ;;  %v1988_v34 = vld [vmem:[#allocation15 + $0x10] sm:$0xff] }
 0x6a4   :  { %5292 = vpow2.f32 %v3884_v42 }
 0x6a5   :  { %5294 = vpow2.f32 %v3885_v21 }
 0x6a6   :  { %5296 = vpow2.f32 %v3886_v15  ;;  %v1992_v15 = vld [vmem:[#allocation15 + $0x30] sm:$0xff] }
 0x6a7   :  { %5298 = vtanh.f32 %v5095_v52  ;;  %v1995_v52 = vld [vmem:[#allocation15 + $0x48] sm:$0xff] }
 0x6ae   :  { %v5293_v38 = vpop.eup %5292 }
 0x6af   :  { %v5295_v57 = vpop.eup %5294  ;;  %v1599_v41 = vadd.f32 1.0, %v5293_v38  ;;  %v1999_v38 = vld [vmem:[#allocation15 + $0x68] sm:$0xff] }
 0x6b0   :  { %v1605_v5 = vadd.f32 1.0, %v5295_v57  ;;  %v5297_v45 = vpop.eup %5296  ;;  %v1997_v57 = vld [vmem:[#allocation15 + $0x58] sm:$0xff] }
 0x6b1   :  { %5300 = vrcp.f32 %v1599_v41  ;;  %v5299_v49 = vpop.eup %5298  ;;  %v1612_v1 = vadd.f32 1.0, %v5297_v45  ;;  %v2001_v41 = vld [vmem:[#allocation15 + $0x78] sm:$0xff] }
 0x6b2   :  { %5302 = vrcp.f32 %v1605_v5 }
 0x6b3   :  { %5304 = vrcp.f32 %v1612_v1 }
 0x6bb   :  { %v5301_v11 = vpop.eup %5300 }
 0x6bc   :  { %v5303_v30 = vpop.eup %5302  ;;  %v1616_v17 = vmul.f32 %v5301_v11, %v5299_v49  ;;  %v4527_v11 = vpack.c.bf16 %v1992_v15, %v1988_v34  ;;  %v2018_v34 = vld [vmem:[#allocation15 + $0x100] sm:$0xff] }
 0x6bd   :  { %v1615_v28 = vmul.f32 %v5303_v30, %v6264_v55  ;;  %v5305_v8 = vpop.eup %5304  ;;  %v1990_v55 = vld [vmem:[#allocation15 + $0x20] sm:$0xff] }
 0x6be   :  { %v1994_v30 = vld [vmem:[#allocation15 + $0x40] sm:$0xff] }
 0x6bf   :  { %v6310_v24 = vadd.f32 %v1616_v17, %v1615_v28  ;;  %v1998_v17 = vld [vmem:[#allocation15 + $0x60] sm:$0xff]  ;;  %v4497_v28 = vpack.c.bf16 %v1999_v38, %v1995_v52 }
 0x6c0   :  { %v2022_v15 = vld [vmem:[#allocation15 + $0x120] sm:$0xff] }
 0x6c1   :  { %5306 = vtanh.f32 %v6310_v24 }
 0x6cb   :  { %v5307_v42 = vpop.eup %5306 }
 0x6cc   :  { %v6313_v21 = vmul.f32 %v5307_v42, %v5305_v8  ;;  %v1996_v8 = vld [vmem:[#allocation15 + $0x50] sm:$0xff] }
 0x6cd   :  { %v2000_v42 = vld [vmem:[#allocation15 + $0x70] sm:$0xff] }
 0x6ce   :  { %1692 = vmatmul.mubr.f32.vlgmr.msra.gmra.mrb[12].mxu0 %v6313_v21  ;;  %1763 = vmatmul.mubr.f32.vlgmr.msra.gmra.mrb[12].mxu1 %v6313_v21 }
 0x6cf   :  { %4432 = vmatpush1.bf16.msra.mxu0 %v5907_v47  ;;  %4464 = vmatpush1.bf16.msra.mxu1 %v5910_v50  ;;  %v1987_v47 = vld [vmem:[#allocation15 + $0x8] sm:$0xff] }
 0x6d0   :  { %4434 = vmatprep.subr.bf16.mxu0 %v5913_v53  ;;  %4466 = vmatprep.subr.bf16.mxu1 %v5915_v56  ;;  %v1991_v50 = vld [vmem:[#allocation15 + $0x28] sm:$0xff]  ;;  %v1989_v53 = vld [vmem:[#allocation15 + $0x18] sm:$0xff] }
 0x6d1   :  { %1868 = vmatprep.mubr.f32.mxu0 %v5711_v0  ;;  %1939 = vmatprep.mubr.f32.mxu1 %v5711_v0  ;;  %v4493_v56 = vpack.c.bf16 %v1991_v50, %v1987_v47  ;;  %v2003_v47 = vld [vmem:[#allocation15 + $0x88] sm:$0xff] }
 0x6d2   :  { %v2007_v50 = vld [vmem:[#allocation15 + $0xa8] sm:$0xff] }
 0x6d3   :  { %4436 = vmatpush1.bf16.msra.mxu0 %v5918_v60  ;;  %4468 = vmatpush1.bf16.msra.mxu1 %v5922_v63  ;;  %v1993_v60 = vld [vmem:[#allocation15 + $0x38] sm:$0xff] }
 0x6d4   :  { %4438 = vmatprep.subr.bf16.mxu0 %v5926_v3  ;;  %4470 = vmatprep.subr.bf16.mxu1 %v5929_v6  ;;  %v4525_v63 = vpack.c.bf16 %v1993_v60, %v1989_v53  ;;  %v2005_v53 = vld [vmem:[#allocation15 + $0x98] sm:$0xff]  ;;  %v4499_v60 = vpack.c.bf16 %v1998_v17, %v1994_v30  ;;  %v4511_v30 = vpack.c.bf16 %v2022_v15, %v2018_v34  ;;  %v2332_v15 = vld [vmem:[#allocation17 + $0x10] sm:$0xff] }
 0x6d7   :  { %4440 = vmatpush1.bf16.msra.mxu0 %v5932_v10  ;;  %4472 = vmatpush1.bf16.msra.mxu1 %v5936_v13 }
 0x6d8   :  { %4442 = vmatprep.subr.bf16.mxu0 %v5940_v16  ;;  %4474 = vmatprep.subr.bf16.mxu1 %v5943_v19 }
 0x6db   :  { %4444 = vmatpush1.bf16.msra.mxu0 %v5946_v23  ;;  %4476 = vmatpush1.bf16.msra.mxu1 %v5950_v26 }
 0x6dc   :  { %4446 = vmatprep.subr.bf16.mxu0 %v5954_v29  ;;  %4478 = vmatprep.subr.bf16.mxu1 %v5957_v32 }
 0x6df   :  { %4448 = vmatpush1.bf16.msra.mxu0 %v5960_v36  ;;  %4480 = vmatpush1.bf16.msra.mxu1 %v5964_v40 }
 0x6e0   :  { %4450 = vmatprep.subr.bf16.mxu0 %v5968_v44  ;;  %4482 = vmatprep.subr.bf16.mxu1 %v5971_v48 }
 0x6e3   :  { %4452 = vmatpush1.bf16.msra.mxu0 %v5974_v54  ;;  %4484 = vmatpush1.bf16.msra.mxu1 %v5978_v58 }
 0x6e4   :  { %4454 = vmatprep.subr.bf16.mxu0 %v5982_v62  ;;  %4486 = vmatprep.subr.bf16.mxu1 %v5985_v4 }
 0x6e7   :  { %4456 = vmatpush1.bf16.msra.mxu0 %v5988_v9  ;;  %4488 = vmatpush1.bf16.msra.mxu1 %v5992_v14 }
 0x6e8   :  { %4458 = vmatprep.subr.bf16.mxu0 %v5996_v18  ;;  %4490 = vmatprep.subr.bf16.mxu1 %v5999_v22 }
 0x6eb   :  { %4460 = vmatpush1.bf16.msra.mxu0 %v6002_v25  ;;  %4492 = vmatpush1.bf16.msra.mxu1 %v6006_v27  ;;  %v1986_v27 = vld [vmem:[#allocation15] sm:$0xff] }
 0x6ec   :  { %4494 = vmatprep.subr.bf16.mxu0 %v4493_v56  ;;  %4526 = vmatprep.subr.bf16.mxu1 %v4525_v63  ;;  %v4495_v49 = vpack.c.bf16 %v1990_v55, %v1986_v27  ;;  %v2009_v56 = vld [vmem:[#allocation15 + $0xb8] sm:$0xff]  ;;  %v4531_v63 = vpack.c.bf16 %v2000_v42, %v1996_v8 }
 0x7a1   :  { %v1693_v3 = vpop.f32.mrb[12].mxu0  ;;  %v1764_v6 = vpop.f32.mrb[12].mxu1 }
 0x7a2   :  { %v5081_v10 = vadd.f32 %v1693_v3, %v6060_v37  ;;  %v1695_v13 = vpop.f32.mrb[13].mxu0  ;;  %v1766_v16 = vpop.f32.mrb[13].mxu1  ;;  %v5097_v36 = vadd.f32 %v1764_v6, %v6077_v2  ;;  %v2002_v3 = vld [vmem:[#allocation15 + $0x80] sm:$0xff] }
 0x7a3   :  { %v5082_v19 = vadd.f32 %v1695_v13, %v6064_v39  ;;  %v5098_v29 = vadd.f32 %v1766_v16, %v6071_v59  ;;  %v2006_v6 = vld [vmem:[#allocation15 + $0xa0] sm:$0xff]  ;;  %v4533_v13 = vpack.c.bf16 %v2009_v56, %v2005_v53  ;;  %v2004_v16 = vld [vmem:[#allocation15 + $0x90] sm:$0xff]  ;;  %v2035_v53 = vld [vmem:[#allocation15 + $0x188] sm:$0xff] }
 0x7a4   :  { %v3887_v23 = vmul.f32 -1.442695, %v5081_v10  ;;  %v4501_v10 = vpack.c.bf16 %v2007_v50, %v2003_v47  ;;  %v2028_v47 = vld [vmem:[#allocation15 + $0x150] sm:$0xff]  ;;  %v2039_v56 = vld [vmem:[#allocation15 + $0x1a8] sm:$0xff] }
 0x7a5   :  { %v3888_v26 = vmul.f32 -1.442695, %v5082_v19  ;;  %v3889_v32 = vmul.f32 -1.442695, %v5098_v29  ;;  %v2008_v19 = vld [vmem:[#allocation15 + $0xb0] sm:$0xff]  ;;  %v2013_v29 = vld [vmem:[#allocation15 + $0xd8] sm:$0xff] }
 0x7a6   :  { %5308 = vpow2.f32 %v3887_v23  ;;  %v2011_v23 = vld [vmem:[#allocation15 + $0xc8] sm:$0xff]  ;;  %v2032_v50 = vld [vmem:[#allocation15 + $0x170] sm:$0xff] }
 0x7a7   :  { %5310 = vpow2.f32 %v3888_v26  ;;  %v2015_v26 = vld [vmem:[#allocation15 + $0xe8] sm:$0xff] }
 0x7a8   :  { %5312 = vpow2.f32 %v3889_v32  ;;  %v2017_v32 = vld [vmem:[#allocation15 + $0xf8] sm:$0xff] }
 0x7a9   :  { %5314 = vtanh.f32 %v5097_v36  ;;  %v4503_v36 = vpack.c.bf16 %v2006_v6, %v2002_v3  ;;  %v4547_v6 = vpack.c.bf16 %v2032_v50, %v2028_v47  ;;  %v2351_v47 = vld [vmem:[#allocation17 + $0xa8] sm:$0xff]  ;;  %v2349_v50 = vld [vmem:[#allocation17 + $0x98] sm:$0xff] }
 0x7b0   :  { %v5309_v40 = vpop.eup %5308 }
 0x7b1   :  { %v5311_v44 = vpop.eup %5310  ;;  %v1776_v48 = vadd.f32 1.0, %v5309_v40  ;;  %v4535_v40 = vpack.c.bf16 %v2008_v19, %v2004_v16  ;;  %v4517_v16 = vpack.c.bf16 %v2039_v56, %v2035_v53  ;;  %v2353_v56 = vld [vmem:[#allocation17 + $0xb8] sm:$0xff] }
 0x7b2   :  { %v1782_v54 = vadd.f32 1.0, %v5311_v44  ;;  %v5313_v58 = vpop.eup %5312  ;;  %v2010_v44 = vld [vmem:[#allocation15 + $0xc0] sm:$0xff] }
 0x7b3   :  { %5316 = vrcp.f32 %v1776_v48  ;;  %v5315_v62 = vpop.eup %5314  ;;  %v1789_v18 = vadd.f32 1.0, %v5313_v58  ;;  %v2014_v48 = vld [vmem:[#allocation15 + $0xe0] sm:$0xff]  ;;  %v4537_v58 = vpack.c.bf16 %v2017_v32, %v2013_v29  ;;  %v2043_v29 = vld [vmem:[#allocation15 + $0x1c8] sm:$0xff] }
 0x7b4   :  { %5318 = vrcp.f32 %v1782_v54  ;;  %v4505_v54 = vpack.c.bf16 %v2015_v26, %v2011_v23  ;;  %v4507_v27 = vpack.c.bf16 %v2014_v48, %v2010_v44  ;;  %v2036_v23 = vld [vmem:[#allocation15 + $0x190] sm:$0xff]  ;;  %v2047_v32 = vld [vmem:[#allocation15 + $0x1e8] sm:$0xff] }
 0x7b5   :  { %5320 = vrcp.f32 %v1789_v18  ;;  %v2021_v18 = vld [vmem:[#allocation15 + $0x118] sm:$0xff]  ;;  %v2040_v26 = vld [vmem:[#allocation15 + $0x1b0] sm:$0xff] }
 0x7b6   :  { %v4551_v48 = vpack.c.bf16 %v2040_v26, %v2036_v23  ;;  %v2359_v23 = vld [vmem:[#allocation17 + $0xe8] sm:$0xff]  ;;  %v2357_v26 = vld [vmem:[#allocation17 + $0xd8] sm:$0xff] }
 0x7bd   :  { %v5317_v4 = vpop.eup %5316 }
 0x7be   :  { %v5319_v9 = vpop.eup %5318  ;;  %v1793_v14 = vmul.f32 %v5317_v4, %v5315_v62  ;;  %v2012_v62 = vld [vmem:[#allocation15 + $0xd0] sm:$0xff] }
 0x7bf   :  { %v1792_v22 = vmul.f32 %v5319_v9, %v6310_v24  ;;  %v5321_v5 = vpop.eup %5320  ;;  %v4529_v24 = vpack.c.bf16 %v2001_v41, %v1997_v57  ;;  %v2016_v4 = vld [vmem:[#allocation15 + $0xf0] sm:$0xff]  ;;  %v2019_v9 = vld [vmem:[#allocation15 + $0x108] sm:$0xff] }
 0x7c0   :  { %v4539_v55 = vpack.c.bf16 %v2016_v4, %v2012_v62  ;;  %v2020_v57 = vld [vmem:[#allocation15 + $0x110] sm:$0xff]  ;;  %v2046_v4 = vld [vmem:[#allocation15 + $0x1e0] sm:$0xff] }
 0x7c1   :  { %v6354_v25 = vadd.f32 %v1793_v14, %v1792_v22  ;;  %v2023_v14 = vld [vmem:[#allocation15 + $0x128] sm:$0xff]  ;;  %v2025_v22 = vld [vmem:[#allocation15 + $0x138] sm:$0xff]  ;;  %v2024_v41 = vld [vmem:[#allocation15 + $0x130] sm:$0xff] }
 0x7c2   :  { %v4509_v52 = vpack.c.bf16 %v2023_v14, %v2019_v9  ;;  %v4541_v38 = vpack.c.bf16 %v2025_v22, %v2021_v18  ;;  %v4543_v17 = vpack.c.bf16 %v2024_v41, %v2020_v57  ;;  %v2044_v9 = vld [vmem:[#allocation15 + $0x1d0] sm:$0xff]  ;;  %v2343_v57 = vld [vmem:[#allocation17 + $0x68] sm:$0xff]  ;;  %v2341_v41 = vld [vmem:[#allocation17 + $0x58] sm:$0xff] }
 0x7c3   :  { %5322 = vtanh.f32 %v6354_v25  ;;  %v2048_v14 = vld [vmem:[#allocation15 + $0x1f0] sm:$0xff] }
 0x7c4   :  { %v4555_v22 = vpack.c.bf16 %v2048_v14, %v2044_v9  ;;  %v2367_v9 = vld [vmem:[#allocation17 + $0x128] sm:$0xff]  ;;  %v2365_v14 = vld [vmem:[#allocation17 + $0x118] sm:$0xff] }
 0x7cd   :  { %v5323_v45 = vpop.eup %5322 }
 0x7ce   :  { %v6357_v1 = vmul.f32 %v5323_v45, %v5321_v5  ;;  %v2027_v5 = vld [vmem:[#allocation15 + $0x148] sm:$0xff] }
 0x7cf   :  { %v2031_v45 = vld [vmem:[#allocation15 + $0x168] sm:$0xff] }
 0x7d0   :  { %1869 = vmatmul.mubr.f32.vlgmr.msra.gmra.mrb[14].mxu0 %v6357_v1  ;;  %1940 = vmatmul.mubr.f32.vlgmr.msra.gmra.mrb[14].mxu1 %v6357_v1  ;;  %v4513_v8 = vpack.c.bf16 %v2031_v45, %v2027_v5  ;;  %v2345_v45 = vld [vmem:[#allocation17 + $0x78] sm:$0xff] }
 0x7d1   :  { %4496 = vmatpush1.bf16.msra.mxu0 %v4495_v49  ;;  %4528 = vmatpush1.bf16.msra.mxu1 %v4527_v11  ;;  %v2029_v49 = vld [vmem:[#allocation15 + $0x158] sm:$0xff] }
 0x7d2   :  { %4498 = vmatprep.subr.bf16.mxu0 %v4497_v28  ;;  %4530 = vmatprep.subr.bf16.mxu1 %v4529_v24  ;;  %v2033_v11 = vld [vmem:[#allocation15 + $0x178] sm:$0xff]  ;;  %v2026_v28 = vld [vmem:[#allocation15 + $0x140] sm:$0xff] }
 0x7d3   :  { %2136 = vmatprep.mubr.f32.mxu0 %v5711_v0  ;;  %2249 = vmatprep.mubr.f32.mxu1 %v5711_v0  ;;  %v2030_v24 = vld [vmem:[#allocation15 + $0x160] sm:$0xff]  ;;  %v4545_v42 = vpack.c.bf16 %v2033_v11, %v2029_v49 }
 0x7d4   :  { %v4515_v3 = vpack.c.bf16 %v2030_v24, %v2026_v28  ;;  %v2338_v49 = vld [vmem:[#allocation17 + $0x40] sm:$0xff]  ;;  %v2340_v28 = vld [vmem:[#allocation17 + $0x50] sm:$0xff] }
 0x7d5   :  { %4500 = vmatpush1.bf16.msra.mxu0 %v4499_v60  ;;  %4532 = vmatpush1.bf16.msra.mxu1 %v4531_v63  ;;  %v2037_v60 = vld [vmem:[#allocation15 + $0x198] sm:$0xff]  ;;  %v2342_v11 = vld [vmem:[#allocation17 + $0x60] sm:$0xff]  ;;  %v2344_v24 = vld [vmem:[#allocation17 + $0x70] sm:$0xff] }
 0x7d6   :  { %4502 = vmatprep.subr.bf16.mxu0 %v4501_v10  ;;  %4534 = vmatprep.subr.bf16.mxu1 %v4533_v13  ;;  %v2041_v63 = vld [vmem:[#allocation15 + $0x1b8] sm:$0xff]  ;;  %v2034_v10 = vld [vmem:[#allocation15 + $0x180] sm:$0xff] }
 0x7d7   :  { %v2038_v13 = vld [vmem:[#allocation15 + $0x1a0] sm:$0xff]  ;;  %v4549_v19 = vpack.c.bf16 %v2041_v63, %v2037_v60 }
 0x7d8   :  { %v4519_v44 = vpack.c.bf16 %v2038_v13, %v2034_v10  ;;  %v2346_v60 = vld [vmem:[#allocation17 + $0x80] sm:$0xff]  ;;  %v2348_v10 = vld [vmem:[#allocation17 + $0x90] sm:$0xff] }
 0x7d9   :  { %4504 = vmatpush1.bf16.msra.mxu0 %v4503_v36  ;;  %4536 = vmatpush1.bf16.msra.mxu1 %v4535_v40  ;;  %v2045_v36 = vld [vmem:[#allocation15 + $0x1d8] sm:$0xff]  ;;  %v2350_v63 = vld [vmem:[#allocation17 + $0xa0] sm:$0xff]  ;;  %v2352_v13 = vld [vmem:[#allocation17 + $0xb0] sm:$0xff] }
 0x7da   :  { %4506 = vmatprep.subr.bf16.mxu0 %v4505_v54  ;;  %4538 = vmatprep.subr.bf16.mxu1 %v4537_v58  ;;  %v2049_v40 = vld [vmem:[#allocation15 + $0x1f8] sm:$0xff]  ;;  %v2042_v54 = vld [vmem:[#allocation15 + $0x1c0] sm:$0xff]  ;;  %v4521_v58 = vpack.c.bf16 %v2047_v32, %v2043_v29 }
 0x7db   :  { %v4553_v62 = vpack.c.bf16 %v2049_v40, %v2045_v36  ;;  %v4523_v18 = vpack.c.bf16 %v2046_v4, %v2042_v54  ;;  %v2361_v32 = vld [vmem:[#allocation17 + $0xf8] sm:$0xff]  ;;  %v2354_v36 = vld [vmem:[#allocation17 + $0xc0] sm:$0xff]  ;;  %v2356_v54 = vld [vmem:[#allocation17 + $0xd0] sm:$0xff] }
 0x7dc   :  { %v2358_v40 = vld [vmem:[#allocation17 + $0xe0] sm:$0xff] }
 0x7dd   :  { %4508 = vmatpush1.bf16.msra.mxu0 %v4507_v27  ;;  %4540 = vmatpush1.bf16.msra.mxu1 %v4539_v55  ;;  %v2330_v27 = vld [vmem:[#allocation17] sm:$0xff] }
 0x7de   :  { %4510 = vmatprep.subr.bf16.mxu0 %v4509_v52  ;;  %4542 = vmatprep.subr.bf16.mxu1 %v4541_v38  ;;  %v2336_v52 = vld [vmem:[#allocation17 + $0x30] sm:$0xff]  ;;  %v2339_v38 = vld [vmem:[#allocation17 + $0x48] sm:$0xff] }
 0x7df   :  { %v6403_v5 = vpack.c.bf16 %v2343_v57, %v2339_v38 }
 0x7e1   :  { %4512 = vmatpush1.bf16.msra.mxu0 %v4511_v30  ;;  %4544 = vmatpush1.bf16.msra.mxu1 %v4543_v17  ;;  %v6405_v30 = vpack.c.bf16 %v2345_v45, %v2341_v41  ;;  %v6407_v17 = vpack.c.bf16 %v2342_v11, %v2338_v49  ;;  %v2373_v41 = vld [vmem:[#allocation17 + $0x158] sm:$0xff]  ;;  %v2370_v49 = vld [vmem:[#allocation17 + $0x140] sm:$0xff] }
 0x7e2   :  { %4514 = vmatprep.subr.bf16.mxu0 %v4513_v8  ;;  %4546 = vmatprep.subr.bf16.mxu1 %v4545_v42  ;;  %v6410_v8 = vpack.c.bf16 %v2344_v24, %v2340_v28  ;;  %v2347_v42 = vld [vmem:[#allocation17 + $0x88] sm:$0xff]  ;;  %v2377_v45 = vld [vmem:[#allocation17 + $0x178] sm:$0xff]  ;;  %v2374_v28 = vld [vmem:[#allocation17 + $0x160] sm:$0xff] }
 0x7e3   :  { %v6415_v53 = vpack.c.bf16 %v2351_v47, %v2347_v42  ;;  %v6451_v11 = vpack.c.bf16 %v2377_v45, %v2373_v41  ;;  %v2372_v24 = vld [vmem:[#allocation17 + $0x150] sm:$0xff]  ;;  %v6454_v47 = vpack.c.bf16 %v2374_v28, %v2370_v49 }
 0x7e4   :  { %v2376_v42 = vld [vmem:[#allocation17 + $0x170] sm:$0xff] }
 0x7e5   :  { %4516 = vmatpush1.bf16.msra.mxu0 %v4515_v3  ;;  %4548 = vmatpush1.bf16.msra.mxu1 %v4547_v6  ;;  %v6417_v3 = vpack.c.bf16 %v2353_v56, %v2349_v50  ;;  %v6419_v6 = vpack.c.bf16 %v2350_v63, %v2346_v60  ;;  %v2379_v50 = vld [vmem:[#allocation17 + $0x188] sm:$0xff]  ;;  %v2381_v60 = vld [vmem:[#allocation17 + $0x198] sm:$0xff]  ;;  %v6458_v63 = vpack.c.bf16 %v2376_v42, %v2372_v24 }
 0x7e6   :  { %4518 = vmatprep.subr.bf16.mxu0 %v4517_v16  ;;  %4550 = vmatprep.subr.bf16.mxu1 %v4549_v19  ;;  %v6422_v16 = vpack.c.bf16 %v2352_v13, %v2348_v10  ;;  %v2355_v19 = vld [vmem:[#allocation17 + $0xc8] sm:$0xff]  ;;  %v2385_v13 = vld [vmem:[#allocation17 + $0x1b8] sm:$0xff] }
 0x7e7   :  { %v6427_v29 = vpack.c.bf16 %v2359_v23, %v2355_v19  ;;  %v2383_v56 = vld [vmem:[#allocation17 + $0x1a8] sm:$0xff]  ;;  %v2378_v19 = vld [vmem:[#allocation17 + $0x180] sm:$0xff] }
 0x7e8   :  { %v6460_v10 = vpack.c.bf16 %v2383_v56, %v2379_v50  ;;  %v2382_v23 = vld [vmem:[#allocation17 + $0x1a0] sm:$0xff] }
 0x7e9   :  { %4520 = vmatpush1.bf16.msra.mxu0 %v4519_v44  ;;  %4552 = vmatpush1.bf16.msra.mxu1 %v4551_v48  ;;  %v6429_v44 = vpack.c.bf16 %v2361_v32, %v2357_v26  ;;  %v6431_v48 = vpack.c.bf16 %v2358_v40, %v2354_v36  ;;  %v6463_v26 = vpack.c.bf16 %v2385_v13, %v2381_v60  ;;  %v2380_v32 = vld [vmem:[#allocation17 + $0x190] sm:$0xff] }
 0x7ea   :  { %4522 = vmatprep.subr.bf16.mxu0 %v4521_v58  ;;  %4554 = vmatprep.subr.bf16.mxu1 %v4553_v62  ;;  %v2360_v58 = vld [vmem:[#allocation17 + $0xf0] sm:$0xff]  ;;  %v2363_v62 = vld [vmem:[#allocation17 + $0x108] sm:$0xff]  ;;  %v6466_v40 = vpack.c.bf16 %v2382_v23, %v2378_v19 }
 0x7eb   :  { %v6434_v4 = vpack.c.bf16 %v2360_v58, %v2356_v54  ;;  %v2384_v36 = vld [vmem:[#allocation17 + $0x1b0] sm:$0xff]  ;;  %v2387_v58 = vld [vmem:[#allocation17 + $0x1c8] sm:$0xff] }
 0x7ec   :  { %v6470_v54 = vpack.c.bf16 %v2384_v36, %v2380_v32 }
 0x7ed   :  { %4524 = vmatpush1.bf16.msra.mxu0 %v4523_v18  ;;  %4556 = vmatpush1.bf16.msra.mxu1 %v4555_v22  ;;  %v2369_v18 = vld [vmem:[#allocation17 + $0x138] sm:$0xff]  ;;  %v6438_v22 = vpack.c.bf16 %v2367_v9, %v2363_v62  ;;  %v2391_v62 = vld [vmem:[#allocation17 + $0x1e8] sm:$0xff] }
 0x7ee   :  { %v2389_v9 = vld [vmem:[#allocation17 + $0x1d8] sm:$0xff] }
 0x7f0   :  { %2137 = vmatmul.mubr.f32.vlgmr.msra.gmra.mrb[16].mxu0 %v6083_v51  ;;  %2250 = vmatmul.mubr.f32.vlgmr.msra.gmra.mrb[16].mxu1 %v6083_v51  ;;  %v2331_v51 = vld [vmem:[#allocation17 + $0x8] sm:$0xff] }
 0x7f1   :  { %2142 = vmatprep.mubr.f32.mxu0 %v5711_v0  ;;  %2255 = vmatprep.mubr.f32.mxu1 %v5711_v0 }
 0x7f4   :  { %2143 = vmatmul.mubr.f32.gmra.mrb[18].mxu0 %v6129_v7  ;;  %2256 = vmatmul.mubr.f32.gmra.mrb[18].mxu1 %v6129_v7  ;;  %v2335_v7 = vld [vmem:[#allocation17 + $0x28] sm:$0xff] }
 0x7f5   :  { %2148 = vmatprep.mubr.f32.mxu0 %v5711_v0  ;;  %2261 = vmatprep.mubr.f32.mxu1 %v5711_v0 }
 0x7f8   :  { %2149 = vmatmul.mubr.f32.gmra.mrb[20].mxu0 %v6175_v20  ;;  %2262 = vmatmul.mubr.f32.gmra.mrb[20].mxu1 %v6175_v20  ;;  %v2333_v20 = vld [vmem:[#allocation17 + $0x18] sm:$0xff] }
 0x7f9   :  { %2154 = vmatprep.mubr.f32.mxu0 %v5711_v0  ;;  %2267 = vmatprep.mubr.f32.mxu1 %v5711_v0 }
 0x7fc   :  { %2155 = vmatmul.mubr.f32.gmra.mrb[22].mxu0 %v6221_v46  ;;  %2268 = vmatmul.mubr.f32.gmra.mrb[22].mxu1 %v6221_v46  ;;  %v6391_v46 = vpack.c.bf16 %v2335_v7, %v2331_v51  ;;  %v6440_v51 = vpack.c.bf16 %v2369_v18, %v2365_v14  ;;  %v2362_v7 = vld [vmem:[#allocation17 + $0x100] sm:$0xff]  ;;  %v6475_v14 = vpack.c.bf16 %v2391_v62, %v2387_v58  ;;  %v2393_v18 = vld [vmem:[#allocation17 + $0x1f8] sm:$0xff] }
 0x7fd   :  { %2160 = vmatprep.mubr.f32.mxu0 %v5711_v0  ;;  %2273 = vmatprep.mubr.f32.mxu1 %v5711_v0 }
 0x7fe   :  { %4558 = vmatprep.subr.bf16.mxu0 %v6391_v46 }
 0x800   :  { %2161 = vmatmul.mubr.f32.gmra.mrb[24].mxu0 %v6267_v12  ;;  %2274 = vmatmul.mubr.f32.gmra.mrb[24].mxu1 %v6267_v12  ;;  %v2337_v12 = vld [vmem:[#allocation17 + $0x38] sm:$0xff] }
 0x801   :  { %2166 = vmatprep.mubr.f32.mxu0 %v5711_v0  ;;  %2279 = vmatprep.mubr.f32.mxu1 %v5711_v0  ;;  %v6393_v55 = vpack.c.bf16 %v2337_v12, %v2333_v20  ;;  %v2366_v20 = vld [vmem:[#allocation17 + $0x120] sm:$0xff]  ;;  %v2364_v12 = vld [vmem:[#allocation17 + $0x110] sm:$0xff] }
 0x803   :  { %4590 = vmatprep.subr.bf16.mxu1 %v6393_v55 }
 0x804   :  { %2167 = vmatmul.mubr.f32.gmra.mrb[26].mxu0 %v6313_v21  ;;  %2280 = vmatmul.mubr.f32.gmra.mrb[26].mxu1 %v6313_v21  ;;  %v2334_v21 = vld [vmem:[#allocation17 + $0x20] sm:$0xff] }
 0x805   :  { %2172 = vmatprep.mubr.f32.mxu0 %v5711_v0  ;;  %2285 = vmatprep.mubr.f32.mxu1 %v5711_v0  ;;  %v6395_v34 = vpack.c.bf16 %v2334_v21, %v2330_v27  ;;  %v6443_v27 = vpack.c.bf16 %v2366_v20, %v2362_v7  ;;  %v2368_v21 = vld [vmem:[#allocation17 + $0x130] sm:$0xff]  ;;  %v2386_v7 = vld [vmem:[#allocation17 + $0x1c0] sm:$0xff] }
 0x806   :  { %v6447_v38 = vpack.c.bf16 %v2368_v21, %v2364_v12  ;;  %v2390_v20 = vld [vmem:[#allocation17 + $0x1e0] sm:$0xff]  ;;  %v6477_v12 = vpack.c.bf16 %v2393_v18, %v2389_v9 }
 0x807   :  { %4560 = vmatpush1.bf16.msra.mxu0 %v6395_v34  ;;  %v6479_v21 = vpack.c.bf16 %v2390_v20, %v2386_v7 }
 0x808   :  { %2173 = vmatmul.mubr.f32.gmra.mrb[28].mxu0 %v6357_v1  ;;  %2286 = vmatmul.mubr.f32.gmra.mrb[28].mxu1 %v6357_v1  ;;  %v6398_v1 = vpack.c.bf16 %v2336_v52, %v2332_v15  ;;  %v2371_v15 = vld [vmem:[#allocation17 + $0x148] sm:$0xff] }
 0x809   :  { %2178 = vmatprep.mubr.f32.mxu0 %v5711_v0  ;;  %2291 = vmatprep.mubr.f32.mxu1 %v5711_v0  ;;  %v2375_v52 = vld [vmem:[#allocation17 + $0x168] sm:$0xff] }
 0x80a   :  { %4592 = vmatpush1.bf16.msra.mxu1 %v6398_v1  ;;  %4562 = vmatprep.subr.bf16.mxu0 %v6403_v5  ;;  %v6449_v57 = vpack.c.bf16 %v2375_v52, %v2371_v15  ;;  %v2388_v15 = vld [vmem:[#allocation17 + $0x1d0] sm:$0xff] }
 0x80b   :  { %4594 = vmatprep.subr.bf16.mxu1 %v6405_v30  ;;  %4564 = vmatpush1.bf16.msra.mxu0 %v6407_v17  ;;  %v2392_v52 = vld [vmem:[#allocation17 + $0x1f0] sm:$0xff] }
 0x80c   :  { %4566 = vmatprep.subr.bf16.mxu0 %v6415_v53  ;;  %v6482_v41 = vpack.c.bf16 %v2392_v52, %v2388_v15 }
 0x80e   :  { %4596 = vmatpush1.bf16.msra.mxu1 %v6410_v8 }
 0x80f   :  { %4598 = vmatprep.subr.bf16.mxu1 %v6417_v3  ;;  %4568 = vmatpush1.bf16.msra.mxu0 %v6419_v6 }
 0x810   :  { %4570 = vmatprep.subr.bf16.mxu0 %v6427_v29 }
 0x812   :  { %4600 = vmatpush1.bf16.msra.mxu1 %v6422_v16 }
 0x813   :  { %4602 = vmatprep.subr.bf16.mxu1 %v6429_v44  ;;  %4572 = vmatpush1.bf16.msra.mxu0 %v6431_v48 }
 0x814   :  { %4574 = vmatprep.subr.bf16.mxu0 %v6438_v22 }
 0x816   :  { %4604 = vmatpush1.bf16.msra.mxu1 %v6434_v4 }
 0x817   :  { %4606 = vmatprep.subr.bf16.mxu1 %v6440_v51  ;;  %4576 = vmatpush1.bf16.msra.mxu0 %v6443_v27 }
 0x818   :  { %4578 = vmatprep.subr.bf16.mxu0 %v6449_v57 }
 0x81a   :  { %4608 = vmatpush1.bf16.msra.mxu1 %v6447_v38 }
 0x81b   :  { %4610 = vmatprep.subr.bf16.mxu1 %v6451_v11  ;;  %4580 = vmatpush1.bf16.msra.mxu0 %v6454_v47 }
 0x81c   :  { %4582 = vmatprep.subr.bf16.mxu0 %v6460_v10 }
 0x81e   :  { %4612 = vmatpush1.bf16.msra.mxu1 %v6458_v63 }
 0x81f   :  { %4614 = vmatprep.subr.bf16.mxu1 %v6463_v26  ;;  %4584 = vmatpush1.bf16.msra.mxu0 %v6466_v40 }
 0x820   :  { %4586 = vmatprep.subr.bf16.mxu0 %v6475_v14 }
 0x822   :  { %4616 = vmatpush1.bf16.msra.mxu1 %v6470_v54 }
 0x823   :  { %4618 = vmatprep.subr.bf16.mxu1 %v6477_v12  ;;  %4588 = vmatpush1.bf16.msra.mxu0 %v6479_v21 }
 0x824   :  { %4622 = vmatprep.subr.bf16.mxu0 %v6391_v46 }
 0x826   :  { %4620 = vmatpush1.bf16.msra.mxu1 %v6482_v41 }
 0x827   :  { %4654 = vmatprep.subr.bf16.mxu1 %v6393_v55 }
 0x8a3   :  { %v1870_v45 = vpop.f32.mrb[14].mxu0  ;;  %v1941_v49 = vpop.f32.mrb[14].mxu1 }
 0x8a4   :  { %v5083_v28 = vadd.f32 %v1870_v45, %v6060_v37  ;;  %v1872_v24 = vpop.f32.mrb[15].mxu0  ;;  %v1943_v42 = vpop.f32.mrb[15].mxu1  ;;  %v5099_v23 = vadd.f32 %v1941_v49, %v6077_v2  ;;  %v137_v49 = vld [vmem:[#allocation9 + $0x8] sm:$0xff] }
 0x8a5   :  { %v5084_v50 = vadd.f32 %v1872_v24, %v6064_v39  ;;  %v5100_v13 = vadd.f32 %v1943_v42, %v6071_v59 }
 0x8a6   :  { %v3890_v56 = vmul.f32 -1.442695, %v5083_v28 }
 0x8a7   :  { %v3891_v60 = vmul.f32 -1.442695, %v5084_v50  ;;  %v3892_v19 = vmul.f32 -1.442695, %v5100_v13 }
 0x8a8   :  { %5324 = vpow2.f32 %v3890_v56 }
 0x8a9   :  { %5326 = vpow2.f32 %v3891_v60 }
 0x8aa   :  { %5328 = vpow2.f32 %v3892_v19 }
 0x8ab   :  { %5330 = vtanh.f32 %v5099_v23 }
 0x8b2   :  { %v5325_v32 = vpop.eup %5324 }
 0x8b3   :  { %v5327_v36 = vpop.eup %5326  ;;  %v1953_v58 = vadd.f32 1.0, %v5325_v32 }
 0x8b4   :  { %v1959_v62 = vadd.f32 1.0, %v5327_v36  ;;  %v5329_v37 = vpop.eup %5328 }
 0x8b5   :  { %5332 = vrcp.f32 %v1953_v58  ;;  %v5331_v9 = vpop.eup %5330  ;;  %v1966_v20 = vadd.f32 1.0, %v5329_v37 }
 0x8b6   :  { %5334 = vrcp.f32 %v1959_v62 }
 0x8b7   :  { %5336 = vrcp.f32 %v1966_v20  ;;  %v141_v20 = vld [vmem:[#allocation11 + $0x8] sm:$0xff] }
 0x8bf   :  { %v5333_v39 = vpop.eup %5332 }
 0x8c0   :  { %v5335_v18 = vpop.eup %5334  ;;  %v1970_v7 = vmul.f32 %v5333_v39, %v5331_v9 }
 0x8c1   :  { %v1969_v15 = vmul.f32 %v5335_v18, %v6354_v25  ;;  %v5337_v2 = vpop.eup %5336  ;;  %v2050_v25 = vld [vmem:[%s6874_s8] sm:$0xf]  ;;  %s5712_s8 = smov [#allocation19]  }
 0x8c2   :  { %v6535_v28 = vrot.slane %v2050_v25, %v220_v33  ;;  %v6539_v24 = vrot.slane %v2050_v25, %v224_v35  ;;  %v6545_v36 = vrot.slane %v2050_v25, %v232_v43  ;;  %v6550_v35 = vrot.slane %v2050_v25, %v228_v61  ;;  %s3835_s14 = sshll.u32 %s5712_s8, 4  ;;  %s3836_s14 = int_to_ptr.vmem [resolvable:$true] %s3835_s14 }
 0x8c3   :  { %v1971_v59 = vadd.f32 %v1970_v7, %v1969_v15  ;;  %s5622_s19 = scalar_lea.vmem %s3836_s14, 256  ;;  %p5627_p1 = scmp.lt.s32.totalorder %s3836_s14, %s3836_s14 }
 0x8c4   :  { %p5623_p0 = scmp.ne.s32.totalorder %s3836_s14, %s5622_s19  ;;  %p5628_p2 = scmp.lt.s32.totalorder %s5622_s19, %s5622_s19 }
 0x8c5   :  { %5338 = vtanh.f32 %v1971_v59  ;;  %3816 = vst [vmem:[#allocation21] sm:$0xff] %v1971_v59 }
 0x8c6   :  { %p5629_p3 = por %p5628_p2, %p5627_p1 }
 0x8c8   :  { %p5630_p4 = pnand %p5629_p3, %p5623_p0 }
 0x8cf   :  { %v5339_v52 = vpop.eup %5338 }
 0x8d0   :  { %v1973_v45 = vmul.f32 %v5339_v52, %v5337_v2 }
 0x8d2   :  { %2179 = vmatmul.mubr.f32.gmra.mrb[30].mxu0 %v1973_v45  ;;  %3812 = vst [vmem:[#allocation19] sm:$0xff] %v1973_v45  ;;  %2292 = vmatmul.mubr.f32.gmra.mrb[30].mxu1 %v1973_v45 }
 0x8d3   :  { %2466 = vmatprep.mubr.f32.mxu0 %v5711_v0  ;;  %2537 = vmatprep.mubr.f32.mxu1 %v5711_v0 }
 0x8d6   :  { %2467 = vmatmul.mubr.f32.vlgmr.msra.gmra.mrb[16].mxu0 %v137_v49  ;;  %2538 = vmatmul.mubr.f32.vlgmr.msra.gmra.mrb[16].mxu1 %v137_v49 }
 0x8d7   :  { %4624 = vmatpush1.bf16.msra.mxu0 %v6395_v34  ;;  %4656 = vmatpush1.bf16.msra.mxu1 %v6398_v1 }
 0x8d8   :  { %4626 = vmatprep.subr.bf16.mxu0 %v6403_v5  ;;  %4658 = vmatprep.subr.bf16.mxu1 %v6405_v30 }
 0x8d9   :  { %2641 = vmatprep.mubr.f32.mxu0 %v5711_v0  ;;  %2712 = vmatprep.mubr.f32.mxu1 %v5711_v0 }
 0x8db   :  { %4628 = vmatpush1.bf16.msra.mxu0 %v6407_v17  ;;  %4660 = vmatpush1.bf16.msra.mxu1 %v6410_v8 }
 0x8dc   :  { %4630 = vmatprep.subr.bf16.mxu0 %v6415_v53  ;;  %4662 = vmatprep.subr.bf16.mxu1 %v6417_v3 }
 0x8df   :  { %4632 = vmatpush1.bf16.msra.mxu0 %v6419_v6  ;;  %4664 = vmatpush1.bf16.msra.mxu1 %v6422_v16 }
 0x8e0   :  { %4634 = vmatprep.subr.bf16.mxu0 %v6427_v29  ;;  %4666 = vmatprep.subr.bf16.mxu1 %v6429_v44 }
 0x8e3   :  { %4636 = vmatpush1.bf16.msra.mxu0 %v6431_v48  ;;  %4668 = vmatpush1.bf16.msra.mxu1 %v6434_v4 }
 0x8e4   :  { %4638 = vmatprep.subr.bf16.mxu0 %v6438_v22  ;;  %4670 = vmatprep.subr.bf16.mxu1 %v6440_v51 }
 0x8e7   :  { %4640 = vmatpush1.bf16.msra.mxu0 %v6443_v27  ;;  %4672 = vmatpush1.bf16.msra.mxu1 %v6447_v38 }
 0x8e8   :  { %4642 = vmatprep.subr.bf16.mxu0 %v6449_v57  ;;  %4674 = vmatprep.subr.bf16.mxu1 %v6451_v11 }
 0x8eb   :  { %4644 = vmatpush1.bf16.msra.mxu0 %v6454_v47  ;;  %4676 = vmatpush1.bf16.msra.mxu1 %v6458_v63 }
 0x8ec   :  { %4646 = vmatprep.subr.bf16.mxu0 %v6460_v10  ;;  %4678 = vmatprep.subr.bf16.mxu1 %v6463_v26 }
 0x8ef   :  { %4648 = vmatpush1.bf16.msra.mxu0 %v6466_v40  ;;  %4680 = vmatpush1.bf16.msra.mxu1 %v6470_v54 }
 0x8f0   :  { %4650 = vmatprep.subr.bf16.mxu0 %v6475_v14  ;;  %4682 = vmatprep.subr.bf16.mxu1 %v6477_v12 }
 0x8f3   :  { %4652 = vmatpush1.bf16.msra.mxu0 %v6479_v21  ;;  %4684 = vmatpush1.bf16.msra.mxu1 %v6482_v41 }
 0x8f4   :  { %4686 = vmatprep.subr.bf16.mxu0 %v6391_v46  ;;  %4718 = vmatprep.subr.bf16.mxu1 %v6393_v55 }
 0x9a9   :  { %v2468_v42 = vpop.f32.mrb[16].mxu0  ;;  %v2539_v50 = vpop.f32.mrb[16].mxu1 }
 0x9aa   :  { %v5101_v56 = vadd.f32 %v2468_v42, %v6535_v28  ;;  %v2470_v60 = vpop.f32.mrb[17].mxu0  ;;  %v2541_v13 = vpop.f32.mrb[17].mxu1  ;;  %v5117_v62 = vadd.f32 %v2539_v50, %v6550_v35 }
 0x9ab   :  { %v5102_v19 = vadd.f32 %v2470_v60, %v6539_v24  ;;  %v5118_v33 = vadd.f32 %v2541_v13, %v6545_v36 }
 0x9ac   :  { %v3893_v23 = vmul.f32 -1.442695, %v5101_v56 }
 0x9ad   :  { %v3894_v32 = vmul.f32 -1.442695, %v5102_v19  ;;  %v3895_v58 = vmul.f32 -1.442695, %v5118_v33 }
 0x9ae   :  { %5340 = vpow2.f32 %v3893_v23 }
 0x9af   :  { %5342 = vpow2.f32 %v3894_v32 }
 0x9b0   :  { %5344 = vpow2.f32 %v3895_v58 }
 0x9b1   :  { %5346 = vtanh.f32 %v5117_v62 }
 0x9b8   :  { %v5341_v37 = vpop.eup %5340 }
 0x9b9   :  { %v5343_v9 = vpop.eup %5342  ;;  %v2551_v39 = vadd.f32 1.0, %v5341_v37 }
 0x9ba   :  { %v2557_v18 = vadd.f32 1.0, %v5343_v9  ;;  %v5345_v43 = vpop.eup %5344 }
 0x9bb   :  { %5348 = vrcp.f32 %v2551_v39  ;;  %v5347_v7 = vpop.eup %5346  ;;  %v2564_v31 = vadd.f32 1.0, %v5345_v43 }
 0x9bc   :  { %5350 = vrcp.f32 %v2557_v18 }
 0x9bd   :  { %5352 = vrcp.f32 %v2564_v31 }
 0x9c5   :  { %v5349_v15 = vpop.eup %5348 }
 0x9c6   :  { %v5351_v59 = vpop.eup %5350  ;;  %v2568_v2 = vmul.f32 %v5349_v15, %v5347_v7 }
 0x9c7   :  { %v2567_v61 = vmul.f32 %v5351_v59, %v141_v20  ;;  %v5353_v45 = vpop.eup %5352 }
 0x9c9   :  { %v6553_v52 = vadd.f32 %v2568_v2, %v2567_v61 }
 0x9cb   :  { %5354 = vtanh.f32 %v6553_v52 }
 0x9d5   :  { %v5355_v49 = vpop.eup %5354 }
 0x9d6   :  { %v2571_v25 = vmul.f32 %v5355_v49, %v5353_v45 }
 0x9d8   :  { %2572 = vst [vmem:[#allocation18] sm:$0xff] %v2571_v25  ;;  %2642 = vmatmul.mubr.f32.vlgmr.msra.gmra.mrb[18].mxu0 %v2571_v25  ;;  %2713 = vmatmul.mubr.f32.vlgmr.msra.gmra.mrb[18].mxu1 %v2571_v25 }
 0x9d9   :  { %4688 = vmatpush1.bf16.msra.mxu0 %v6395_v34  ;;  %4720 = vmatpush1.bf16.msra.mxu1 %v6398_v1 }
 0x9da   :  { %4690 = vmatprep.subr.bf16.mxu0 %v6403_v5  ;;  %4722 = vmatprep.subr.bf16.mxu1 %v6405_v30 }
 0x9db   :  { %2817 = vmatprep.mubr.f32.mxu0 %v5711_v0  ;;  %2888 = vmatprep.mubr.f32.mxu1 %v5711_v0 }
 0x9dd   :  { %4692 = vmatpush1.bf16.msra.mxu0 %v6407_v17  ;;  %4724 = vmatpush1.bf16.msra.mxu1 %v6410_v8 }
 0x9de   :  { %4694 = vmatprep.subr.bf16.mxu0 %v6415_v53  ;;  %4726 = vmatprep.subr.bf16.mxu1 %v6417_v3 }
 0x9e1   :  { %4696 = vmatpush1.bf16.msra.mxu0 %v6419_v6  ;;  %4728 = vmatpush1.bf16.msra.mxu1 %v6422_v16 }
 0x9e2   :  { %4698 = vmatprep.subr.bf16.mxu0 %v6427_v29  ;;  %4730 = vmatprep.subr.bf16.mxu1 %v6429_v44 }
 0x9e5   :  { %4700 = vmatpush1.bf16.msra.mxu0 %v6431_v48  ;;  %4732 = vmatpush1.bf16.msra.mxu1 %v6434_v4 }
 0x9e6   :  { %4702 = vmatprep.subr.bf16.mxu0 %v6438_v22  ;;  %4734 = vmatprep.subr.bf16.mxu1 %v6440_v51 }
 0x9e9   :  { %4704 = vmatpush1.bf16.msra.mxu0 %v6443_v27  ;;  %4736 = vmatpush1.bf16.msra.mxu1 %v6447_v38 }
 0x9ea   :  { %4706 = vmatprep.subr.bf16.mxu0 %v6449_v57  ;;  %4738 = vmatprep.subr.bf16.mxu1 %v6451_v11 }
 0x9ed   :  { %4708 = vmatpush1.bf16.msra.mxu0 %v6454_v47  ;;  %4740 = vmatpush1.bf16.msra.mxu1 %v6458_v63 }
 0x9ee   :  { %4710 = vmatprep.subr.bf16.mxu0 %v6460_v10  ;;  %4742 = vmatprep.subr.bf16.mxu1 %v6463_v26 }
 0x9f1   :  { %4712 = vmatpush1.bf16.msra.mxu0 %v6466_v40  ;;  %4744 = vmatpush1.bf16.msra.mxu1 %v6470_v54 }
 0x9f2   :  { %4714 = vmatprep.subr.bf16.mxu0 %v6475_v14  ;;  %4746 = vmatprep.subr.bf16.mxu1 %v6477_v12 }
 0x9f5   :  { %4716 = vmatpush1.bf16.msra.mxu0 %v6479_v21  ;;  %4748 = vmatpush1.bf16.msra.mxu1 %v6482_v41 }
 0x9f6   :  { %4750 = vmatprep.subr.bf16.mxu0 %v6391_v46  ;;  %4782 = vmatprep.subr.bf16.mxu1 %v6393_v55 }
 0xaab   :  { %v2643_v42 = vpop.f32.mrb[18].mxu0  ;;  %v2714_v50 = vpop.f32.mrb[18].mxu1 }
 0xaac   :  { %v5103_v56 = vadd.f32 %v2643_v42, %v6535_v28  ;;  %v2645_v60 = vpop.f32.mrb[19].mxu0  ;;  %v2716_v13 = vpop.f32.mrb[19].mxu1  ;;  %v5119_v62 = vadd.f32 %v2714_v50, %v6550_v35 }
 0xaad   :  { %v5104_v19 = vadd.f32 %v2645_v60, %v6539_v24  ;;  %v5120_v33 = vadd.f32 %v2716_v13, %v6545_v36 }
 0xaae   :  { %v3896_v23 = vmul.f32 -1.442695, %v5103_v56 }
 0xaaf   :  { %v3897_v32 = vmul.f32 -1.442695, %v5104_v19  ;;  %v3898_v58 = vmul.f32 -1.442695, %v5120_v33 }
 0xab0   :  { %5356 = vpow2.f32 %v3896_v23 }
 0xab1   :  { %5358 = vpow2.f32 %v3897_v32 }
 0xab2   :  { %5360 = vpow2.f32 %v3898_v58 }
 0xab3   :  { %5362 = vtanh.f32 %v5119_v62 }
 0xaba   :  { %v5357_v37 = vpop.eup %5356 }
 0xabb   :  { %v5359_v9 = vpop.eup %5358  ;;  %v2726_v39 = vadd.f32 1.0, %v5357_v37 }
 0xabc   :  { %v2732_v18 = vadd.f32 1.0, %v5359_v9  ;;  %v5361_v43 = vpop.eup %5360 }
 0xabd   :  { %5364 = vrcp.f32 %v2726_v39  ;;  %v5363_v7 = vpop.eup %5362  ;;  %v2739_v2 = vadd.f32 1.0, %v5361_v43 }
 0xabe   :  { %5366 = vrcp.f32 %v2732_v18 }
 0xabf   :  { %5368 = vrcp.f32 %v2739_v2 }
 0xac7   :  { %v5365_v20 = vpop.eup %5364 }
 0xac8   :  { %v5367_v15 = vpop.eup %5366  ;;  %v2743_v59 = vmul.f32 %v5365_v20, %v5363_v7 }
 0xac9   :  { %v2742_v31 = vmul.f32 %v5367_v15, %v6553_v52  ;;  %v5369_v45 = vpop.eup %5368 }
 0xacb   :  { %v6595_v61 = vadd.f32 %v2743_v59, %v2742_v31 }
 0xacd   :  { %5370 = vtanh.f32 %v6595_v61 }
 0xad7   :  { %v5371_v49 = vpop.eup %5370 }
 0xad8   :  { %v2746_v25 = vmul.f32 %v5371_v49, %v5369_v45 }
 0xada   :  { %2748 = vst [vmem:[#allocation18 + $0x8] sm:$0xff] %v2746_v25  ;;  %2818 = vmatmul.mubr.f32.vlgmr.msra.gmra.mrb[20].mxu0 %v2746_v25  ;;  %2889 = vmatmul.mubr.f32.vlgmr.msra.gmra.mrb[20].mxu1 %v2746_v25 }
 0xadb   :  { %4752 = vmatpush1.bf16.msra.mxu0 %v6395_v34  ;;  %4784 = vmatpush1.bf16.msra.mxu1 %v6398_v1 }
 0xadc   :  { %4754 = vmatprep.subr.bf16.mxu0 %v6403_v5  ;;  %4786 = vmatprep.subr.bf16.mxu1 %v6405_v30 }
 0xadd   :  { %2993 = vmatprep.mubr.f32.mxu0 %v5711_v0  ;;  %3064 = vmatprep.mubr.f32.mxu1 %v5711_v0 }
 0xadf   :  { %4756 = vmatpush1.bf16.msra.mxu0 %v6407_v17  ;;  %4788 = vmatpush1.bf16.msra.mxu1 %v6410_v8 }
 0xae0   :  { %4758 = vmatprep.subr.bf16.mxu0 %v6415_v53  ;;  %4790 = vmatprep.subr.bf16.mxu1 %v6417_v3 }
 0xae3   :  { %4760 = vmatpush1.bf16.msra.mxu0 %v6419_v6  ;;  %4792 = vmatpush1.bf16.msra.mxu1 %v6422_v16 }
 0xae4   :  { %4762 = vmatprep.subr.bf16.mxu0 %v6427_v29  ;;  %4794 = vmatprep.subr.bf16.mxu1 %v6429_v44 }
 0xae7   :  { %4764 = vmatpush1.bf16.msra.mxu0 %v6431_v48  ;;  %4796 = vmatpush1.bf16.msra.mxu1 %v6434_v4 }
 0xae8   :  { %4766 = vmatprep.subr.bf16.mxu0 %v6438_v22  ;;  %4798 = vmatprep.subr.bf16.mxu1 %v6440_v51 }
 0xaeb   :  { %4768 = vmatpush1.bf16.msra.mxu0 %v6443_v27  ;;  %4800 = vmatpush1.bf16.msra.mxu1 %v6447_v38 }
 0xaec   :  { %4770 = vmatprep.subr.bf16.mxu0 %v6449_v57  ;;  %4802 = vmatprep.subr.bf16.mxu1 %v6451_v11 }
 0xaef   :  { %4772 = vmatpush1.bf16.msra.mxu0 %v6454_v47  ;;  %4804 = vmatpush1.bf16.msra.mxu1 %v6458_v63 }
 0xaf0   :  { %4774 = vmatprep.subr.bf16.mxu0 %v6460_v10  ;;  %4806 = vmatprep.subr.bf16.mxu1 %v6463_v26 }
 0xaf3   :  { %4776 = vmatpush1.bf16.msra.mxu0 %v6466_v40  ;;  %4808 = vmatpush1.bf16.msra.mxu1 %v6470_v54 }
 0xaf4   :  { %4778 = vmatprep.subr.bf16.mxu0 %v6475_v14  ;;  %4810 = vmatprep.subr.bf16.mxu1 %v6477_v12 }
 0xaf7   :  { %4780 = vmatpush1.bf16.msra.mxu0 %v6479_v21  ;;  %4812 = vmatpush1.bf16.msra.mxu1 %v6482_v41 }
 0xaf8   :  { %4814 = vmatprep.subr.bf16.mxu0 %v6391_v46  ;;  %4846 = vmatprep.subr.bf16.mxu1 %v6393_v55 }
 0xbad   :  { %v2819_v52 = vpop.f32.mrb[20].mxu0  ;;  %v2890_v42 = vpop.f32.mrb[20].mxu1 }
 0xbae   :  { %v5105_v50 = vadd.f32 %v2819_v52, %v6535_v28  ;;  %v2821_v56 = vpop.f32.mrb[21].mxu0  ;;  %v2892_v60 = vpop.f32.mrb[21].mxu1  ;;  %v5121_v58 = vadd.f32 %v2890_v42, %v6550_v35 }
 0xbaf   :  { %v5106_v13 = vadd.f32 %v2821_v56, %v6539_v24  ;;  %v5122_v32 = vadd.f32 %v2892_v60, %v6545_v36 }
 0xbb0   :  { %v3899_v19 = vmul.f32 -1.442695, %v5105_v50 }
 0xbb1   :  { %v3900_v23 = vmul.f32 -1.442695, %v5106_v13  ;;  %v3901_v33 = vmul.f32 -1.442695, %v5122_v32 }
 0xbb2   :  { %5372 = vpow2.f32 %v3899_v19 }
 0xbb3   :  { %5374 = vpow2.f32 %v3900_v23 }
 0xbb4   :  { %5376 = vpow2.f32 %v3901_v33 }
 0xbb5   :  { %5378 = vtanh.f32 %v5121_v58 }
 0xbbc   :  { %v5373_v62 = vpop.eup %5372 }
 0xbbd   :  { %v5375_v37 = vpop.eup %5374  ;;  %v2902_v9 = vadd.f32 1.0, %v5373_v62 }
 0xbbe   :  { %v2908_v39 = vadd.f32 1.0, %v5375_v37  ;;  %v5377_v18 = vpop.eup %5376 }
 0xbbf   :  { %5380 = vrcp.f32 %v2902_v9  ;;  %v5379_v43 = vpop.eup %5378  ;;  %v2915_v59 = vadd.f32 1.0, %v5377_v18 }
 0xbc0   :  { %5382 = vrcp.f32 %v2908_v39 }
 0xbc1   :  { %5384 = vrcp.f32 %v2915_v59 }
 0xbc9   :  { %v5381_v7 = vpop.eup %5380 }
 0xbca   :  { %v5383_v20 = vpop.eup %5382  ;;  %v2919_v15 = vmul.f32 %v5381_v7, %v5379_v43 }
 0xbcb   :  { %v2918_v2 = vmul.f32 %v5383_v20, %v6595_v61  ;;  %v5385_v45 = vpop.eup %5384 }
 0xbcd   :  { %v6637_v31 = vadd.f32 %v2919_v15, %v2918_v2 }
 0xbcf   :  { %5386 = vtanh.f32 %v6637_v31 }
 0xbd9   :  { %v5387_v49 = vpop.eup %5386 }
 0xbda   :  { %v2922_v25 = vmul.f32 %v5387_v49, %v5385_v45 }
 0xbdc   :  { %2924 = vst [vmem:[#allocation18 + $0x10] sm:$0xff] %v2922_v25  ;;  %2994 = vmatmul.mubr.f32.vlgmr.msra.gmra.mrb[22].mxu0 %v2922_v25  ;;  %3065 = vmatmul.mubr.f32.vlgmr.msra.gmra.mrb[22].mxu1 %v2922_v25 }
 0xbdd   :  { %4816 = vmatpush1.bf16.msra.mxu0 %v6395_v34  ;;  %4848 = vmatpush1.bf16.msra.mxu1 %v6398_v1 }
 0xbde   :  { %4818 = vmatprep.subr.bf16.mxu0 %v6403_v5  ;;  %4850 = vmatprep.subr.bf16.mxu1 %v6405_v30 }
 0xbdf   :  { %3169 = vmatprep.mubr.f32.mxu0 %v5711_v0  ;;  %3240 = vmatprep.mubr.f32.mxu1 %v5711_v0 }
 0xbe1   :  { %4820 = vmatpush1.bf16.msra.mxu0 %v6407_v17  ;;  %4852 = vmatpush1.bf16.msra.mxu1 %v6410_v8 }
 0xbe2   :  { %4822 = vmatprep.subr.bf16.mxu0 %v6415_v53  ;;  %4854 = vmatprep.subr.bf16.mxu1 %v6417_v3 }
 0xbe5   :  { %4824 = vmatpush1.bf16.msra.mxu0 %v6419_v6  ;;  %4856 = vmatpush1.bf16.msra.mxu1 %v6422_v16 }
 0xbe6   :  { %4826 = vmatprep.subr.bf16.mxu0 %v6427_v29  ;;  %4858 = vmatprep.subr.bf16.mxu1 %v6429_v44 }
 0xbe9   :  { %4828 = vmatpush1.bf16.msra.mxu0 %v6431_v48  ;;  %4860 = vmatpush1.bf16.msra.mxu1 %v6434_v4 }
 0xbea   :  { %4830 = vmatprep.subr.bf16.mxu0 %v6438_v22  ;;  %4862 = vmatprep.subr.bf16.mxu1 %v6440_v51 }
 0xbed   :  { %4832 = vmatpush1.bf16.msra.mxu0 %v6443_v27  ;;  %4864 = vmatpush1.bf16.msra.mxu1 %v6447_v38 }
 0xbee   :  { %4834 = vmatprep.subr.bf16.mxu0 %v6449_v57  ;;  %4866 = vmatprep.subr.bf16.mxu1 %v6451_v11 }
 0xbf1   :  { %4836 = vmatpush1.bf16.msra.mxu0 %v6454_v47  ;;  %4868 = vmatpush1.bf16.msra.mxu1 %v6458_v63 }
 0xbf2   :  { %4838 = vmatprep.subr.bf16.mxu0 %v6460_v10  ;;  %4870 = vmatprep.subr.bf16.mxu1 %v6463_v26 }
 0xbf5   :  { %4840 = vmatpush1.bf16.msra.mxu0 %v6466_v40  ;;  %4872 = vmatpush1.bf16.msra.mxu1 %v6470_v54 }
 0xbf6   :  { %4842 = vmatprep.subr.bf16.mxu0 %v6475_v14  ;;  %4874 = vmatprep.subr.bf16.mxu1 %v6477_v12 }
 0xbf9   :  { %4844 = vmatpush1.bf16.msra.mxu0 %v6479_v21  ;;  %4876 = vmatpush1.bf16.msra.mxu1 %v6482_v41 }
 0xbfa   :  { %4878 = vmatprep.subr.bf16.mxu0 %v6391_v46  ;;  %4910 = vmatprep.subr.bf16.mxu1 %v6393_v55 }
 0xcaf   :  { %v2995_v61 = vpop.f32.mrb[22].mxu0  ;;  %v3066_v52 = vpop.f32.mrb[22].mxu1 }
 0xcb0   :  { %v5107_v42 = vadd.f32 %v2995_v61, %v6535_v28  ;;  %v2997_v50 = vpop.f32.mrb[23].mxu0  ;;  %v3068_v56 = vpop.f32.mrb[23].mxu1  ;;  %v5123_v33 = vadd.f32 %v3066_v52, %v6550_v35 }
 0xcb1   :  { %v5108_v60 = vadd.f32 %v2997_v50, %v6539_v24  ;;  %v5124_v23 = vadd.f32 %v3068_v56, %v6545_v36 }
 0xcb2   :  { %v3902_v13 = vmul.f32 -1.442695, %v5107_v42 }
 0xcb3   :  { %v3903_v19 = vmul.f32 -1.442695, %v5108_v60  ;;  %v3904_v32 = vmul.f32 -1.442695, %v5124_v23 }
 0xcb4   :  { %5388 = vpow2.f32 %v3902_v13 }
 0xcb5   :  { %5390 = vpow2.f32 %v3903_v19 }
 0xcb6   :  { %5392 = vpow2.f32 %v3904_v32 }
 0xcb7   :  { %5394 = vtanh.f32 %v5123_v33 }
 0xcbe   :  { %v5389_v58 = vpop.eup %5388 }
 0xcbf   :  { %v5391_v62 = vpop.eup %5390  ;;  %v3078_v37 = vadd.f32 1.0, %v5389_v58 }
 0xcc0   :  { %v3084_v9 = vadd.f32 1.0, %v5391_v62  ;;  %v5393_v39 = vpop.eup %5392 }
 0xcc1   :  { %5396 = vrcp.f32 %v3078_v37  ;;  %v5395_v18 = vpop.eup %5394  ;;  %v3091_v15 = vadd.f32 1.0, %v5393_v39 }
 0xcc2   :  { %5398 = vrcp.f32 %v3084_v9 }
 0xcc3   :  { %5400 = vrcp.f32 %v3091_v15 }
 0xccb   :  { %v5397_v43 = vpop.eup %5396 }
 0xccc   :  { %v5399_v7 = vpop.eup %5398  ;;  %v3095_v20 = vmul.f32 %v5397_v43, %v5395_v18 }
 0xccd   :  { %v3094_v59 = vmul.f32 %v5399_v7, %v6637_v31  ;;  %v5401_v45 = vpop.eup %5400 }
 0xccf   :  { %v6679_v2 = vadd.f32 %v3095_v20, %v3094_v59 }
 0xcd1   :  { %5402 = vtanh.f32 %v6679_v2 }
 0xcdb   :  { %v5403_v49 = vpop.eup %5402 }
 0xcdc   :  { %v3098_v25 = vmul.f32 %v5403_v49, %v5401_v45 }
 0xcde   :  { %3100 = vst [vmem:[#allocation18 + $0x18] sm:$0xff] %v3098_v25  ;;  %3170 = vmatmul.mubr.f32.vlgmr.msra.gmra.mrb[24].mxu0 %v3098_v25  ;;  %3241 = vmatmul.mubr.f32.vlgmr.msra.gmra.mrb[24].mxu1 %v3098_v25 }
 0xcdf   :  { %4880 = vmatpush1.bf16.msra.mxu0 %v6395_v34  ;;  %4912 = vmatpush1.bf16.msra.mxu1 %v6398_v1 }
 0xce0   :  { %4882 = vmatprep.subr.bf16.mxu0 %v6403_v5  ;;  %4914 = vmatprep.subr.bf16.mxu1 %v6405_v30 }
 0xce1   :  { %3345 = vmatprep.mubr.f32.mxu0 %v5711_v0  ;;  %3416 = vmatprep.mubr.f32.mxu1 %v5711_v0 }
 0xce3   :  { %4884 = vmatpush1.bf16.msra.mxu0 %v6407_v17  ;;  %4916 = vmatpush1.bf16.msra.mxu1 %v6410_v8 }
 0xce4   :  { %4886 = vmatprep.subr.bf16.mxu0 %v6415_v53  ;;  %4918 = vmatprep.subr.bf16.mxu1 %v6417_v3 }
 0xce7   :  { %4888 = vmatpush1.bf16.msra.mxu0 %v6419_v6  ;;  %4920 = vmatpush1.bf16.msra.mxu1 %v6422_v16 }
 0xce8   :  { %4890 = vmatprep.subr.bf16.mxu0 %v6427_v29  ;;  %4922 = vmatprep.subr.bf16.mxu1 %v6429_v44 }
 0xceb   :  { %4892 = vmatpush1.bf16.msra.mxu0 %v6431_v48  ;;  %4924 = vmatpush1.bf16.msra.mxu1 %v6434_v4 }
 0xcec   :  { %4894 = vmatprep.subr.bf16.mxu0 %v6438_v22  ;;  %4926 = vmatprep.subr.bf16.mxu1 %v6440_v51 }
 0xcef   :  { %4896 = vmatpush1.bf16.msra.mxu0 %v6443_v27  ;;  %4928 = vmatpush1.bf16.msra.mxu1 %v6447_v38 }
 0xcf0   :  { %4898 = vmatprep.subr.bf16.mxu0 %v6449_v57  ;;  %4930 = vmatprep.subr.bf16.mxu1 %v6451_v11 }
 0xcf3   :  { %4900 = vmatpush1.bf16.msra.mxu0 %v6454_v47  ;;  %4932 = vmatpush1.bf16.msra.mxu1 %v6458_v63 }
 0xcf4   :  { %4902 = vmatprep.subr.bf16.mxu0 %v6460_v10  ;;  %4934 = vmatprep.subr.bf16.mxu1 %v6463_v26 }
 0xcf7   :  { %4904 = vmatpush1.bf16.msra.mxu0 %v6466_v40  ;;  %4936 = vmatpush1.bf16.msra.mxu1 %v6470_v54 }
 0xcf8   :  { %4906 = vmatprep.subr.bf16.mxu0 %v6475_v14  ;;  %4938 = vmatprep.subr.bf16.mxu1 %v6477_v12 }
 0xcfb   :  { %4908 = vmatpush1.bf16.msra.mxu0 %v6479_v21  ;;  %4940 = vmatpush1.bf16.msra.mxu1 %v6482_v41 }
 0xcfc   :  { %4942 = vmatprep.subr.bf16.mxu0 %v6391_v46  ;;  %4974 = vmatprep.subr.bf16.mxu1 %v6393_v55 }
 0xdb1   :  { %v3171_v31 = vpop.f32.mrb[24].mxu0  ;;  %v3242_v61 = vpop.f32.mrb[24].mxu1 }
 0xdb2   :  { %v5109_v52 = vadd.f32 %v3171_v31, %v6535_v28  ;;  %v3173_v42 = vpop.f32.mrb[25].mxu0  ;;  %v3244_v50 = vpop.f32.mrb[25].mxu1  ;;  %v5125_v32 = vadd.f32 %v3242_v61, %v6550_v35 }
 0xdb3   :  { %v5110_v56 = vadd.f32 %v3173_v42, %v6539_v24  ;;  %v5126_v19 = vadd.f32 %v3244_v50, %v6545_v36 }
 0xdb4   :  { %v3905_v60 = vmul.f32 -1.442695, %v5109_v52 }
 0xdb5   :  { %v3906_v13 = vmul.f32 -1.442695, %v5110_v56  ;;  %v3907_v23 = vmul.f32 -1.442695, %v5126_v19 }
 0xdb6   :  { %5404 = vpow2.f32 %v3905_v60 }
 0xdb7   :  { %5406 = vpow2.f32 %v3906_v13 }
 0xdb8   :  { %5408 = vpow2.f32 %v3907_v23 }
 0xdb9   :  { %5410 = vtanh.f32 %v5125_v32 }
 0xdc0   :  { %v5405_v33 = vpop.eup %5404 }
 0xdc1   :  { %v5407_v58 = vpop.eup %5406  ;;  %v3254_v62 = vadd.f32 1.0, %v5405_v33 }
 0xdc2   :  { %v3260_v37 = vadd.f32 1.0, %v5407_v58  ;;  %v5409_v9 = vpop.eup %5408 }
 0xdc3   :  { %5412 = vrcp.f32 %v3254_v62  ;;  %v5411_v39 = vpop.eup %5410  ;;  %v3267_v20 = vadd.f32 1.0, %v5409_v9 }
 0xdc4   :  { %5414 = vrcp.f32 %v3260_v37 }
 0xdc5   :  { %5416 = vrcp.f32 %v3267_v20 }
 0xdcd   :  { %v5413_v18 = vpop.eup %5412 }
 0xdce   :  { %v5415_v43 = vpop.eup %5414  ;;  %v3271_v7 = vmul.f32 %v5413_v18, %v5411_v39 }
 0xdcf   :  { %v3270_v15 = vmul.f32 %v5415_v43, %v6679_v2  ;;  %v5417_v45 = vpop.eup %5416 }
 0xdd1   :  { %v6721_v59 = vadd.f32 %v3271_v7, %v3270_v15 }
 0xdd3   :  { %5418 = vtanh.f32 %v6721_v59 }
 0xddd   :  { %v5419_v49 = vpop.eup %5418 }
 0xdde   :  { %v3274_v25 = vmul.f32 %v5419_v49, %v5417_v45 }
 0xde0   :  { %3276 = vst [vmem:[#allocation18 + $0x20] sm:$0xff] %v3274_v25  ;;  %3346 = vmatmul.mubr.f32.vlgmr.msra.gmra.mrb[26].mxu0 %v3274_v25  ;;  %3417 = vmatmul.mubr.f32.vlgmr.msra.gmra.mrb[26].mxu1 %v3274_v25 }
 0xde1   :  { %4944 = vmatpush1.bf16.msra.mxu0 %v6395_v34  ;;  %4976 = vmatpush1.bf16.msra.mxu1 %v6398_v1 }
 0xde2   :  { %4946 = vmatprep.subr.bf16.mxu0 %v6403_v5  ;;  %4978 = vmatprep.subr.bf16.mxu1 %v6405_v30 }
 0xde3   :  { %3521 = vmatprep.mubr.f32.mxu0 %v5711_v0  ;;  %3592 = vmatprep.mubr.f32.mxu1 %v5711_v0 }
 0xde5   :  { %4948 = vmatpush1.bf16.msra.mxu0 %v6407_v17  ;;  %4980 = vmatpush1.bf16.msra.mxu1 %v6410_v8 }
 0xde6   :  { %4950 = vmatprep.subr.bf16.mxu0 %v6415_v53  ;;  %4982 = vmatprep.subr.bf16.mxu1 %v6417_v3 }
 0xde9   :  { %4952 = vmatpush1.bf16.msra.mxu0 %v6419_v6  ;;  %4984 = vmatpush1.bf16.msra.mxu1 %v6422_v16 }
 0xdea   :  { %4954 = vmatprep.subr.bf16.mxu0 %v6427_v29  ;;  %4986 = vmatprep.subr.bf16.mxu1 %v6429_v44 }
 0xded   :  { %4956 = vmatpush1.bf16.msra.mxu0 %v6431_v48  ;;  %4988 = vmatpush1.bf16.msra.mxu1 %v6434_v4 }
 0xdee   :  { %4958 = vmatprep.subr.bf16.mxu0 %v6438_v22  ;;  %4990 = vmatprep.subr.bf16.mxu1 %v6440_v51 }
 0xdf1   :  { %4960 = vmatpush1.bf16.msra.mxu0 %v6443_v27  ;;  %4992 = vmatpush1.bf16.msra.mxu1 %v6447_v38 }
 0xdf2   :  { %4962 = vmatprep.subr.bf16.mxu0 %v6449_v57  ;;  %4994 = vmatprep.subr.bf16.mxu1 %v6451_v11 }
 0xdf5   :  { %4964 = vmatpush1.bf16.msra.mxu0 %v6454_v47  ;;  %4996 = vmatpush1.bf16.msra.mxu1 %v6458_v63 }
 0xdf6   :  { %4966 = vmatprep.subr.bf16.mxu0 %v6460_v10  ;;  %4998 = vmatprep.subr.bf16.mxu1 %v6463_v26 }
 0xdf9   :  { %4968 = vmatpush1.bf16.msra.mxu0 %v6466_v40  ;;  %5000 = vmatpush1.bf16.msra.mxu1 %v6470_v54 }
 0xdfa   :  { %4970 = vmatprep.subr.bf16.mxu0 %v6475_v14  ;;  %5002 = vmatprep.subr.bf16.mxu1 %v6477_v12 }
 0xdfd   :  { %4972 = vmatpush1.bf16.msra.mxu0 %v6479_v21  ;;  %5004 = vmatpush1.bf16.msra.mxu1 %v6482_v41 }
 0xdfe   :  { %5006 = vmatprep.subr.bf16.mxu0 %v6391_v46  ;;  %5038 = vmatprep.subr.bf16.mxu1 %v6393_v55 }
 0xeb3   :  { %v3347_v2 = vpop.f32.mrb[26].mxu0  ;;  %v3418_v31 = vpop.f32.mrb[26].mxu1 }
 0xeb4   :  { %v5111_v61 = vadd.f32 %v3347_v2, %v6535_v28  ;;  %v3349_v52 = vpop.f32.mrb[27].mxu0  ;;  %v3420_v42 = vpop.f32.mrb[27].mxu1  ;;  %v5127_v23 = vadd.f32 %v3418_v31, %v6550_v35 }
 0xeb5   :  { %v5112_v50 = vadd.f32 %v3349_v52, %v6539_v24  ;;  %v5128_v13 = vadd.f32 %v3420_v42, %v6545_v36 }
 0xeb6   :  { %v3908_v56 = vmul.f32 -1.442695, %v5111_v61 }
 0xeb7   :  { %v3909_v60 = vmul.f32 -1.442695, %v5112_v50  ;;  %v3910_v19 = vmul.f32 -1.442695, %v5128_v13 }
 0xeb8   :  { %5420 = vpow2.f32 %v3908_v56 }
 0xeb9   :  { %5422 = vpow2.f32 %v3909_v60 }
 0xeba   :  { %5424 = vpow2.f32 %v3910_v19 }
 0xebb   :  { %5426 = vtanh.f32 %v5127_v23 }
 0xec2   :  { %v5421_v46 = vpop.eup %5420 }
 0xec3   :  { %v5423_v32 = vpop.eup %5422  ;;  %v3430_v55 = vadd.f32 1.0, %v5421_v46 }
 0xec4   :  { %v3436_v33 = vadd.f32 1.0, %v5423_v32  ;;  %v5425_v58 = vpop.eup %5424 }
 0xec5   :  { %5428 = vrcp.f32 %v3430_v55  ;;  %v5427_v62 = vpop.eup %5426  ;;  %v3443_v18 = vadd.f32 1.0, %v5425_v58 }
 0xec6   :  { %5430 = vrcp.f32 %v3436_v33 }
 0xec7   :  { %5432 = vrcp.f32 %v3443_v18 }
 0xecf   :  { %v5429_v37 = vpop.eup %5428 }
 0xed0   :  { %v5431_v9 = vpop.eup %5430  ;;  %v3447_v39 = vmul.f32 %v5429_v37, %v5427_v62 }
 0xed1   :  { %v3446_v43 = vmul.f32 %v5431_v9, %v6721_v59  ;;  %v5433_v20 = vpop.eup %5432 }
 0xed3   :  { %v6763_v7 = vadd.f32 %v3447_v39, %v3446_v43 }
 0xed5   :  { %5434 = vtanh.f32 %v6763_v7 }
 0xedf   :  { %v5435_v15 = vpop.eup %5434 }
 0xee0   :  { %v3450_v45 = vmul.f32 %v5435_v15, %v5433_v20 }
 0xee2   :  { %3452 = vst [vmem:[#allocation18 + $0x28] sm:$0xff] %v3450_v45  ;;  %3522 = vmatmul.mubr.f32.vlgmr.msra.gmra.mrb[28].mxu0 %v3450_v45  ;;  %3593 = vmatmul.mubr.f32.vlgmr.msra.gmra.mrb[28].mxu1 %v3450_v45 }
 0xee3   :  { %5008 = vmatpush1.bf16.msra.mxu0 %v6395_v34  ;;  %5040 = vmatpush1.bf16.msra.mxu1 %v6398_v1 }
 0xee4   :  { %5010 = vmatprep.subr.bf16.mxu0 %v6403_v5  ;;  %5042 = vmatprep.subr.bf16.mxu1 %v6405_v30 }
 0xee5   :  { %3697 = vmatprep.mubr.f32.mxu0 %v5711_v0  ;;  %3768 = vmatprep.mubr.f32.mxu1 %v5711_v0 }
 0xee7   :  { %5012 = vmatpush1.bf16.msra.mxu0 %v6407_v17  ;;  %5044 = vmatpush1.bf16.msra.mxu1 %v6410_v8 }
 0xee8   :  { %5014 = vmatprep.subr.bf16.mxu0 %v6415_v53  ;;  %5046 = vmatprep.subr.bf16.mxu1 %v6417_v3 }
 0xeeb   :  { %5016 = vmatpush1.bf16.msra.mxu0 %v6419_v6  ;;  %5048 = vmatpush1.bf16.msra.mxu1 %v6422_v16 }
 0xeec   :  { %5018 = vmatprep.subr.bf16.mxu0 %v6427_v29  ;;  %5050 = vmatprep.subr.bf16.mxu1 %v6429_v44 }
 0xeef   :  { %5020 = vmatpush1.bf16.msra.mxu0 %v6431_v48  ;;  %5052 = vmatpush1.bf16.msra.mxu1 %v6434_v4 }
 0xef0   :  { %5022 = vmatprep.subr.bf16.mxu0 %v6438_v22  ;;  %5054 = vmatprep.subr.bf16.mxu1 %v6440_v51 }
 0xef3   :  { %5024 = vmatpush1.bf16.msra.mxu0 %v6443_v27  ;;  %5056 = vmatpush1.bf16.msra.mxu1 %v6447_v38 }
 0xef4   :  { %5026 = vmatprep.subr.bf16.mxu0 %v6449_v57  ;;  %5058 = vmatprep.subr.bf16.mxu1 %v6451_v11 }
 0xef7   :  { %5028 = vmatpush1.bf16.msra.mxu0 %v6454_v47  ;;  %5060 = vmatpush1.bf16.msra.mxu1 %v6458_v63 }
 0xef8   :  { %5030 = vmatprep.subr.bf16.mxu0 %v6460_v10  ;;  %5062 = vmatprep.subr.bf16.mxu1 %v6463_v26 }
 0xefb   :  { %5032 = vmatpush1.bf16.msra.mxu0 %v6466_v40  ;;  %5064 = vmatpush1.bf16.msra.mxu1 %v6470_v54 }
 0xefc   :  { %5034 = vmatprep.subr.bf16.mxu0 %v6475_v14  ;;  %5066 = vmatprep.subr.bf16.mxu1 %v6477_v12 }
 0xeff   :  { %5036 = vmatpush1.bf16.msra.mxu0 %v6479_v21  ;;  %5068 = vmatpush1.bf16.msra.mxu1 %v6482_v41 }
 0xfb5   :  { %v3523_v0 = vpop.f32.mrb[28].mxu0  ;;  %v3594_v34 = vpop.f32.mrb[28].mxu1 }
 0xfb6   :  { %v5113_v1 = vadd.f32 %v3523_v0, %v6535_v28  ;;  %v3525_v5 = vpop.f32.mrb[29].mxu0  ;;  %v3596_v30 = vpop.f32.mrb[29].mxu1  ;;  %v5129_v16 = vadd.f32 %v3594_v34, %v6550_v35 }
 0xfb7   :  { %v5114_v17 = vadd.f32 %v3525_v5, %v6539_v24  ;;  %v5130_v3 = vadd.f32 %v3596_v30, %v6545_v36 }
 0xfb8   :  { %v3911_v8 = vmul.f32 -1.442695, %v5113_v1 }
 0xfb9   :  { %v3912_v53 = vmul.f32 -1.442695, %v5114_v17  ;;  %v3913_v6 = vmul.f32 -1.442695, %v5130_v3 }
 0xfba   :  { %5436 = vpow2.f32 %v3911_v8 }
 0xfbb   :  { %5438 = vpow2.f32 %v3912_v53 }
 0xfbc   :  { %5440 = vpow2.f32 %v3913_v6 }
 0xfbd   :  { %5442 = vtanh.f32 %v5129_v16 }
 0xfc4   :  { %v5437_v29 = vpop.eup %5436 }
 0xfc5   :  { %v5439_v44 = vpop.eup %5438  ;;  %v3606_v48 = vadd.f32 1.0, %v5437_v29 }
 0xfc6   :  { %v3612_v4 = vadd.f32 1.0, %v5439_v44  ;;  %v5441_v22 = vpop.eup %5440 }
 0xfc7   :  { %5444 = vrcp.f32 %v3606_v48  ;;  %v5443_v51 = vpop.eup %5442  ;;  %v3619_v11 = vadd.f32 1.0, %v5441_v22 }
 0xfc8   :  { %5446 = vrcp.f32 %v3612_v4 }
 0xfc9   :  { %5448 = vrcp.f32 %v3619_v11 }
 0xfd1   :  { %v5445_v27 = vpop.eup %5444 }
 0xfd2   :  { %v5447_v38 = vpop.eup %5446  ;;  %v3623_v57 = vmul.f32 %v5445_v27, %v5443_v51 }
 0xfd3   :  { %v3622_v47 = vmul.f32 %v5447_v38, %v6763_v7  ;;  %v5449_v10 = vpop.eup %5448 }
 0xfd5   :  { %v3624_v63 = vadd.f32 %v3623_v57, %v3622_v47 }
 0xfd7   :  { %5450 = vtanh.f32 %v3624_v63 }
 0xfe1   :  { %v5451_v26 = vpop.eup %5450 }
 0xfe2   :  { %v3626_v40 = vmul.f32 %v5451_v26, %v5449_v10 }
 0xfe4   :  { %3628 = vst [vmem:[#allocation18 + $0x30] sm:$0xff] %v3626_v40  ;;  %3698 = vmatmul.mubr.f32.vlgmr.msra.gmra.mrb[30].mxu0 %v3626_v40  ;;  %3769 = vmatmul.mubr.f32.vlgmr.msra.gmra.mrb[30].mxu1 %v3626_v40 }
0x10b7   :  { %v3699_v54 = vpop.f32.mrb[30].mxu0  ;;  %v3770_v14 = vpop.f32.mrb[30].mxu1 }
0x10b8   :  { %v5115_v12 = vadd.f32 %v3699_v54, %v6535_v28  ;;  %v3701_v21 = vpop.f32.mrb[31].mxu0  ;;  %v3772_v41 = vpop.f32.mrb[31].mxu1  ;;  %v5131_v61 = vadd.f32 %v3770_v14, %v6550_v35 }
0x10b9   :  { %v5116_v59 = vadd.f32 %v3701_v21, %v6539_v24  ;;  %v5132_v2 = vadd.f32 %v3772_v41, %v6545_v36 }
0x10ba   :  { %v3914_v49 = vmul.f32 -1.442695, %v5115_v12 }
0x10bb   :  { %v3915_v25 = vmul.f32 -1.442695, %v5116_v59  ;;  %v3916_v31 = vmul.f32 -1.442695, %v5132_v2 }
0x10bc   :  { %5452 = vpow2.f32 %v3914_v49 }
0x10bd   :  { %5454 = vpow2.f32 %v3915_v25 }
0x10be   :  { %5456 = vpow2.f32 %v3916_v31 }
0x10bf   :  { %5458 = vtanh.f32 %v5131_v61 }
0x10c6   :  { %v5453_v52 = vpop.eup %5452 }
0x10c7   :  { %v5455_v42 = vpop.eup %5454  ;;  %v3782_v50 = vadd.f32 1.0, %v5453_v52 }
0x10c8   :  { %v3788_v56 = vadd.f32 1.0, %v5455_v42  ;;  %v5457_v28 = vpop.eup %5456 }
0x10c9   :  { %5460 = vrcp.f32 %v3782_v50  ;;  %v5459_v60 = vpop.eup %5458  ;;  %v3795_v23 = vadd.f32 1.0, %v5457_v28 }
0x10ca   :  { %5462 = vrcp.f32 %v3788_v56 }
0x10cb   :  { %5464 = vrcp.f32 %v3795_v23 }
0x10d3   :  { %v5461_v24 = vpop.eup %5460 }
0x10d4   :  { %v5463_v13 = vpop.eup %5462  ;;  %v3799_v19 = vmul.f32 %v5461_v24, %v5459_v60 }
0x10d5   :  { %v3798_v46 = vmul.f32 %v5463_v13, %v3624_v63  ;;  %v5465_v36 = vpop.eup %5464 }
0x10d7   :  { %v3800_v32 = vadd.f32 %v3799_v19, %v3798_v46 }
0x10d9   :  { %3817 = vst [vmem:[#allocation21 + $0x8] sm:$0xff] %v3800_v32  ;;  %5466 = vtanh.f32 %v3800_v32 }
0x10e3   :  { %v5467_v35 = vpop.eup %5466 }
0x10e4   :  { %v3802_v55 = vmul.f32 %v5467_v35, %v5465_v36 }
0x10e6   :  { %3804 = vst [vmem:[#allocation18 + $0x38] sm:$0xff] %v3802_v55  ;;  %3813 = vst [vmem:[#allocation19 + $0x8] sm:$0xff] %v3802_v55 }
0x10e7   :  { %5633 = shalt.err (!%p5630_p4)
}
0x10e8   :  { %s5634_s17 = scalar_lea.hbm %s6876_s10, 256 }
0x10e9   :  { %p5635_p5 = scmp.ne.s32.totalorder %s6876_s10, %s5634_s17  ;;  %p5638_p6 = scmp.lt.u32.totalorder %s5634_s17, %s6876_s10 }
0x10eb   :  { %p5640_p7 = pnand %p5638_p6, %p5635_p5 }
0x10ed   :  { %5643 = shalt.err (!%p5640_p7)
}
0x10ee   :  { %3841 = dma.vmem_to_hbm [thread:$0]  %s3836_s14, 256, %s6876_s10, [#allocation20], %s5702_s29, %s5702_s29, %s5703_s30  }
0x10ef   :  { %s5644_s0 = scalar_lea.vmem %s6807_s6, 1024  ;;  %p5649_p9 = scmp.lt.s32.totalorder %s6807_s6, %s6807_s6 }
0x10f0   :  { %p5645_p8 = scmp.ne.s32.totalorder %s6807_s6, %s5644_s0  ;;  %p5650_p10 = scmp.lt.s32.totalorder %s5644_s0, %s5644_s0 }
0x10f2   :  { %p5651_p11 = por %p5650_p10, %p5649_p9 }
0x10f4   :  { %p5652_p12 = pnand %p5651_p11, %p5645_p8 }
0x10f6   :  { %5655 = shalt.err (!%p5652_p12)
}
0x10f7   :  { %s5656_s13 = scalar_lea.hbm %s6875_s9, 1024 }
0x10f8   :  { %p5657_p13 = scmp.ne.s32.totalorder %s6875_s9, %s5656_s13  ;;  %p5660_p0 = scmp.lt.u32.totalorder %s5656_s13, %s6875_s9 }
0x10fa   :  { %p5662_p1 = pnand %p5660_p0, %p5657_p13 }
0x10fc   :  { %5665 = shalt.err (!%p5662_p1)
}
0x10fd   :  { %3829 = dma.vmem_to_hbm [thread:$0]  %s6807_s6, 1024, %s6875_s9, [#allocation8], %s5702_s29, %s5702_s29, %s5703_s30  }
0x10fe   :  { %s5666_s18 = scalar_lea.vmem %s6809_s16, 256  ;;  %p5671_p3 = scmp.lt.s32.totalorder %s6809_s16, %s6809_s16 }
0x10ff   :  { %p5667_p2 = scmp.ne.s32.totalorder %s6809_s16, %s5666_s18  ;;  %p5672_p4 = scmp.lt.s32.totalorder %s5666_s18, %s5666_s18 }
0x1101   :  { %p5673_p5 = por %p5672_p4, %p5671_p3 }
0x1103   :  { %p5674_p6 = pnand %p5673_p5, %p5667_p2 }
0x1105   :  { %5677 = shalt.err (!%p5674_p6)
}
0x1106   :  { %s5678_s15 = scalar_lea.hbm %s6877_s11, 256 }
0x1107   :  { %p5679_p7 = scmp.ne.s32.totalorder %s6877_s11, %s5678_s15  ;;  %p5682_p8 = scmp.lt.u32.totalorder %s5678_s15, %s6877_s11 }
0x1109   :  { %p5684_p9 = pnand %p5682_p8, %p5679_p7 }
0x110b   :  { %5687 = shalt.err (!%p5684_p9)
}
0x110c   :  { %3853 = dma.vmem_to_hbm [thread:$0]  %s6809_s16, 256, %s6877_s11, [#allocation20], %s5702_s29, %s5702_s29, %s5703_s30  }
0x110d   :  { %5696 = dma.done.wait [#allocation8], 1024  }
0x110e   :  { %5697 = vsyncadd [#allocation8], 4294966272 }
0x110f   :  { %5698 = dma.done.wait [#allocation20], 512  }
0x1110   :  { %5699 = vsyncadd [#allocation20], 4294966784 }
0x1111   :  { %3863 = vsyncpa [#allocation7], 1 }
0x1112   :  { %3864 = vsyncpa [#allocation10], 1 }
0x1113   :  { %3865 = vsyncpa [#allocation13], 1 }
0x1114   :  { %3866 = vsyncpa [#allocation16], 1 }
0x1115   :  { %3867 = vsyncpa [#allocation8], 1 }
0x1116   :  { %3868 = vsyncpa [#allocation20], 1 }

// kernel: tpu_custom_call.1
= control target key start
LH: loop header
LB: loop body
LE: loop exit
PB: predicated region body
PF: predicated region fallthrough
CT: control target
= control target key end

     0   :  { %17 = vsyncpa [#allocation7], 0  ;;  %s6866_s0 = inlined_call_operand.hbm [shape: f32[8,8,128], index: 0, kind: input, shape index: {}]   ;;  %s6867_s1 = inlined_call_operand.hbm [shape: f32[2,8,128], index: 1, kind: input, shape index: {}]   ;;  %s6868_s2 = inlined_call_operand.hbm [shape: f32[2,8,128], index: 2, kind: input, shape index: {}]   ;;  %s6869_s3 = inlined_call_operand.hbm [shape: f32[128,512], index: 3, kind: input, shape index: {}]   ;;  %s6870_s4 = inlined_call_operand.hbm [shape: f32[128,512], index: 4, kind: input, shape index: {}]   ;;  %s6871_s5 = inlined_call_operand.vmem [shape: f32[1,512], index: 5, kind: input, shape index: {}]   ;;  %s6872_s6 = inlined_call_operand.hbm [shape: f32[128,512], index: 6, kind: input, shape index: {}]   ;;  %s6873_s7 = inlined_call_operand.hbm [shape: f32[128,512], index: 7, kind: input, shape index: {}]   ;;  %s6874_s8 = inlined_call_operand.vmem [shape: f32[1,512], index: 8, kind: input, shape index: {}]   ;;  %s6875_s9 = inlined_call_operand.hbm [shape: f32[8,8,128], index: 9, kind: output, shape index: {0}]   ;;  %s6876_s10 = inlined_call_operand.hbm [shape: f32[2,8,128], index: 10, kind: output, shape index: {1}]   ;;  %s6877_s11 = inlined_call_operand.hbm [shape: f32[2,8,128], index: 11, kind: output, shape index: {2}]  }
   0x1   :  { %18 = vsyncpa [#allocation10], 0 }
   0x2   :  { %19 = vsyncpa [#allocation13], 0 }
   0x3   :  { %20 = vsyncpa [#allocation16], 0 }
   0x4   :  { %21 = vsyncpa [#allocation8], 0 }
   0x5   :  { %22 = vsyncpa [#allocation20], 0  ;;  %s5700_s17 = smov [#allocation9]   ;;  %s5701_s19 = smov [#allocation12]  }
   0x6   :  { %s40_s18 = sshll.u32 %s5700_s17, 4  ;;  %s64_s20 = sshll.u32 %s5701_s19, 4  ;;  %s41_s18 = int_to_ptr.vmem [resolvable:$true] %s40_s18  ;;  %s5775_s20 = int_to_ptr.vmem [resolvable:$true] %s64_s20 }
   0x7   :  { %s5468_s23 = scalar_lea.hbm %s6867_s1, 256 }
   0x8   :  { %p5469_p0 = scmp.ne.s32.totalorder %s6867_s1, %s5468_s23  ;;  %p5472_p1 = scmp.lt.u32.totalorder %s5468_s23, %s6867_s1 }
   0xa   :  { %p5474_p2 = pnand %p5472_p1, %p5469_p0 }
   0xc   :  { %5477 = shalt.err (!%p5474_p2)
}
   0xd   :  { %s5478_s28 = scalar_lea.vmem %s41_s18, 256  ;;  %p5483_p4 = scmp.lt.s32.totalorder %s41_s18, %s41_s18 }
   0xe   :  { %p5479_p3 = scmp.ne.s32.totalorder %s41_s18, %s5478_s28  ;;  %p5484_p5 = scmp.lt.s32.totalorder %s5478_s28, %s5478_s28 }
  0x10   :  { %p5485_p6 = por %p5484_p5, %p5483_p4 }
  0x12   :  { %p5486_p7 = pnand %p5485_p6, %p5479_p3 }
  0x14   :  { %5489 = shalt.err (!%p5486_p7)
}
  0x15   :  { %s5702_s29 = smov 128   ;;  %s5703_s30 = smov 8  }
  0x16   :  { %46 = dma.hbm_to_vmem [thread:$0]  %s6867_s1, 256, %s41_s18, [#allocation10], %s5702_s29, %s5702_s29, %s5703_s30  }
  0x17   :  { %s5490_s16 = scalar_lea.hbm %s6869_s3, 8192 }
  0x18   :  { %p5491_p8 = scmp.ne.s32.totalorder %s6869_s3, %s5490_s16  ;;  %p5494_p9 = scmp.lt.u32.totalorder %s5490_s16, %s6869_s3 }
  0x1a   :  { %p5496_p10 = pnand %p5494_p9, %p5491_p8 }
  0x1c   :  { %5499 = shalt.err (!%p5496_p10)
}
  0x1d   :  { %s5500_s23 = scalar_lea.vmem %s5775_s20, 8192  ;;  %p5505_p12 = scmp.lt.s32.totalorder %s5775_s20, %s5775_s20 }
  0x1e   :  { %p5501_p11 = scmp.ne.s32.totalorder %s5775_s20, %s5500_s23  ;;  %p5506_p13 = scmp.lt.s32.totalorder %s5500_s23, %s5500_s23 }
  0x20   :  { %p5507_p0 = por %p5506_p13, %p5505_p12 }
  0x22   :  { %p5508_p1 = pnand %p5507_p0, %p5501_p11 }
  0x24   :  { %5511 = shalt.err (!%p5508_p1)
}
  0x25   :  { %s5704_s1 = smov 512   ;;  %s5705_s18 = smov 32  }
  0x26   :  { %70 = dma.hbm_to_vmem [thread:$0]  %s6869_s3, 8192, %s5775_s20, [#allocation13], %s5704_s1, %s5704_s1, %s5705_s18  }
  0x27   :  { %s5706_s26 = smov [#allocation15]   ;;  %s5707_s28 = smov [#allocation6]  }
  0x28   :  { %s90_s27 = sshll.u32 %s5706_s26, 4  ;;  %s28_s12 = sshll.u32 %s5707_s28, 4  ;;  %s91_s27 = int_to_ptr.vmem [resolvable:$true] %s90_s27  ;;  %s5812_s12 = int_to_ptr.vmem [resolvable:$true] %s28_s12 }
  0x29   :  { %s5512_s15 = scalar_lea.hbm %s6872_s6, 8192 }
  0x2a   :  { %p5513_p2 = scmp.ne.s32.totalorder %s6872_s6, %s5512_s15  ;;  %p5516_p3 = scmp.lt.u32.totalorder %s5512_s15, %s6872_s6 }
  0x2c   :  { %p5518_p4 = pnand %p5516_p3, %p5513_p2 }
  0x2e   :  { %5521 = shalt.err (!%p5518_p4)
}
  0x2f   :  { %s5522_s3 = scalar_lea.vmem %s91_s27, 8192  ;;  %p5527_p6 = scmp.lt.s32.totalorder %s91_s27, %s91_s27 }
  0x30   :  { %p5523_p5 = scmp.ne.s32.totalorder %s91_s27, %s5522_s3  ;;  %p5528_p7 = scmp.lt.s32.totalorder %s5522_s3, %s5522_s3 }
  0x32   :  { %p5529_p8 = por %p5528_p7, %p5527_p6 }
  0x34   :  { %p5530_p9 = pnand %p5529_p8, %p5523_p5 }
  0x36   :  { %5533 = shalt.err (!%p5530_p9)
}
  0x37   :  { %96 = dma.hbm_to_vmem [thread:$0]  %s6872_s6, 8192, %s91_s27, [#allocation16], %s5704_s1, %s5704_s1, %s5705_s18  }
  0x38   :  { %s5534_s25 = scalar_lea.hbm %s6866_s0, 1024 }
  0x39   :  { %p5535_p10 = scmp.ne.s32.totalorder %s6866_s0, %s5534_s25  ;;  %p5538_p11 = scmp.lt.u32.totalorder %s5534_s25, %s6866_s0 }
  0x3b   :  { %p5540_p12 = pnand %p5538_p11, %p5535_p10 }
  0x3d   :  { %5543 = shalt.err (!%p5540_p12)
}
  0x3e   :  { %s5544_s15 = scalar_lea.vmem %s5812_s12, 1024  ;;  %p5549_p0 = scmp.lt.s32.totalorder %s5812_s12, %s5812_s12 }
  0x3f   :  { %p5545_p13 = scmp.ne.s32.totalorder %s5812_s12, %s5544_s15  ;;  %p5550_p1 = scmp.lt.s32.totalorder %s5544_s15, %s5544_s15 }
  0x41   :  { %p5551_p2 = por %p5550_p1, %p5549_p0 }
  0x43   :  { %p5552_p3 = pnand %p5551_p2, %p5545_p13 }
  0x45   :  { %5555 = shalt.err (!%p5552_p3)
}
  0x46   :  { %34 = dma.hbm_to_vmem [thread:$0]  %s6866_s0, 1024, %s5812_s12, [#allocation7], %s5702_s29, %s5702_s29, %s5703_s30  }
  0x47   :  { %s5708_s16 = smov [#allocation11]   ;;  %s5709_s19 = smov [#allocation14]  }
  0x48   :  { %s52_s17 = sshll.u32 %s5708_s16, 4  ;;  %s76_s21 = sshll.u32 %s5709_s19, 4  ;;  %s53_s17 = int_to_ptr.vmem [resolvable:$true] %s52_s17  ;;  %s5849_s21 = int_to_ptr.vmem [resolvable:$true] %s76_s21 }
  0x49   :  { %s5556_s22 = scalar_lea.hbm %s6868_s2, 256 }
  0x4a   :  { %p5557_p4 = scmp.ne.s32.totalorder %s6868_s2, %s5556_s22  ;;  %p5560_p5 = scmp.lt.u32.totalorder %s5556_s22, %s6868_s2 }
  0x4c   :  { %p5562_p6 = pnand %p5560_p5, %p5557_p4 }
  0x4e   :  { %5565 = shalt.err (!%p5562_p6)
}
  0x4f   :  { %s5566_s0 = scalar_lea.vmem %s53_s17, 256  ;;  %p5571_p8 = scmp.lt.s32.totalorder %s53_s17, %s53_s17 }
  0x50   :  { %p5567_p7 = scmp.ne.s32.totalorder %s53_s17, %s5566_s0  ;;  %p5572_p9 = scmp.lt.s32.totalorder %s5566_s0, %s5566_s0 }
  0x52   :  { %p5573_p10 = por %p5572_p9, %p5571_p8 }
  0x54   :  { %p5574_p11 = pnand %p5573_p10, %p5567_p7 }
  0x56   :  { %5577 = shalt.err (!%p5574_p11)
}
  0x57   :  { %58 = dma.hbm_to_vmem [thread:$0]  %s6868_s2, 256, %s53_s17, [#allocation10], %s5702_s29, %s5702_s29, %s5703_s30  }
  0x58   :  { %s5578_s15 = scalar_lea.hbm %s6870_s4, 8192 }
  0x59   :  { %p5579_p12 = scmp.ne.s32.totalorder %s6870_s4, %s5578_s15  ;;  %p5582_p13 = scmp.lt.u32.totalorder %s5578_s15, %s6870_s4 }
  0x5b   :  { %p5584_p0 = pnand %p5582_p13, %p5579_p12 }
  0x5d   :  { %5587 = shalt.err (!%p5584_p0)
}
  0x5e   :  { %s5588_s3 = scalar_lea.vmem %s5849_s21, 8192  ;;  %p5593_p2 = scmp.lt.s32.totalorder %s5849_s21, %s5849_s21 }
  0x5f   :  { %p5589_p1 = scmp.ne.s32.totalorder %s5849_s21, %s5588_s3  ;;  %p5594_p3 = scmp.lt.s32.totalorder %s5588_s3, %s5588_s3 }
  0x61   :  { %p5595_p4 = por %p5594_p3, %p5593_p2 }
  0x63   :  { %p5596_p5 = pnand %p5595_p4, %p5589_p1 }
  0x65   :  { %5599 = shalt.err (!%p5596_p5)
}
  0x66   :  { %82 = dma.hbm_to_vmem [thread:$0]  %s6870_s4, 8192, %s5849_s21, [#allocation13], %s5704_s1, %s5704_s1, %s5705_s18  }
  0x67   :  { %s5710_s20 = smov [#allocation17]   ;;  %s5600_s25 = scalar_lea.hbm %s6873_s7, 8192 }
  0x68   :  { %s102_s22 = sshll.u32 %s5710_s20, 4  ;;  %p5601_p6 = scmp.ne.s32.totalorder %s6873_s7, %s5600_s25  ;;  %s103_s22 = int_to_ptr.vmem [resolvable:$true] %s102_s22 }
  0x69   :  { %p5604_p7 = scmp.lt.u32.totalorder %s5600_s25, %s6873_s7 }
  0x6b   :  { %p5606_p8 = pnand %p5604_p7, %p5601_p6 }
  0x6d   :  { %5609 = shalt.err (!%p5606_p8)
}
  0x6e   :  { %s5610_s13 = scalar_lea.vmem %s103_s22, 8192  ;;  %p5615_p10 = scmp.lt.s32.totalorder %s103_s22, %s103_s22 }
  0x6f   :  { %p5611_p9 = scmp.ne.s32.totalorder %s103_s22, %s5610_s13  ;;  %p5616_p11 = scmp.lt.s32.totalorder %s5610_s13, %s5610_s13 }
  0x71   :  { %p5617_p12 = por %p5616_p11, %p5615_p10 }
  0x73   :  { %p5618_p13 = pnand %p5617_p12, %p5611_p9 }
  0x75   :  { %5621 = shalt.err (!%p5618_p13)
}
  0x76   :  { %108 = dma.hbm_to_vmem [thread:$0]  %s6873_s7, 8192, %s103_s22, [#allocation16], %s5704_s1, %s5704_s1, %s5705_s18  }
  0x77   :  { %5688 = dma.done.wait [#allocation7], 1024  }
  0x78   :  { %5689 = vsyncadd [#allocation7], 4294966272 }
  0x79   :  { %5690 = dma.done.wait [#allocation10], 512  }
  0x7a   :  { %5691 = vsyncadd [#allocation10], 4294966784 }
  0x7b   :  { %5692 = dma.done.wait [#allocation13], 16384  }
  0x7c   :  { %5693 = vsyncadd [#allocation13], 4294950912 }
  0x7d   :  { %5694 = dma.done.wait [#allocation16], 16384  }
  0x7e   :  { %5695 = vsyncadd [#allocation16], 4294950912  ;;  %v5711_v0 = vmov 0.0   ;;  %v153_v1 = vld [vmem:[#allocation12 + $0x8] sm:$0xff]  ;;  %v155_v3 = vld [vmem:[#allocation12 + $0x18] sm:$0xff]  ;;  %s5713_s15 = smov [#allocation18]  }
  0x7f   :  { %302 = vmatprep.mubr.f32.mxu0 %v5711_v0  ;;  %415 = vmatprep.mubr.f32.mxu1 %v5711_v0  ;;  %v157_v2 = vld [vmem:[#allocation12 + $0x28] sm:$0xff]  ;;  %v159_v5 = vld [vmem:[#allocation12 + $0x38] sm:$0xff]  ;;  %v152_v6 = vld [vmem:[#allocation12] sm:$0xff]  ;;  %s3823_s6 = sshll.u32 %s5713_s15, 4  ;;  %s5714_s27 = smov [#allocation21]   ;;  %s6807_s6 = int_to_ptr.vmem [resolvable:$true] %s3823_s6 }
  0x80   :  { %v3917_v4 = vpack.c.bf16 %v157_v2, %v153_v1  ;;  %v156_v7 = vld [vmem:[#allocation12 + $0x20] sm:$0xff]  ;;  %v3949_v8 = vpack.c.bf16 %v159_v5, %v155_v3  ;;  %v154_v10 = vld [vmem:[#allocation12 + $0x10] sm:$0xff]  ;;  %v161_v12 = vld [vmem:[#allocation12 + $0x48] sm:$0xff]  ;;  %s3847_s16 = sshll.u32 %s5714_s27, 4  ;;  %s6809_s16 = int_to_ptr.vmem [resolvable:$true] %s3847_s16 }
  0x81   :  { %v3919_v9 = vpack.c.bf16 %v156_v7, %v152_v6  ;;  %v158_v11 = vld [vmem:[#allocation12 + $0x30] sm:$0xff]  ;;  %v165_v14 = vld [vmem:[#allocation12 + $0x68] sm:$0xff]  ;;  %v163_v15 = vld [vmem:[#allocation12 + $0x58] sm:$0xff] }
  0x82   :  { %3918 = vmatprep.subr.bf16.mxu0 %v3917_v4  ;;  %v3951_v13 = vpack.c.bf16 %v158_v11, %v154_v10  ;;  %v167_v16 = vld [vmem:[#allocation12 + $0x78] sm:$0xff]  ;;  %3950 = vmatprep.subr.bf16.mxu1 %v3949_v8  ;;  %v3921_v17 = vpack.c.bf16 %v165_v14, %v161_v12  ;;  %v160_v19 = vld [vmem:[#allocation12 + $0x40] sm:$0xff]  ;;  %v162_v21 = vld [vmem:[#allocation12 + $0x50] sm:$0xff] }
  0x83   :  { %3920 = vmatpush1.bf16.msra.mxu0 %v3919_v9  ;;  %v3953_v18 = vpack.c.bf16 %v167_v16, %v163_v15  ;;  %v164_v20 = vld [vmem:[#allocation12 + $0x60] sm:$0xff]  ;;  %v166_v23 = vld [vmem:[#allocation12 + $0x70] sm:$0xff]  ;;  %v169_v24 = vld [vmem:[#allocation12 + $0x88] sm:$0xff] }
  0x84   :  { %3952 = vmatpush1.bf16.msra.mxu1 %v3951_v13  ;;  %v3923_v22 = vpack.c.bf16 %v164_v20, %v160_v19  ;;  %v173_v25 = vld [vmem:[#allocation12 + $0xa8] sm:$0xff]  ;;  %3922 = vmatprep.subr.bf16.mxu0 %v3921_v17  ;;  %v3955_v26 = vpack.c.bf16 %v166_v23, %v162_v21  ;;  %v171_v28 = vld [vmem:[#allocation12 + $0x98] sm:$0xff]  ;;  %v168_v30 = vld [vmem:[#allocation12 + $0x80] sm:$0xff] }
  0x85   :  { %3954 = vmatprep.subr.bf16.mxu1 %v3953_v18  ;;  %v3925_v27 = vpack.c.bf16 %v173_v25, %v169_v24  ;;  %v175_v29 = vld [vmem:[#allocation12 + $0xb8] sm:$0xff]  ;;  %v172_v32 = vld [vmem:[#allocation12 + $0xa0] sm:$0xff]  ;;  %v170_v33 = vld [vmem:[#allocation12 + $0x90] sm:$0xff] }
  0x86   :  { %v3957_v31 = vpack.c.bf16 %v175_v29, %v171_v28  ;;  %v174_v34 = vld [vmem:[#allocation12 + $0xb0] sm:$0xff]  ;;  %v3927_v35 = vpack.c.bf16 %v172_v32, %v168_v30  ;;  %v177_v36 = vld [vmem:[#allocation12 + $0xc8] sm:$0xff]  ;;  %v179_v38 = vld [vmem:[#allocation12 + $0xd8] sm:$0xff] }
  0x87   :  { %3924 = vmatpush1.bf16.msra.mxu0 %v3923_v22  ;;  %v181_v37 = vld [vmem:[#allocation12 + $0xe8] sm:$0xff]  ;;  %v3959_v39 = vpack.c.bf16 %v174_v34, %v170_v33  ;;  %v183_v41 = vld [vmem:[#allocation12 + $0xf8] sm:$0xff]  ;;  %v176_v42 = vld [vmem:[#allocation12 + $0xc0] sm:$0xff] }
  0x88   :  { %3956 = vmatpush1.bf16.msra.mxu1 %v3955_v26  ;;  %3926 = vmatprep.subr.bf16.mxu0 %v3925_v27  ;;  %v3929_v40 = vpack.c.bf16 %v181_v37, %v177_v36  ;;  %v180_v43 = vld [vmem:[#allocation12 + $0xe0] sm:$0xff]  ;;  %v3961_v44 = vpack.c.bf16 %v183_v41, %v179_v38  ;;  %v178_v45 = vld [vmem:[#allocation12 + $0xd0] sm:$0xff]  ;;  %v185_v47 = vld [vmem:[#allocation12 + $0x108] sm:$0xff] }
  0x89   :  { %3958 = vmatprep.subr.bf16.mxu1 %v3957_v31  ;;  %v182_v46 = vld [vmem:[#allocation12 + $0xf0] sm:$0xff]  ;;  %v189_v48 = vld [vmem:[#allocation12 + $0x128] sm:$0xff]  ;;  %v187_v49 = vld [vmem:[#allocation12 + $0x118] sm:$0xff]  ;;  %v3931_v51 = vpack.c.bf16 %v180_v43, %v176_v42 }
  0x8a   :  { %v191_v50 = vld [vmem:[#allocation12 + $0x138] sm:$0xff]  ;;  %v3963_v52 = vpack.c.bf16 %v182_v46, %v178_v45  ;;  %v3933_v53 = vpack.c.bf16 %v189_v48, %v185_v47  ;;  %v184_v54 = vld [vmem:[#allocation12 + $0x100] sm:$0xff]  ;;  %v186_v56 = vld [vmem:[#allocation12 + $0x110] sm:$0xff] }
  0x8b   :  { %3928 = vmatpush1.bf16.msra.mxu0 %v3927_v35  ;;  %v188_v55 = vld [vmem:[#allocation12 + $0x120] sm:$0xff]  ;;  %v3965_v57 = vpack.c.bf16 %v191_v50, %v187_v49  ;;  %v190_v58 = vld [vmem:[#allocation12 + $0x130] sm:$0xff]  ;;  %v193_v59 = vld [vmem:[#allocation12 + $0x148] sm:$0xff] }
  0x8c   :  { %3960 = vmatpush1.bf16.msra.mxu1 %v3959_v39  ;;  %3930 = vmatprep.subr.bf16.mxu0 %v3929_v40  ;;  %v197_v60 = vld [vmem:[#allocation12 + $0x168] sm:$0xff]  ;;  %v195_v61 = vld [vmem:[#allocation12 + $0x158] sm:$0xff]  ;;  %v3935_v63 = vpack.c.bf16 %v188_v55, %v184_v54  ;;  %v3967_v1 = vpack.c.bf16 %v190_v58, %v186_v56  ;;  %v192_v3 = vld [vmem:[#allocation12 + $0x140] sm:$0xff] }
  0x8d   :  { %3962 = vmatprep.subr.bf16.mxu1 %v3961_v44  ;;  %v199_v62 = vld [vmem:[#allocation12 + $0x178] sm:$0xff]  ;;  %v3937_v2 = vpack.c.bf16 %v197_v60, %v193_v59  ;;  %v196_v4 = vld [vmem:[#allocation12 + $0x160] sm:$0xff]  ;;  %v194_v5 = vld [vmem:[#allocation12 + $0x150] sm:$0xff] }
  0x8e   :  { %v3969_v6 = vpack.c.bf16 %v199_v62, %v195_v61  ;;  %v198_v7 = vld [vmem:[#allocation12 + $0x170] sm:$0xff]  ;;  %v201_v8 = vld [vmem:[#allocation12 + $0x188] sm:$0xff]  ;;  %v203_v10 = vld [vmem:[#allocation12 + $0x198] sm:$0xff]  ;;  %v3939_v12 = vpack.c.bf16 %v196_v4, %v192_v3 }
  0x8f   :  { %3932 = vmatpush1.bf16.msra.mxu0 %v3931_v51  ;;  %v205_v9 = vld [vmem:[#allocation12 + $0x1a8] sm:$0xff]  ;;  %v207_v11 = vld [vmem:[#allocation12 + $0x1b8] sm:$0xff]  ;;  %v3971_v13 = vpack.c.bf16 %v198_v7, %v194_v5  ;;  %v200_v15 = vld [vmem:[#allocation12 + $0x180] sm:$0xff] }
  0x90   :  { %3964 = vmatpush1.bf16.msra.mxu1 %v3963_v52  ;;  %3934 = vmatprep.subr.bf16.mxu0 %v3933_v53  ;;  %v3941_v14 = vpack.c.bf16 %v205_v9, %v201_v8  ;;  %v204_v16 = vld [vmem:[#allocation12 + $0x1a0] sm:$0xff]  ;;  %v202_v17 = vld [vmem:[#allocation12 + $0x190] sm:$0xff]  ;;  %v3973_v18 = vpack.c.bf16 %v207_v11, %v203_v10  ;;  %v209_v20 = vld [vmem:[#allocation12 + $0x1c8] sm:$0xff] }
  0x91   :  { %3966 = vmatprep.subr.bf16.mxu1 %v3965_v57  ;;  %v206_v19 = vld [vmem:[#allocation12 + $0x1b0] sm:$0xff]  ;;  %v213_v21 = vld [vmem:[#allocation12 + $0x1e8] sm:$0xff]  ;;  %v211_v22 = vld [vmem:[#allocation12 + $0x1d8] sm:$0xff]  ;;  %v3943_v24 = vpack.c.bf16 %v204_v16, %v200_v15 }
  0x92   :  { %v215_v23 = vld [vmem:[#allocation12 + $0x1f8] sm:$0xff]  ;;  %v3975_v25 = vpack.c.bf16 %v206_v19, %v202_v17  ;;  %v3945_v26 = vpack.c.bf16 %v213_v21, %v209_v20  ;;  %v208_v27 = vld [vmem:[#allocation12 + $0x1c0] sm:$0xff]  ;;  %v210_v29 = vld [vmem:[#allocation12 + $0x1d0] sm:$0xff] }
  0x93   :  { %3936 = vmatpush1.bf16.msra.mxu0 %v3935_v63  ;;  %v212_v28 = vld [vmem:[#allocation12 + $0x1e0] sm:$0xff]  ;;  %v3977_v30 = vpack.c.bf16 %v215_v23, %v211_v22  ;;  %v214_v31 = vld [vmem:[#allocation12 + $0x1f0] sm:$0xff]  ;;  %v497_v32 = vld [vmem:[#allocation14 + $0x8] sm:$0xff] }
  0x94   :  { %3968 = vmatpush1.bf16.msra.mxu1 %v3967_v1  ;;  %3938 = vmatprep.subr.bf16.mxu0 %v3937_v2  ;;  %v501_v33 = vld [vmem:[#allocation14 + $0x28] sm:$0xff]  ;;  %v499_v34 = vld [vmem:[#allocation14 + $0x18] sm:$0xff]  ;;  %v3947_v36 = vpack.c.bf16 %v212_v28, %v208_v27  ;;  %v3979_v37 = vpack.c.bf16 %v214_v31, %v210_v29  ;;  %v496_v39 = vld [vmem:[#allocation14] sm:$0xff] }
  0x95   :  { %3970 = vmatprep.subr.bf16.mxu1 %v3969_v6  ;;  %v503_v35 = vld [vmem:[#allocation14 + $0x38] sm:$0xff]  ;;  %v5903_v38 = vpack.c.bf16 %v501_v33, %v497_v32  ;;  %v500_v40 = vld [vmem:[#allocation14 + $0x20] sm:$0xff]  ;;  %v498_v42 = vld [vmem:[#allocation14 + $0x10] sm:$0xff] }
  0x96   :  { %v5905_v41 = vpack.c.bf16 %v503_v35, %v499_v34  ;;  %v502_v43 = vld [vmem:[#allocation14 + $0x30] sm:$0xff]  ;;  %v505_v44 = vld [vmem:[#allocation14 + $0x48] sm:$0xff]  ;;  %v144_v46 = vld [vmem:[#allocation6] sm:$0xff]  ;;  %v5907_v47 = vpack.c.bf16 %v500_v40, %v496_v39 }
  0x97   :  { %3940 = vmatpush1.bf16.msra.mxu0 %v3939_v12  ;;  %v509_v45 = vld [vmem:[#allocation14 + $0x68] sm:$0xff]  ;;  %v507_v48 = vld [vmem:[#allocation14 + $0x58] sm:$0xff]  ;;  %v5910_v50 = vpack.c.bf16 %v502_v43, %v498_v42  ;;  %v504_v51 = vld [vmem:[#allocation14 + $0x40] sm:$0xff] }
  0x98   :  { %3972 = vmatpush1.bf16.msra.mxu1 %v3971_v13  ;;  %3942 = vmatprep.subr.bf16.mxu0 %v3941_v14  ;;  %v511_v49 = vld [vmem:[#allocation14 + $0x78] sm:$0xff]  ;;  %v508_v52 = vld [vmem:[#allocation14 + $0x60] sm:$0xff]  ;;  %v5913_v53 = vpack.c.bf16 %v509_v45, %v505_v44  ;;  %v506_v54 = vld [vmem:[#allocation14 + $0x50] sm:$0xff] }
  0x99   :  { %3974 = vmatprep.subr.bf16.mxu1 %v3973_v18  ;;  %v510_v55 = vld [vmem:[#allocation14 + $0x70] sm:$0xff]  ;;  %v5915_v56 = vpack.c.bf16 %v511_v49, %v507_v48  ;;  %v513_v57 = vld [vmem:[#allocation14 + $0x88] sm:$0xff]  ;;  %v5918_v60 = vpack.c.bf16 %v508_v52, %v504_v51  ;;  %v515_v61 = vld [vmem:[#allocation14 + $0x98] sm:$0xff] }
  0x9a   :  { %v517_v58 = vld [vmem:[#allocation14 + $0xa8] sm:$0xff]  ;;  %v519_v62 = vld [vmem:[#allocation14 + $0xb8] sm:$0xff]  ;;  %v5922_v63 = vpack.c.bf16 %v510_v55, %v506_v54  ;;  %v512_v1 = vld [vmem:[#allocation14 + $0x80] sm:$0xff] }
  0x9b   :  { %3944 = vmatpush1.bf16.msra.mxu0 %v3943_v24  ;;  %v145_v59 = vld [vmem:[#allocation6 + $0x8] sm:$0xff]  ;;  %v516_v2 = vld [vmem:[#allocation14 + $0xa0] sm:$0xff]  ;;  %v5926_v3 = vpack.c.bf16 %v517_v58, %v513_v57  ;;  %v514_v4 = vld [vmem:[#allocation14 + $0x90] sm:$0xff]  ;;  %v5929_v6 = vpack.c.bf16 %v519_v62, %v515_v61 }
  0x9c   :  { %3976 = vmatpush1.bf16.msra.mxu1 %v3975_v25  ;;  %3946 = vmatprep.subr.bf16.mxu0 %v3945_v26  ;;  %v518_v5 = vld [vmem:[#allocation14 + $0xb0] sm:$0xff]  ;;  %v521_v7 = vld [vmem:[#allocation14 + $0xc8] sm:$0xff]  ;;  %v5932_v10 = vpack.c.bf16 %v516_v2, %v512_v1  ;;  %v523_v11 = vld [vmem:[#allocation14 + $0xd8] sm:$0xff] }
  0x9d   :  { %3978 = vmatprep.subr.bf16.mxu1 %v3977_v30  ;;  %v525_v8 = vld [vmem:[#allocation14 + $0xe8] sm:$0xff]  ;;  %v146_v9 = vld [vmem:[#allocation6 + $0x10] sm:$0xff]  ;;  %v527_v12 = vld [vmem:[#allocation14 + $0xf8] sm:$0xff]  ;;  %v5936_v13 = vpack.c.bf16 %v518_v5, %v514_v4 }
  0x9e   :  { %v520_v14 = vld [vmem:[#allocation14 + $0xc0] sm:$0xff]  ;;  %v5940_v16 = vpack.c.bf16 %v525_v8, %v521_v7  ;;  %v522_v17 = vld [vmem:[#allocation14 + $0xd0] sm:$0xff]  ;;  %v5943_v19 = vpack.c.bf16 %v527_v12, %v523_v11  ;;  %v529_v20 = vld [vmem:[#allocation14 + $0x108] sm:$0xff] }
  0x9f   :  { %3948 = vmatpush1.bf16.msra.mxu0 %v3947_v36  ;;  %v524_v15 = vld [vmem:[#allocation14 + $0xe0] sm:$0xff]  ;;  %v526_v18 = vld [vmem:[#allocation14 + $0xf0] sm:$0xff]  ;;  %v533_v21 = vld [vmem:[#allocation14 + $0x128] sm:$0xff] }
  0xa0   :  { %3980 = vmatpush1.bf16.msra.mxu1 %v3979_v37  ;;  %3982 = vmatprep.subr.bf16.mxu0 %v5903_v38  ;;  %v147_v22 = vld [vmem:[#allocation6 + $0x18] sm:$0xff]  ;;  %v5946_v23 = vpack.c.bf16 %v524_v15, %v520_v14  ;;  %v5950_v26 = vpack.c.bf16 %v526_v18, %v522_v17  ;;  %v528_v27 = vld [vmem:[#allocation14 + $0x100] sm:$0xff]  ;;  %v5954_v29 = vpack.c.bf16 %v533_v21, %v529_v20  ;;  %v530_v30 = vld [vmem:[#allocation14 + $0x110] sm:$0xff] }
  0xa1   :  { %4014 = vmatprep.subr.bf16.mxu1 %v5905_v41  ;;  %v531_v24 = vld [vmem:[#allocation14 + $0x118] sm:$0xff]  ;;  %v532_v28 = vld [vmem:[#allocation14 + $0x120] sm:$0xff]  ;;  %v534_v31 = vld [vmem:[#allocation14 + $0x130] sm:$0xff] }
  0xa2   :  { %303 = vmatmul.mubr.f32.vlgmr.msra.gmra.mrb[0].mxu0 %v144_v46  ;;  %v535_v25 = vld [vmem:[#allocation14 + $0x138] sm:$0xff]  ;;  %v537_v33 = vld [vmem:[#allocation14 + $0x148] sm:$0xff]  ;;  %v148_v35 = vld [vmem:[#allocation6 + $0x20] sm:$0xff]  ;;  %v5960_v36 = vpack.c.bf16 %v532_v28, %v528_v27  ;;  %v5964_v40 = vpack.c.bf16 %v534_v31, %v530_v30  ;;  %v218_v30 = vlaneseq }
  0xa3   :  { %416 = vmatmul.mubr.f32.vlgmr.msra.gmra.mrb[0].mxu1 %v144_v46  ;;  %3984 = vmatpush1.bf16.msra.mxu0 %v5907_v47  ;;  %v5957_v32 = vpack.c.bf16 %v535_v25, %v531_v24  ;;  %v541_v34 = vld [vmem:[#allocation14 + $0x168] sm:$0xff]  ;;  %v539_v37 = vld [vmem:[#allocation14 + $0x158] sm:$0xff]  ;;  %v536_v42 = vld [vmem:[#allocation14 + $0x140] sm:$0xff] }
  0xa4   :  { %4016 = vmatpush1.bf16.msra.mxu1 %v5910_v50  ;;  %308 = vmatprep.mubr.f32.mxu0 %v5711_v0  ;;  %v543_v39 = vld [vmem:[#allocation14 + $0x178] sm:$0xff]  ;;  %v540_v43 = vld [vmem:[#allocation14 + $0x160] sm:$0xff]  ;;  %v5968_v44 = vpack.c.bf16 %v541_v34, %v537_v33  ;;  %v538_v45 = vld [vmem:[#allocation14 + $0x150] sm:$0xff]  ;;  %v6051_v31 = vshrl.u32 %v218_v30, 7 }
  0xa5   :  { %421 = vmatprep.mubr.f32.mxu1 %v5711_v0  ;;  %3986 = vmatprep.subr.bf16.mxu0 %v5913_v53  ;;  %v542_v46 = vld [vmem:[#allocation14 + $0x170] sm:$0xff]  ;;  %v5971_v48 = vpack.c.bf16 %v543_v39, %v539_v37  ;;  %v545_v49 = vld [vmem:[#allocation14 + $0x188] sm:$0xff]  ;;  %v5974_v54 = vpack.c.bf16 %v540_v43, %v536_v42  ;;  %v547_v55 = vld [vmem:[#allocation14 + $0x198] sm:$0xff] }
  0xa6   :  { %309 = vmatmul.mubr.f32.gmra.mrb[2].mxu0 %v145_v59  ;;  %4018 = vmatprep.subr.bf16.mxu1 %v5915_v56  ;;  %v549_v51 = vld [vmem:[#allocation14 + $0x1a8] sm:$0xff]  ;;  %v551_v57 = vld [vmem:[#allocation14 + $0x1b8] sm:$0xff]  ;;  %v5978_v58 = vpack.c.bf16 %v542_v46, %v538_v45  ;;  %v548_v61 = vld [vmem:[#allocation14 + $0x1a0] sm:$0xff]  ;;  %v220_v33 = vsub.s32 0, %v6051_v31  ;;  %v232_v43 = vsub.s32 3, %v6051_v31 }
  0xa7   :  { %422 = vmatmul.mubr.f32.gmra.mrb[2].mxu1 %v145_v59  ;;  %3988 = vmatpush1.bf16.msra.mxu0 %v5918_v60  ;;  %v149_v52 = vld [vmem:[#allocation6 + $0x28] sm:$0xff]  ;;  %v544_v59 = vld [vmem:[#allocation14 + $0x180] sm:$0xff]  ;;  %v5982_v62 = vpack.c.bf16 %v549_v51, %v545_v49  ;;  %v546_v1 = vld [vmem:[#allocation14 + $0x190] sm:$0xff]  ;;  %v5985_v4 = vpack.c.bf16 %v551_v57, %v547_v55 }
  0xa8   :  { %4020 = vmatpush1.bf16.msra.mxu1 %v5922_v63  ;;  %314 = vmatprep.mubr.f32.mxu0 %v5711_v0  ;;  %v550_v2 = vld [vmem:[#allocation14 + $0x1b0] sm:$0xff]  ;;  %v553_v5 = vld [vmem:[#allocation14 + $0x1c8] sm:$0xff]  ;;  %v555_v11 = vld [vmem:[#allocation14 + $0x1d8] sm:$0xff] }
  0xa9   :  { %427 = vmatprep.mubr.f32.mxu1 %v5711_v0  ;;  %3990 = vmatprep.subr.bf16.mxu0 %v5926_v3  ;;  %v557_v7 = vld [vmem:[#allocation14 + $0x1e8] sm:$0xff]  ;;  %v150_v8 = vld [vmem:[#allocation6 + $0x30] sm:$0xff]  ;;  %v559_v12 = vld [vmem:[#allocation14 + $0x1f8] sm:$0xff]  ;;  %v5992_v14 = vpack.c.bf16 %v550_v2, %v546_v1 }
  0xaa   :  { %315 = vmatmul.mubr.f32.gmra.mrb[4].mxu0 %v146_v9  ;;  %4022 = vmatprep.subr.bf16.mxu1 %v5929_v6  ;;  %v552_v15 = vld [vmem:[#allocation14 + $0x1c0] sm:$0xff]  ;;  %v5996_v18 = vpack.c.bf16 %v557_v7, %v553_v5  ;;  %v554_v20 = vld [vmem:[#allocation14 + $0x1d0] sm:$0xff]  ;;  %v151_v24 = vld [vmem:[#allocation6 + $0x38] sm:$0xff] }
  0xab   :  { %428 = vmatmul.mubr.f32.gmra.mrb[4].mxu1 %v146_v9  ;;  %3992 = vmatpush1.bf16.msra.mxu0 %v5932_v10  ;;  %v5988_v9 = vpack.c.bf16 %v548_v61, %v544_v59  ;;  %v556_v17 = vld [vmem:[#allocation14 + $0x1e0] sm:$0xff]  ;;  %v558_v21 = vld [vmem:[#allocation14 + $0x1f0] sm:$0xff]  ;;  %v228_v61 = vsub.s32 2, %v6051_v31 }
  0xac   :  { %4024 = vmatpush1.bf16.msra.mxu1 %v5936_v13  ;;  %320 = vmatprep.mubr.f32.mxu0 %v5711_v0  ;;  %v6002_v25 = vpack.c.bf16 %v556_v17, %v552_v15  ;;  %v6006_v27 = vpack.c.bf16 %v558_v21, %v554_v20  ;;  %v136_v28 = vld [vmem:[#allocation9] sm:$0xff]  ;;  %v140_v21 = vld [vmem:[#allocation11] sm:$0xff] }
  0xad   :  { %433 = vmatprep.mubr.f32.mxu1 %v5711_v0  ;;  %3994 = vmatprep.subr.bf16.mxu0 %v5940_v16  ;;  %v216_v34 = vld [vmem:[%s6871_s5] sm:$0xf] }
  0xae   :  { %321 = vmatmul.mubr.f32.gmra.mrb[6].mxu0 %v147_v22  ;;  %4026 = vmatprep.subr.bf16.mxu1 %v5943_v19  ;;  %v6060_v37 = vrot.slane %v216_v34, %v220_v33  ;;  %v6071_v59 = vrot.slane %v216_v34, %v232_v43  ;;  %v6077_v2 = vrot.slane %v216_v34, %v228_v61 }
  0xaf   :  { %434 = vmatmul.mubr.f32.gmra.mrb[6].mxu1 %v147_v22  ;;  %3996 = vmatpush1.bf16.msra.mxu0 %v5946_v23  ;;  %v5999_v22 = vpack.c.bf16 %v559_v12, %v555_v11 }
  0xb0   :  { %4028 = vmatpush1.bf16.msra.mxu1 %v5950_v26  ;;  %326 = vmatprep.mubr.f32.mxu0 %v5711_v0 }
  0xb1   :  { %439 = vmatprep.mubr.f32.mxu1 %v5711_v0  ;;  %3998 = vmatprep.subr.bf16.mxu0 %v5954_v29 }
  0xb2   :  { %327 = vmatmul.mubr.f32.gmra.mrb[8].mxu0 %v148_v35  ;;  %4030 = vmatprep.subr.bf16.mxu1 %v5957_v32 }
  0xb3   :  { %440 = vmatmul.mubr.f32.gmra.mrb[8].mxu1 %v148_v35  ;;  %4000 = vmatpush1.bf16.msra.mxu0 %v5960_v36  ;;  %v224_v35 = vsub.s32 1, %v6051_v31 }
  0xb4   :  { %4032 = vmatpush1.bf16.msra.mxu1 %v5964_v40  ;;  %332 = vmatprep.mubr.f32.mxu0 %v5711_v0 }
  0xb5   :  { %445 = vmatprep.mubr.f32.mxu1 %v5711_v0  ;;  %4002 = vmatprep.subr.bf16.mxu0 %v5968_v44  ;;  %v6064_v39 = vrot.slane %v216_v34, %v224_v35 }
  0xb6   :  { %333 = vmatmul.mubr.f32.gmra.mrb[10].mxu0 %v149_v52  ;;  %4034 = vmatprep.subr.bf16.mxu1 %v5971_v48 }
  0xb7   :  { %446 = vmatmul.mubr.f32.gmra.mrb[10].mxu1 %v149_v52  ;;  %4004 = vmatpush1.bf16.msra.mxu0 %v5974_v54 }
  0xb8   :  { %4036 = vmatpush1.bf16.msra.mxu1 %v5978_v58  ;;  %338 = vmatprep.mubr.f32.mxu0 %v5711_v0 }
  0xb9   :  { %451 = vmatprep.mubr.f32.mxu1 %v5711_v0  ;;  %4006 = vmatprep.subr.bf16.mxu0 %v5982_v62 }
  0xba   :  { %339 = vmatmul.mubr.f32.gmra.mrb[12].mxu0 %v150_v8  ;;  %4038 = vmatprep.subr.bf16.mxu1 %v5985_v4 }
  0xbb   :  { %452 = vmatmul.mubr.f32.gmra.mrb[12].mxu1 %v150_v8  ;;  %4008 = vmatpush1.bf16.msra.mxu0 %v5988_v9 }
  0xbc   :  { %4040 = vmatpush1.bf16.msra.mxu1 %v5992_v14  ;;  %344 = vmatprep.mubr.f32.mxu0 %v5711_v0 }
  0xbd   :  { %457 = vmatprep.mubr.f32.mxu1 %v5711_v0  ;;  %4010 = vmatprep.subr.bf16.mxu0 %v5996_v18 }
  0xbe   :  { %345 = vmatmul.mubr.f32.gmra.mrb[14].mxu0 %v151_v24  ;;  %4042 = vmatprep.subr.bf16.mxu1 %v5999_v22 }
  0xbf   :  { %458 = vmatmul.mubr.f32.gmra.mrb[14].mxu1 %v151_v24  ;;  %4012 = vmatpush1.bf16.msra.mxu0 %v6002_v25 }
  0xc0   :  { %4044 = vmatpush1.bf16.msra.mxu1 %v6006_v27  ;;  %630 = vmatprep.mubr.f32.mxu0 %v5711_v0 }
  0xc1   :  { %701 = vmatprep.mubr.f32.mxu1 %v5711_v0  ;;  %4046 = vmatprep.subr.bf16.mxu0 %v5903_v38 }
  0xc2   :  { %631 = vmatmul.mubr.f32.vlgmr.msra.gmra.mrb[0].mxu0 %v136_v28  ;;  %4078 = vmatprep.subr.bf16.mxu1 %v5905_v41 }
  0xc3   :  { %702 = vmatmul.mubr.f32.vlgmr.msra.gmra.mrb[0].mxu1 %v136_v28  ;;  %4048 = vmatpush1.bf16.msra.mxu0 %v5907_v47 }
  0xc4   :  { %4080 = vmatpush1.bf16.msra.mxu1 %v5910_v50  ;;  %4050 = vmatprep.subr.bf16.mxu0 %v5913_v53 }
  0xc5   :  { %4082 = vmatprep.subr.bf16.mxu1 %v5915_v56  ;;  %806 = vmatprep.mubr.f32.mxu0 %v5711_v0 }
  0xc6   :  { %877 = vmatprep.mubr.f32.mxu1 %v5711_v0 }
  0xc7   :  { %4052 = vmatpush1.bf16.msra.mxu0 %v5918_v60 }
  0xc8   :  { %4084 = vmatpush1.bf16.msra.mxu1 %v5922_v63  ;;  %4054 = vmatprep.subr.bf16.mxu0 %v5926_v3 }
  0xc9   :  { %4086 = vmatprep.subr.bf16.mxu1 %v5929_v6 }
  0xcb   :  { %4056 = vmatpush1.bf16.msra.mxu0 %v5932_v10 }
  0xcc   :  { %4088 = vmatpush1.bf16.msra.mxu1 %v5936_v13  ;;  %4058 = vmatprep.subr.bf16.mxu0 %v5940_v16 }
  0xcd   :  { %4090 = vmatprep.subr.bf16.mxu1 %v5943_v19 }
  0xcf   :  { %4060 = vmatpush1.bf16.msra.mxu0 %v5946_v23 }
  0xd0   :  { %4092 = vmatpush1.bf16.msra.mxu1 %v5950_v26  ;;  %4062 = vmatprep.subr.bf16.mxu0 %v5954_v29 }
  0xd1   :  { %4094 = vmatprep.subr.bf16.mxu1 %v5957_v32 }
  0xd3   :  { %4064 = vmatpush1.bf16.msra.mxu0 %v5960_v36 }
  0xd4   :  { %4096 = vmatpush1.bf16.msra.mxu1 %v5964_v40  ;;  %4066 = vmatprep.subr.bf16.mxu0 %v5968_v44 }
  0xd5   :  { %4098 = vmatprep.subr.bf16.mxu1 %v5971_v48 }
  0xd7   :  { %4068 = vmatpush1.bf16.msra.mxu0 %v5974_v54 }
  0xd8   :  { %4100 = vmatpush1.bf16.msra.mxu1 %v5978_v58  ;;  %4070 = vmatprep.subr.bf16.mxu0 %v5982_v62 }
  0xd9   :  { %4102 = vmatprep.subr.bf16.mxu1 %v5985_v4 }
  0xdb   :  { %4072 = vmatpush1.bf16.msra.mxu0 %v5988_v9 }
  0xdc   :  { %4104 = vmatpush1.bf16.msra.mxu1 %v5992_v14  ;;  %4074 = vmatprep.subr.bf16.mxu0 %v5996_v18 }
  0xdd   :  { %4106 = vmatprep.subr.bf16.mxu1 %v5999_v22 }
  0xdf   :  { %4076 = vmatpush1.bf16.msra.mxu0 %v6002_v25 }
  0xe0   :  { %4108 = vmatpush1.bf16.msra.mxu1 %v6006_v27  ;;  %4110 = vmatprep.subr.bf16.mxu0 %v5903_v38 }
  0xe1   :  { %4142 = vmatprep.subr.bf16.mxu1 %v5905_v41 }
 0x195   :  { %v632_v42 = vpop.f32.mrb[0].mxu0 }
 0x196   :  { %v5069_v45 = vadd.f32 %v632_v42, %v6060_v37  ;;  %v703_v46 = vpop.f32.mrb[0].mxu1  ;;  %v634_v49 = vpop.f32.mrb[1].mxu0 }
 0x197   :  { %v5070_v51 = vadd.f32 %v634_v49, %v6064_v39  ;;  %v705_v52 = vpop.f32.mrb[1].mxu1  ;;  %v5085_v7 = vadd.f32 %v703_v46, %v6077_v2 }
 0x198   :  { %v3869_v55 = vmul.f32 -1.442695, %v5069_v45  ;;  %v5086_v1 = vadd.f32 %v705_v52, %v6071_v59 }
 0x199   :  { %v3870_v57 = vmul.f32 -1.442695, %v5070_v51 }
 0x19a   :  { %5212 = vpow2.f32 %v3869_v55  ;;  %v3871_v5 = vmul.f32 -1.442695, %v5086_v1 }
 0x19b   :  { %5214 = vpow2.f32 %v3870_v57 }
 0x19c   :  { %5216 = vpow2.f32 %v3871_v5 }
 0x19d   :  { %5218 = vtanh.f32 %v5085_v7 }
 0x1a4   :  { %v5213_v8 = vpop.eup %5212 }
 0x1a5   :  { %v5215_v11 = vpop.eup %5214  ;;  %v715_v12 = vadd.f32 1.0, %v5213_v8 }
 0x1a6   :  { %v721_v15 = vadd.f32 1.0, %v5215_v11  ;;  %v5217_v17 = vpop.eup %5216 }
 0x1a7   :  { %5220 = vrcp.f32 %v715_v12  ;;  %v5219_v20 = vpop.eup %5218  ;;  %v728_v42 = vadd.f32 1.0, %v5217_v17 }
 0x1a8   :  { %5222 = vrcp.f32 %v721_v15 }
 0x1a9   :  { %5224 = vrcp.f32 %v728_v42 }
 0x1b1   :  { %v5221_v24 = vpop.eup %5220 }
 0x1b2   :  { %v5223_v28 = vpop.eup %5222  ;;  %v732_v30 = vmul.f32 %v5221_v24, %v5219_v20 }
 0x1b3   :  { %v731_v34 = vmul.f32 %v5223_v28, %v140_v21  ;;  %v5225_v46 = vpop.eup %5224 }
 0x1b5   :  { %v6080_v45 = vadd.f32 %v732_v30, %v731_v34 }
 0x1b7   :  { %5226 = vtanh.f32 %v6080_v45 }
 0x1c1   :  { %v5227_v49 = vpop.eup %5226 }
 0x1c2   :  { %v6083_v51 = vmul.f32 %v5227_v49, %v5225_v46 }
 0x1c4   :  { %807 = vmatmul.mubr.f32.vlgmr.msra.gmra.mrb[2].mxu0 %v6083_v51  ;;  %878 = vmatmul.mubr.f32.vlgmr.msra.gmra.mrb[2].mxu1 %v6083_v51 }
 0x1c5   :  { %4112 = vmatpush1.bf16.msra.mxu0 %v5907_v47  ;;  %4144 = vmatpush1.bf16.msra.mxu1 %v5910_v50 }
 0x1c6   :  { %4114 = vmatprep.subr.bf16.mxu0 %v5913_v53  ;;  %4146 = vmatprep.subr.bf16.mxu1 %v5915_v56 }
 0x1c7   :  { %983 = vmatprep.mubr.f32.mxu0 %v5711_v0  ;;  %1054 = vmatprep.mubr.f32.mxu1 %v5711_v0 }
 0x1c9   :  { %4116 = vmatpush1.bf16.msra.mxu0 %v5918_v60  ;;  %4148 = vmatpush1.bf16.msra.mxu1 %v5922_v63 }
 0x1ca   :  { %4118 = vmatprep.subr.bf16.mxu0 %v5926_v3  ;;  %4150 = vmatprep.subr.bf16.mxu1 %v5929_v6 }
 0x1cd   :  { %4120 = vmatpush1.bf16.msra.mxu0 %v5932_v10  ;;  %4152 = vmatpush1.bf16.msra.mxu1 %v5936_v13 }
 0x1ce   :  { %4122 = vmatprep.subr.bf16.mxu0 %v5940_v16  ;;  %4154 = vmatprep.subr.bf16.mxu1 %v5943_v19 }
 0x1d1   :  { %4124 = vmatpush1.bf16.msra.mxu0 %v5946_v23  ;;  %4156 = vmatpush1.bf16.msra.mxu1 %v5950_v26 }
 0x1d2   :  { %4126 = vmatprep.subr.bf16.mxu0 %v5954_v29  ;;  %4158 = vmatprep.subr.bf16.mxu1 %v5957_v32 }
 0x1d5   :  { %4128 = vmatpush1.bf16.msra.mxu0 %v5960_v36  ;;  %4160 = vmatpush1.bf16.msra.mxu1 %v5964_v40 }
 0x1d6   :  { %4130 = vmatprep.subr.bf16.mxu0 %v5968_v44  ;;  %4162 = vmatprep.subr.bf16.mxu1 %v5971_v48 }
 0x1d9   :  { %4132 = vmatpush1.bf16.msra.mxu0 %v5974_v54  ;;  %4164 = vmatpush1.bf16.msra.mxu1 %v5978_v58 }
 0x1da   :  { %4134 = vmatprep.subr.bf16.mxu0 %v5982_v62  ;;  %4166 = vmatprep.subr.bf16.mxu1 %v5985_v4 }
 0x1dd   :  { %4136 = vmatpush1.bf16.msra.mxu0 %v5988_v9  ;;  %4168 = vmatpush1.bf16.msra.mxu1 %v5992_v14 }
 0x1de   :  { %4138 = vmatprep.subr.bf16.mxu0 %v5996_v18  ;;  %4170 = vmatprep.subr.bf16.mxu1 %v5999_v22 }
 0x1e1   :  { %4140 = vmatpush1.bf16.msra.mxu0 %v6002_v25  ;;  %4172 = vmatpush1.bf16.msra.mxu1 %v6006_v27 }
 0x1e2   :  { %4174 = vmatprep.subr.bf16.mxu0 %v5903_v38  ;;  %4206 = vmatprep.subr.bf16.mxu1 %v5905_v41 }
 0x297   :  { %v808_v52 = vpop.f32.mrb[2].mxu0  ;;  %v879_v55 = vpop.f32.mrb[2].mxu1 }
 0x298   :  { %v5071_v57 = vadd.f32 %v808_v52, %v6060_v37  ;;  %v810_v1 = vpop.f32.mrb[3].mxu0  ;;  %v881_v5 = vpop.f32.mrb[3].mxu1  ;;  %v5087_v17 = vadd.f32 %v879_v55, %v6077_v2 }
 0x299   :  { %v5072_v7 = vadd.f32 %v810_v1, %v6064_v39  ;;  %v5088_v12 = vadd.f32 %v881_v5, %v6071_v59 }
 0x29a   :  { %v3872_v8 = vmul.f32 -1.442695, %v5071_v57 }
 0x29b   :  { %v3873_v11 = vmul.f32 -1.442695, %v5072_v7  ;;  %v3874_v15 = vmul.f32 -1.442695, %v5088_v12 }
 0x29c   :  { %5228 = vpow2.f32 %v3872_v8 }
 0x29d   :  { %5230 = vpow2.f32 %v3873_v11 }
 0x29e   :  { %5232 = vpow2.f32 %v3874_v15 }
 0x29f   :  { %5234 = vtanh.f32 %v5087_v17 }
 0x2a6   :  { %v5229_v20 = vpop.eup %5228 }
 0x2a7   :  { %v5231_v21 = vpop.eup %5230  ;;  %v891_v24 = vadd.f32 1.0, %v5229_v20 }
 0x2a8   :  { %v897_v28 = vadd.f32 1.0, %v5231_v21  ;;  %v5233_v30 = vpop.eup %5232 }
 0x2a9   :  { %5236 = vrcp.f32 %v891_v24  ;;  %v5235_v42 = vpop.eup %5234  ;;  %v904_v52 = vadd.f32 1.0, %v5233_v30 }
 0x2aa   :  { %5238 = vrcp.f32 %v897_v28 }
 0x2ab   :  { %5240 = vrcp.f32 %v904_v52 }
 0x2b3   :  { %v5237_v34 = vpop.eup %5236 }
 0x2b4   :  { %v5239_v46 = vpop.eup %5238  ;;  %v908_v49 = vmul.f32 %v5237_v34, %v5235_v42 }
 0x2b5   :  { %v907_v57 = vmul.f32 %v5239_v46, %v6080_v45  ;;  %v5241_v55 = vpop.eup %5240 }
 0x2b7   :  { %v6126_v1 = vadd.f32 %v908_v49, %v907_v57 }
 0x2b9   :  { %5242 = vtanh.f32 %v6126_v1 }
 0x2c3   :  { %v5243_v5 = vpop.eup %5242 }
 0x2c4   :  { %v6129_v7 = vmul.f32 %v5243_v5, %v5241_v55 }
 0x2c6   :  { %984 = vmatmul.mubr.f32.vlgmr.msra.gmra.mrb[4].mxu0 %v6129_v7  ;;  %1055 = vmatmul.mubr.f32.vlgmr.msra.gmra.mrb[4].mxu1 %v6129_v7 }
 0x2c7   :  { %4176 = vmatpush1.bf16.msra.mxu0 %v5907_v47  ;;  %4208 = vmatpush1.bf16.msra.mxu1 %v5910_v50 }
 0x2c8   :  { %4178 = vmatprep.subr.bf16.mxu0 %v5913_v53  ;;  %4210 = vmatprep.subr.bf16.mxu1 %v5915_v56 }
 0x2c9   :  { %1160 = vmatprep.mubr.f32.mxu0 %v5711_v0  ;;  %1231 = vmatprep.mubr.f32.mxu1 %v5711_v0 }
 0x2cb   :  { %4180 = vmatpush1.bf16.msra.mxu0 %v5918_v60  ;;  %4212 = vmatpush1.bf16.msra.mxu1 %v5922_v63 }
 0x2cc   :  { %4182 = vmatprep.subr.bf16.mxu0 %v5926_v3  ;;  %4214 = vmatprep.subr.bf16.mxu1 %v5929_v6 }
 0x2cf   :  { %4184 = vmatpush1.bf16.msra.mxu0 %v5932_v10  ;;  %4216 = vmatpush1.bf16.msra.mxu1 %v5936_v13 }
 0x2d0   :  { %4186 = vmatprep.subr.bf16.mxu0 %v5940_v16  ;;  %4218 = vmatprep.subr.bf16.mxu1 %v5943_v19 }
 0x2d3   :  { %4188 = vmatpush1.bf16.msra.mxu0 %v5946_v23  ;;  %4220 = vmatpush1.bf16.msra.mxu1 %v5950_v26 }
 0x2d4   :  { %4190 = vmatprep.subr.bf16.mxu0 %v5954_v29  ;;  %4222 = vmatprep.subr.bf16.mxu1 %v5957_v32 }
 0x2d7   :  { %4192 = vmatpush1.bf16.msra.mxu0 %v5960_v36  ;;  %4224 = vmatpush1.bf16.msra.mxu1 %v5964_v40 }
 0x2d8   :  { %4194 = vmatprep.subr.bf16.mxu0 %v5968_v44  ;;  %4226 = vmatprep.subr.bf16.mxu1 %v5971_v48 }
 0x2db   :  { %4196 = vmatpush1.bf16.msra.mxu0 %v5974_v54  ;;  %4228 = vmatpush1.bf16.msra.mxu1 %v5978_v58 }
 0x2dc   :  { %4198 = vmatprep.subr.bf16.mxu0 %v5982_v62  ;;  %4230 = vmatprep.subr.bf16.mxu1 %v5985_v4 }
 0x2df   :  { %4200 = vmatpush1.bf16.msra.mxu0 %v5988_v9  ;;  %4232 = vmatpush1.bf16.msra.mxu1 %v5992_v14 }
 0x2e0   :  { %4202 = vmatprep.subr.bf16.mxu0 %v5996_v18  ;;  %4234 = vmatprep.subr.bf16.mxu1 %v5999_v22 }
 0x2e3   :  { %4204 = vmatpush1.bf16.msra.mxu0 %v6002_v25  ;;  %4236 = vmatpush1.bf16.msra.mxu1 %v6006_v27 }
 0x2e4   :  { %4238 = vmatprep.subr.bf16.mxu0 %v5903_v38  ;;  %4270 = vmatprep.subr.bf16.mxu1 %v5905_v41 }
 0x399   :  { %v985_v45 = vpop.f32.mrb[4].mxu0  ;;  %v1056_v8 = vpop.f32.mrb[4].mxu1 }
 0x39a   :  { %v5073_v11 = vadd.f32 %v985_v45, %v6060_v37  ;;  %v987_v12 = vpop.f32.mrb[5].mxu0  ;;  %v1058_v15 = vpop.f32.mrb[5].mxu1  ;;  %v5089_v30 = vadd.f32 %v1056_v8, %v6077_v2 }
 0x39b   :  { %v5074_v17 = vadd.f32 %v987_v12, %v6064_v39  ;;  %v5090_v24 = vadd.f32 %v1058_v15, %v6071_v59 }
 0x39c   :  { %v3875_v20 = vmul.f32 -1.442695, %v5073_v11 }
 0x39d   :  { %v3876_v21 = vmul.f32 -1.442695, %v5074_v17  ;;  %v3877_v28 = vmul.f32 -1.442695, %v5090_v24 }
 0x39e   :  { %5244 = vpow2.f32 %v3875_v20 }
 0x39f   :  { %5246 = vpow2.f32 %v3876_v21 }
 0x3a0   :  { %5248 = vpow2.f32 %v3877_v28 }
 0x3a1   :  { %5250 = vtanh.f32 %v5089_v30 }
 0x3a8   :  { %v5245_v42 = vpop.eup %5244 }
 0x3a9   :  { %v5247_v34 = vpop.eup %5246  ;;  %v1068_v46 = vadd.f32 1.0, %v5245_v42 }
 0x3aa   :  { %v1074_v49 = vadd.f32 1.0, %v5247_v34  ;;  %v5249_v52 = vpop.eup %5248 }
 0x3ab   :  { %5252 = vrcp.f32 %v1068_v46  ;;  %v5251_v57 = vpop.eup %5250  ;;  %v1081_v11 = vadd.f32 1.0, %v5249_v52 }
 0x3ac   :  { %5254 = vrcp.f32 %v1074_v49 }
 0x3ad   :  { %5256 = vrcp.f32 %v1081_v11 }
 0x3b5   :  { %v5253_v55 = vpop.eup %5252 }
 0x3b6   :  { %v5255_v5 = vpop.eup %5254  ;;  %v1085_v45 = vmul.f32 %v5253_v55, %v5251_v57 }
 0x3b7   :  { %v1084_v12 = vmul.f32 %v5255_v5, %v6126_v1  ;;  %v5257_v8 = vpop.eup %5256 }
 0x3b9   :  { %v6172_v15 = vadd.f32 %v1085_v45, %v1084_v12 }
 0x3bb   :  { %5258 = vtanh.f32 %v6172_v15 }
 0x3c5   :  { %v5259_v17 = vpop.eup %5258 }
 0x3c6   :  { %v6175_v20 = vmul.f32 %v5259_v17, %v5257_v8 }
 0x3c8   :  { %1161 = vmatmul.mubr.f32.vlgmr.msra.gmra.mrb[6].mxu0 %v6175_v20  ;;  %1232 = vmatmul.mubr.f32.vlgmr.msra.gmra.mrb[6].mxu1 %v6175_v20 }
 0x3c9   :  { %4240 = vmatpush1.bf16.msra.mxu0 %v5907_v47  ;;  %4272 = vmatpush1.bf16.msra.mxu1 %v5910_v50 }
 0x3ca   :  { %4242 = vmatprep.subr.bf16.mxu0 %v5913_v53  ;;  %4274 = vmatprep.subr.bf16.mxu1 %v5915_v56 }
 0x3cb   :  { %1337 = vmatprep.mubr.f32.mxu0 %v5711_v0  ;;  %1408 = vmatprep.mubr.f32.mxu1 %v5711_v0 }
 0x3cd   :  { %4244 = vmatpush1.bf16.msra.mxu0 %v5918_v60  ;;  %4276 = vmatpush1.bf16.msra.mxu1 %v5922_v63 }
 0x3ce   :  { %4246 = vmatprep.subr.bf16.mxu0 %v5926_v3  ;;  %4278 = vmatprep.subr.bf16.mxu1 %v5929_v6 }
 0x3d1   :  { %4248 = vmatpush1.bf16.msra.mxu0 %v5932_v10  ;;  %4280 = vmatpush1.bf16.msra.mxu1 %v5936_v13 }
 0x3d2   :  { %4250 = vmatprep.subr.bf16.mxu0 %v5940_v16  ;;  %4282 = vmatprep.subr.bf16.mxu1 %v5943_v19 }
 0x3d5   :  { %4252 = vmatpush1.bf16.msra.mxu0 %v5946_v23  ;;  %4284 = vmatpush1.bf16.msra.mxu1 %v5950_v26 }
 0x3d6   :  { %4254 = vmatprep.subr.bf16.mxu0 %v5954_v29  ;;  %4286 = vmatprep.subr.bf16.mxu1 %v5957_v32 }
 0x3d9   :  { %4256 = vmatpush1.bf16.msra.mxu0 %v5960_v36  ;;  %4288 = vmatpush1.bf16.msra.mxu1 %v5964_v40 }
 0x3da   :  { %4258 = vmatprep.subr.bf16.mxu0 %v5968_v44  ;;  %4290 = vmatprep.subr.bf16.mxu1 %v5971_v48 }
 0x3dd   :  { %4260 = vmatpush1.bf16.msra.mxu0 %v5974_v54  ;;  %4292 = vmatpush1.bf16.msra.mxu1 %v5978_v58 }
 0x3de   :  { %4262 = vmatprep.subr.bf16.mxu0 %v5982_v62  ;;  %4294 = vmatprep.subr.bf16.mxu1 %v5985_v4 }
 0x3e1   :  { %4264 = vmatpush1.bf16.msra.mxu0 %v5988_v9  ;;  %4296 = vmatpush1.bf16.msra.mxu1 %v5992_v14 }
 0x3e2   :  { %4266 = vmatprep.subr.bf16.mxu0 %v5996_v18  ;;  %4298 = vmatprep.subr.bf16.mxu1 %v5999_v22 }
 0x3e5   :  { %4268 = vmatpush1.bf16.msra.mxu0 %v6002_v25  ;;  %4300 = vmatpush1.bf16.msra.mxu1 %v6006_v27 }
 0x3e6   :  { %4302 = vmatprep.subr.bf16.mxu0 %v5903_v38  ;;  %4334 = vmatprep.subr.bf16.mxu1 %v5905_v41 }
 0x49b   :  { %v1162_v1 = vpop.f32.mrb[6].mxu0  ;;  %v1233_v21 = vpop.f32.mrb[6].mxu1 }
 0x49c   :  { %v5075_v24 = vadd.f32 %v1162_v1, %v6060_v37  ;;  %v1164_v28 = vpop.f32.mrb[7].mxu0  ;;  %v1235_v30 = vpop.f32.mrb[7].mxu1  ;;  %v5091_v57 = vadd.f32 %v1233_v21, %v6077_v2 }
 0x49d   :  { %v5076_v42 = vadd.f32 %v1164_v28, %v6064_v39  ;;  %v5092_v49 = vadd.f32 %v1235_v30, %v6071_v59 }
 0x49e   :  { %v3878_v34 = vmul.f32 -1.442695, %v5075_v24 }
 0x49f   :  { %v3879_v46 = vmul.f32 -1.442695, %v5076_v42  ;;  %v3880_v52 = vmul.f32 -1.442695, %v5092_v49 }
 0x4a0   :  { %5260 = vpow2.f32 %v3878_v34 }
 0x4a1   :  { %5262 = vpow2.f32 %v3879_v46 }
 0x4a2   :  { %5264 = vpow2.f32 %v3880_v52 }
 0x4a3   :  { %5266 = vtanh.f32 %v5091_v57 }
 0x4aa   :  { %v5261_v55 = vpop.eup %5260 }
 0x4ab   :  { %v5263_v5 = vpop.eup %5262  ;;  %v1245_v45 = vadd.f32 1.0, %v5261_v55 }
 0x4ac   :  { %v1251_v11 = vadd.f32 1.0, %v5263_v5  ;;  %v5265_v12 = vpop.eup %5264 }
 0x4ad   :  { %5268 = vrcp.f32 %v1245_v45  ;;  %v5267_v8 = vpop.eup %5266  ;;  %v1258_v28 = vadd.f32 1.0, %v5265_v12 }
 0x4ae   :  { %5270 = vrcp.f32 %v1251_v11 }
 0x4af   :  { %5272 = vrcp.f32 %v1258_v28 }
 0x4b7   :  { %v5269_v17 = vpop.eup %5268 }
 0x4b8   :  { %v5271_v1 = vpop.eup %5270  ;;  %v1262_v24 = vmul.f32 %v5269_v17, %v5267_v8 }
 0x4b9   :  { %v1261_v42 = vmul.f32 %v5271_v1, %v6172_v15  ;;  %v5273_v21 = vpop.eup %5272 }
 0x4bb   :  { %v6218_v30 = vadd.f32 %v1262_v24, %v1261_v42 }
 0x4bd   :  { %5274 = vtanh.f32 %v6218_v30 }
 0x4c7   :  { %v5275_v34 = vpop.eup %5274 }
 0x4c8   :  { %v6221_v46 = vmul.f32 %v5275_v34, %v5273_v21 }
 0x4ca   :  { %1338 = vmatmul.mubr.f32.vlgmr.msra.gmra.mrb[8].mxu0 %v6221_v46  ;;  %1409 = vmatmul.mubr.f32.vlgmr.msra.gmra.mrb[8].mxu1 %v6221_v46 }
 0x4cb   :  { %4304 = vmatpush1.bf16.msra.mxu0 %v5907_v47  ;;  %4336 = vmatpush1.bf16.msra.mxu1 %v5910_v50 }
 0x4cc   :  { %4306 = vmatprep.subr.bf16.mxu0 %v5913_v53  ;;  %4338 = vmatprep.subr.bf16.mxu1 %v5915_v56 }
 0x4cd   :  { %1514 = vmatprep.mubr.f32.mxu0 %v5711_v0  ;;  %1585 = vmatprep.mubr.f32.mxu1 %v5711_v0 }
 0x4cf   :  { %4308 = vmatpush1.bf16.msra.mxu0 %v5918_v60  ;;  %4340 = vmatpush1.bf16.msra.mxu1 %v5922_v63 }
 0x4d0   :  { %4310 = vmatprep.subr.bf16.mxu0 %v5926_v3  ;;  %4342 = vmatprep.subr.bf16.mxu1 %v5929_v6 }
 0x4d3   :  { %4312 = vmatpush1.bf16.msra.mxu0 %v5932_v10  ;;  %4344 = vmatpush1.bf16.msra.mxu1 %v5936_v13 }
 0x4d4   :  { %4314 = vmatprep.subr.bf16.mxu0 %v5940_v16  ;;  %4346 = vmatprep.subr.bf16.mxu1 %v5943_v19 }
 0x4d7   :  { %4316 = vmatpush1.bf16.msra.mxu0 %v5946_v23  ;;  %4348 = vmatpush1.bf16.msra.mxu1 %v5950_v26 }
 0x4d8   :  { %4318 = vmatprep.subr.bf16.mxu0 %v5954_v29  ;;  %4350 = vmatprep.subr.bf16.mxu1 %v5957_v32 }
 0x4db   :  { %4320 = vmatpush1.bf16.msra.mxu0 %v5960_v36  ;;  %4352 = vmatpush1.bf16.msra.mxu1 %v5964_v40 }
 0x4dc   :  { %4322 = vmatprep.subr.bf16.mxu0 %v5968_v44  ;;  %4354 = vmatprep.subr.bf16.mxu1 %v5971_v48 }
 0x4df   :  { %4324 = vmatpush1.bf16.msra.mxu0 %v5974_v54  ;;  %4356 = vmatpush1.bf16.msra.mxu1 %v5978_v58 }
 0x4e0   :  { %4326 = vmatprep.subr.bf16.mxu0 %v5982_v62  ;;  %4358 = vmatprep.subr.bf16.mxu1 %v5985_v4 }
 0x4e3   :  { %4328 = vmatpush1.bf16.msra.mxu0 %v5988_v9  ;;  %4360 = vmatpush1.bf16.msra.mxu1 %v5992_v14 }
 0x4e4   :  { %4330 = vmatprep.subr.bf16.mxu0 %v5996_v18  ;;  %4362 = vmatprep.subr.bf16.mxu1 %v5999_v22 }
 0x4e7   :  { %4332 = vmatpush1.bf16.msra.mxu0 %v6002_v25  ;;  %4364 = vmatpush1.bf16.msra.mxu1 %v6006_v27 }
 0x4e8   :  { %4366 = vmatprep.subr.bf16.mxu0 %v5903_v38  ;;  %4398 = vmatprep.subr.bf16.mxu1 %v5905_v41 }
 0x59d   :  { %v1339_v15 = vpop.f32.mrb[8].mxu0  ;;  %v1410_v49 = vpop.f32.mrb[8].mxu1 }
 0x59e   :  { %v5077_v52 = vadd.f32 %v1339_v15, %v6060_v37  ;;  %v1341_v57 = vpop.f32.mrb[9].mxu0  ;;  %v1412_v55 = vpop.f32.mrb[9].mxu1  ;;  %v5093_v17 = vadd.f32 %v1410_v49, %v6077_v2 }
 0x59f   :  { %v5078_v5 = vadd.f32 %v1341_v57, %v6064_v39  ;;  %v5094_v12 = vadd.f32 %v1412_v55, %v6071_v59 }
 0x5a0   :  { %v3881_v45 = vmul.f32 -1.442695, %v5077_v52 }
 0x5a1   :  { %v3882_v11 = vmul.f32 -1.442695, %v5078_v5  ;;  %v3883_v8 = vmul.f32 -1.442695, %v5094_v12 }
 0x5a2   :  { %5276 = vpow2.f32 %v3881_v45 }
 0x5a3   :  { %5278 = vpow2.f32 %v3882_v11 }
 0x5a4   :  { %5280 = vpow2.f32 %v3883_v8 }
 0x5a5   :  { %5282 = vtanh.f32 %v5093_v17 }
 0x5ac   :  { %v5277_v1 = vpop.eup %5276 }
 0x5ad   :  { %v5279_v24 = vpop.eup %5278  ;;  %v1422_v28 = vadd.f32 1.0, %v5277_v1 }
 0x5ae   :  { %v1428_v42 = vadd.f32 1.0, %v5279_v24  ;;  %v5281_v21 = vpop.eup %5280 }
 0x5af   :  { %5284 = vrcp.f32 %v1422_v28  ;;  %v5283_v34 = vpop.eup %5282  ;;  %v1435_v5 = vadd.f32 1.0, %v5281_v21 }
 0x5b0   :  { %5286 = vrcp.f32 %v1428_v42 }
 0x5b1   :  { %5288 = vrcp.f32 %v1435_v5 }
 0x5b9   :  { %v5285_v15 = vpop.eup %5284 }
 0x5ba   :  { %v5287_v52 = vpop.eup %5286  ;;  %v1439_v57 = vmul.f32 %v5285_v15, %v5283_v34 }
 0x5bb   :  { %v1438_v45 = vmul.f32 %v5287_v52, %v6218_v30  ;;  %v5289_v49 = vpop.eup %5288 }
 0x5bd   :  { %v6264_v55 = vadd.f32 %v1439_v57, %v1438_v45 }
 0x5bf   :  { %5290 = vtanh.f32 %v6264_v55 }
 0x5c9   :  { %v5291_v11 = vpop.eup %5290 }
 0x5ca   :  { %v6267_v12 = vmul.f32 %v5291_v11, %v5289_v49 }
 0x5cc   :  { %1515 = vmatmul.mubr.f32.vlgmr.msra.gmra.mrb[10].mxu0 %v6267_v12  ;;  %1586 = vmatmul.mubr.f32.vlgmr.msra.gmra.mrb[10].mxu1 %v6267_v12 }
 0x5cd   :  { %4368 = vmatpush1.bf16.msra.mxu0 %v5907_v47  ;;  %4400 = vmatpush1.bf16.msra.mxu1 %v5910_v50 }
 0x5ce   :  { %4370 = vmatprep.subr.bf16.mxu0 %v5913_v53  ;;  %4402 = vmatprep.subr.bf16.mxu1 %v5915_v56 }
 0x5cf   :  { %1691 = vmatprep.mubr.f32.mxu0 %v5711_v0  ;;  %1762 = vmatprep.mubr.f32.mxu1 %v5711_v0 }
 0x5d1   :  { %4372 = vmatpush1.bf16.msra.mxu0 %v5918_v60  ;;  %4404 = vmatpush1.bf16.msra.mxu1 %v5922_v63 }
 0x5d2   :  { %4374 = vmatprep.subr.bf16.mxu0 %v5926_v3  ;;  %4406 = vmatprep.subr.bf16.mxu1 %v5929_v6 }
 0x5d5   :  { %4376 = vmatpush1.bf16.msra.mxu0 %v5932_v10  ;;  %4408 = vmatpush1.bf16.msra.mxu1 %v5936_v13 }
 0x5d6   :  { %4378 = vmatprep.subr.bf16.mxu0 %v5940_v16  ;;  %4410 = vmatprep.subr.bf16.mxu1 %v5943_v19 }
 0x5d9   :  { %4380 = vmatpush1.bf16.msra.mxu0 %v5946_v23  ;;  %4412 = vmatpush1.bf16.msra.mxu1 %v5950_v26 }
 0x5da   :  { %4382 = vmatprep.subr.bf16.mxu0 %v5954_v29  ;;  %4414 = vmatprep.subr.bf16.mxu1 %v5957_v32 }
 0x5dd   :  { %4384 = vmatpush1.bf16.msra.mxu0 %v5960_v36  ;;  %4416 = vmatpush1.bf16.msra.mxu1 %v5964_v40 }
 0x5de   :  { %4386 = vmatprep.subr.bf16.mxu0 %v5968_v44  ;;  %4418 = vmatprep.subr.bf16.mxu1 %v5971_v48 }
 0x5e1   :  { %4388 = vmatpush1.bf16.msra.mxu0 %v5974_v54  ;;  %4420 = vmatpush1.bf16.msra.mxu1 %v5978_v58 }
 0x5e2   :  { %4390 = vmatprep.subr.bf16.mxu0 %v5982_v62  ;;  %4422 = vmatprep.subr.bf16.mxu1 %v5985_v4 }
 0x5e5   :  { %4392 = vmatpush1.bf16.msra.mxu0 %v5988_v9  ;;  %4424 = vmatpush1.bf16.msra.mxu1 %v5992_v14 }
 0x5e6   :  { %4394 = vmatprep.subr.bf16.mxu0 %v5996_v18  ;;  %4426 = vmatprep.subr.bf16.mxu1 %v5999_v22 }
 0x5e9   :  { %4396 = vmatpush1.bf16.msra.mxu0 %v6002_v25  ;;  %4428 = vmatpush1.bf16.msra.mxu1 %v6006_v27 }
 0x5ea   :  { %4430 = vmatprep.subr.bf16.mxu0 %v5903_v38  ;;  %4462 = vmatprep.subr.bf16.mxu1 %v5905_v41 }
 0x69f   :  { %v1516_v30 = vpop.f32.mrb[10].mxu0  ;;  %v1587_v8 = vpop.f32.mrb[10].mxu1 }
 0x6a0   :  { %v5079_v17 = vadd.f32 %v1516_v30, %v6060_v37  ;;  %v1518_v1 = vpop.f32.mrb[11].mxu0  ;;  %v1589_v24 = vpop.f32.mrb[11].mxu1  ;;  %v5095_v52 = vadd.f32 %v1587_v8, %v6077_v2 }
 0x6a1   :  { %v5080_v28 = vadd.f32 %v1518_v1, %v6064_v39  ;;  %v5096_v34 = vadd.f32 %v1589_v24, %v6071_v59 }
 0x6a2   :  { %v3884_v42 = vmul.f32 -1.442695, %v5079_v17 }
 0x6a3   :  { %v3885_v21 = vmul.f32 -1.442695, %v5080_v28  ;;  %v3886_v15 = vmul.f32 -1.442695, %v5096_v34  ;;  %v1988_v34 = vld [vmem:[#allocation15 + $0x10] sm:$0xff] }
 0x6a4   :  { %5292 = vpow2.f32 %v3884_v42 }
 0x6a5   :  { %5294 = vpow2.f32 %v3885_v21 }
 0x6a6   :  { %5296 = vpow2.f32 %v3886_v15  ;;  %v1992_v15 = vld [vmem:[#allocation15 + $0x30] sm:$0xff] }
 0x6a7   :  { %5298 = vtanh.f32 %v5095_v52  ;;  %v1995_v52 = vld [vmem:[#allocation15 + $0x48] sm:$0xff] }
 0x6ae   :  { %v5293_v38 = vpop.eup %5292 }
 0x6af   :  { %v5295_v57 = vpop.eup %5294  ;;  %v1599_v41 = vadd.f32 1.0, %v5293_v38  ;;  %v1999_v38 = vld [vmem:[#allocation15 + $0x68] sm:$0xff] }
 0x6b0   :  { %v1605_v5 = vadd.f32 1.0, %v5295_v57  ;;  %v5297_v45 = vpop.eup %5296  ;;  %v1997_v57 = vld [vmem:[#allocation15 + $0x58] sm:$0xff] }
 0x6b1   :  { %5300 = vrcp.f32 %v1599_v41  ;;  %v5299_v49 = vpop.eup %5298  ;;  %v1612_v1 = vadd.f32 1.0, %v5297_v45  ;;  %v2001_v41 = vld [vmem:[#allocation15 + $0x78] sm:$0xff] }
 0x6b2   :  { %5302 = vrcp.f32 %v1605_v5 }
 0x6b3   :  { %5304 = vrcp.f32 %v1612_v1 }
 0x6bb   :  { %v5301_v11 = vpop.eup %5300 }
 0x6bc   :  { %v5303_v30 = vpop.eup %5302  ;;  %v1616_v17 = vmul.f32 %v5301_v11, %v5299_v49  ;;  %v4527_v11 = vpack.c.bf16 %v1992_v15, %v1988_v34  ;;  %v2018_v34 = vld [vmem:[#allocation15 + $0x100] sm:$0xff] }
 0x6bd   :  { %v1615_v28 = vmul.f32 %v5303_v30, %v6264_v55  ;;  %v5305_v8 = vpop.eup %5304  ;;  %v1990_v55 = vld [vmem:[#allocation15 + $0x20] sm:$0xff] }
 0x6be   :  { %v1994_v30 = vld [vmem:[#allocation15 + $0x40] sm:$0xff] }
 0x6bf   :  { %v6310_v24 = vadd.f32 %v1616_v17, %v1615_v28  ;;  %v1998_v17 = vld [vmem:[#allocation15 + $0x60] sm:$0xff]  ;;  %v4497_v28 = vpack.c.bf16 %v1999_v38, %v1995_v52 }
 0x6c0   :  { %v2022_v15 = vld [vmem:[#allocation15 + $0x120] sm:$0xff] }
 0x6c1   :  { %5306 = vtanh.f32 %v6310_v24 }
 0x6cb   :  { %v5307_v42 = vpop.eup %5306 }
 0x6cc   :  { %v6313_v21 = vmul.f32 %v5307_v42, %v5305_v8  ;;  %v1996_v8 = vld [vmem:[#allocation15 + $0x50] sm:$0xff] }
 0x6cd   :  { %v2000_v42 = vld [vmem:[#allocation15 + $0x70] sm:$0xff] }
 0x6ce   :  { %1692 = vmatmul.mubr.f32.vlgmr.msra.gmra.mrb[12].mxu0 %v6313_v21  ;;  %1763 = vmatmul.mubr.f32.vlgmr.msra.gmra.mrb[12].mxu1 %v6313_v21 }
 0x6cf   :  { %4432 = vmatpush1.bf16.msra.mxu0 %v5907_v47  ;;  %4464 = vmatpush1.bf16.msra.mxu1 %v5910_v50  ;;  %v1987_v47 = vld [vmem:[#allocation15 + $0x8] sm:$0xff] }
 0x6d0   :  { %4434 = vmatprep.subr.bf16.mxu0 %v5913_v53  ;;  %4466 = vmatprep.subr.bf16.mxu1 %v5915_v56  ;;  %v1991_v50 = vld [vmem:[#allocation15 + $0x28] sm:$0xff]  ;;  %v1989_v53 = vld [vmem:[#allocation15 + $0x18] sm:$0xff] }
 0x6d1   :  { %1868 = vmatprep.mubr.f32.mxu0 %v5711_v0  ;;  %1939 = vmatprep.mubr.f32.mxu1 %v5711_v0  ;;  %v4493_v56 = vpack.c.bf16 %v1991_v50, %v1987_v47  ;;  %v2003_v47 = vld [vmem:[#allocation15 + $0x88] sm:$0xff] }
 0x6d2   :  { %v2007_v50 = vld [vmem:[#allocation15 + $0xa8] sm:$0xff] }
 0x6d3   :  { %4436 = vmatpush1.bf16.msra.mxu0 %v5918_v60  ;;  %4468 = vmatpush1.bf16.msra.mxu1 %v5922_v63  ;;  %v1993_v60 = vld [vmem:[#allocation15 + $0x38] sm:$0xff] }
 0x6d4   :  { %4438 = vmatprep.subr.bf16.mxu0 %v5926_v3  ;;  %4470 = vmatprep.subr.bf16.mxu1 %v5929_v6  ;;  %v4525_v63 = vpack.c.bf16 %v1993_v60, %v1989_v53  ;;  %v2005_v53 = vld [vmem:[#allocation15 + $0x98] sm:$0xff]  ;;  %v4499_v60 = vpack.c.bf16 %v1998_v17, %v1994_v30  ;;  %v4511_v30 = vpack.c.bf16 %v2022_v15, %v2018_v34  ;;  %v2332_v15 = vld [vmem:[#allocation17 + $0x10] sm:$0xff] }
 0x6d7   :  { %4440 = vmatpush1.bf16.msra.mxu0 %v5932_v10  ;;  %4472 = vmatpush1.bf16.msra.mxu1 %v5936_v13 }
 0x6d8   :  { %4442 = vmatprep.subr.bf16.mxu0 %v5940_v16  ;;  %4474 = vmatprep.subr.bf16.mxu1 %v5943_v19 }
 0x6db   :  { %4444 = vmatpush1.bf16.msra.mxu0 %v5946_v23  ;;  %4476 = vmatpush1.bf16.msra.mxu1 %v5950_v26 }
 0x6dc   :  { %4446 = vmatprep.subr.bf16.mxu0 %v5954_v29  ;;  %4478 = vmatprep.subr.bf16.mxu1 %v5957_v32 }
 0x6df   :  { %4448 = vmatpush1.bf16.msra.mxu0 %v5960_v36  ;;  %4480 = vmatpush1.bf16.msra.mxu1 %v5964_v40 }
 0x6e0   :  { %4450 = vmatprep.subr.bf16.mxu0 %v5968_v44  ;;  %4482 = vmatprep.subr.bf16.mxu1 %v5971_v48 }
 0x6e3   :  { %4452 = vmatpush1.bf16.msra.mxu0 %v5974_v54  ;;  %4484 = vmatpush1.bf16.msra.mxu1 %v5978_v58 }
 0x6e4   :  { %4454 = vmatprep.subr.bf16.mxu0 %v5982_v62  ;;  %4486 = vmatprep.subr.bf16.mxu1 %v5985_v4 }
 0x6e7   :  { %4456 = vmatpush1.bf16.msra.mxu0 %v5988_v9  ;;  %4488 = vmatpush1.bf16.msra.mxu1 %v5992_v14 }
 0x6e8   :  { %4458 = vmatprep.subr.bf16.mxu0 %v5996_v18  ;;  %4490 = vmatprep.subr.bf16.mxu1 %v5999_v22 }
 0x6eb   :  { %4460 = vmatpush1.bf16.msra.mxu0 %v6002_v25  ;;  %4492 = vmatpush1.bf16.msra.mxu1 %v6006_v27  ;;  %v1986_v27 = vld [vmem:[#allocation15] sm:$0xff] }
 0x6ec   :  { %4494 = vmatprep.subr.bf16.mxu0 %v4493_v56  ;;  %4526 = vmatprep.subr.bf16.mxu1 %v4525_v63  ;;  %v4495_v49 = vpack.c.bf16 %v1990_v55, %v1986_v27  ;;  %v2009_v56 = vld [vmem:[#allocation15 + $0xb8] sm:$0xff]  ;;  %v4531_v63 = vpack.c.bf16 %v2000_v42, %v1996_v8 }
 0x7a1   :  { %v1693_v3 = vpop.f32.mrb[12].mxu0  ;;  %v1764_v6 = vpop.f32.mrb[12].mxu1 }
 0x7a2   :  { %v5081_v10 = vadd.f32 %v1693_v3, %v6060_v37  ;;  %v1695_v13 = vpop.f32.mrb[13].mxu0  ;;  %v1766_v16 = vpop.f32.mrb[13].mxu1  ;;  %v5097_v36 = vadd.f32 %v1764_v6, %v6077_v2  ;;  %v2002_v3 = vld [vmem:[#allocation15 + $0x80] sm:$0xff] }
 0x7a3   :  { %v5082_v19 = vadd.f32 %v1695_v13, %v6064_v39  ;;  %v5098_v29 = vadd.f32 %v1766_v16, %v6071_v59  ;;  %v2006_v6 = vld [vmem:[#allocation15 + $0xa0] sm:$0xff]  ;;  %v4533_v13 = vpack.c.bf16 %v2009_v56, %v2005_v53  ;;  %v2004_v16 = vld [vmem:[#allocation15 + $0x90] sm:$0xff]  ;;  %v2035_v53 = vld [vmem:[#allocation15 + $0x188] sm:$0xff] }
 0x7a4   :  { %v3887_v23 = vmul.f32 -1.442695, %v5081_v10  ;;  %v4501_v10 = vpack.c.bf16 %v2007_v50, %v2003_v47  ;;  %v2028_v47 = vld [vmem:[#allocation15 + $0x150] sm:$0xff]  ;;  %v2039_v56 = vld [vmem:[#allocation15 + $0x1a8] sm:$0xff] }
 0x7a5   :  { %v3888_v26 = vmul.f32 -1.442695, %v5082_v19  ;;  %v3889_v32 = vmul.f32 -1.442695, %v5098_v29  ;;  %v2008_v19 = vld [vmem:[#allocation15 + $0xb0] sm:$0xff]  ;;  %v2013_v29 = vld [vmem:[#allocation15 + $0xd8] sm:$0xff] }
 0x7a6   :  { %5308 = vpow2.f32 %v3887_v23  ;;  %v2011_v23 = vld [vmem:[#allocation15 + $0xc8] sm:$0xff]  ;;  %v2032_v50 = vld [vmem:[#allocation15 + $0x170] sm:$0xff] }
 0x7a7   :  { %5310 = vpow2.f32 %v3888_v26  ;;  %v2015_v26 = vld [vmem:[#allocation15 + $0xe8] sm:$0xff] }
 0x7a8   :  { %5312 = vpow2.f32 %v3889_v32  ;;  %v2017_v32 = vld [vmem:[#allocation15 + $0xf8] sm:$0xff] }
 0x7a9   :  { %5314 = vtanh.f32 %v5097_v36  ;;  %v4503_v36 = vpack.c.bf16 %v2006_v6, %v2002_v3  ;;  %v4547_v6 = vpack.c.bf16 %v2032_v50, %v2028_v47  ;;  %v2351_v47 = vld [vmem:[#allocation17 + $0xa8] sm:$0xff]  ;;  %v2349_v50 = vld [vmem:[#allocation17 + $0x98] sm:$0xff] }
 0x7b0   :  { %v5309_v40 = vpop.eup %5308 }
 0x7b1   :  { %v5311_v44 = vpop.eup %5310  ;;  %v1776_v48 = vadd.f32 1.0, %v5309_v40  ;;  %v4535_v40 = vpack.c.bf16 %v2008_v19, %v2004_v16  ;;  %v4517_v16 = vpack.c.bf16 %v2039_v56, %v2035_v53  ;;  %v2353_v56 = vld [vmem:[#allocation17 + $0xb8] sm:$0xff] }
 0x7b2   :  { %v1782_v54 = vadd.f32 1.0, %v5311_v44  ;;  %v5313_v58 = vpop.eup %5312  ;;  %v2010_v44 = vld [vmem:[#allocation15 + $0xc0] sm:$0xff] }
 0x7b3   :  { %5316 = vrcp.f32 %v1776_v48  ;;  %v5315_v62 = vpop.eup %5314  ;;  %v1789_v18 = vadd.f32 1.0, %v5313_v58  ;;  %v2014_v48 = vld [vmem:[#allocation15 + $0xe0] sm:$0xff]  ;;  %v4537_v58 = vpack.c.bf16 %v2017_v32, %v2013_v29  ;;  %v2043_v29 = vld [vmem:[#allocation15 + $0x1c8] sm:$0xff] }
 0x7b4   :  { %5318 = vrcp.f32 %v1782_v54  ;;  %v4505_v54 = vpack.c.bf16 %v2015_v26, %v2011_v23  ;;  %v4507_v27 = vpack.c.bf16 %v2014_v48, %v2010_v44  ;;  %v2036_v23 = vld [vmem:[#allocation15 + $0x190] sm:$0xff]  ;;  %v2047_v32 = vld [vmem:[#allocation15 + $0x1e8] sm:$0xff] }
 0x7b5   :  { %5320 = vrcp.f32 %v1789_v18  ;;  %v2021_v18 = vld [vmem:[#allocation15 + $0x118] sm:$0xff]  ;;  %v2040_v26 = vld [vmem:[#allocation15 + $0x1b0] sm:$0xff] }
 0x7b6   :  { %v4551_v48 = vpack.c.bf16 %v2040_v26, %v2036_v23  ;;  %v2359_v23 = vld [vmem:[#allocation17 + $0xe8] sm:$0xff]  ;;  %v2357_v26 = vld [vmem:[#allocation17 + $0xd8] sm:$0xff] }
 0x7bd   :  { %v5317_v4 = vpop.eup %5316 }
 0x7be   :  { %v5319_v9 = vpop.eup %5318  ;;  %v1793_v14 = vmul.f32 %v5317_v4, %v5315_v62  ;;  %v2012_v62 = vld [vmem:[#allocation15 + $0xd0] sm:$0xff] }
 0x7bf   :  { %v1792_v22 = vmul.f32 %v5319_v9, %v6310_v24  ;;  %v5321_v5 = vpop.eup %5320  ;;  %v4529_v24 = vpack.c.bf16 %v2001_v41, %v1997_v57  ;;  %v2016_v4 = vld [vmem:[#allocation15 + $0xf0] sm:$0xff]  ;;  %v2019_v9 = vld [vmem:[#allocation15 + $0x108] sm:$0xff] }
 0x7c0   :  { %v4539_v55 = vpack.c.bf16 %v2016_v4, %v2012_v62  ;;  %v2020_v57 = vld [vmem:[#allocation15 + $0x110] sm:$0xff]  ;;  %v2046_v4 = vld [vmem:[#allocation15 + $0x1e0] sm:$0xff] }
 0x7c1   :  { %v6354_v25 = vadd.f32 %v1793_v14, %v1792_v22  ;;  %v2023_v14 = vld [vmem:[#allocation15 + $0x128] sm:$0xff]  ;;  %v2025_v22 = vld [vmem:[#allocation15 + $0x138] sm:$0xff]  ;;  %v2024_v41 = vld [vmem:[#allocation15 + $0x130] sm:$0xff] }
 0x7c2   :  { %v4509_v52 = vpack.c.bf16 %v2023_v14, %v2019_v9  ;;  %v4541_v38 = vpack.c.bf16 %v2025_v22, %v2021_v18  ;;  %v4543_v17 = vpack.c.bf16 %v2024_v41, %v2020_v57  ;;  %v2044_v9 = vld [vmem:[#allocation15 + $0x1d0] sm:$0xff]  ;;  %v2343_v57 = vld [vmem:[#allocation17 + $0x68] sm:$0xff]  ;;  %v2341_v41 = vld [vmem:[#allocation17 + $0x58] sm:$0xff] }
 0x7c3   :  { %5322 = vtanh.f32 %v6354_v25  ;;  %v2048_v14 = vld [vmem:[#allocation15 + $0x1f0] sm:$0xff] }
 0x7c4   :  { %v4555_v22 = vpack.c.bf16 %v2048_v14, %v2044_v9  ;;  %v2367_v9 = vld [vmem:[#allocation17 + $0x128] sm:$0xff]  ;;  %v2365_v14 = vld [vmem:[#allocation17 + $0x118] sm:$0xff] }
 0x7cd   :  { %v5323_v45 = vpop.eup %5322 }
 0x7ce   :  { %v6357_v1 = vmul.f32 %v5323_v45, %v5321_v5  ;;  %v2027_v5 = vld [vmem:[#allocation15 + $0x148] sm:$0xff] }
 0x7cf   :  { %v2031_v45 = vld [vmem:[#allocation15 + $0x168] sm:$0xff] }
 0x7d0   :  { %1869 = vmatmul.mubr.f32.vlgmr.msra.gmra.mrb[14].mxu0 %v6357_v1  ;;  %1940 = vmatmul.mubr.f32.vlgmr.msra.gmra.mrb[14].mxu1 %v6357_v1  ;;  %v4513_v8 = vpack.c.bf16 %v2031_v45, %v2027_v5  ;;  %v2345_v45 = vld [vmem:[#allocation17 + $0x78] sm:$0xff] }
 0x7d1   :  { %4496 = vmatpush1.bf16.msra.mxu0 %v4495_v49  ;;  %4528 = vmatpush1.bf16.msra.mxu1 %v4527_v11  ;;  %v2029_v49 = vld [vmem:[#allocation15 + $0x158] sm:$0xff] }
 0x7d2   :  { %4498 = vmatprep.subr.bf16.mxu0 %v4497_v28  ;;  %4530 = vmatprep.subr.bf16.mxu1 %v4529_v24  ;;  %v2033_v11 = vld [vmem:[#allocation15 + $0x178] sm:$0xff]  ;;  %v2026_v28 = vld [vmem:[#allocation15 + $0x140] sm:$0xff] }
 0x7d3   :  { %2136 = vmatprep.mubr.f32.mxu0 %v5711_v0  ;;  %2249 = vmatprep.mubr.f32.mxu1 %v5711_v0  ;;  %v2030_v24 = vld [vmem:[#allocation15 + $0x160] sm:$0xff]  ;;  %v4545_v42 = vpack.c.bf16 %v2033_v11, %v2029_v49 }
 0x7d4   :  { %v4515_v3 = vpack.c.bf16 %v2030_v24, %v2026_v28  ;;  %v2338_v49 = vld [vmem:[#allocation17 + $0x40] sm:$0xff]  ;;  %v2340_v28 = vld [vmem:[#allocation17 + $0x50] sm:$0xff] }
 0x7d5   :  { %4500 = vmatpush1.bf16.msra.mxu0 %v4499_v60  ;;  %4532 = vmatpush1.bf16.msra.mxu1 %v4531_v63  ;;  %v2037_v60 = vld [vmem:[#allocation15 + $0x198] sm:$0xff]  ;;  %v2342_v11 = vld [vmem:[#allocation17 + $0x60] sm:$0xff]  ;;  %v2344_v24 = vld [vmem:[#allocation17 + $0x70] sm:$0xff] }
 0x7d6   :  { %4502 = vmatprep.subr.bf16.mxu0 %v4501_v10  ;;  %4534 = vmatprep.subr.bf16.mxu1 %v4533_v13  ;;  %v2041_v63 = vld [vmem:[#allocation15 + $0x1b8] sm:$0xff]  ;;  %v2034_v10 = vld [vmem:[#allocation15 + $0x180] sm:$0xff] }
 0x7d7   :  { %v2038_v13 = vld [vmem:[#allocation15 + $0x1a0] sm:$0xff]  ;;  %v4549_v19 = vpack.c.bf16 %v2041_v63, %v2037_v60 }
 0x7d8   :  { %v4519_v44 = vpack.c.bf16 %v2038_v13, %v2034_v10  ;;  %v2346_v60 = vld [vmem:[#allocation17 + $0x80] sm:$0xff]  ;;  %v2348_v10 = vld [vmem:[#allocation17 + $0x90] sm:$0xff] }
 0x7d9   :  { %4504 = vmatpush1.bf16.msra.mxu0 %v4503_v36  ;;  %4536 = vmatpush1.bf16.msra.mxu1 %v4535_v40  ;;  %v2045_v36 = vld [vmem:[#allocation15 + $0x1d8] sm:$0xff]  ;;  %v2350_v63 = vld [vmem:[#allocation17 + $0xa0] sm:$0xff]  ;;  %v2352_v13 = vld [vmem:[#allocation17 + $0xb0] sm:$0xff] }
 0x7da   :  { %4506 = vmatprep.subr.bf16.mxu0 %v4505_v54  ;;  %4538 = vmatprep.subr.bf16.mxu1 %v4537_v58  ;;  %v2049_v40 = vld [vmem:[#allocation15 + $0x1f8] sm:$0xff]  ;;  %v2042_v54 = vld [vmem:[#allocation15 + $0x1c0] sm:$0xff]  ;;  %v4521_v58 = vpack.c.bf16 %v2047_v32, %v2043_v29 }
 0x7db   :  { %v4553_v62 = vpack.c.bf16 %v2049_v40, %v2045_v36  ;;  %v4523_v18 = vpack.c.bf16 %v2046_v4, %v2042_v54  ;;  %v2361_v32 = vld [vmem:[#allocation17 + $0xf8] sm:$0xff]  ;;  %v2354_v36 = vld [vmem:[#allocation17 + $0xc0] sm:$0xff]  ;;  %v2356_v54 = vld [vmem:[#allocation17 + $0xd0] sm:$0xff] }
 0x7dc   :  { %v2358_v40 = vld [vmem:[#allocation17 + $0xe0] sm:$0xff] }
 0x7dd   :  { %4508 = vmatpush1.bf16.msra.mxu0 %v4507_v27  ;;  %4540 = vmatpush1.bf16.msra.mxu1 %v4539_v55  ;;  %v2330_v27 = vld [vmem:[#allocation17] sm:$0xff] }
 0x7de   :  { %4510 = vmatprep.subr.bf16.mxu0 %v4509_v52  ;;  %4542 = vmatprep.subr.bf16.mxu1 %v4541_v38  ;;  %v2336_v52 = vld [vmem:[#allocation17 + $0x30] sm:$0xff]  ;;  %v2339_v38 = vld [vmem:[#allocation17 + $0x48] sm:$0xff] }
 0x7df   :  { %v6403_v5 = vpack.c.bf16 %v2343_v57, %v2339_v38 }
 0x7e1   :  { %4512 = vmatpush1.bf16.msra.mxu0 %v4511_v30  ;;  %4544 = vmatpush1.bf16.msra.mxu1 %v4543_v17  ;;  %v6405_v30 = vpack.c.bf16 %v2345_v45, %v2341_v41  ;;  %v6407_v17 = vpack.c.bf16 %v2342_v11, %v2338_v49  ;;  %v2373_v41 = vld [vmem:[#allocation17 + $0x158] sm:$0xff]  ;;  %v2370_v49 = vld [vmem:[#allocation17 + $0x140] sm:$0xff] }
 0x7e2   :  { %4514 = vmatprep.subr.bf16.mxu0 %v4513_v8  ;;  %4546 = vmatprep.subr.bf16.mxu1 %v4545_v42  ;;  %v6410_v8 = vpack.c.bf16 %v2344_v24, %v2340_v28  ;;  %v2347_v42 = vld [vmem:[#allocation17 + $0x88] sm:$0xff]  ;;  %v2377_v45 = vld [vmem:[#allocation17 + $0x178] sm:$0xff]  ;;  %v2374_v28 = vld [vmem:[#allocation17 + $0x160] sm:$0xff] }
 0x7e3   :  { %v6415_v53 = vpack.c.bf16 %v2351_v47, %v2347_v42  ;;  %v6451_v11 = vpack.c.bf16 %v2377_v45, %v2373_v41  ;;  %v2372_v24 = vld [vmem:[#allocation17 + $0x150] sm:$0xff]  ;;  %v6454_v47 = vpack.c.bf16 %v2374_v28, %v2370_v49 }
 0x7e4   :  { %v2376_v42 = vld [vmem:[#allocation17 + $0x170] sm:$0xff] }
 0x7e5   :  { %4516 = vmatpush1.bf16.msra.mxu0 %v4515_v3  ;;  %4548 = vmatpush1.bf16.msra.mxu1 %v4547_v6  ;;  %v6417_v3 = vpack.c.bf16 %v2353_v56, %v2349_v50  ;;  %v6419_v6 = vpack.c.bf16 %v2350_v63, %v2346_v60  ;;  %v2379_v50 = vld [vmem:[#allocation17 + $0x188] sm:$0xff]  ;;  %v2381_v60 = vld [vmem:[#allocation17 + $0x198] sm:$0xff]  ;;  %v6458_v63 = vpack.c.bf16 %v2376_v42, %v2372_v24 }
 0x7e6   :  { %4518 = vmatprep.subr.bf16.mxu0 %v4517_v16  ;;  %4550 = vmatprep.subr.bf16.mxu1 %v4549_v19  ;;  %v6422_v16 = vpack.c.bf16 %v2352_v13, %v2348_v10  ;;  %v2355_v19 = vld [vmem:[#allocation17 + $0xc8] sm:$0xff]  ;;  %v2385_v13 = vld [vmem:[#allocation17 + $0x1b8] sm:$0xff] }
 0x7e7   :  { %v6427_v29 = vpack.c.bf16 %v2359_v23, %v2355_v19  ;;  %v2383_v56 = vld [vmem:[#allocation17 + $0x1a8] sm:$0xff]  ;;  %v2378_v19 = vld [vmem:[#allocation17 + $0x180] sm:$0xff] }
 0x7e8   :  { %v6460_v10 = vpack.c.bf16 %v2383_v56, %v2379_v50  ;;  %v2382_v23 = vld [vmem:[#allocation17 + $0x1a0] sm:$0xff] }
 0x7e9   :  { %4520 = vmatpush1.bf16.msra.mxu0 %v4519_v44  ;;  %4552 = vmatpush1.bf16.msra.mxu1 %v4551_v48  ;;  %v6429_v44 = vpack.c.bf16 %v2361_v32, %v2357_v26  ;;  %v6431_v48 = vpack.c.bf16 %v2358_v40, %v2354_v36  ;;  %v6463_v26 = vpack.c.bf16 %v2385_v13, %v2381_v60  ;;  %v2380_v32 = vld [vmem:[#allocation17 + $0x190] sm:$0xff] }
 0x7ea   :  { %4522 = vmatprep.subr.bf16.mxu0 %v4521_v58  ;;  %4554 = vmatprep.subr.bf16.mxu1 %v4553_v62  ;;  %v2360_v58 = vld [vmem:[#allocation17 + $0xf0] sm:$0xff]  ;;  %v2363_v62 = vld [vmem:[#allocation17 + $0x108] sm:$0xff]  ;;  %v6466_v40 = vpack.c.bf16 %v2382_v23, %v2378_v19 }
 0x7eb   :  { %v6434_v4 = vpack.c.bf16 %v2360_v58, %v2356_v54  ;;  %v2384_v36 = vld [vmem:[#allocation17 + $0x1b0] sm:$0xff]  ;;  %v2387_v58 = vld [vmem:[#allocation17 + $0x1c8] sm:$0xff] }
 0x7ec   :  { %v6470_v54 = vpack.c.bf16 %v2384_v36, %v2380_v32 }
 0x7ed   :  { %4524 = vmatpush1.bf16.msra.mxu0 %v4523_v18  ;;  %4556 = vmatpush1.bf16.msra.mxu1 %v4555_v22  ;;  %v2369_v18 = vld [vmem:[#allocation17 + $0x138] sm:$0xff]  ;;  %v6438_v22 = vpack.c.bf16 %v2367_v9, %v2363_v62  ;;  %v2391_v62 = vld [vmem:[#allocation17 + $0x1e8] sm:$0xff] }
 0x7ee   :  { %v2389_v9 = vld [vmem:[#allocation17 + $0x1d8] sm:$0xff] }
 0x7f0   :  { %2137 = vmatmul.mubr.f32.vlgmr.msra.gmra.mrb[16].mxu0 %v6083_v51  ;;  %2250 = vmatmul.mubr.f32.vlgmr.msra.gmra.mrb[16].mxu1 %v6083_v51  ;;  %v2331_v51 = vld [vmem:[#allocation17 + $0x8] sm:$0xff] }
 0x7f1   :  { %2142 = vmatprep.mubr.f32.mxu0 %v5711_v0  ;;  %2255 = vmatprep.mubr.f32.mxu1 %v5711_v0 }
 0x7f4   :  { %2143 = vmatmul.mubr.f32.gmra.mrb[18].mxu0 %v6129_v7  ;;  %2256 = vmatmul.mubr.f32.gmra.mrb[18].mxu1 %v6129_v7  ;;  %v2335_v7 = vld [vmem:[#allocation17 + $0x28] sm:$0xff] }
 0x7f5   :  { %2148 = vmatprep.mubr.f32.mxu0 %v5711_v0  ;;  %2261 = vmatprep.mubr.f32.mxu1 %v5711_v0 }
 0x7f8   :  { %2149 = vmatmul.mubr.f32.gmra.mrb[20].mxu0 %v6175_v20  ;;  %2262 = vmatmul.mubr.f32.gmra.mrb[20].mxu1 %v6175_v20  ;;  %v2333_v20 = vld [vmem:[#allocation17 + $0x18] sm:$0xff] }
 0x7f9   :  { %2154 = vmatprep.mubr.f32.mxu0 %v5711_v0  ;;  %2267 = vmatprep.mubr.f32.mxu1 %v5711_v0 }
 0x7fc   :  { %2155 = vmatmul.mubr.f32.gmra.mrb[22].mxu0 %v6221_v46  ;;  %2268 = vmatmul.mubr.f32.gmra.mrb[22].mxu1 %v6221_v46  ;;  %v6391_v46 = vpack.c.bf16 %v2335_v7, %v2331_v51  ;;  %v6440_v51 = vpack.c.bf16 %v2369_v18, %v2365_v14  ;;  %v2362_v7 = vld [vmem:[#allocation17 + $0x100] sm:$0xff]  ;;  %v6475_v14 = vpack.c.bf16 %v2391_v62, %v2387_v58  ;;  %v2393_v18 = vld [vmem:[#allocation17 + $0x1f8] sm:$0xff] }
 0x7fd   :  { %2160 = vmatprep.mubr.f32.mxu0 %v5711_v0  ;;  %2273 = vmatprep.mubr.f32.mxu1 %v5711_v0 }
 0x7fe   :  { %4558 = vmatprep.subr.bf16.mxu0 %v6391_v46 }
 0x800   :  { %2161 = vmatmul.mubr.f32.gmra.mrb[24].mxu0 %v6267_v12  ;;  %2274 = vmatmul.mubr.f32.gmra.mrb[24].mxu1 %v6267_v12  ;;  %v2337_v12 = vld [vmem:[#allocation17 + $0x38] sm:$0xff] }
 0x801   :  { %2166 = vmatprep.mubr.f32.mxu0 %v5711_v0  ;;  %2279 = vmatprep.mubr.f32.mxu1 %v5711_v0  ;;  %v6393_v55 = vpack.c.bf16 %v2337_v12, %v2333_v20  ;;  %v2366_v20 = vld [vmem:[#allocation17 + $0x120] sm:$0xff]  ;;  %v2364_v12 = vld [vmem:[#allocation17 + $0x110] sm:$0xff] }
 0x803   :  { %4590 = vmatprep.subr.bf16.mxu1 %v6393_v55 }
 0x804   :  { %2167 = vmatmul.mubr.f32.gmra.mrb[26].mxu0 %v6313_v21  ;;  %2280 = vmatmul.mubr.f32.gmra.mrb[26].mxu1 %v6313_v21  ;;  %v2334_v21 = vld [vmem:[#allocation17 + $0x20] sm:$0xff] }
 0x805   :  { %2172 = vmatprep.mubr.f32.mxu0 %v5711_v0  ;;  %2285 = vmatprep.mubr.f32.mxu1 %v5711_v0  ;;  %v6395_v34 = vpack.c.bf16 %v2334_v21, %v2330_v27  ;;  %v6443_v27 = vpack.c.bf16 %v2366_v20, %v2362_v7  ;;  %v2368_v21 = vld [vmem:[#allocation17 + $0x130] sm:$0xff]  ;;  %v2386_v7 = vld [vmem:[#allocation17 + $0x1c0] sm:$0xff] }
 0x806   :  { %v6447_v38 = vpack.c.bf16 %v2368_v21, %v2364_v12  ;;  %v2390_v20 = vld [vmem:[#allocation17 + $0x1e0] sm:$0xff]  ;;  %v6477_v12 = vpack.c.bf16 %v2393_v18, %v2389_v9 }
 0x807   :  { %4560 = vmatpush1.bf16.msra.mxu0 %v6395_v34  ;;  %v6479_v21 = vpack.c.bf16 %v2390_v20, %v2386_v7 }
 0x808   :  { %2173 = vmatmul.mubr.f32.gmra.mrb[28].mxu0 %v6357_v1  ;;  %2286 = vmatmul.mubr.f32.gmra.mrb[28].mxu1 %v6357_v1  ;;  %v6398_v1 = vpack.c.bf16 %v2336_v52, %v2332_v15  ;;  %v2371_v15 = vld [vmem:[#allocation17 + $0x148] sm:$0xff] }
 0x809   :  { %2178 = vmatprep.mubr.f32.mxu0 %v5711_v0  ;;  %2291 = vmatprep.mubr.f32.mxu1 %v5711_v0  ;;  %v2375_v52 = vld [vmem:[#allocation17 + $0x168] sm:$0xff] }
 0x80a   :  { %4592 = vmatpush1.bf16.msra.mxu1 %v6398_v1  ;;  %4562 = vmatprep.subr.bf16.mxu0 %v6403_v5  ;;  %v6449_v57 = vpack.c.bf16 %v2375_v52, %v2371_v15  ;;  %v2388_v15 = vld [vmem:[#allocation17 + $0x1d0] sm:$0xff] }
 0x80b   :  { %4594 = vmatprep.subr.bf16.mxu1 %v6405_v30  ;;  %4564 = vmatpush1.bf16.msra.mxu0 %v6407_v17  ;;  %v2392_v52 = vld [vmem:[#allocation17 + $0x1f0] sm:$0xff] }
 0x80c   :  { %4566 = vmatprep.subr.bf16.mxu0 %v6415_v53  ;;  %v6482_v41 = vpack.c.bf16 %v2392_v52, %v2388_v15 }
 0x80e   :  { %4596 = vmatpush1.bf16.msra.mxu1 %v6410_v8 }
 0x80f   :  { %4598 = vmatprep.subr.bf16.mxu1 %v6417_v3  ;;  %4568 = vmatpush1.bf16.msra.mxu0 %v6419_v6 }
 0x810   :  { %4570 = vmatprep.subr.bf16.mxu0 %v6427_v29 }
 0x812   :  { %4600 = vmatpush1.bf16.msra.mxu1 %v6422_v16 }
 0x813   :  { %4602 = vmatprep.subr.bf16.mxu1 %v6429_v44  ;;  %4572 = vmatpush1.bf16.msra.mxu0 %v6431_v48 }
 0x814   :  { %4574 = vmatprep.subr.bf16.mxu0 %v6438_v22 }
 0x816   :  { %4604 = vmatpush1.bf16.msra.mxu1 %v6434_v4 }
 0x817   :  { %4606 = vmatprep.subr.bf16.mxu1 %v6440_v51  ;;  %4576 = vmatpush1.bf16.msra.mxu0 %v6443_v27 }
 0x818   :  { %4578 = vmatprep.subr.bf16.mxu0 %v6449_v57 }
 0x81a   :  { %4608 = vmatpush1.bf16.msra.mxu1 %v6447_v38 }
 0x81b   :  { %4610 = vmatprep.subr.bf16.mxu1 %v6451_v11  ;;  %4580 = vmatpush1.bf16.msra.mxu0 %v6454_v47 }
 0x81c   :  { %4582 = vmatprep.subr.bf16.mxu0 %v6460_v10 }
 0x81e   :  { %4612 = vmatpush1.bf16.msra.mxu1 %v6458_v63 }
 0x81f   :  { %4614 = vmatprep.subr.bf16.mxu1 %v6463_v26  ;;  %4584 = vmatpush1.bf16.msra.mxu0 %v6466_v40 }
 0x820   :  { %4586 = vmatprep.subr.bf16.mxu0 %v6475_v14 }
 0x822   :  { %4616 = vmatpush1.bf16.msra.mxu1 %v6470_v54 }
 0x823   :  { %4618 = vmatprep.subr.bf16.mxu1 %v6477_v12  ;;  %4588 = vmatpush1.bf16.msra.mxu0 %v6479_v21 }
 0x824   :  { %4622 = vmatprep.subr.bf16.mxu0 %v6391_v46 }
 0x826   :  { %4620 = vmatpush1.bf16.msra.mxu1 %v6482_v41 }
 0x827   :  { %4654 = vmatprep.subr.bf16.mxu1 %v6393_v55 }
 0x8a3   :  { %v1870_v45 = vpop.f32.mrb[14].mxu0  ;;  %v1941_v49 = vpop.f32.mrb[14].mxu1 }
 0x8a4   :  { %v5083_v28 = vadd.f32 %v1870_v45, %v6060_v37  ;;  %v1872_v24 = vpop.f32.mrb[15].mxu0  ;;  %v1943_v42 = vpop.f32.mrb[15].mxu1  ;;  %v5099_v23 = vadd.f32 %v1941_v49, %v6077_v2  ;;  %v137_v49 = vld [vmem:[#allocation9 + $0x8] sm:$0xff] }
 0x8a5   :  { %v5084_v50 = vadd.f32 %v1872_v24, %v6064_v39  ;;  %v5100_v13 = vadd.f32 %v1943_v42, %v6071_v59 }
 0x8a6   :  { %v3890_v56 = vmul.f32 -1.442695, %v5083_v28 }
 0x8a7   :  { %v3891_v60 = vmul.f32 -1.442695, %v5084_v50  ;;  %v3892_v19 = vmul.f32 -1.442695, %v5100_v13 }
 0x8a8   :  { %5324 = vpow2.f32 %v3890_v56 }
 0x8a9   :  { %5326 = vpow2.f32 %v3891_v60 }
 0x8aa   :  { %5328 = vpow2.f32 %v3892_v19 }
 0x8ab   :  { %5330 = vtanh.f32 %v5099_v23 }
 0x8b2   :  { %v5325_v32 = vpop.eup %5324 }
 0x8b3   :  { %v5327_v36 = vpop.eup %5326  ;;  %v1953_v58 = vadd.f32 1.0, %v5325_v32 }
 0x8b4   :  { %v1959_v62 = vadd.f32 1.0, %v5327_v36  ;;  %v5329_v37 = vpop.eup %5328 }
 0x8b5   :  { %5332 = vrcp.f32 %v1953_v58  ;;  %v5331_v9 = vpop.eup %5330  ;;  %v1966_v20 = vadd.f32 1.0, %v5329_v37 }
 0x8b6   :  { %5334 = vrcp.f32 %v1959_v62 }
 0x8b7   :  { %5336 = vrcp.f32 %v1966_v20  ;;  %v141_v20 = vld [vmem:[#allocation11 + $0x8] sm:$0xff] }
 0x8bf   :  { %v5333_v39 = vpop.eup %5332 }
 0x8c0   :  { %v5335_v18 = vpop.eup %5334  ;;  %v1970_v7 = vmul.f32 %v5333_v39, %v5331_v9 }
 0x8c1   :  { %v1969_v15 = vmul.f32 %v5335_v18, %v6354_v25  ;;  %v5337_v2 = vpop.eup %5336  ;;  %v2050_v25 = vld [vmem:[%s6874_s8] sm:$0xf]  ;;  %s5712_s8 = smov [#allocation19]  }
 0x8c2   :  { %v6535_v28 = vrot.slane %v2050_v25, %v220_v33  ;;  %v6539_v24 = vrot.slane %v2050_v25, %v224_v35  ;;  %v6545_v36 = vrot.slane %v2050_v25, %v232_v43  ;;  %v6550_v35 = vrot.slane %v2050_v25, %v228_v61  ;;  %s3835_s14 = sshll.u32 %s5712_s8, 4  ;;  %s3836_s14 = int_to_ptr.vmem [resolvable:$true] %s3835_s14 }
 0x8c3   :  { %v1971_v59 = vadd.f32 %v1970_v7, %v1969_v15  ;;  %s5622_s19 = scalar_lea.vmem %s3836_s14, 256  ;;  %p5627_p1 = scmp.lt.s32.totalorder %s3836_s14, %s3836_s14 }
 0x8c4   :  { %p5623_p0 = scmp.ne.s32.totalorder %s3836_s14, %s5622_s19  ;;  %p5628_p2 = scmp.lt.s32.totalorder %s5622_s19, %s5622_s19 }
 0x8c5   :  { %5338 = vtanh.f32 %v1971_v59  ;;  %3816 = vst [vmem:[#allocation21] sm:$0xff] %v1971_v59 }
 0x8c6   :  { %p5629_p3 = por %p5628_p2, %p5627_p1 }
 0x8c8   :  { %p5630_p4 = pnand %p5629_p3, %p5623_p0 }
 0x8cf   :  { %v5339_v52 = vpop.eup %5338 }
 0x8d0   :  { %v1973_v45 = vmul.f32 %v5339_v52, %v5337_v2 }
 0x8d2   :  { %2179 = vmatmul.mubr.f32.gmra.mrb[30].mxu0 %v1973_v45  ;;  %3812 = vst [vmem:[#allocation19] sm:$0xff] %v1973_v45  ;;  %2292 = vmatmul.mubr.f32.gmra.mrb[30].mxu1 %v1973_v45 }
 0x8d3   :  { %2466 = vmatprep.mubr.f32.mxu0 %v5711_v0  ;;  %2537 = vmatprep.mubr.f32.mxu1 %v5711_v0 }
 0x8d6   :  { %2467 = vmatmul.mubr.f32.vlgmr.msra.gmra.mrb[16].mxu0 %v137_v49  ;;  %2538 = vmatmul.mubr.f32.vlgmr.msra.gmra.mrb[16].mxu1 %v137_v49 }
 0x8d7   :  { %4624 = vmatpush1.bf16.msra.mxu0 %v6395_v34  ;;  %4656 = vmatpush1.bf16.msra.mxu1 %v6398_v1 }
 0x8d8   :  { %4626 = vmatprep.subr.bf16.mxu0 %v6403_v5  ;;  %4658 = vmatprep.subr.bf16.mxu1 %v6405_v30 }
 0x8d9   :  { %2641 = vmatprep.mubr.f32.mxu0 %v5711_v0  ;;  %2712 = vmatprep.mubr.f32.mxu1 %v5711_v0 }
 0x8db   :  { %4628 = vmatpush1.bf16.msra.mxu0 %v6407_v17  ;;  %4660 = vmatpush1.bf16.msra.mxu1 %v6410_v8 }
 0x8dc   :  { %4630 = vmatprep.subr.bf16.mxu0 %v6415_v53  ;;  %4662 = vmatprep.subr.bf16.mxu1 %v6417_v3 }
 0x8df   :  { %4632 = vmatpush1.bf16.msra.mxu0 %v6419_v6  ;;  %4664 = vmatpush1.bf16.msra.mxu1 %v6422_v16 }
 0x8e0   :  { %4634 = vmatprep.subr.bf16.mxu0 %v6427_v29  ;;  %4666 = vmatprep.subr.bf16.mxu1 %v6429_v44 }
 0x8e3   :  { %4636 = vmatpush1.bf16.msra.mxu0 %v6431_v48  ;;  %4668 = vmatpush1.bf16.msra.mxu1 %v6434_v4 }
 0x8e4   :  { %4638 = vmatprep.subr.bf16.mxu0 %v6438_v22  ;;  %4670 = vmatprep.subr.bf16.mxu1 %v6440_v51 }
 0x8e7   :  { %4640 = vmatpush1.bf16.msra.mxu0 %v6443_v27  ;;  %4672 = vmatpush1.bf16.msra.mxu1 %v6447_v38 }
 0x8e8   :  { %4642 = vmatprep.subr.bf16.mxu0 %v6449_v57  ;;  %4674 = vmatprep.subr.bf16.mxu1 %v6451_v11 }
 0x8eb   :  { %4644 = vmatpush1.bf16.msra.mxu0 %v6454_v47  ;;  %4676 = vmatpush1.bf16.msra.mxu1 %v6458_v63 }
 0x8ec   :  { %4646 = vmatprep.subr.bf16.mxu0 %v6460_v10  ;;  %4678 = vmatprep.subr.bf16.mxu1 %v6463_v26 }
 0x8ef   :  { %4648 = vmatpush1.bf16.msra.mxu0 %v6466_v40  ;;  %4680 = vmatpush1.bf16.msra.mxu1 %v6470_v54 }
 0x8f0   :  { %4650 = vmatprep.subr.bf16.mxu0 %v6475_v14  ;;  %4682 = vmatprep.subr.bf16.mxu1 %v6477_v12 }
 0x8f3   :  { %4652 = vmatpush1.bf16.msra.mxu0 %v6479_v21  ;;  %4684 = vmatpush1.bf16.msra.mxu1 %v6482_v41 }
 0x8f4   :  { %4686 = vmatprep.subr.bf16.mxu0 %v6391_v46  ;;  %4718 = vmatprep.subr.bf16.mxu1 %v6393_v55 }
 0x9a9   :  { %v2468_v42 = vpop.f32.mrb[16].mxu0  ;;  %v2539_v50 = vpop.f32.mrb[16].mxu1 }
 0x9aa   :  { %v5101_v56 = vadd.f32 %v2468_v42, %v6535_v28  ;;  %v2470_v60 = vpop.f32.mrb[17].mxu0  ;;  %v2541_v13 = vpop.f32.mrb[17].mxu1  ;;  %v5117_v62 = vadd.f32 %v2539_v50, %v6550_v35 }
 0x9ab   :  { %v5102_v19 = vadd.f32 %v2470_v60, %v6539_v24  ;;  %v5118_v33 = vadd.f32 %v2541_v13, %v6545_v36 }
 0x9ac   :  { %v3893_v23 = vmul.f32 -1.442695, %v5101_v56 }
 0x9ad   :  { %v3894_v32 = vmul.f32 -1.442695, %v5102_v19  ;;  %v3895_v58 = vmul.f32 -1.442695, %v5118_v33 }
 0x9ae   :  { %5340 = vpow2.f32 %v3893_v23 }
 0x9af   :  { %5342 = vpow2.f32 %v3894_v32 }
 0x9b0   :  { %5344 = vpow2.f32 %v3895_v58 }
 0x9b1   :  { %5346 = vtanh.f32 %v5117_v62 }
 0x9b8   :  { %v5341_v37 = vpop.eup %5340 }
 0x9b9   :  { %v5343_v9 = vpop.eup %5342  ;;  %v2551_v39 = vadd.f32 1.0, %v5341_v37 }
 0x9ba   :  { %v2557_v18 = vadd.f32 1.0, %v5343_v9  ;;  %v5345_v43 = vpop.eup %5344 }
 0x9bb   :  { %5348 = vrcp.f32 %v2551_v39  ;;  %v5347_v7 = vpop.eup %5346  ;;  %v2564_v31 = vadd.f32 1.0, %v5345_v43 }
 0x9bc   :  { %5350 = vrcp.f32 %v2557_v18 }
 0x9bd   :  { %5352 = vrcp.f32 %v2564_v31 }
 0x9c5   :  { %v5349_v15 = vpop.eup %5348 }
 0x9c6   :  { %v5351_v59 = vpop.eup %5350  ;;  %v2568_v2 = vmul.f32 %v5349_v15, %v5347_v7 }
 0x9c7   :  { %v2567_v61 = vmul.f32 %v5351_v59, %v141_v20  ;;  %v5353_v45 = vpop.eup %5352 }
 0x9c9   :  { %v6553_v52 = vadd.f32 %v2568_v2, %v2567_v61 }
 0x9cb   :  { %5354 = vtanh.f32 %v6553_v52 }
 0x9d5   :  { %v5355_v49 = vpop.eup %5354 }
 0x9d6   :  { %v2571_v25 = vmul.f32 %v5355_v49, %v5353_v45 }
 0x9d8   :  { %2572 = vst [vmem:[#allocation18] sm:$0xff] %v2571_v25  ;;  %2642 = vmatmul.mubr.f32.vlgmr.msra.gmra.mrb[18].mxu0 %v2571_v25  ;;  %2713 = vmatmul.mubr.f32.vlgmr.msra.gmra.mrb[18].mxu1 %v2571_v25 }
 0x9d9   :  { %4688 = vmatpush1.bf16.msra.mxu0 %v6395_v34  ;;  %4720 = vmatpush1.bf16.msra.mxu1 %v6398_v1 }
 0x9da   :  { %4690 = vmatprep.subr.bf16.mxu0 %v6403_v5  ;;  %4722 = vmatprep.subr.bf16.mxu1 %v6405_v30 }
 0x9db   :  { %2817 = vmatprep.mubr.f32.mxu0 %v5711_v0  ;;  %2888 = vmatprep.mubr.f32.mxu1 %v5711_v0 }
 0x9dd   :  { %4692 = vmatpush1.bf16.msra.mxu0 %v6407_v17  ;;  %4724 = vmatpush1.bf16.msra.mxu1 %v6410_v8 }
 0x9de   :  { %4694 = vmatprep.subr.bf16.mxu0 %v6415_v53  ;;  %4726 = vmatprep.subr.bf16.mxu1 %v6417_v3 }
 0x9e1   :  { %4696 = vmatpush1.bf16.msra.mxu0 %v6419_v6  ;;  %4728 = vmatpush1.bf16.msra.mxu1 %v6422_v16 }
 0x9e2   :  { %4698 = vmatprep.subr.bf16.mxu0 %v6427_v29  ;;  %4730 = vmatprep.subr.bf16.mxu1 %v6429_v44 }
 0x9e5   :  { %4700 = vmatpush1.bf16.msra.mxu0 %v6431_v48  ;;  %4732 = vmatpush1.bf16.msra.mxu1 %v6434_v4 }
 0x9e6   :  { %4702 = vmatprep.subr.bf16.mxu0 %v6438_v22  ;;  %4734 = vmatprep.subr.bf16.mxu1 %v6440_v51 }
 0x9e9   :  { %4704 = vmatpush1.bf16.msra.mxu0 %v6443_v27  ;;  %4736 = vmatpush1.bf16.msra.mxu1 %v6447_v38 }
 0x9ea   :  { %4706 = vmatprep.subr.bf16.mxu0 %v6449_v57  ;;  %4738 = vmatprep.subr.bf16.mxu1 %v6451_v11 }
 0x9ed   :  { %4708 = vmatpush1.bf16.msra.mxu0 %v6454_v47  ;;  %4740 = vmatpush1.bf16.msra.mxu1 %v6458_v63 }
 0x9ee   :  { %4710 = vmatprep.subr.bf16.mxu0 %v6460_v10  ;;  %4742 = vmatprep.subr.bf16.mxu1 %v6463_v26 }
 0x9f1   :  { %4712 = vmatpush1.bf16.msra.mxu0 %v6466_v40  ;;  %4744 = vmatpush1.bf16.msra.mxu1 %v6470_v54 }
 0x9f2   :  { %4714 = vmatprep.subr.bf16.mxu0 %v6475_v14  ;;  %4746 = vmatprep.subr.bf16.mxu1 %v6477_v12 }
 0x9f5   :  { %4716 = vmatpush1.bf16.msra.mxu0 %v6479_v21  ;;  %4748 = vmatpush1.bf16.msra.mxu1 %v6482_v41 }
 0x9f6   :  { %4750 = vmatprep.subr.bf16.mxu0 %v6391_v46  ;;  %4782 = vmatprep.subr.bf16.mxu1 %v6393_v55 }
 0xaab   :  { %v2643_v42 = vpop.f32.mrb[18].mxu0  ;;  %v2714_v50 = vpop.f32.mrb[18].mxu1 }
 0xaac   :  { %v5103_v56 = vadd.f32 %v2643_v42, %v6535_v28  ;;  %v2645_v60 = vpop.f32.mrb[19].mxu0  ;;  %v2716_v13 = vpop.f32.mrb[19].mxu1  ;;  %v5119_v62 = vadd.f32 %v2714_v50, %v6550_v35 }
 0xaad   :  { %v5104_v19 = vadd.f32 %v2645_v60, %v6539_v24  ;;  %v5120_v33 = vadd.f32 %v2716_v13, %v6545_v36 }
 0xaae   :  { %v3896_v23 = vmul.f32 -1.442695, %v5103_v56 }
 0xaaf   :  { %v3897_v32 = vmul.f32 -1.442695, %v5104_v19  ;;  %v3898_v58 = vmul.f32 -1.442695, %v5120_v33 }
 0xab0   :  { %5356 = vpow2.f32 %v3896_v23 }
 0xab1   :  { %5358 = vpow2.f32 %v3897_v32 }
 0xab2   :  { %5360 = vpow2.f32 %v3898_v58 }
 0xab3   :  { %5362 = vtanh.f32 %v5119_v62 }
 0xaba   :  { %v5357_v37 = vpop.eup %5356 }
 0xabb   :  { %v5359_v9 = vpop.eup %5358  ;;  %v2726_v39 = vadd.f32 1.0, %v5357_v37 }
 0xabc   :  { %v2732_v18 = vadd.f32 1.0, %v5359_v9  ;;  %v5361_v43 = vpop.eup %5360 }
 0xabd   :  { %5364 = vrcp.f32 %v2726_v39  ;;  %v5363_v7 = vpop.eup %5362  ;;  %v2739_v2 = vadd.f32 1.0, %v5361_v43 }
 0xabe   :  { %5366 = vrcp.f32 %v2732_v18 }
 0xabf   :  { %5368 = vrcp.f32 %v2739_v2 }
 0xac7   :  { %v5365_v20 = vpop.eup %5364 }
 0xac8   :  { %v5367_v15 = vpop.eup %5366  ;;  %v2743_v59 = vmul.f32 %v5365_v20, %v5363_v7 }
 0xac9   :  { %v2742_v31 = vmul.f32 %v5367_v15, %v6553_v52  ;;  %v5369_v45 = vpop.eup %5368 }
 0xacb   :  { %v6595_v61 = vadd.f32 %v2743_v59, %v2742_v31 }
 0xacd   :  { %5370 = vtanh.f32 %v6595_v61 }
 0xad7   :  { %v5371_v49 = vpop.eup %5370 }
 0xad8   :  { %v2746_v25 = vmul.f32 %v5371_v49, %v5369_v45 }
 0xada   :  { %2748 = vst [vmem:[#allocation18 + $0x8] sm:$0xff] %v2746_v25  ;;  %2818 = vmatmul.mubr.f32.vlgmr.msra.gmra.mrb[20].mxu0 %v2746_v25  ;;  %2889 = vmatmul.mubr.f32.vlgmr.msra.gmra.mrb[20].mxu1 %v2746_v25 }
 0xadb   :  { %4752 = vmatpush1.bf16.msra.mxu0 %v6395_v34  ;;  %4784 = vmatpush1.bf16.msra.mxu1 %v6398_v1 }
 0xadc   :  { %4754 = vmatprep.subr.bf16.mxu0 %v6403_v5  ;;  %4786 = vmatprep.subr.bf16.mxu1 %v6405_v30 }
 0xadd   :  { %2993 = vmatprep.mubr.f32.mxu0 %v5711_v0  ;;  %3064 = vmatprep.mubr.f32.mxu1 %v5711_v0 }
 0xadf   :  { %4756 = vmatpush1.bf16.msra.mxu0 %v6407_v17  ;;  %4788 = vmatpush1.bf16.msra.mxu1 %v6410_v8 }
 0xae0   :  { %4758 = vmatprep.subr.bf16.mxu0 %v6415_v53  ;;  %4790 = vmatprep.subr.bf16.mxu1 %v6417_v3 }
 0xae3   :  { %4760 = vmatpush1.bf16.msra.mxu0 %v6419_v6  ;;  %4792 = vmatpush1.bf16.msra.mxu1 %v6422_v16 }
 0xae4   :  { %4762 = vmatprep.subr.bf16.mxu0 %v6427_v29  ;;  %4794 = vmatprep.subr.bf16.mxu1 %v6429_v44 }
 0xae7   :  { %4764 = vmatpush1.bf16.msra.mxu0 %v6431_v48  ;;  %4796 = vmatpush1.bf16.msra.mxu1 %v6434_v4 }
 0xae8   :  { %4766 = vmatprep.subr.bf16.mxu0 %v6438_v22  ;;  %4798 = vmatprep.subr.bf16.mxu1 %v6440_v51 }
 0xaeb   :  { %4768 = vmatpush1.bf16.msra.mxu0 %v6443_v27  ;;  %4800 = vmatpush1.bf16.msra.mxu1 %v6447_v38 }
 0xaec   :  { %4770 = vmatprep.subr.bf16.mxu0 %v6449_v57  ;;  %4802 = vmatprep.subr.bf16.mxu1 %v6451_v11 }
 0xaef   :  { %4772 = vmatpush1.bf16.msra.mxu0 %v6454_v47  ;;  %4804 = vmatpush1.bf16.msra.mxu1 %v6458_v63 }
 0xaf0   :  { %4774 = vmatprep.subr.bf16.mxu0 %v6460_v10  ;;  %4806 = vmatprep.subr.bf16.mxu1 %v6463_v26 }
 0xaf3   :  { %4776 = vmatpush1.bf16.msra.mxu0 %v6466_v40  ;;  %4808 = vmatpush1.bf16.msra.mxu1 %v6470_v54 }
 0xaf4   :  { %4778 = vmatprep.subr.bf16.mxu0 %v6475_v14  ;;  %4810 = vmatprep.subr.bf16.mxu1 %v6477_v12 }
 0xaf7   :  { %4780 = vmatpush1.bf16.msra.mxu0 %v6479_v21  ;;  %4812 = vmatpush1.bf16.msra.mxu1 %v6482_v41 }
 0xaf8   :  { %4814 = vmatprep.subr.bf16.mxu0 %v6391_v46  ;;  %4846 = vmatprep.subr.bf16.mxu1 %v6393_v55 }
 0xbad   :  { %v2819_v52 = vpop.f32.mrb[20].mxu0  ;;  %v2890_v42 = vpop.f32.mrb[20].mxu1 }
 0xbae   :  { %v5105_v50 = vadd.f32 %v2819_v52, %v6535_v28  ;;  %v2821_v56 = vpop.f32.mrb[21].mxu0  ;;  %v2892_v60 = vpop.f32.mrb[21].mxu1  ;;  %v5121_v58 = vadd.f32 %v2890_v42, %v6550_v35 }
 0xbaf   :  { %v5106_v13 = vadd.f32 %v2821_v56, %v6539_v24  ;;  %v5122_v32 = vadd.f32 %v2892_v60, %v6545_v36 }
 0xbb0   :  { %v3899_v19 = vmul.f32 -1.442695, %v5105_v50 }
 0xbb1   :  { %v3900_v23 = vmul.f32 -1.442695, %v5106_v13  ;;  %v3901_v33 = vmul.f32 -1.442695, %v5122_v32 }
 0xbb2   :  { %5372 = vpow2.f32 %v3899_v19 }
 0xbb3   :  { %5374 = vpow2.f32 %v3900_v23 }
 0xbb4   :  { %5376 = vpow2.f32 %v3901_v33 }
 0xbb5   :  { %5378 = vtanh.f32 %v5121_v58 }
 0xbbc   :  { %v5373_v62 = vpop.eup %5372 }
 0xbbd   :  { %v5375_v37 = vpop.eup %5374  ;;  %v2902_v9 = vadd.f32 1.0, %v5373_v62 }
 0xbbe   :  { %v2908_v39 = vadd.f32 1.0, %v5375_v37  ;;  %v5377_v18 = vpop.eup %5376 }
 0xbbf   :  { %5380 = vrcp.f32 %v2902_v9  ;;  %v5379_v43 = vpop.eup %5378  ;;  %v2915_v59 = vadd.f32 1.0, %v5377_v18 }
 0xbc0   :  { %5382 = vrcp.f32 %v2908_v39 }
 0xbc1   :  { %5384 = vrcp.f32 %v2915_v59 }
 0xbc9   :  { %v5381_v7 = vpop.eup %5380 }
 0xbca   :  { %v5383_v20 = vpop.eup %5382  ;;  %v2919_v15 = vmul.f32 %v5381_v7, %v5379_v43 }
 0xbcb   :  { %v2918_v2 = vmul.f32 %v5383_v20, %v6595_v61  ;;  %v5385_v45 = vpop.eup %5384 }
 0xbcd   :  { %v6637_v31 = vadd.f32 %v2919_v15, %v2918_v2 }
 0xbcf   :  { %5386 = vtanh.f32 %v6637_v31 }
 0xbd9   :  { %v5387_v49 = vpop.eup %5386 }
 0xbda   :  { %v2922_v25 = vmul.f32 %v5387_v49, %v5385_v45 }
 0xbdc   :  { %2924 = vst [vmem:[#allocation18 + $0x10] sm:$0xff] %v2922_v25  ;;  %2994 = vmatmul.mubr.f32.vlgmr.msra.gmra.mrb[22].mxu0 %v2922_v25  ;;  %3065 = vmatmul.mubr.f32.vlgmr.msra.gmra.mrb[22].mxu1 %v2922_v25 }
 0xbdd   :  { %4816 = vmatpush1.bf16.msra.mxu0 %v6395_v34  ;;  %4848 = vmatpush1.bf16.msra.mxu1 %v6398_v1 }
 0xbde   :  { %4818 = vmatprep.subr.bf16.mxu0 %v6403_v5  ;;  %4850 = vmatprep.subr.bf16.mxu1 %v6405_v30 }
 0xbdf   :  { %3169 = vmatprep.mubr.f32.mxu0 %v5711_v0  ;;  %3240 = vmatprep.mubr.f32.mxu1 %v5711_v0 }
 0xbe1   :  { %4820 = vmatpush1.bf16.msra.mxu0 %v6407_v17  ;;  %4852 = vmatpush1.bf16.msra.mxu1 %v6410_v8 }
 0xbe2   :  { %4822 = vmatprep.subr.bf16.mxu0 %v6415_v53  ;;  %4854 = vmatprep.subr.bf16.mxu1 %v6417_v3 }
 0xbe5   :  { %4824 = vmatpush1.bf16.msra.mxu0 %v6419_v6  ;;  %4856 = vmatpush1.bf16.msra.mxu1 %v6422_v16 }
 0xbe6   :  { %4826 = vmatprep.subr.bf16.mxu0 %v6427_v29  ;;  %4858 = vmatprep.subr.bf16.mxu1 %v6429_v44 }
 0xbe9   :  { %4828 = vmatpush1.bf16.msra.mxu0 %v6431_v48  ;;  %4860 = vmatpush1.bf16.msra.mxu1 %v6434_v4 }
 0xbea   :  { %4830 = vmatprep.subr.bf16.mxu0 %v6438_v22  ;;  %4862 = vmatprep.subr.bf16.mxu1 %v6440_v51 }
 0xbed   :  { %4832 = vmatpush1.bf16.msra.mxu0 %v6443_v27  ;;  %4864 = vmatpush1.bf16.msra.mxu1 %v6447_v38 }
 0xbee   :  { %4834 = vmatprep.subr.bf16.mxu0 %v6449_v57  ;;  %4866 = vmatprep.subr.bf16.mxu1 %v6451_v11 }
 0xbf1   :  { %4836 = vmatpush1.bf16.msra.mxu0 %v6454_v47  ;;  %4868 = vmatpush1.bf16.msra.mxu1 %v6458_v63 }
 0xbf2   :  { %4838 = vmatprep.subr.bf16.mxu0 %v6460_v10  ;;  %4870 = vmatprep.subr.bf16.mxu1 %v6463_v26 }
 0xbf5   :  { %4840 = vmatpush1.bf16.msra.mxu0 %v6466_v40  ;;  %4872 = vmatpush1.bf16.msra.mxu1 %v6470_v54 }
 0xbf6   :  { %4842 = vmatprep.subr.bf16.mxu0 %v6475_v14  ;;  %4874 = vmatprep.subr.bf16.mxu1 %v6477_v12 }
 0xbf9   :  { %4844 = vmatpush1.bf16.msra.mxu0 %v6479_v21  ;;  %4876 = vmatpush1.bf16.msra.mxu1 %v6482_v41 }
 0xbfa   :  { %4878 = vmatprep.subr.bf16.mxu0 %v6391_v46  ;;  %4910 = vmatprep.subr.bf16.mxu1 %v6393_v55 }
 0xcaf   :  { %v2995_v61 = vpop.f32.mrb[22].mxu0  ;;  %v3066_v52 = vpop.f32.mrb[22].mxu1 }
 0xcb0   :  { %v5107_v42 = vadd.f32 %v2995_v61, %v6535_v28  ;;  %v2997_v50 = vpop.f32.mrb[23].mxu0  ;;  %v3068_v56 = vpop.f32.mrb[23].mxu1  ;;  %v5123_v33 = vadd.f32 %v3066_v52, %v6550_v35 }
 0xcb1   :  { %v5108_v60 = vadd.f32 %v2997_v50, %v6539_v24  ;;  %v5124_v23 = vadd.f32 %v3068_v56, %v6545_v36 }
 0xcb2   :  { %v3902_v13 = vmul.f32 -1.442695, %v5107_v42 }
 0xcb3   :  { %v3903_v19 = vmul.f32 -1.442695, %v5108_v60  ;;  %v3904_v32 = vmul.f32 -1.442695, %v5124_v23 }
 0xcb4   :  { %5388 = vpow2.f32 %v3902_v13 }
 0xcb5   :  { %5390 = vpow2.f32 %v3903_v19 }
 0xcb6   :  { %5392 = vpow2.f32 %v3904_v32 }
 0xcb7   :  { %5394 = vtanh.f32 %v5123_v33 }
 0xcbe   :  { %v5389_v58 = vpop.eup %5388 }
 0xcbf   :  { %v5391_v62 = vpop.eup %5390  ;;  %v3078_v37 = vadd.f32 1.0, %v5389_v58 }
 0xcc0   :  { %v3084_v9 = vadd.f32 1.0, %v5391_v62  ;;  %v5393_v39 = vpop.eup %5392 }
 0xcc1   :  { %5396 = vrcp.f32 %v3078_v37  ;;  %v5395_v18 = vpop.eup %5394  ;;  %v3091_v15 = vadd.f32 1.0, %v5393_v39 }
 0xcc2   :  { %5398 = vrcp.f32 %v3084_v9 }
 0xcc3   :  { %5400 = vrcp.f32 %v3091_v15 }
 0xccb   :  { %v5397_v43 = vpop.eup %5396 }
 0xccc   :  { %v5399_v7 = vpop.eup %5398  ;;  %v3095_v20 = vmul.f32 %v5397_v43, %v5395_v18 }
 0xccd   :  { %v3094_v59 = vmul.f32 %v5399_v7, %v6637_v31  ;;  %v5401_v45 = vpop.eup %5400 }
 0xccf   :  { %v6679_v2 = vadd.f32 %v3095_v20, %v3094_v59 }
 0xcd1   :  { %5402 = vtanh.f32 %v6679_v2 }
 0xcdb   :  { %v5403_v49 = vpop.eup %5402 }
 0xcdc   :  { %v3098_v25 = vmul.f32 %v5403_v49, %v5401_v45 }
 0xcde   :  { %3100 = vst [vmem:[#allocation18 + $0x18] sm:$0xff] %v3098_v25  ;;  %3170 = vmatmul.mubr.f32.vlgmr.msra.gmra.mrb[24].mxu0 %v3098_v25  ;;  %3241 = vmatmul.mubr.f32.vlgmr.msra.gmra.mrb[24].mxu1 %v3098_v25 }
 0xcdf   :  { %4880 = vmatpush1.bf16.msra.mxu0 %v6395_v34  ;;  %4912 = vmatpush1.bf16.msra.mxu1 %v6398_v1 }
 0xce0   :  { %4882 = vmatprep.subr.bf16.mxu0 %v6403_v5  ;;  %4914 = vmatprep.subr.bf16.mxu1 %v6405_v30 }
 0xce1   :  { %3345 = vmatprep.mubr.f32.mxu0 %v5711_v0  ;;  %3416 = vmatprep.mubr.f32.mxu1 %v5711_v0 }
 0xce3   :  { %4884 = vmatpush1.bf16.msra.mxu0 %v6407_v17  ;;  %4916 = vmatpush1.bf16.msra.mxu1 %v6410_v8 }
 0xce4   :  { %4886 = vmatprep.subr.bf16.mxu0 %v6415_v53  ;;  %4918 = vmatprep.subr.bf16.mxu1 %v6417_v3 }
 0xce7   :  { %4888 = vmatpush1.bf16.msra.mxu0 %v6419_v6  ;;  %4920 = vmatpush1.bf16.msra.mxu1 %v6422_v16 }
 0xce8   :  { %4890 = vmatprep.subr.bf16.mxu0 %v6427_v29  ;;  %4922 = vmatprep.subr.bf16.mxu1 %v6429_v44 }
 0xceb   :  { %4892 = vmatpush1.bf16.msra.mxu0 %v6431_v48  ;;  %4924 = vmatpush1.bf16.msra.mxu1 %v6434_v4 }
 0xcec   :  { %4894 = vmatprep.subr.bf16.mxu0 %v6438_v22  ;;  %4926 = vmatprep.subr.bf16.mxu1 %v6440_v51 }
 0xcef   :  { %4896 = vmatpush1.bf16.msra.mxu0 %v6443_v27  ;;  %4928 = vmatpush1.bf16.msra.mxu1 %v6447_v38 }
 0xcf0   :  { %4898 = vmatprep.subr.bf16.mxu0 %v6449_v57  ;;  %4930 = vmatprep.subr.bf16.mxu1 %v6451_v11 }
 0xcf3   :  { %4900 = vmatpush1.bf16.msra.mxu0 %v6454_v47  ;;  %4932 = vmatpush1.bf16.msra.mxu1 %v6458_v63 }
 0xcf4   :  { %4902 = vmatprep.subr.bf16.mxu0 %v6460_v10  ;;  %4934 = vmatprep.subr.bf16.mxu1 %v6463_v26 }
 0xcf7   :  { %4904 = vmatpush1.bf16.msra.mxu0 %v6466_v40  ;;  %4936 = vmatpush1.bf16.msra.mxu1 %v6470_v54 }
 0xcf8   :  { %4906 = vmatprep.subr.bf16.mxu0 %v6475_v14  ;;  %4938 = vmatprep.subr.bf16.mxu1 %v6477_v12 }
 0xcfb   :  { %4908 = vmatpush1.bf16.msra.mxu0 %v6479_v21  ;;  %4940 = vmatpush1.bf16.msra.mxu1 %v6482_v41 }
 0xcfc   :  { %4942 = vmatprep.subr.bf16.mxu0 %v6391_v46  ;;  %4974 = vmatprep.subr.bf16.mxu1 %v6393_v55 }
 0xdb1   :  { %v3171_v31 = vpop.f32.mrb[24].mxu0  ;;  %v3242_v61 = vpop.f32.mrb[24].mxu1 }
 0xdb2   :  { %v5109_v52 = vadd.f32 %v3171_v31, %v6535_v28  ;;  %v3173_v42 = vpop.f32.mrb[25].mxu0  ;;  %v3244_v50 = vpop.f32.mrb[25].mxu1  ;;  %v5125_v32 = vadd.f32 %v3242_v61, %v6550_v35 }
 0xdb3   :  { %v5110_v56 = vadd.f32 %v3173_v42, %v6539_v24  ;;  %v5126_v19 = vadd.f32 %v3244_v50, %v6545_v36 }
 0xdb4   :  { %v3905_v60 = vmul.f32 -1.442695, %v5109_v52 }
 0xdb5   :  { %v3906_v13 = vmul.f32 -1.442695, %v5110_v56  ;;  %v3907_v23 = vmul.f32 -1.442695, %v5126_v19 }
 0xdb6   :  { %5404 = vpow2.f32 %v3905_v60 }
 0xdb7   :  { %5406 = vpow2.f32 %v3906_v13 }
 0xdb8   :  { %5408 = vpow2.f32 %v3907_v23 }
 0xdb9   :  { %5410 = vtanh.f32 %v5125_v32 }
 0xdc0   :  { %v5405_v33 = vpop.eup %5404 }
 0xdc1   :  { %v5407_v58 = vpop.eup %5406  ;;  %v3254_v62 = vadd.f32 1.0, %v5405_v33 }
 0xdc2   :  { %v3260_v37 = vadd.f32 1.0, %v5407_v58  ;;  %v5409_v9 = vpop.eup %5408 }
 0xdc3   :  { %5412 = vrcp.f32 %v3254_v62  ;;  %v5411_v39 = vpop.eup %5410  ;;  %v3267_v20 = vadd.f32 1.0, %v5409_v9 }
 0xdc4   :  { %5414 = vrcp.f32 %v3260_v37 }
 0xdc5   :  { %5416 = vrcp.f32 %v3267_v20 }
 0xdcd   :  { %v5413_v18 = vpop.eup %5412 }
 0xdce   :  { %v5415_v43 = vpop.eup %5414  ;;  %v3271_v7 = vmul.f32 %v5413_v18, %v5411_v39 }
 0xdcf   :  { %v3270_v15 = vmul.f32 %v5415_v43, %v6679_v2  ;;  %v5417_v45 = vpop.eup %5416 }
 0xdd1   :  { %v6721_v59 = vadd.f32 %v3271_v7, %v3270_v15 }
 0xdd3   :  { %5418 = vtanh.f32 %v6721_v59 }
 0xddd   :  { %v5419_v49 = vpop.eup %5418 }
 0xdde   :  { %v3274_v25 = vmul.f32 %v5419_v49, %v5417_v45 }
 0xde0   :  { %3276 = vst [vmem:[#allocation18 + $0x20] sm:$0xff] %v3274_v25  ;;  %3346 = vmatmul.mubr.f32.vlgmr.msra.gmra.mrb[26].mxu0 %v3274_v25  ;;  %3417 = vmatmul.mubr.f32.vlgmr.msra.gmra.mrb[26].mxu1 %v3274_v25 }
 0xde1   :  { %4944 = vmatpush1.bf16.msra.mxu0 %v6395_v34  ;;  %4976 = vmatpush1.bf16.msra.mxu1 %v6398_v1 }
 0xde2   :  { %4946 = vmatprep.subr.bf16.mxu0 %v6403_v5  ;;  %4978 = vmatprep.subr.bf16.mxu1 %v6405_v30 }
 0xde3   :  { %3521 = vmatprep.mubr.f32.mxu0 %v5711_v0  ;;  %3592 = vmatprep.mubr.f32.mxu1 %v5711_v0 }
 0xde5   :  { %4948 = vmatpush1.bf16.msra.mxu0 %v6407_v17  ;;  %4980 = vmatpush1.bf16.msra.mxu1 %v6410_v8 }
 0xde6   :  { %4950 = vmatprep.subr.bf16.mxu0 %v6415_v53  ;;  %4982 = vmatprep.subr.bf16.mxu1 %v6417_v3 }
 0xde9   :  { %4952 = vmatpush1.bf16.msra.mxu0 %v6419_v6  ;;  %4984 = vmatpush1.bf16.msra.mxu1 %v6422_v16 }
 0xdea   :  { %4954 = vmatprep.subr.bf16.mxu0 %v6427_v29  ;;  %4986 = vmatprep.subr.bf16.mxu1 %v6429_v44 }
 0xded   :  { %4956 = vmatpush1.bf16.msra.mxu0 %v6431_v48  ;;  %4988 = vmatpush1.bf16.msra.mxu1 %v6434_v4 }
 0xdee   :  { %4958 = vmatprep.subr.bf16.mxu0 %v6438_v22  ;;  %4990 = vmatprep.subr.bf16.mxu1 %v6440_v51 }
 0xdf1   :  { %4960 = vmatpush1.bf16.msra.mxu0 %v6443_v27  ;;  %4992 = vmatpush1.bf16.msra.mxu1 %v6447_v38 }
 0xdf2   :  { %4962 = vmatprep.subr.bf16.mxu0 %v6449_v57  ;;  %4994 = vmatprep.subr.bf16.mxu1 %v6451_v11 }
 0xdf5   :  { %4964 = vmatpush1.bf16.msra.mxu0 %v6454_v47  ;;  %4996 = vmatpush1.bf16.msra.mxu1 %v6458_v63 }
 0xdf6   :  { %4966 = vmatprep.subr.bf16.mxu0 %v6460_v10  ;;  %4998 = vmatprep.subr.bf16.mxu1 %v6463_v26 }
 0xdf9   :  { %4968 = vmatpush1.bf16.msra.mxu0 %v6466_v40  ;;  %5000 = vmatpush1.bf16.msra.mxu1 %v6470_v54 }
 0xdfa   :  { %4970 = vmatprep.subr.bf16.mxu0 %v6475_v14  ;;  %5002 = vmatprep.subr.bf16.mxu1 %v6477_v12 }
 0xdfd   :  { %4972 = vmatpush1.bf16.msra.mxu0 %v6479_v21  ;;  %5004 = vmatpush1.bf16.msra.mxu1 %v6482_v41 }
 0xdfe   :  { %5006 = vmatprep.subr.bf16.mxu0 %v6391_v46  ;;  %5038 = vmatprep.subr.bf16.mxu1 %v6393_v55 }
 0xeb3   :  { %v3347_v2 = vpop.f32.mrb[26].mxu0  ;;  %v3418_v31 = vpop.f32.mrb[26].mxu1 }
 0xeb4   :  { %v5111_v61 = vadd.f32 %v3347_v2, %v6535_v28  ;;  %v3349_v52 = vpop.f32.mrb[27].mxu0  ;;  %v3420_v42 = vpop.f32.mrb[27].mxu1  ;;  %v5127_v23 = vadd.f32 %v3418_v31, %v6550_v35 }
 0xeb5   :  { %v5112_v50 = vadd.f32 %v3349_v52, %v6539_v24  ;;  %v5128_v13 = vadd.f32 %v3420_v42, %v6545_v36 }
 0xeb6   :  { %v3908_v56 = vmul.f32 -1.442695, %v5111_v61 }
 0xeb7   :  { %v3909_v60 = vmul.f32 -1.442695, %v5112_v50  ;;  %v3910_v19 = vmul.f32 -1.442695, %v5128_v13 }
 0xeb8   :  { %5420 = vpow2.f32 %v3908_v56 }
 0xeb9   :  { %5422 = vpow2.f32 %v3909_v60 }
 0xeba   :  { %5424 = vpow2.f32 %v3910_v19 }
 0xebb   :  { %5426 = vtanh.f32 %v5127_v23 }
 0xec2   :  { %v5421_v46 = vpop.eup %5420 }
 0xec3   :  { %v5423_v32 = vpop.eup %5422  ;;  %v3430_v55 = vadd.f32 1.0, %v5421_v46 }
 0xec4   :  { %v3436_v33 = vadd.f32 1.0, %v5423_v32  ;;  %v5425_v58 = vpop.eup %5424 }
 0xec5   :  { %5428 = vrcp.f32 %v3430_v55  ;;  %v5427_v62 = vpop.eup %5426  ;;  %v3443_v18 = vadd.f32 1.0, %v5425_v58 }
 0xec6   :  { %5430 = vrcp.f32 %v3436_v33 }
 0xec7   :  { %5432 = vrcp.f32 %v3443_v18 }
 0xecf   :  { %v5429_v37 = vpop.eup %5428 }
 0xed0   :  { %v5431_v9 = vpop.eup %5430  ;;  %v3447_v39 = vmul.f32 %v5429_v37, %v5427_v62 }
 0xed1   :  { %v3446_v43 = vmul.f32 %v5431_v9, %v6721_v59  ;;  %v5433_v20 = vpop.eup %5432 }
 0xed3   :  { %v6763_v7 = vadd.f32 %v3447_v39, %v3446_v43 }
 0xed5   :  { %5434 = vtanh.f32 %v6763_v7 }
 0xedf   :  { %v5435_v15 = vpop.eup %5434 }
 0xee0   :  { %v3450_v45 = vmul.f32 %v5435_v15, %v5433_v20 }
 0xee2   :  { %3452 = vst [vmem:[#allocation18 + $0x28] sm:$0xff] %v3450_v45  ;;  %3522 = vmatmul.mubr.f32.vlgmr.msra.gmra.mrb[28].mxu0 %v3450_v45  ;;  %3593 = vmatmul.mubr.f32.vlgmr.msra.gmra.mrb[28].mxu1 %v3450_v45 }
 0xee3   :  { %5008 = vmatpush1.bf16.msra.mxu0 %v6395_v34  ;;  %5040 = vmatpush1.bf16.msra.mxu1 %v6398_v1 }
 0xee4   :  { %5010 = vmatprep.subr.bf16.mxu0 %v6403_v5  ;;  %5042 = vmatprep.subr.bf16.mxu1 %v6405_v30 }
 0xee5   :  { %3697 = vmatprep.mubr.f32.mxu0 %v5711_v0  ;;  %3768 = vmatprep.mubr.f32.mxu1 %v5711_v0 }
 0xee7   :  { %5012 = vmatpush1.bf16.msra.mxu0 %v6407_v17  ;;  %5044 = vmatpush1.bf16.msra.mxu1 %v6410_v8 }
 0xee8   :  { %5014 = vmatprep.subr.bf16.mxu0 %v6415_v53  ;;  %5046 = vmatprep.subr.bf16.mxu1 %v6417_v3 }
 0xeeb   :  { %5016 = vmatpush1.bf16.msra.mxu0 %v6419_v6  ;;  %5048 = vmatpush1.bf16.msra.mxu1 %v6422_v16 }
 0xeec   :  { %5018 = vmatprep.subr.bf16.mxu0 %v6427_v29  ;;  %5050 = vmatprep.subr.bf16.mxu1 %v6429_v44 }
 0xeef   :  { %5020 = vmatpush1.bf16.msra.mxu0 %v6431_v48  ;;  %5052 = vmatpush1.bf16.msra.mxu1 %v6434_v4 }
 0xef0   :  { %5022 = vmatprep.subr.bf16.mxu0 %v6438_v22  ;;  %5054 = vmatprep.subr.bf16.mxu1 %v6440_v51 }
 0xef3   :  { %5024 = vmatpush1.bf16.msra.mxu0 %v6443_v27  ;;  %5056 = vmatpush1.bf16.msra.mxu1 %v6447_v38 }
 0xef4   :  { %5026 = vmatprep.subr.bf16.mxu0 %v6449_v57  ;;  %5058 = vmatprep.subr.bf16.mxu1 %v6451_v11 }
 0xef7   :  { %5028 = vmatpush1.bf16.msra.mxu0 %v6454_v47  ;;  %5060 = vmatpush1.bf16.msra.mxu1 %v6458_v63 }
 0xef8   :  { %5030 = vmatprep.subr.bf16.mxu0 %v6460_v10  ;;  %5062 = vmatprep.subr.bf16.mxu1 %v6463_v26 }
 0xefb   :  { %5032 = vmatpush1.bf16.msra.mxu0 %v6466_v40  ;;  %5064 = vmatpush1.bf16.msra.mxu1 %v6470_v54 }
 0xefc   :  { %5034 = vmatprep.subr.bf16.mxu0 %v6475_v14  ;;  %5066 = vmatprep.subr.bf16.mxu1 %v6477_v12 }
 0xeff   :  { %5036 = vmatpush1.bf16.msra.mxu0 %v6479_v21  ;;  %5068 = vmatpush1.bf16.msra.mxu1 %v6482_v41 }
 0xfb5   :  { %v3523_v0 = vpop.f32.mrb[28].mxu0  ;;  %v3594_v34 = vpop.f32.mrb[28].mxu1 }
 0xfb6   :  { %v5113_v1 = vadd.f32 %v3523_v0, %v6535_v28  ;;  %v3525_v5 = vpop.f32.mrb[29].mxu0  ;;  %v3596_v30 = vpop.f32.mrb[29].mxu1  ;;  %v5129_v16 = vadd.f32 %v3594_v34, %v6550_v35 }
 0xfb7   :  { %v5114_v17 = vadd.f32 %v3525_v5, %v6539_v24  ;;  %v5130_v3 = vadd.f32 %v3596_v30, %v6545_v36 }
 0xfb8   :  { %v3911_v8 = vmul.f32 -1.442695, %v5113_v1 }
 0xfb9   :  { %v3912_v53 = vmul.f32 -1.442695, %v5114_v17  ;;  %v3913_v6 = vmul.f32 -1.442695, %v5130_v3 }
 0xfba   :  { %5436 = vpow2.f32 %v3911_v8 }
 0xfbb   :  { %5438 = vpow2.f32 %v3912_v53 }
 0xfbc   :  { %5440 = vpow2.f32 %v3913_v6 }
 0xfbd   :  { %5442 = vtanh.f32 %v5129_v16 }
 0xfc4   :  { %v5437_v29 = vpop.eup %5436 }
 0xfc5   :  { %v5439_v44 = vpop.eup %5438  ;;  %v3606_v48 = vadd.f32 1.0, %v5437_v29 }
 0xfc6   :  { %v3612_v4 = vadd.f32 1.0, %v5439_v44  ;;  %v5441_v22 = vpop.eup %5440 }
 0xfc7   :  { %5444 = vrcp.f32 %v3606_v48  ;;  %v5443_v51 = vpop.eup %5442  ;;  %v3619_v11 = vadd.f32 1.0, %v5441_v22 }
 0xfc8   :  { %5446 = vrcp.f32 %v3612_v4 }
 0xfc9   :  { %5448 = vrcp.f32 %v3619_v11 }
 0xfd1   :  { %v5445_v27 = vpop.eup %5444 }
 0xfd2   :  { %v5447_v38 = vpop.eup %5446  ;;  %v3623_v57 = vmul.f32 %v5445_v27, %v5443_v51 }
 0xfd3   :  { %v3622_v47 = vmul.f32 %v5447_v38, %v6763_v7  ;;  %v5449_v10 = vpop.eup %5448 }
 0xfd5   :  { %v3624_v63 = vadd.f32 %v3623_v57, %v3622_v47 }
 0xfd7   :  { %5450 = vtanh.f32 %v3624_v63 }
 0xfe1   :  { %v5451_v26 = vpop.eup %5450 }
 0xfe2   :  { %v3626_v40 = vmul.f32 %v5451_v26, %v5449_v10 }
 0xfe4   :  { %3628 = vst [vmem:[#allocation18 + $0x30] sm:$0xff] %v3626_v40  ;;  %3698 = vmatmul.mubr.f32.vlgmr.msra.gmra.mrb[30].mxu0 %v3626_v40  ;;  %3769 = vmatmul.mubr.f32.vlgmr.msra.gmra.mrb[30].mxu1 %v3626_v40 }
0x10b7   :  { %v3699_v54 = vpop.f32.mrb[30].mxu0  ;;  %v3770_v14 = vpop.f32.mrb[30].mxu1 }
0x10b8   :  { %v5115_v12 = vadd.f32 %v3699_v54, %v6535_v28  ;;  %v3701_v21 = vpop.f32.mrb[31].mxu0  ;;  %v3772_v41 = vpop.f32.mrb[31].mxu1  ;;  %v5131_v61 = vadd.f32 %v3770_v14, %v6550_v35 }
0x10b9   :  { %v5116_v59 = vadd.f32 %v3701_v21, %v6539_v24  ;;  %v5132_v2 = vadd.f32 %v3772_v41, %v6545_v36 }
0x10ba   :  { %v3914_v49 = vmul.f32 -1.442695, %v5115_v12 }
0x10bb   :  { %v3915_v25 = vmul.f32 -1.442695, %v5116_v59  ;;  %v3916_v31 = vmul.f32 -1.442695, %v5132_v2 }
0x10bc   :  { %5452 = vpow2.f32 %v3914_v49 }
0x10bd   :  { %5454 = vpow2.f32 %v3915_v25 }
0x10be   :  { %5456 = vpow2.f32 %v3916_v31 }
0x10bf   :  { %5458 = vtanh.f32 %v5131_v61 }
0x10c6   :  { %v5453_v52 = vpop.eup %5452 }
0x10c7   :  { %v5455_v42 = vpop.eup %5454  ;;  %v3782_v50 = vadd.f32 1.0, %v5453_v52 }
0x10c8   :  { %v3788_v56 = vadd.f32 1.0, %v5455_v42  ;;  %v5457_v28 = vpop.eup %5456 }
0x10c9   :  { %5460 = vrcp.f32 %v3782_v50  ;;  %v5459_v60 = vpop.eup %5458  ;;  %v3795_v23 = vadd.f32 1.0, %v5457_v28 }
0x10ca   :  { %5462 = vrcp.f32 %v3788_v56 }
0x10cb   :  { %5464 = vrcp.f32 %v3795_v23 }
0x10d3   :  { %v5461_v24 = vpop.eup %5460 }
0x10d4   :  { %v5463_v13 = vpop.eup %5462  ;;  %v3799_v19 = vmul.f32 %v5461_v24, %v5459_v60 }
0x10d5   :  { %v3798_v46 = vmul.f32 %v5463_v13, %v3624_v63  ;;  %v5465_v36 = vpop.eup %5464 }
0x10d7   :  { %v3800_v32 = vadd.f32 %v3799_v19, %v3798_v46 }
0x10d9   :  { %3817 = vst [vmem:[#allocation21 + $0x8] sm:$0xff] %v3800_v32  ;;  %5466 = vtanh.f32 %v3800_v32 }
0x10e3   :  { %v5467_v35 = vpop.eup %5466 }
0x10e4   :  { %v3802_v55 = vmul.f32 %v5467_v35, %v5465_v36 }
0x10e6   :  { %3804 = vst [vmem:[#allocation18 + $0x38] sm:$0xff] %v3802_v55  ;;  %3813 = vst [vmem:[#allocation19 + $0x8] sm:$0xff] %v3802_v55 }
0x10e7   :  { %5633 = shalt.err (!%p5630_p4)
}
0x10e8   :  { %s5634_s17 = scalar_lea.hbm %s6876_s10, 256 }
0x10e9   :  { %p5635_p5 = scmp.ne.s32.totalorder %s6876_s10, %s5634_s17  ;;  %p5638_p6 = scmp.lt.u32.totalorder %s5634_s17, %s6876_s10 }
0x10eb   :  { %p5640_p7 = pnand %p5638_p6, %p5635_p5 }
0x10ed   :  { %5643 = shalt.err (!%p5640_p7)
}
0x10ee   :  { %3841 = dma.vmem_to_hbm [thread:$0]  %s3836_s14, 256, %s6876_s10, [#allocation20], %s5702_s29, %s5702_s29, %s5703_s30  }
0x10ef   :  { %s5644_s0 = scalar_lea.vmem %s6807_s6, 1024  ;;  %p5649_p9 = scmp.lt.s32.totalorder %s6807_s6, %s6807_s6 }
0x10f0   :  { %p5645_p8 = scmp.ne.s32.totalorder %s6807_s6, %s5644_s0  ;;  %p5650_p10 = scmp.lt.s32.totalorder %s5644_s0, %s5644_s0 }
0x10f2   :  { %p5651_p11 = por %p5650_p10, %p5649_p9 }
0x10f4   :  { %p5652_p12 = pnand %p5651_p11, %p5645_p8 }
0x10f6   :  { %5655 = shalt.err (!%p5652_p12)
}
0x10f7   :  { %s5656_s13 = scalar_lea.hbm %s6875_s9, 1024 }
0x10f8   :  { %p5657_p13 = scmp.ne.s32.totalorder %s6875_s9, %s5656_s13  ;;  %p5660_p0 = scmp.lt.u32.totalorder %s5656_s13, %s6875_s9 }
0x10fa   :  { %p5662_p1 = pnand %p5660_p0, %p5657_p13 }
0x10fc   :  { %5665 = shalt.err (!%p5662_p1)
}
0x10fd   :  { %3829 = dma.vmem_to_hbm [thread:$0]  %s6807_s6, 1024, %s6875_s9, [#allocation8], %s5702_s29, %s5702_s29, %s5703_s30  }
0x10fe   :  { %s5666_s18 = scalar_lea.vmem %s6809_s16, 256  ;;  %p5671_p3 = scmp.lt.s32.totalorder %s6809_s16, %s6809_s16 }
0x10ff   :  { %p5667_p2 = scmp.ne.s32.totalorder %s6809_s16, %s5666_s18  ;;  %p5672_p4 = scmp.lt.s32.totalorder %s5666_s18, %s5666_s18 }
0x1101   :  { %p5673_p5 = por %p5672_p4, %p5671_p3 }
0x1103   :  { %p5674_p6 = pnand %p5673_p5, %p5667_p2 }
0x1105   :  { %5677 = shalt.err (!%p5674_p6)
}
0x1106   :  { %s5678_s15 = scalar_lea.hbm %s6877_s11, 256 }
0x1107   :  { %p5679_p7 = scmp.ne.s32.totalorder %s6877_s11, %s5678_s15  ;;  %p5682_p8 = scmp.lt.u32.totalorder %s5678_s15, %s6877_s11 }
0x1109   :  { %p5684_p9 = pnand %p5682_p8, %p5679_p7 }
0x110b   :  { %5687 = shalt.err (!%p5684_p9)
}
0x110c   :  { %3853 = dma.vmem_to_hbm [thread:$0]  %s6809_s16, 256, %s6877_s11, [#allocation20], %s5702_s29, %s5702_s29, %s5703_s30  }
0x110d   :  { %5696 = dma.done.wait [#allocation8], 1024  }
0x110e   :  { %5697 = vsyncadd [#allocation8], 4294966272 }
0x110f   :  { %5698 = dma.done.wait [#allocation20], 512  }
0x1110   :  { %5699 = vsyncadd [#allocation20], 4294966784 }
0x1111   :  { %3863 = vsyncpa [#allocation7], 1 }
0x1112   :  { %3864 = vsyncpa [#allocation10], 1 }
0x1113   :  { %3865 = vsyncpa [#allocation13], 1 }
0x1114   :  { %3866 = vsyncpa [#allocation16], 1 }
0x1115   :  { %3867 = vsyncpa [#allocation8], 1 }
0x1116   :  { %3868 = vsyncpa [#allocation20], 1 }

</bundles_post_ra>
